<compile_context>
chip_gen: v5e
topology: v5e:2x2
jax: 0.10.0
libtpu: 0.0.40
codegen_flags: <defaults>
</compile_context>

<pallas_src>
import math

import jax
import jax.numpy as jnp
from jax.experimental import pallas as pl
from jax.experimental.pallas import tpu as pltpu

P_PACK = 16  # conv output positions packed per MXU row (=> P_PACK * C0 = 128 lanes)


# ------------------------------------------------------------------ helpers
def _bn_scale_shift(gamma, beta, mean, var, eps=1e-5):
    scale = gamma / jnp.sqrt(var + eps)
    shift = beta - mean * scale
    return (scale.reshape(1, -1).astype(jnp.float32),
            shift.reshape(1, -1).astype(jnp.float32))


def _pack_toeplitz(w_kc, pack):
    # w_kc: (K, C0) first-conv weight, tap-major.  Build the block-Toeplitz weight
    #   W[m, p*C0 + c] = w_kc[m - 2p, c]   (0 <= m - 2p < K, else 0)
    # so that a contiguous window of KSPLIT*32 input samples (stride 2*pack between
    # windows) times W yields `pack` consecutive stride-2 conv outputs for all C0
    # channels, laid out lane = p*C0 + c.  Rows are split into 32-sample chunks so the
    # kernel can feed the MXU straight from the (rows of 32 samples) reshaped signal.
    K, C = w_kc.shape
    kw = K + 2 * (pack - 1)
    kwp = ((kw + 31) // 32) * 32
    wt = jnp.zeros((kwp, pack * C), jnp.float32)
    for p in range(pack):
        wt = wt.at[2 * p:2 * p + K, p * C:(p + 1) * C].set(w_kc)
    return wt.reshape(kwp // 32, 32, pack * C).astype(jnp.bfloat16)


# ------------------------------------------------------------------ fused kernel
def _make_fused_kernel(meta, G, P, C0, KSPLIT, CMAX):
    # meta: per InvertedResidual block static (cin, cout, stride, lin, lout)
    nblk = len(meta)

    def kernel(*refs):
        xr_ref = refs[0]                       # (NR, 32) f32   padded signal rows
        wt_ref = refs[1]                       # (KSPLIT, 32, P*C0) bf16 Toeplitz weight
        s0_ref, b0_ref = refs[2], refs[3]      # (1, P*C0) f32  folded BN (lane-tiled)
        blk = refs[4:4 + 6 * nblk]
        (w_last_ref, s_last_ref, b_last_ref,
         w_cls_ref, b_cls_ref) = refs[4 + 6 * nblk:9 + 6 * nblk]
        out_ref = refs[9 + 6 * nblk]           # (1, n_labels)
        buf_a = refs[10 + 6 * nblk]            # (G+2, CMAX) f32 VMEM ping-pong scratch
        buf_b = refs[11 + 6 * nblk]

        zrow = jnp.zeros((1, CMAX), jnp.float32)
        buf_a[0:1, :] = zrow                   # left-pad row (k=3, pad=1): written once
        buf_b[0:1, :] = zrow

        # ---- conv_bn: block-Toeplitz matmul (bf16 MXU operands, f32 accumulation),
        #      folded BN + ReLU6.  Row r of xr is samples [32r, 32r+32); group g's
        #      window is rows g..g+KSPLIT-1, i.e. purely static-offset contiguous loads.
        acc = jnp.dot(xr_ref[pl.ds(0, G), :].astype(jnp.bfloat16), wt_ref[0],
                      preferred_element_type=jnp.float32)
        for r in range(1, KSPLIT):
            acc = acc + jnp.dot(xr_ref[pl.ds(r, G), :].astype(jnp.bfloat16), wt_ref[r],
                                preferred_element_type=jnp.float32)
        y = jnp.clip(acc * s0_ref[...] + b0_ref[...], 0.0, 6.0)       # (G, P*C0)

        # ---- MaxPool1d(8, 8): lane p*C0+c holds conv position P*g+p, channel c, so the
        #      pool is a max over 8 consecutive C0-lane groups.  ph0[g]=pooled[2g],
        #      ph1[g]=pooled[2g+1] (even/odd phases of the pooled sequence).
        half = (P // 2) * C0
        ph1 = y[:, half:half + C0]
        for p in range(1, P // 2):
            ph1 = jnp.maximum(ph1, y[:, half + p * C0:half + (p + 1) * C0])
        buf_b[1:1 + G, 0:C0] = ph1             # park the odd phase in VMEM
        ph0 = y[:, 0:C0]
        for p in range(1, P // 2):
            ph0 = jnp.maximum(ph0, y[:, p * C0:(p + 1) * C0])

        # ---- block 0 (depthwise k=3 stride-2 + BN + ReLU6 + pointwise 1x1 + BN) on the
        #      pooled sequence, computed straight from the phases (no strided loads):
        #        out[j] = pooled[2j-1]*w0 + pooled[2j]*w1 + pooled[2j+1]*w2
        #               = ph1[j-1]*w0 + ph0[j]*w1 + ph1[j]*w2,   ph1[-1] = 0.
        tap_m1 = buf_b[0:G, 0:C0]              # ph1 shifted down one row (row 0 = pad)
        tap_p1 = buf_b[1:1 + G, 0:C0]          # ph1
        cin, cout, _, _, lout = meta[0]        # lout == G
        wdw = blk[0][...]; s1 = blk[1][...]; b1 = blk[2][...]
        wpw = blk[3][...]; s2 = blk[4][...]; b2 = blk[5][...]
        dw = tap_m1 * wdw[0:1, :] + ph0 * wdw[1:2, :] + tap_p1 * wdw[2:3, :]
        dw = jnp.clip(dw * s1 + b1, 0.0, 6.0)
        yb = jnp.dot(dw, wpw, preferred_element_type=jnp.float32) * s2 + b2
        buf_a[1:1 + lout, 0:cout] = yb
        buf_a[1 + lout:2 + lout, :] = zrow     # right-pad row

        # ---- blocks 1..7: padded activation lives in the VMEM ping-pong buffers; the
        #      three k=3 taps are strided sublane loads (lout <= 126, negligible work).
        src, dst = buf_a, buf_b
        for b in range(1, nblk):
            cin, cout, stride, lin, lout = meta[b]
            wdw = blk[6 * b][...]; s1 = blk[6 * b + 1][...]; b1 = blk[6 * b + 2][...]
            wpw = blk[6 * b + 3][...]; s2 = blk[6 * b + 4][...]; b2 = blk[6 * b + 5][...]

            def tap(k, lout=lout, stride=stride, cin=cin, src=src):
                sl = pl.ds(k, lout) if stride == 1 else pl.ds(k, lout, stride=stride)
                return src[sl, :][:, :cin]

            dw = tap(0) * wdw[0:1, :] + tap(1) * wdw[1:2, :] + tap(2) * wdw[2:3, :]
            dw = jnp.clip(dw * s1 + b1, 0.0, 6.0)
            yb = jnp.dot(dw, wpw, preferred_element_type=jnp.float32) * s2 + b2
            if stride == 1 and cin == cout:    # use_res_connect (never hit: all stride 2)
                yb = yb + src[1:1 + lout, :][:, :cin]
            dst[1:1 + lout, 0:cout] = yb
            dst[1 + lout:2 + lout, :] = zrow
            src, dst = dst, src

        # ---- conv_1x1_bn + temporal mean + Linear (Dropout == identity at inference)
        c_in = meta[-1][1]
        l_last = meta[-1][4]
        xl = src[1:1 + l_last, :][:, :c_in]
        yl = jnp.dot(xl, w_last_ref[...], preferred_element_type=jnp.float32)
        yl = jnp.clip(yl * s_last_ref[...] + b_last_ref[...], 0.0, 6.0)
        m = jnp.mean(yl, axis=0, keepdims=True)
        out_ref[...] = (jnp.dot(m, w_cls_ref[...], preferred_element_type=jnp.float32)
                        + b_cls_ref[...])

    return kernel


# ------------------------------------------------------------------ forward
def forward(x_ncl, params, strides):
    N, _, L = x_ncl.shape
    P = P_PACK
    wt = params["wt"]
    KSPLIT = wt.shape[0]
    C0 = wt.shape[2] // P

    # conv_bn geometry: k=160, stride=2, pad=4; MaxPool1d(8,8) only consumes
    # floor(Lc/8)*8 conv outputs, so only those positions are computed.
    Lc = (L + 8 - 160) // 2 + 1
    Lp = (Lc // 8) * 8
    assert Lp % P == 0, "conv output length must be divisible by the pack factor"
    G = Lp // P
    NR = G + KSPLIT - 1
    assert strides[0] == 2

    # Pad (left pad 4 == the conv's padding; the trailing conv positions the pool drops
    # are never computed so the right pad is only a truncation) and reshape the signal
    # into 32-sample rows.  This (N, NR, 32) slab is the only activation in HBM.
    x = x_ncl[:, 0, :]
    need = NR * 32
    right = max(0, need - (L + 4))
    xp = jnp.pad(x, ((0, 0), (4, right)))[:, :need]
    xr = xp.reshape(N, NR, 32).astype(jnp.float32)

    # per-block static geometry
    meta = []
    lin, cin = Lp // 8, C0
    for bp, stride in zip(params["blocks"], strides):
        cout = bp["wpw"].shape[1]
        lout = (lin + 2 - 3) // stride + 1
        meta.append((cin, cout, stride, lin, lout))
        lin, cin = lout, cout
    assert meta[0][4] == G
    CMAX = max(C0, max(m_[1] for m_ in meta))
    LBUF = G + 2
    n_labels = params["w_cls"].shape[1]

    args = [xr, wt, params["s0t"], params["b0t"]]
    for bp in params["blocks"]:
        args += [bp["wdw"], bp["s1"], bp["b1"], bp["wpw"], bp["s2"], bp["b2"]]
    args += [params["w_last"], params["s_last"], params["b_last"],
             params["w_cls"], params["b_cls"]]

    def const_spec(a):
        nd = a.ndim
        return pl.BlockSpec(a.shape, lambda i: (0,) * nd)   # weights stay resident

    in_specs = [pl.BlockSpec((None, NR, 32), lambda i: (i, 0, 0))]
    in_specs += [const_spec(a) for a in args[1:]]

    flops = 2 * N * G * KSPLIT * 32 * (P * C0)
    for (ci, co, st, li, lo) in meta:
        flops += N * (6 * lo * ci + 2 * lo * ci * co)
    flops += 2 * N * meta[-1][4] * meta[-1][1] * params["w_last"].shape[1]
    flops += 2 * N * params["w_cls"].shape[0] * n_labels
    bytes_accessed = sum(int(a.size) * a.dtype.itemsize for a in args) + N * n_labels * 4

    kernel = _make_fused_kernel(meta, G, P, C0, KSPLIT, CMAX)
    out = pl.pallas_call(
        kernel,
        out_shape=jax.ShapeDtypeStruct((N, 1, n_labels), jnp.float32),
        grid=(N,),
        in_specs=in_specs,
        out_specs=pl.BlockSpec((None, 1, n_labels), lambda i: (i, 0, 0)),
        scratch_shapes=[pltpu.VMEM((LBUF, CMAX), jnp.float32),
                        pltpu.VMEM((LBUF, CMAX), jnp.float32)],
        compiler_params=pltpu.CompilerParams(dimension_semantics=("parallel",)),
        cost_estimate=pl.CostEstimate(flops=flops, transcendentals=0,
                                      bytes_accessed=bytes_accessed),
    )(*args)
    return out[:, 0, :]


# ------------------------------------------------------------------ params
def init_params(key, cfg):
    width_mult = cfg["width_mult"]
    input_channel = int(cfg["input_channel"] * width_mult)
    last_channel = (int(cfg["last_channel"] * width_mult)
                    if width_mult > 1.0 else cfg["last_channel"])
    settings = [[1, 16, 1, 2], [1, 24, 1, 2], [1, 32, 1, 2], [1, 64, 1, 2],
                [1, 64, 1, 2], [1, 64, 1, 2], [1, 64, 1, 2], [1, 64, 1, 2]]

    keys = jax.random.split(key, 64)
    kit = iter(range(64))

    def conv_w(out_c, in_c, ksize):
        # PyTorch _initialize_weights: normal(0, sqrt(2 / (kernel_size * out_channels)))
        std = math.sqrt(2.0 / (ksize * out_c))
        return std * jax.random.normal(keys[next(kit)], (out_c, in_c, ksize), jnp.float32)

    def bn(c):
        return _bn_scale_shift(jnp.ones((c,)), jnp.zeros((c,)),
                               jnp.zeros((c,)), jnp.ones((c,)))

    params = {}
    w0 = conv_w(input_channel, 1, 160)                       # (C0, 1, 160)
    w0_kc = jnp.transpose(w0[:, 0, :])                       # (160, C0)
    s0, b0 = bn(input_channel)
    params["wt"] = _pack_toeplitz(w0_kc, P_PACK)             # (6, 32, 128) bf16
    params["s0t"] = jnp.tile(s0, (1, P_PACK))                # (1, 128) lane-tiled BN
    params["b0t"] = jnp.tile(b0, (1, P_PACK))

    blocks, strides = [], []
    inp = input_channel
    for t, c, n, s in settings:
        oup = int(c * width_mult)
        for i in range(n):
            stride = s if i == 0 else 1
            hidden = round(inp * t)                          # t == 1 -> hidden == inp
            wdw = conv_w(hidden, 1, 3)                       # depthwise (hidden, 1, 3)
            wpw = conv_w(oup, hidden, 1)                     # pointwise (oup, hidden, 1)
            s1, b1 = bn(hidden)
            s2, b2 = bn(oup)
            blocks.append(dict(wdw=jnp.transpose(wdw[:, 0, :]),   # (3, hidden)
                               s1=s1, b1=b1,
                               wpw=jnp.transpose(wpw[:, :, 0]),   # (hidden, oup)
                               s2=s2, b2=b2))
            strides.append(stride)
            inp = oup
    params["blocks"] = blocks

    wl = conv_w(last_channel, inp, 1)
    params["w_last"] = jnp.transpose(wl[:, :, 0])            # (inp, last_channel)
    params["s_last"], params["b_last"] = bn(last_channel)

    wc = 0.01 * jax.random.normal(keys[next(kit)], (cfg["n_labels"], last_channel), jnp.float32)
    params["w_cls"] = jnp.transpose(wc)                      # (last_channel, n_labels)
    params["b_cls"] = jnp.zeros((1, cfg["n_labels"]), jnp.float32)
    return params, tuple(strides)


# ------------------------------------------------------------------ main
if __name__ == "__main__":
    cfg = dict(n_labels=10, input_length=8192, width_mult=1.0,
               dropout_prob=0.5, input_channel=8, last_channel=32)
    key = jax.random.PRNGKey(0)
    pkey, xkey = jax.random.split(key)
    params, strides = init_params(pkey, cfg)
    x = jax.random.normal(xkey, (2, 1, cfg["input_length"]), dtype=jnp.float32)  # NCW

    fwd = jax.jit(lambda xx, pp: forward(xx, pp, strides))
    out = jax.block_until_ready(fwd(x, params))
    assert out.shape == (2, cfg["n_labels"]), out.shape
    assert bool(jnp.all(jnp.isfinite(out)))
    print("KERNEL_OK")
</pallas_src>

<mosaic_0001>
module attributes {stable_mosaic.version = 11 : i64} {
  func.func @kernel(%arg0: i32, %arg1: memref<1x256x32xf32, #tpu.memory_space<vmem>>, %arg2: memref<6x32x128xbf16, #tpu.memory_space<vmem>>, %arg3: memref<1x128xf32, #tpu.memory_space<vmem>>, %arg4: memref<1x128xf32, #tpu.memory_space<vmem>>, %arg5: memref<3x8xf32, #tpu.memory_space<vmem>>, %arg6: memref<1x8xf32, #tpu.memory_space<vmem>>, %arg7: memref<1x8xf32, #tpu.memory_space<vmem>>, %arg8: memref<8x16xf32, #tpu.memory_space<vmem>>, %arg9: memref<1x16xf32, #tpu.memory_space<vmem>>, %arg10: memref<1x16xf32, #tpu.memory_space<vmem>>, %arg11: memref<3x16xf32, #tpu.memory_space<vmem>>, %arg12: memref<1x16xf32, #tpu.memory_space<vmem>>, %arg13: memref<1x16xf32, #tpu.memory_space<vmem>>, %arg14: memref<16x24xf32, #tpu.memory_space<vmem>>, %arg15: memref<1x24xf32, #tpu.memory_space<vmem>>, %arg16: memref<1x24xf32, #tpu.memory_space<vmem>>, %arg17: memref<3x24xf32, #tpu.memory_space<vmem>>, %arg18: memref<1x24xf32, #tpu.memory_space<vmem>>, %arg19: memref<1x24xf32, #tpu.memory_space<vmem>>, %arg20: memref<24x32xf32, #tpu.memory_space<vmem>>, %arg21: memref<1x32xf32, #tpu.memory_space<vmem>>, %arg22: memref<1x32xf32, #tpu.memory_space<vmem>>, %arg23: memref<3x32xf32, #tpu.memory_space<vmem>>, %arg24: memref<1x32xf32, #tpu.memory_space<vmem>>, %arg25: memref<1x32xf32, #tpu.memory_space<vmem>>, %arg26: memref<32x64xf32, #tpu.memory_space<vmem>>, %arg27: memref<1x64xf32, #tpu.memory_space<vmem>>, %arg28: memref<1x64xf32, #tpu.memory_space<vmem>>, %arg29: memref<3x64xf32, #tpu.memory_space<vmem>>, %arg30: memref<1x64xf32, #tpu.memory_space<vmem>>, %arg31: memref<1x64xf32, #tpu.memory_space<vmem>>, %arg32: memref<64x64xf32, #tpu.memory_space<vmem>>, %arg33: memref<1x64xf32, #tpu.memory_space<vmem>>, %arg34: memref<1x64xf32, #tpu.memory_space<vmem>>, %arg35: memref<3x64xf32, #tpu.memory_space<vmem>>, %arg36: memref<1x64xf32, #tpu.memory_space<vmem>>, %arg37: memref<1x64xf32, #tpu.memory_space<vmem>>, %arg38: memref<64x64xf32, #tpu.memory_space<vmem>>, %arg39: memref<1x64xf32, #tpu.memory_space<vmem>>, %arg40: memref<1x64xf32, #tpu.memory_space<vmem>>, %arg41: memref<3x64xf32, #tpu.memory_space<vmem>>, %arg42: memref<1x64xf32, #tpu.memory_space<vmem>>, %arg43: memref<1x64xf32, #tpu.memory_space<vmem>>, %arg44: memref<64x64xf32, #tpu.memory_space<vmem>>, %arg45: memref<1x64xf32, #tpu.memory_space<vmem>>, %arg46: memref<1x64xf32, #tpu.memory_space<vmem>>, %arg47: memref<3x64xf32, #tpu.memory_space<vmem>>, %arg48: memref<1x64xf32, #tpu.memory_space<vmem>>, %arg49: memref<1x64xf32, #tpu.memory_space<vmem>>, %arg50: memref<64x64xf32, #tpu.memory_space<vmem>>, %arg51: memref<1x64xf32, #tpu.memory_space<vmem>>, %arg52: memref<1x64xf32, #tpu.memory_space<vmem>>, %arg53: memref<64x32xf32, #tpu.memory_space<vmem>>, %arg54: memref<1x32xf32, #tpu.memory_space<vmem>>, %arg55: memref<1x32xf32, #tpu.memory_space<vmem>>, %arg56: memref<32x10xf32, #tpu.memory_space<vmem>>, %arg57: memref<1x10xf32, #tpu.memory_space<vmem>>, %arg58: memref<1x1x10xf32, #tpu.memory_space<vmem>>, %arg59: memref<253x64xf32, #tpu.memory_space<vmem>>, %arg60: memref<253x64xf32, #tpu.memory_space<vmem>>) attributes {dimension_semantics = [#tpu.dimension_semantics<parallel>], iteration_bounds = array<i64: 2>, scalar_prefetch = 0 : i64, scratch_operands = 2 : i64, tpu.core_type = #tpu.core_type<tc>, window_params = [{transform_indices = @transform_0, window_bounds = array<i64: 1, 256, 32>}, {pipeline_mode = #tpu.pipeline_mode<synchronous>, transform_indices = @transform_1, window_bounds = array<i64: 6, 32, 128>}, {pipeline_mode = #tpu.pipeline_mode<synchronous>, transform_indices = @transform_2, window_bounds = array<i64: 1, 128>}, {pipeline_mode = #tpu.pipeline_mode<synchronous>, transform_indices = @transform_3, window_bounds = array<i64: 1, 128>}, {pipeline_mode = #tpu.pipeline_mode<synchronous>, transform_indices = @transform_4, window_bounds = array<i64: 3, 8>}, {pipeline_mode = #tpu.pipeline_mode<synchronous>, transform_indices = @transform_5, window_bounds = array<i64: 1, 8>}, {pipeline_mode = #tpu.pipeline_mode<synchronous>, transform_indices = @transform_6, window_bounds = array<i64: 1, 8>}, {pipeline_mode = #tpu.pipeline_mode<synchronous>, transform_indices = @transform_7, window_bounds = array<i64: 8, 16>}, {pipeline_mode = #tpu.pipeline_mode<synchronous>, transform_indices = @transform_8, window_bounds = array<i64: 1, 16>}, {pipeline_mode = #tpu.pipeline_mode<synchronous>, transform_indices = @transform_9, window_bounds = array<i64: 1, 16>}, {pipeline_mode = #tpu.pipeline_mode<synchronous>, transform_indices = @transform_10, window_bounds = array<i64: 3, 16>}, {pipeline_mode = #tpu.pipeline_mode<synchronous>, transform_indices = @transform_11, window_bounds = array<i64: 1, 16>}, {pipeline_mode = #tpu.pipeline_mode<synchronous>, transform_indices = @transform_12, window_bounds = array<i64: 1, 16>}, {pipeline_mode = #tpu.pipeline_mode<synchronous>, transform_indices = @transform_13, window_bounds = array<i64: 16, 24>}, {pipeline_mode = #tpu.pipeline_mode<synchronous>, transform_indices = @transform_14, window_bounds = array<i64: 1, 24>}, {pipeline_mode = #tpu.pipeline_mode<synchronous>, transform_indices = @transform_15, window_bounds = array<i64: 1, 24>}, {pipeline_mode = #tpu.pipeline_mode<synchronous>, transform_indices = @transform_16, window_bounds = array<i64: 3, 24>}, {pipeline_mode = #tpu.pipeline_mode<synchronous>, transform_indices = @transform_17, window_bounds = array<i64: 1, 24>}, {pipeline_mode = #tpu.pipeline_mode<synchronous>, transform_indices = @transform_18, window_bounds = array<i64: 1, 24>}, {pipeline_mode = #tpu.pipeline_mode<synchronous>, transform_indices = @transform_19, window_bounds = array<i64: 24, 32>}, {pipeline_mode = #tpu.pipeline_mode<synchronous>, transform_indices = @transform_20, window_bounds = array<i64: 1, 32>}, {pipeline_mode = #tpu.pipeline_mode<synchronous>, transform_indices = @transform_21, window_bounds = array<i64: 1, 32>}, {pipeline_mode = #tpu.pipeline_mode<synchronous>, transform_indices = @transform_22, window_bounds = array<i64: 3, 32>}, {pipeline_mode = #tpu.pipeline_mode<synchronous>, transform_indices = @transform_23, window_bounds = array<i64: 1, 32>}, {pipeline_mode = #tpu.pipeline_mode<synchronous>, transform_indices = @transform_24, window_bounds = array<i64: 1, 32>}, {pipeline_mode = #tpu.pipeline_mode<synchronous>, transform_indices = @transform_25, window_bounds = array<i64: 32, 64>}, {pipeline_mode = #tpu.pipeline_mode<synchronous>, transform_indices = @transform_26, window_bounds = array<i64: 1, 64>}, {pipeline_mode = #tpu.pipeline_mode<synchronous>, transform_indices = @transform_27, window_bounds = array<i64: 1, 64>}, {pipeline_mode = #tpu.pipeline_mode<synchronous>, transform_indices = @transform_28, window_bounds = array<i64: 3, 64>}, {pipeline_mode = #tpu.pipeline_mode<synchronous>, transform_indices = @transform_29, window_bounds = array<i64: 1, 64>}, {pipeline_mode = #tpu.pipeline_mode<synchronous>, transform_indices = @transform_30, window_bounds = array<i64: 1, 64>}, {pipeline_mode = #tpu.pipeline_mode<synchronous>, transform_indices = @transform_31, window_bounds = array<i64: 64, 64>}, {pipeline_mode = #tpu.pipeline_mode<synchronous>, transform_indices = @transform_32, window_bounds = array<i64: 1, 64>}, {pipeline_mode = #tpu.pipeline_mode<synchronous>, transform_indices = @transform_33, window_bounds = array<i64: 1, 64>}, {pipeline_mode = #tpu.pipeline_mode<synchronous>, transform_indices = @transform_34, window_bounds = array<i64: 3, 64>}, {pipeline_mode = #tpu.pipeline_mode<synchronous>, transform_indices = @transform_35, window_bounds = array<i64: 1, 64>}, {pipeline_mode = #tpu.pipeline_mode<synchronous>, transform_indices = @transform_36, window_bounds = array<i64: 1, 64>}, {pipeline_mode = #tpu.pipeline_mode<synchronous>, transform_indices = @transform_37, window_bounds = array<i64: 64, 64>}, {pipeline_mode = #tpu.pipeline_mode<synchronous>, transform_indices = @transform_38, window_bounds = array<i64: 1, 64>}, {pipeline_mode = #tpu.pipeline_mode<synchronous>, transform_indices = @transform_39, window_bounds = array<i64: 1, 64>}, {pipeline_mode = #tpu.pipeline_mode<synchronous>, transform_indices = @transform_40, window_bounds = array<i64: 3, 64>}, {pipeline_mode = #tpu.pipeline_mode<synchronous>, transform_indices = @transform_41, window_bounds = array<i64: 1, 64>}, {pipeline_mode = #tpu.pipeline_mode<synchronous>, transform_indices = @transform_42, window_bounds = array<i64: 1, 64>}, {pipeline_mode = #tpu.pipeline_mode<synchronous>, transform_indices = @transform_43, window_bounds = array<i64: 64, 64>}, {pipeline_mode = #tpu.pipeline_mode<synchronous>, transform_indices = @transform_44, window_bounds = array<i64: 1, 64>}, {pipeline_mode = #tpu.pipeline_mode<synchronous>, transform_indices = @transform_45, window_bounds = array<i64: 1, 64>}, {pipeline_mode = #tpu.pipeline_mode<synchronous>, transform_indices = @transform_46, window_bounds = array<i64: 3, 64>}, {pipeline_mode = #tpu.pipeline_mode<synchronous>, transform_indices = @transform_47, window_bounds = array<i64: 1, 64>}, {pipeline_mode = #tpu.pipeline_mode<synchronous>, transform_indices = @transform_48, window_bounds = array<i64: 1, 64>}, {pipeline_mode = #tpu.pipeline_mode<synchronous>, transform_indices = @transform_49, window_bounds = array<i64: 64, 64>}, {pipeline_mode = #tpu.pipeline_mode<synchronous>, transform_indices = @transform_50, window_bounds = array<i64: 1, 64>}, {pipeline_mode = #tpu.pipeline_mode<synchronous>, transform_indices = @transform_51, window_bounds = array<i64: 1, 64>}, {pipeline_mode = #tpu.pipeline_mode<synchronous>, transform_indices = @transform_52, window_bounds = array<i64: 64, 32>}, {pipeline_mode = #tpu.pipeline_mode<synchronous>, transform_indices = @transform_53, window_bounds = array<i64: 1, 32>}, {pipeline_mode = #tpu.pipeline_mode<synchronous>, transform_indices = @transform_54, window_bounds = array<i64: 1, 32>}, {pipeline_mode = #tpu.pipeline_mode<synchronous>, transform_indices = @transform_55, window_bounds = array<i64: 32, 10>}, {pipeline_mode = #tpu.pipeline_mode<synchronous>, transform_indices = @transform_56, window_bounds = array<i64: 1, 10>}, {transform_indices = @transform_57, window_bounds = array<i64: 1, 1, 10>}]} {
    %cst = arith.constant 0.000000e+00 : f32
    %0 = vector.broadcast %cst : f32 to vector<1x64xf32>
    %c0 = arith.constant 0 : index
    %c0_0 = arith.constant 0 : index
    %1 = vector.load %arg59[%c0, %c0_0] : memref<253x64xf32, #tpu.memory_space<vmem>>, vector<1x64xf32>
    tpu.vector_store %arg59[%c0, %c0_0], %0 {strides = array<i32>} : memref<253x64xf32, #tpu.memory_space<vmem>>, vector<1x64xf32>,
    %c0_1 = arith.constant 0 : index
    %c0_2 = arith.constant 0 : index
    %2 = vector.load %arg60[%c0_1, %c0_2] : memref<253x64xf32, #tpu.memory_space<vmem>>, vector<1x64xf32>
    tpu.vector_store %arg60[%c0_1, %c0_2], %0 {strides = array<i32>} : memref<253x64xf32, #tpu.memory_space<vmem>>, vector<1x64xf32>,
    %c0_3 = arith.constant 0 : index
    %c0_4 = arith.constant 0 : index
    %c0_5 = arith.constant 0 : index
    %3 = vector.load %arg1[%c0_3, %c0_4, %c0_5] : memref<1x256x32xf32, #tpu.memory_space<vmem>>, vector<1x251x32xf32>
    %4 = vector.shape_cast %3 : vector<1x251x32xf32> to vector<251x32xf32>
    %5 = arith.truncf %4 : vector<251x32xf32> to vector<251x32xbf16>
    %c0_6 = arith.constant 0 : index
    %c0_7 = arith.constant 0 : index
    %c0_8 = arith.constant 0 : index
    %6 = vector.load %arg2[%c0_6, %c0_7, %c0_8] : memref<6x32x128xbf16, #tpu.memory_space<vmem>>, vector<1x32x128xbf16>
    %7 = vector.shape_cast %6 : vector<1x32x128xbf16> to vector<32x128xbf16>
    %cst_9 = arith.constant dense<0.000000e+00> : vector<251x128xf32>
    %8 = tpu.matmul %5, %7, %cst_9 {dimension_numbers = #tpu.dot_dimension_numbers<[1], [0], [0], [1], [0, 0, 1, 1], [], []>} : vector<251x32xbf16>, vector<32x128xbf16>, vector<251x128xf32> -> vector<251x128xf32>
    %c0_10 = arith.constant 0 : index
    %c1 = arith.constant 1 : index
    %c0_11 = arith.constant 0 : index
    %9 = vector.load %arg1[%c0_10, %c1, %c0_11] : memref<1x256x32xf32, #tpu.memory_space<vmem>>, vector<1x251x32xf32>
    %10 = vector.shape_cast %9 : vector<1x251x32xf32> to vector<251x32xf32>
    %11 = arith.truncf %10 : vector<251x32xf32> to vector<251x32xbf16>
    %c1_12 = arith.constant 1 : index
    %c0_13 = arith.constant 0 : index
    %c0_14 = arith.constant 0 : index
    %12 = vector.load %arg2[%c1_12, %c0_13, %c0_14] : memref<6x32x128xbf16, #tpu.memory_space<vmem>>, vector<1x32x128xbf16>
    %13 = vector.shape_cast %12 : vector<1x32x128xbf16> to vector<32x128xbf16>
    %cst_15 = arith.constant dense<0.000000e+00> : vector<251x128xf32>
    %14 = tpu.matmul %11, %13, %cst_15 {dimension_numbers = #tpu.dot_dimension_numbers<[1], [0], [0], [1], [0, 0, 1, 1], [], []>} : vector<251x32xbf16>, vector<32x128xbf16>, vector<251x128xf32> -> vector<251x128xf32>
    %15 = arith.addf %8, %14 : vector<251x128xf32>
    %c0_16 = arith.constant 0 : index
    %c2 = arith.constant 2 : index
    %c0_17 = arith.constant 0 : index
    %16 = vector.load %arg1[%c0_16, %c2, %c0_17] : memref<1x256x32xf32, #tpu.memory_space<vmem>>, vector<1x251x32xf32>
    %17 = vector.shape_cast %16 : vector<1x251x32xf32> to vector<251x32xf32>
    %18 = arith.truncf %17 : vector<251x32xf32> to vector<251x32xbf16>
    %c2_18 = arith.constant 2 : index
    %c0_19 = arith.constant 0 : index
    %c0_20 = arith.constant 0 : index
    %19 = vector.load %arg2[%c2_18, %c0_19, %c0_20] : memref<6x32x128xbf16, #tpu.memory_space<vmem>>, vector<1x32x128xbf16>
    %20 = vector.shape_cast %19 : vector<1x32x128xbf16> to vector<32x128xbf16>
    %cst_21 = arith.constant dense<0.000000e+00> : vector<251x128xf32>
    %21 = tpu.matmul %18, %20, %cst_21 {dimension_numbers = #tpu.dot_dimension_numbers<[1], [0], [0], [1], [0, 0, 1, 1], [], []>} : vector<251x32xbf16>, vector<32x128xbf16>, vector<251x128xf32> -> vector<251x128xf32>
    %22 = arith.addf %15, %21 : vector<251x128xf32>
    %c0_22 = arith.constant 0 : index
    %c3 = arith.constant 3 : index
    %c0_23 = arith.constant 0 : index
    %23 = vector.load %arg1[%c0_22, %c3, %c0_23] : memref<1x256x32xf32, #tpu.memory_space<vmem>>, vector<1x251x32xf32>
    %24 = vector.shape_cast %23 : vector<1x251x32xf32> to vector<251x32xf32>
    %25 = arith.truncf %24 : vector<251x32xf32> to vector<251x32xbf16>
    %c3_24 = arith.constant 3 : index
    %c0_25 = arith.constant 0 : index
    %c0_26 = arith.constant 0 : index
    %26 = vector.load %arg2[%c3_24, %c0_25, %c0_26] : memref<6x32x128xbf16, #tpu.memory_space<vmem>>, vector<1x32x128xbf16>
    %27 = vector.shape_cast %26 : vector<1x32x128xbf16> to vector<32x128xbf16>
    %cst_27 = arith.constant dense<0.000000e+00> : vector<251x128xf32>
    %28 = tpu.matmul %25, %27, %cst_27 {dimension_numbers = #tpu.dot_dimension_numbers<[1], [0], [0], [1], [0, 0, 1, 1], [], []>} : vector<251x32xbf16>, vector<32x128xbf16>, vector<251x128xf32> -> vector<251x128xf32>
    %29 = arith.addf %22, %28 : vector<251x128xf32>
    %c0_28 = arith.constant 0 : index
    %c4 = arith.constant 4 : index
    %c0_29 = arith.constant 0 : index
    %30 = vector.load %arg1[%c0_28, %c4, %c0_29] : memref<1x256x32xf32, #tpu.memory_space<vmem>>, vector<1x251x32xf32>
    %31 = vector.shape_cast %30 : vector<1x251x32xf32> to vector<251x32xf32>
    %32 = arith.truncf %31 : vector<251x32xf32> to vector<251x32xbf16>
    %c4_30 = arith.constant 4 : index
    %c0_31 = arith.constant 0 : index
    %c0_32 = arith.constant 0 : index
    %33 = vector.load %arg2[%c4_30, %c0_31, %c0_32] : memref<6x32x128xbf16, #tpu.memory_space<vmem>>, vector<1x32x128xbf16>
    %34 = vector.shape_cast %33 : vector<1x32x128xbf16> to vector<32x128xbf16>
    %cst_33 = arith.constant dense<0.000000e+00> : vector<251x128xf32>
    %35 = tpu.matmul %32, %34, %cst_33 {dimension_numbers = #tpu.dot_dimension_numbers<[1], [0], [0], [1], [0, 0, 1, 1], [], []>} : vector<251x32xbf16>, vector<32x128xbf16>, vector<251x128xf32> -> vector<251x128xf32>
    %36 = arith.addf %29, %35 : vector<251x128xf32>
    %c0_34 = arith.constant 0 : index
    %c5 = arith.constant 5 : index
    %c0_35 = arith.constant 0 : index
    %37 = vector.load %arg1[%c0_34, %c5, %c0_35] : memref<1x256x32xf32, #tpu.memory_space<vmem>>, vector<1x251x32xf32>
    %38 = vector.shape_cast %37 : vector<1x251x32xf32> to vector<251x32xf32>
    %39 = arith.truncf %38 : vector<251x32xf32> to vector<251x32xbf16>
    %c5_36 = arith.constant 5 : index
    %c0_37 = arith.constant 0 : index
    %c0_38 = arith.constant 0 : index
    %40 = vector.load %arg2[%c5_36, %c0_37, %c0_38] : memref<6x32x128xbf16, #tpu.memory_space<vmem>>, vector<1x32x128xbf16>
    %41 = vector.shape_cast %40 : vector<1x32x128xbf16> to vector<32x128xbf16>
    %cst_39 = arith.constant dense<0.000000e+00> : vector<251x128xf32>
    %42 = tpu.matmul %39, %41, %cst_39 {dimension_numbers = #tpu.dot_dimension_numbers<[1], [0], [0], [1], [0, 0, 1, 1], [], []>} : vector<251x32xbf16>, vector<32x128xbf16>, vector<251x128xf32> -> vector<251x128xf32>
    %43 = arith.addf %36, %42 : vector<251x128xf32>
    %c0_40 = arith.constant 0 : index
    %c0_41 = arith.constant 0 : index
    %44 = vector.load %arg3[%c0_40, %c0_41] : memref<1x128xf32, #tpu.memory_space<vmem>>, vector<1x128xf32>
    %45 = vector.broadcast %44 : vector<1x128xf32> to vector<251x128xf32>
    %46 = arith.mulf %43, %45 : vector<251x128xf32>
    %c0_42 = arith.constant 0 : index
    %c0_43 = arith.constant 0 : index
    %47 = vector.load %arg4[%c0_42, %c0_43] : memref<1x128xf32, #tpu.memory_space<vmem>>, vector<1x128xf32>
    %48 = vector.broadcast %47 : vector<1x128xf32> to vector<251x128xf32>
    %49 = arith.addf %46, %48 : vector<251x128xf32>
    %cst_44 = arith.constant 0.000000e+00 : f32
    %cst_45 = arith.constant 6.000000e+00 : f32
    %50 = vector.broadcast %cst_44 : f32 to vector<251x128xf32>
    %51 = arith.maximumf %50, %49 : vector<251x128xf32>
    %52 = vector.broadcast %cst_45 : f32 to vector<251x128xf32>
    %53 = arith.minimumf %52, %51 : vector<251x128xf32>
    %54 = vector.extract_strided_slice %53 {offsets = [0, 64], sizes = [251, 8], strides = [1, 1]} : vector<251x128xf32> to vector<251x8xf32>
    %55 = vector.extract_strided_slice %53 {offsets = [0, 72], sizes = [251, 8], strides = [1, 1]} : vector<251x128xf32> to vector<251x8xf32>
    %56 = arith.maximumf %54, %55 : vector<251x8xf32>
    %57 = vector.extract_strided_slice %53 {offsets = [0, 80], sizes = [251, 8], strides = [1, 1]} : vector<251x128xf32> to vector<251x8xf32>
    %58 = arith.maximumf %56, %57 : vector<251x8xf32>
    %59 = vector.extract_strided_slice %53 {offsets = [0, 88], sizes = [251, 8], strides = [1, 1]} : vector<251x128xf32> to vector<251x8xf32>
    %60 = arith.maximumf %58, %59 : vector<251x8xf32>
    %61 = vector.extract_strided_slice %53 {offsets = [0, 96], sizes = [251, 8], strides = [1, 1]} : vector<251x128xf32> to vector<251x8xf32>
    %62 = arith.maximumf %60, %61 : vector<251x8xf32>
    %63 = vector.extract_strided_slice %53 {offsets = [0, 104], sizes = [251, 8], strides = [1, 1]} : vector<251x128xf32> to vector<251x8xf32>
    %64 = arith.maximumf %62, %63 : vector<251x8xf32>
    %65 = vector.extract_strided_slice %53 {offsets = [0, 112], sizes = [251, 8], strides = [1, 1]} : vector<251x128xf32> to vector<251x8xf32>
    %66 = arith.maximumf %64, %65 : vector<251x8xf32>
    %67 = vector.extract_strided_slice %53 {offsets = [0, 120], sizes = [251, 8], strides = [1, 1]} : vector<251x128xf32> to vector<251x8xf32>
    %68 = arith.maximumf %66, %67 : vector<251x8xf32>
    %c1_46 = arith.constant 1 : index
    %c0_47 = arith.constant 0 : index
    %69 = vector.load %arg60[%c1_46, %c0_47] : memref<253x64xf32, #tpu.memory_space<vmem>>, vector<251x8xf32>
    tpu.vector_store %arg60[%c1_46, %c0_47], %68 {strides = array<i32>} : memref<253x64xf32, #tpu.memory_space<vmem>>, vector<251x8xf32>,
    %70 = vector.extract_strided_slice %53 {offsets = [0, 0], sizes = [251, 8], strides = [1, 1]} : vector<251x128xf32> to vector<251x8xf32>
    %71 = vector.extract_strided_slice %53 {offsets = [0, 8], sizes = [251, 8], strides = [1, 1]} : vector<251x128xf32> to vector<251x8xf32>
    %72 = arith.maximumf %70, %71 : vector<251x8xf32>
    %73 = vector.extract_strided_slice %53 {offsets = [0, 16], sizes = [251, 8], strides = [1, 1]} : vector<251x128xf32> to vector<251x8xf32>
    %74 = arith.maximumf %72, %73 : vector<251x8xf32>
    %75 = vector.extract_strided_slice %53 {offsets = [0, 24], sizes = [251, 8], strides = [1, 1]} : vector<251x128xf32> to vector<251x8xf32>
    %76 = arith.maximumf %74, %75 : vector<251x8xf32>
    %77 = vector.extract_strided_slice %53 {offsets = [0, 32], sizes = [251, 8], strides = [1, 1]} : vector<251x128xf32> to vector<251x8xf32>
    %78 = arith.maximumf %76, %77 : vector<251x8xf32>
    %79 = vector.extract_strided_slice %53 {offsets = [0, 40], sizes = [251, 8], strides = [1, 1]} : vector<251x128xf32> to vector<251x8xf32>
    %80 = arith.maximumf %78, %79 : vector<251x8xf32>
    %81 = vector.extract_strided_slice %53 {offsets = [0, 48], sizes = [251, 8], strides = [1, 1]} : vector<251x128xf32> to vector<251x8xf32>
    %82 = arith.maximumf %80, %81 : vector<251x8xf32>
    %83 = vector.extract_strided_slice %53 {offsets = [0, 56], sizes = [251, 8], strides = [1, 1]} : vector<251x128xf32> to vector<251x8xf32>
    %84 = arith.maximumf %82, %83 : vector<251x8xf32>
    %c0_48 = arith.constant 0 : index
    %c0_49 = arith.constant 0 : index
    %85 = vector.load %arg60[%c0_48, %c0_49] : memref<253x64xf32, #tpu.memory_space<vmem>>, vector<251x8xf32>
    %c1_50 = arith.constant 1 : index
    %c0_51 = arith.constant 0 : index
    %86 = vector.load %arg60[%c1_50, %c0_51] : memref<253x64xf32, #tpu.memory_space<vmem>>, vector<251x8xf32>
    %c0_52 = arith.constant 0 : index
    %c0_53 = arith.constant 0 : index
    %87 = vector.load %arg5[%c0_52, %c0_53] : memref<3x8xf32, #tpu.memory_space<vmem>>, vector<3x8xf32>
    %c0_54 = arith.constant 0 : index
    %c0_55 = arith.constant 0 : index
    %88 = vector.load %arg6[%c0_54, %c0_55] : memref<1x8xf32, #tpu.memory_space<vmem>>, vector<1x8xf32>
    %c0_56 = arith.constant 0 : index
    %c0_57 = arith.constant 0 : index
    %89 = vector.load %arg7[%c0_56, %c0_57] : memref<1x8xf32, #tpu.memory_space<vmem>>, vector<1x8xf32>
    %c0_58 = arith.constant 0 : index
    %c0_59 = arith.constant 0 : index
    %90 = vector.load %arg8[%c0_58, %c0_59] : memref<8x16xf32, #tpu.memory_space<vmem>>, vector<8x16xf32>
    %c0_60 = arith.constant 0 : index
    %c0_61 = arith.constant 0 : index
    %91 = vector.load %arg9[%c0_60, %c0_61] : memref<1x16xf32, #tpu.memory_space<vmem>>, vector<1x16xf32>
    %c0_62 = arith.constant 0 : index
    %c0_63 = arith.constant 0 : index
    %92 = vector.load %arg10[%c0_62, %c0_63] : memref<1x16xf32, #tpu.memory_space<vmem>>, vector<1x16xf32>
    %93 = vector.extract_strided_slice %87 {offsets = [0, 0], sizes = [1, 8], strides = [1, 1]} : vector<3x8xf32> to vector<1x8xf32>
    %94 = vector.broadcast %93 : vector<1x8xf32> to vector<251x8xf32>
    %95 = arith.mulf %85, %94 : vector<251x8xf32>
    %96 = vector.extract_strided_slice %87 {offsets = [1, 0], sizes = [1, 8], strides = [1, 1]} : vector<3x8xf32> to vector<1x8xf32>
    %97 = vector.broadcast %96 : vector<1x8xf32> to vector<251x8xf32>
    %98 = arith.mulf %84, %97 : vector<251x8xf32>
    %99 = arith.addf %95, %98 : vector<251x8xf32>
    %100 = vector.extract_strided_slice %87 {offsets = [2, 0], sizes = [1, 8], strides = [1, 1]} : vector<3x8xf32> to vector<1x8xf32>
    %101 = vector.broadcast %100 : vector<1x8xf32> to vector<251x8xf32>
    %102 = arith.mulf %86, %101 : vector<251x8xf32>
    %103 = arith.addf %99, %102 : vector<251x8xf32>
    %104 = vector.broadcast %88 : vector<1x8xf32> to vector<251x8xf32>
    %105 = arith.mulf %103, %104 : vector<251x8xf32>
    %106 = vector.broadcast %89 : vector<1x8xf32> to vector<251x8xf32>
    %107 = arith.addf %105, %106 : vector<251x8xf32>
    %cst_64 = arith.constant 0.000000e+00 : f32
    %cst_65 = arith.constant 6.000000e+00 : f32
    %108 = vector.broadcast %cst_64 : f32 to vector<251x8xf32>
    %109 = arith.maximumf %108, %107 : vector<251x8xf32>
    %110 = vector.broadcast %cst_65 : f32 to vector<251x8xf32>
    %111 = arith.minimumf %110, %109 : vector<251x8xf32>
    %cst_66 = arith.constant dense<0.000000e+00> : vector<251x16xf32>
    %112 = tpu.matmul %111, %90, %cst_66 {dimension_numbers = #tpu.dot_dimension_numbers<[1], [0], [0], [1], [0, 0, 1, 1], [], []>} : vector<251x8xf32>, vector<8x16xf32>, vector<251x16xf32> -> vector<251x16xf32>
    %113 = vector.broadcast %91 : vector<1x16xf32> to vector<251x16xf32>
    %114 = arith.mulf %112, %113 : vector<251x16xf32>
    %115 = vector.broadcast %92 : vector<1x16xf32> to vector<251x16xf32>
    %116 = arith.addf %114, %115 : vector<251x16xf32>
    %c1_67 = arith.constant 1 : index
    %c0_68 = arith.constant 0 : index
    %117 = vector.load %arg59[%c1_67, %c0_68] : memref<253x64xf32, #tpu.memory_space<vmem>>, vector<251x16xf32>
    tpu.vector_store %arg59[%c1_67, %c0_68], %116 {strides = array<i32>} : memref<253x64xf32, #tpu.memory_space<vmem>>, vector<251x16xf32>,
    %c252 = arith.constant 252 : index
    %c0_69 = arith.constant 0 : index
    %118 = vector.load %arg59[%c252, %c0_69] : memref<253x64xf32, #tpu.memory_space<vmem>>, vector<1x64xf32>
    tpu.vector_store %arg59[%c252, %c0_69], %0 {strides = array<i32>} : memref<253x64xf32, #tpu.memory_space<vmem>>, vector<1x64xf32>,
    %c0_70 = arith.constant 0 : index
    %c0_71 = arith.constant 0 : index
    %119 = vector.load %arg11[%c0_70, %c0_71] : memref<3x16xf32, #tpu.memory_space<vmem>>, vector<3x16xf32>
    %c0_72 = arith.constant 0 : index
    %c0_73 = arith.constant 0 : index
    %120 = vector.load %arg12[%c0_72, %c0_73] : memref<1x16xf32, #tpu.memory_space<vmem>>, vector<1x16xf32>
    %c0_74 = arith.constant 0 : index
    %c0_75 = arith.constant 0 : index
    %121 = vector.load %arg13[%c0_74, %c0_75] : memref<1x16xf32, #tpu.memory_space<vmem>>, vector<1x16xf32>
    %c0_76 = arith.constant 0 : index
    %c0_77 = arith.constant 0 : index
    %122 = vector.load %arg14[%c0_76, %c0_77] : memref<16x24xf32, #tpu.memory_space<vmem>>, vector<16x24xf32>
    %c0_78 = arith.constant 0 : index
    %c0_79 = arith.constant 0 : index
    %123 = vector.load %arg15[%c0_78, %c0_79] : memref<1x24xf32, #tpu.memory_space<vmem>>, vector<1x24xf32>
    %c0_80 = arith.constant 0 : index
    %c0_81 = arith.constant 0 : index
    %124 = vector.load %arg16[%c0_80, %c0_81] : memref<1x24xf32, #tpu.memory_space<vmem>>, vector<1x24xf32>
    %c0_82 = arith.constant 0 : index
    %c0_83 = arith.constant 0 : index
    %125 = tpu.strided_load %arg59[%c0_82, %c0_83] {strides = array<i32: 2, 1>} : memref<253x64xf32, #tpu.memory_space<vmem>>, vector<126x64xf32>
    %126 = vector.extract_strided_slice %125 {offsets = [0, 0], sizes = [126, 16], strides = [1, 1]} : vector<126x64xf32> to vector<126x16xf32>
    %127 = vector.extract_strided_slice %119 {offsets = [0, 0], sizes = [1, 16], strides = [1, 1]} : vector<3x16xf32> to vector<1x16xf32>
    %128 = vector.broadcast %127 : vector<1x16xf32> to vector<126x16xf32>
    %129 = arith.mulf %126, %128 : vector<126x16xf32>
    %c1_84 = arith.constant 1 : index
    %c0_85 = arith.constant 0 : index
    %130 = tpu.strided_load %arg59[%c1_84, %c0_85] {strides = array<i32: 2, 1>} : memref<253x64xf32, #tpu.memory_space<vmem>>, vector<126x64xf32>
    %131 = vector.extract_strided_slice %130 {offsets = [0, 0], sizes = [126, 16], strides = [1, 1]} : vector<126x64xf32> to vector<126x16xf32>
    %132 = vector.extract_strided_slice %119 {offsets = [1, 0], sizes = [1, 16], strides = [1, 1]} : vector<3x16xf32> to vector<1x16xf32>
    %133 = vector.broadcast %132 : vector<1x16xf32> to vector<126x16xf32>
    %134 = arith.mulf %131, %133 : vector<126x16xf32>
    %135 = arith.addf %129, %134 : vector<126x16xf32>
    %c2_86 = arith.constant 2 : index
    %c0_87 = arith.constant 0 : index
    %136 = tpu.strided_load %arg59[%c2_86, %c0_87] {strides = array<i32: 2, 1>} : memref<253x64xf32, #tpu.memory_space<vmem>>, vector<126x64xf32>
    %137 = vector.extract_strided_slice %136 {offsets = [0, 0], sizes = [126, 16], strides = [1, 1]} : vector<126x64xf32> to vector<126x16xf32>
    %138 = vector.extract_strided_slice %119 {offsets = [2, 0], sizes = [1, 16], strides = [1, 1]} : vector<3x16xf32> to vector<1x16xf32>
    %139 = vector.broadcast %138 : vector<1x16xf32> to vector<126x16xf32>
    %140 = arith.mulf %137, %139 : vector<126x16xf32>
    %141 = arith.addf %135, %140 : vector<126x16xf32>
    %142 = vector.broadcast %120 : vector<1x16xf32> to vector<126x16xf32>
    %143 = arith.mulf %141, %142 : vector<126x16xf32>
    %144 = vector.broadcast %121 : vector<1x16xf32> to vector<126x16xf32>
    %145 = arith.addf %143, %144 : vector<126x16xf32>
    %cst_88 = arith.constant 0.000000e+00 : f32
    %cst_89 = arith.constant 6.000000e+00 : f32
    %146 = vector.broadcast %cst_88 : f32 to vector<126x16xf32>
    %147 = arith.maximumf %146, %145 : vector<126x16xf32>
    %148 = vector.broadcast %cst_89 : f32 to vector<126x16xf32>
    %149 = arith.minimumf %148, %147 : vector<126x16xf32>
    %cst_90 = arith.constant dense<0.000000e+00> : vector<126x24xf32>
    %150 = tpu.matmul %149, %122, %cst_90 {dimension_numbers = #tpu.dot_dimension_numbers<[1], [0], [0], [1], [0, 0, 1, 1], [], []>} : vector<126x16xf32>, vector<16x24xf32>, vector<126x24xf32> -> vector<126x24xf32>
    %151 = vector.broadcast %123 : vector<1x24xf32> to vector<126x24xf32>
    %152 = arith.mulf %150, %151 : vector<126x24xf32>
    %153 = vector.broadcast %124 : vector<1x24xf32> to vector<126x24xf32>
    %154 = arith.addf %152, %153 : vector<126x24xf32>
    %c1_91 = arith.constant 1 : index
    %c0_92 = arith.constant 0 : index
    %155 = vector.load %arg60[%c1_91, %c0_92] : memref<253x64xf32, #tpu.memory_space<vmem>>, vector<126x24xf32>
    tpu.vector_store %arg60[%c1_91, %c0_92], %154 {strides = array<i32>} : memref<253x64xf32, #tpu.memory_space<vmem>>, vector<126x24xf32>,
    %c127 = arith.constant 127 : index
    %c0_93 = arith.constant 0 : index
    %156 = vector.load %arg60[%c127, %c0_93] : memref<253x64xf32, #tpu.memory_space<vmem>>, vector<1x64xf32>
    tpu.vector_store %arg60[%c127, %c0_93], %0 {strides = array<i32>} : memref<253x64xf32, #tpu.memory_space<vmem>>, vector<1x64xf32>,
    %c0_94 = arith.constant 0 : index
    %c0_95 = arith.constant 0 : index
    %157 = vector.load %arg17[%c0_94, %c0_95] : memref<3x24xf32, #tpu.memory_space<vmem>>, vector<3x24xf32>
    %c0_96 = arith.constant 0 : index
    %c0_97 = arith.constant 0 : index
    %158 = vector.load %arg18[%c0_96, %c0_97] : memref<1x24xf32, #tpu.memory_space<vmem>>, vector<1x24xf32>
    %c0_98 = arith.constant 0 : index
    %c0_99 = arith.constant 0 : index
    %159 = vector.load %arg19[%c0_98, %c0_99] : memref<1x24xf32, #tpu.memory_space<vmem>>, vector<1x24xf32>
    %c0_100 = arith.constant 0 : index
    %c0_101 = arith.constant 0 : index
    %160 = vector.load %arg20[%c0_100, %c0_101] : memref<24x32xf32, #tpu.memory_space<vmem>>, vector<24x32xf32>
    %c0_102 = arith.constant 0 : index
    %c0_103 = arith.constant 0 : index
    %161 = vector.load %arg21[%c0_102, %c0_103] : memref<1x32xf32, #tpu.memory_space<vmem>>, vector<1x32xf32>
    %c0_104 = arith.constant 0 : index
    %c0_105 = arith.constant 0 : index
    %162 = vector.load %arg22[%c0_104, %c0_105] : memref<1x32xf32, #tpu.memory_space<vmem>>, vector<1x32xf32>
    %c0_106 = arith.constant 0 : index
    %c0_107 = arith.constant 0 : index
    %163 = tpu.strided_load %arg60[%c0_106, %c0_107] {strides = array<i32: 2, 1>} : memref<253x64xf32, #tpu.memory_space<vmem>>, vector<63x64xf32>
    %164 = vector.extract_strided_slice %163 {offsets = [0, 0], sizes = [63, 24], strides = [1, 1]} : vector<63x64xf32> to vector<63x24xf32>
    %165 = vector.extract_strided_slice %157 {offsets = [0, 0], sizes = [1, 24], strides = [1, 1]} : vector<3x24xf32> to vector<1x24xf32>
    %166 = vector.broadcast %165 : vector<1x24xf32> to vector<63x24xf32>
    %167 = arith.mulf %164, %166 : vector<63x24xf32>
    %c1_108 = arith.constant 1 : index
    %c0_109 = arith.constant 0 : index
    %168 = tpu.strided_load %arg60[%c1_108, %c0_109] {strides = array<i32: 2, 1>} : memref<253x64xf32, #tpu.memory_space<vmem>>, vector<63x64xf32>
    %169 = vector.extract_strided_slice %168 {offsets = [0, 0], sizes = [63, 24], strides = [1, 1]} : vector<63x64xf32> to vector<63x24xf32>
    %170 = vector.extract_strided_slice %157 {offsets = [1, 0], sizes = [1, 24], strides = [1, 1]} : vector<3x24xf32> to vector<1x24xf32>
    %171 = vector.broadcast %170 : vector<1x24xf32> to vector<63x24xf32>
    %172 = arith.mulf %169, %171 : vector<63x24xf32>
    %173 = arith.addf %167, %172 : vector<63x24xf32>
    %c2_110 = arith.constant 2 : index
    %c0_111 = arith.constant 0 : index
    %174 = tpu.strided_load %arg60[%c2_110, %c0_111] {strides = array<i32: 2, 1>} : memref<253x64xf32, #tpu.memory_space<vmem>>, vector<63x64xf32>
    %175 = vector.extract_strided_slice %174 {offsets = [0, 0], sizes = [63, 24], strides = [1, 1]} : vector<63x64xf32> to vector<63x24xf32>
    %176 = vector.extract_strided_slice %157 {offsets = [2, 0], sizes = [1, 24], strides = [1, 1]} : vector<3x24xf32> to vector<1x24xf32>
    %177 = vector.broadcast %176 : vector<1x24xf32> to vector<63x24xf32>
    %178 = arith.mulf %175, %177 : vector<63x24xf32>
    %179 = arith.addf %173, %178 : vector<63x24xf32>
    %180 = vector.broadcast %158 : vector<1x24xf32> to vector<63x24xf32>
    %181 = arith.mulf %179, %180 : vector<63x24xf32>
    %182 = vector.broadcast %159 : vector<1x24xf32> to vector<63x24xf32>
    %183 = arith.addf %181, %182 : vector<63x24xf32>
    %cst_112 = arith.constant 0.000000e+00 : f32
    %cst_113 = arith.constant 6.000000e+00 : f32
    %184 = vector.broadcast %cst_112 : f32 to vector<63x24xf32>
    %185 = arith.maximumf %184, %183 : vector<63x24xf32>
    %186 = vector.broadcast %cst_113 : f32 to vector<63x24xf32>
    %187 = arith.minimumf %186, %185 : vector<63x24xf32>
    %cst_114 = arith.constant dense<0.000000e+00> : vector<63x32xf32>
    %188 = tpu.matmul %187, %160, %cst_114 {dimension_numbers = #tpu.dot_dimension_numbers<[1], [0], [0], [1], [0, 0, 1, 1], [], []>} : vector<63x24xf32>, vector<24x32xf32>, vector<63x32xf32> -> vector<63x32xf32>
    %189 = vector.broadcast %161 : vector<1x32xf32> to vector<63x32xf32>
    %190 = arith.mulf %188, %189 : vector<63x32xf32>
    %191 = vector.broadcast %162 : vector<1x32xf32> to vector<63x32xf32>
    %192 = arith.addf %190, %191 : vector<63x32xf32>
    %c1_115 = arith.constant 1 : index
    %c0_116 = arith.constant 0 : index
    %193 = vector.load %arg59[%c1_115, %c0_116] : memref<253x64xf32, #tpu.memory_space<vmem>>, vector<63x32xf32>
    tpu.vector_store %arg59[%c1_115, %c0_116], %192 {strides = array<i32>} : memref<253x64xf32, #tpu.memory_space<vmem>>, vector<63x32xf32>,
    %c64 = arith.constant 64 : index
    %c0_117 = arith.constant 0 : index
    %194 = vector.load %arg59[%c64, %c0_117] : memref<253x64xf32, #tpu.memory_space<vmem>>, vector<1x64xf32>
    tpu.vector_store %arg59[%c64, %c0_117], %0 {strides = array<i32>} : memref<253x64xf32, #tpu.memory_space<vmem>>, vector<1x64xf32>,
    %c0_118 = arith.constant 0 : index
    %c0_119 = arith.constant 0 : index
    %195 = vector.load %arg23[%c0_118, %c0_119] : memref<3x32xf32, #tpu.memory_space<vmem>>, vector<3x32xf32>
    %c0_120 = arith.constant 0 : index
    %c0_121 = arith.constant 0 : index
    %196 = vector.load %arg24[%c0_120, %c0_121] : memref<1x32xf32, #tpu.memory_space<vmem>>, vector<1x32xf32>
    %c0_122 = arith.constant 0 : index
    %c0_123 = arith.constant 0 : index
    %197 = vector.load %arg25[%c0_122, %c0_123] : memref<1x32xf32, #tpu.memory_space<vmem>>, vector<1x32xf32>
    %c0_124 = arith.constant 0 : index
    %c0_125 = arith.constant 0 : index
    %198 = vector.load %arg26[%c0_124, %c0_125] : memref<32x64xf32, #tpu.memory_space<vmem>>, vector<32x64xf32>
    %c0_126 = arith.constant 0 : index
    %c0_127 = arith.constant 0 : index
    %199 = vector.load %arg27[%c0_126, %c0_127] : memref<1x64xf32, #tpu.memory_space<vmem>>, vector<1x64xf32>
    %c0_128 = arith.constant 0 : index
    %c0_129 = arith.constant 0 : index
    %200 = vector.load %arg28[%c0_128, %c0_129] : memref<1x64xf32, #tpu.memory_space<vmem>>, vector<1x64xf32>
    %c0_130 = arith.constant 0 : index
    %c0_131 = arith.constant 0 : index
    %201 = tpu.strided_load %arg59[%c0_130, %c0_131] {strides = array<i32: 2, 1>} : memref<253x64xf32, #tpu.memory_space<vmem>>, vector<32x64xf32>
    %202 = vector.extract_strided_slice %201 {offsets = [0, 0], sizes = [32, 32], strides = [1, 1]} : vector<32x64xf32> to vector<32x32xf32>
    %203 = vector.extract_strided_slice %195 {offsets = [0, 0], sizes = [1, 32], strides = [1, 1]} : vector<3x32xf32> to vector<1x32xf32>
    %204 = vector.broadcast %203 : vector<1x32xf32> to vector<32x32xf32>
    %205 = arith.mulf %202, %204 : vector<32x32xf32>
    %c1_132 = arith.constant 1 : index
    %c0_133 = arith.constant 0 : index
    %206 = tpu.strided_load %arg59[%c1_132, %c0_133] {strides = array<i32: 2, 1>} : memref<253x64xf32, #tpu.memory_space<vmem>>, vector<32x64xf32>
    %207 = vector.extract_strided_slice %206 {offsets = [0, 0], sizes = [32, 32], strides = [1, 1]} : vector<32x64xf32> to vector<32x32xf32>
    %208 = vector.extract_strided_slice %195 {offsets = [1, 0], sizes = [1, 32], strides = [1, 1]} : vector<3x32xf32> to vector<1x32xf32>
    %209 = vector.broadcast %208 : vector<1x32xf32> to vector<32x32xf32>
    %210 = arith.mulf %207, %209 : vector<32x32xf32>
    %211 = arith.addf %205, %210 : vector<32x32xf32>
    %c2_134 = arith.constant 2 : index
    %c0_135 = arith.constant 0 : index
    %212 = tpu.strided_load %arg59[%c2_134, %c0_135] {strides = array<i32: 2, 1>} : memref<253x64xf32, #tpu.memory_space<vmem>>, vector<32x64xf32>
    %213 = vector.extract_strided_slice %212 {offsets = [0, 0], sizes = [32, 32], strides = [1, 1]} : vector<32x64xf32> to vector<32x32xf32>
    %214 = vector.extract_strided_slice %195 {offsets = [2, 0], sizes = [1, 32], strides = [1, 1]} : vector<3x32xf32> to vector<1x32xf32>
    %215 = vector.broadcast %214 : vector<1x32xf32> to vector<32x32xf32>
    %216 = arith.mulf %213, %215 : vector<32x32xf32>
    %217 = arith.addf %211, %216 : vector<32x32xf32>
    %218 = vector.broadcast %196 : vector<1x32xf32> to vector<32x32xf32>
    %219 = arith.mulf %217, %218 : vector<32x32xf32>
    %220 = vector.broadcast %197 : vector<1x32xf32> to vector<32x32xf32>
    %221 = arith.addf %219, %220 : vector<32x32xf32>
    %cst_136 = arith.constant 0.000000e+00 : f32
    %cst_137 = arith.constant 6.000000e+00 : f32
    %222 = vector.broadcast %cst_136 : f32 to vector<32x32xf32>
    %223 = arith.maximumf %222, %221 : vector<32x32xf32>
    %224 = vector.broadcast %cst_137 : f32 to vector<32x32xf32>
    %225 = arith.minimumf %224, %223 : vector<32x32xf32>
    %cst_138 = arith.constant dense<0.000000e+00> : vector<32x64xf32>
    %226 = tpu.matmul %225, %198, %cst_138 {dimension_numbers = #tpu.dot_dimension_numbers<[1], [0], [0], [1], [0, 0, 1, 1], [], []>} : vector<32x32xf32>, vector<32x64xf32>, vector<32x64xf32> -> vector<32x64xf32>
    %227 = vector.broadcast %199 : vector<1x64xf32> to vector<32x64xf32>
    %228 = arith.mulf %226, %227 : vector<32x64xf32>
    %229 = vector.broadcast %200 : vector<1x64xf32> to vector<32x64xf32>
    %230 = arith.addf %228, %229 : vector<32x64xf32>
    %c1_139 = arith.constant 1 : index
    %c0_140 = arith.constant 0 : index
    %231 = vector.load %arg60[%c1_139, %c0_140] : memref<253x64xf32, #tpu.memory_space<vmem>>, vector<32x64xf32>
    tpu.vector_store %arg60[%c1_139, %c0_140], %230 {strides = array<i32>} : memref<253x64xf32, #tpu.memory_space<vmem>>, vector<32x64xf32>,
    %c33 = arith.constant 33 : index
    %c0_141 = arith.constant 0 : index
    %232 = vector.load %arg60[%c33, %c0_141] : memref<253x64xf32, #tpu.memory_space<vmem>>, vector<1x64xf32>
    tpu.vector_store %arg60[%c33, %c0_141], %0 {strides = array<i32>} : memref<253x64xf32, #tpu.memory_space<vmem>>, vector<1x64xf32>,
    %c0_142 = arith.constant 0 : index
    %c0_143 = arith.constant 0 : index
    %233 = vector.load %arg29[%c0_142, %c0_143] : memref<3x64xf32, #tpu.memory_space<vmem>>, vector<3x64xf32>
    %c0_144 = arith.constant 0 : index
    %c0_145 = arith.constant 0 : index
    %234 = vector.load %arg30[%c0_144, %c0_145] : memref<1x64xf32, #tpu.memory_space<vmem>>, vector<1x64xf32>
    %c0_146 = arith.constant 0 : index
    %c0_147 = arith.constant 0 : index
    %235 = vector.load %arg31[%c0_146, %c0_147] : memref<1x64xf32, #tpu.memory_space<vmem>>, vector<1x64xf32>
    %c0_148 = arith.constant 0 : index
    %c0_149 = arith.constant 0 : index
    %236 = vector.load %arg32[%c0_148, %c0_149] : memref<64x64xf32, #tpu.memory_space<vmem>>, vector<64x64xf32>
    %c0_150 = arith.constant 0 : index
    %c0_151 = arith.constant 0 : index
    %237 = vector.load %arg33[%c0_150, %c0_151] : memref<1x64xf32, #tpu.memory_space<vmem>>, vector<1x64xf32>
    %c0_152 = arith.constant 0 : index
    %c0_153 = arith.constant 0 : index
    %238 = vector.load %arg34[%c0_152, %c0_153] : memref<1x64xf32, #tpu.memory_space<vmem>>, vector<1x64xf32>
    %c0_154 = arith.constant 0 : index
    %c0_155 = arith.constant 0 : index
    %239 = tpu.strided_load %arg60[%c0_154, %c0_155] {strides = array<i32: 2, 1>} : memref<253x64xf32, #tpu.memory_space<vmem>>, vector<16x64xf32>
    %240 = vector.extract_strided_slice %233 {offsets = [0, 0], sizes = [1, 64], strides = [1, 1]} : vector<3x64xf32> to vector<1x64xf32>
    %241 = vector.broadcast %240 : vector<1x64xf32> to vector<16x64xf32>
    %242 = arith.mulf %239, %241 : vector<16x64xf32>
    %c1_156 = arith.constant 1 : index
    %c0_157 = arith.constant 0 : index
    %243 = tpu.strided_load %arg60[%c1_156, %c0_157] {strides = array<i32: 2, 1>} : memref<253x64xf32, #tpu.memory_space<vmem>>, vector<16x64xf32>
    %244 = vector.extract_strided_slice %233 {offsets = [1, 0], sizes = [1, 64], strides = [1, 1]} : vector<3x64xf32> to vector<1x64xf32>
    %245 = vector.broadcast %244 : vector<1x64xf32> to vector<16x64xf32>
    %246 = arith.mulf %243, %245 : vector<16x64xf32>
    %247 = arith.addf %242, %246 : vector<16x64xf32>
    %c2_158 = arith.constant 2 : index
    %c0_159 = arith.constant 0 : index
    %248 = tpu.strided_load %arg60[%c2_158, %c0_159] {strides = array<i32: 2, 1>} : memref<253x64xf32, #tpu.memory_space<vmem>>, vector<16x64xf32>
    %249 = vector.extract_strided_slice %233 {offsets = [2, 0], sizes = [1, 64], strides = [1, 1]} : vector<3x64xf32> to vector<1x64xf32>
    %250 = vector.broadcast %249 : vector<1x64xf32> to vector<16x64xf32>
    %251 = arith.mulf %248, %250 : vector<16x64xf32>
    %252 = arith.addf %247, %251 : vector<16x64xf32>
    %253 = vector.broadcast %234 : vector<1x64xf32> to vector<16x64xf32>
    %254 = arith.mulf %252, %253 : vector<16x64xf32>
    %255 = vector.broadcast %235 : vector<1x64xf32> to vector<16x64xf32>
    %256 = arith.addf %254, %255 : vector<16x64xf32>
    %cst_160 = arith.constant 0.000000e+00 : f32
    %cst_161 = arith.constant 6.000000e+00 : f32
    %257 = vector.broadcast %cst_160 : f32 to vector<16x64xf32>
    %258 = arith.maximumf %257, %256 : vector<16x64xf32>
    %259 = vector.broadcast %cst_161 : f32 to vector<16x64xf32>
    %260 = arith.minimumf %259, %258 : vector<16x64xf32>
    %cst_162 = arith.constant dense<0.000000e+00> : vector<16x64xf32>
    %261 = tpu.matmul %260, %236, %cst_162 {dimension_numbers = #tpu.dot_dimension_numbers<[1], [0], [0], [1], [0, 0, 1, 1], [], []>} : vector<16x64xf32>, vector<64x64xf32>, vector<16x64xf32> -> vector<16x64xf32>
    %262 = vector.broadcast %237 : vector<1x64xf32> to vector<16x64xf32>
    %263 = arith.mulf %261, %262 : vector<16x64xf32>
    %264 = vector.broadcast %238 : vector<1x64xf32> to vector<16x64xf32>
    %265 = arith.addf %263, %264 : vector<16x64xf32>
    %c1_163 = arith.constant 1 : index
    %c0_164 = arith.constant 0 : index
    %266 = vector.load %arg59[%c1_163, %c0_164] : memref<253x64xf32, #tpu.memory_space<vmem>>, vector<16x64xf32>
    tpu.vector_store %arg59[%c1_163, %c0_164], %265 {strides = array<i32>} : memref<253x64xf32, #tpu.memory_space<vmem>>, vector<16x64xf32>,
    %c17 = arith.constant 17 : index
    %c0_165 = arith.constant 0 : index
    %267 = vector.load %arg59[%c17, %c0_165] : memref<253x64xf32, #tpu.memory_space<vmem>>, vector<1x64xf32>
    tpu.vector_store %arg59[%c17, %c0_165], %0 {strides = array<i32>} : memref<253x64xf32, #tpu.memory_space<vmem>>, vector<1x64xf32>,
    %c0_166 = arith.constant 0 : index
    %c0_167 = arith.constant 0 : index
    %268 = vector.load %arg35[%c0_166, %c0_167] : memref<3x64xf32, #tpu.memory_space<vmem>>, vector<3x64xf32>
    %c0_168 = arith.constant 0 : index
    %c0_169 = arith.constant 0 : index
    %269 = vector.load %arg36[%c0_168, %c0_169] : memref<1x64xf32, #tpu.memory_space<vmem>>, vector<1x64xf32>
    %c0_170 = arith.constant 0 : index
    %c0_171 = arith.constant 0 : index
    %270 = vector.load %arg37[%c0_170, %c0_171] : memref<1x64xf32, #tpu.memory_space<vmem>>, vector<1x64xf32>
    %c0_172 = arith.constant 0 : index
    %c0_173 = arith.constant 0 : index
    %271 = vector.load %arg38[%c0_172, %c0_173] : memref<64x64xf32, #tpu.memory_space<vmem>>, vector<64x64xf32>
    %c0_174 = arith.constant 0 : index
    %c0_175 = arith.constant 0 : index
    %272 = vector.load %arg39[%c0_174, %c0_175] : memref<1x64xf32, #tpu.memory_space<vmem>>, vector<1x64xf32>
    %c0_176 = arith.constant 0 : index
    %c0_177 = arith.constant 0 : index
    %273 = vector.load %arg40[%c0_176, %c0_177] : memref<1x64xf32, #tpu.memory_space<vmem>>, vector<1x64xf32>
    %c0_178 = arith.constant 0 : index
    %c0_179 = arith.constant 0 : index
    %274 = tpu.strided_load %arg59[%c0_178, %c0_179] {strides = array<i32: 2, 1>} : memref<253x64xf32, #tpu.memory_space<vmem>>, vector<8x64xf32>
    %275 = vector.extract_strided_slice %268 {offsets = [0, 0], sizes = [1, 64], strides = [1, 1]} : vector<3x64xf32> to vector<1x64xf32>
    %276 = vector.broadcast %275 : vector<1x64xf32> to vector<8x64xf32>
    %277 = arith.mulf %274, %276 : vector<8x64xf32>
    %c1_180 = arith.constant 1 : index
    %c0_181 = arith.constant 0 : index
    %278 = tpu.strided_load %arg59[%c1_180, %c0_181] {strides = array<i32: 2, 1>} : memref<253x64xf32, #tpu.memory_space<vmem>>, vector<8x64xf32>
    %279 = vector.extract_strided_slice %268 {offsets = [1, 0], sizes = [1, 64], strides = [1, 1]} : vector<3x64xf32> to vector<1x64xf32>
    %280 = vector.broadcast %279 : vector<1x64xf32> to vector<8x64xf32>
    %281 = arith.mulf %278, %280 : vector<8x64xf32>
    %282 = arith.addf %277, %281 : vector<8x64xf32>
    %c2_182 = arith.constant 2 : index
    %c0_183 = arith.constant 0 : index
    %283 = tpu.strided_load %arg59[%c2_182, %c0_183] {strides = array<i32: 2, 1>} : memref<253x64xf32, #tpu.memory_space<vmem>>, vector<8x64xf32>
    %284 = vector.extract_strided_slice %268 {offsets = [2, 0], sizes = [1, 64], strides = [1, 1]} : vector<3x64xf32> to vector<1x64xf32>
    %285 = vector.broadcast %284 : vector<1x64xf32> to vector<8x64xf32>
    %286 = arith.mulf %283, %285 : vector<8x64xf32>
    %287 = arith.addf %282, %286 : vector<8x64xf32>
    %288 = vector.broadcast %269 : vector<1x64xf32> to vector<8x64xf32>
    %289 = arith.mulf %287, %288 : vector<8x64xf32>
    %290 = vector.broadcast %270 : vector<1x64xf32> to vector<8x64xf32>
    %291 = arith.addf %289, %290 : vector<8x64xf32>
    %cst_184 = arith.constant 0.000000e+00 : f32
    %cst_185 = arith.constant 6.000000e+00 : f32
    %292 = vector.broadcast %cst_184 : f32 to vector<8x64xf32>
    %293 = arith.maximumf %292, %291 : vector<8x64xf32>
    %294 = vector.broadcast %cst_185 : f32 to vector<8x64xf32>
    %295 = arith.minimumf %294, %293 : vector<8x64xf32>
    %cst_186 = arith.constant dense<0.000000e+00> : vector<8x64xf32>
    %296 = tpu.matmul %295, %271, %cst_186 {dimension_numbers = #tpu.dot_dimension_numbers<[1], [0], [0], [1], [0, 0, 1, 1], [], []>} : vector<8x64xf32>, vector<64x64xf32>, vector<8x64xf32> -> vector<8x64xf32>
    %297 = vector.broadcast %272 : vector<1x64xf32> to vector<8x64xf32>
    %298 = arith.mulf %296, %297 : vector<8x64xf32>
    %299 = vector.broadcast %273 : vector<1x64xf32> to vector<8x64xf32>
    %300 = arith.addf %298, %299 : vector<8x64xf32>
    %c1_187 = arith.constant 1 : index
    %c0_188 = arith.constant 0 : index
    %301 = vector.load %arg60[%c1_187, %c0_188] : memref<253x64xf32, #tpu.memory_space<vmem>>, vector<8x64xf32>
    tpu.vector_store %arg60[%c1_187, %c0_188], %300 {strides = array<i32>} : memref<253x64xf32, #tpu.memory_space<vmem>>, vector<8x64xf32>,
    %c9 = arith.constant 9 : index
    %c0_189 = arith.constant 0 : index
    %302 = vector.load %arg60[%c9, %c0_189] : memref<253x64xf32, #tpu.memory_space<vmem>>, vector<1x64xf32>
    tpu.vector_store %arg60[%c9, %c0_189], %0 {strides = array<i32>} : memref<253x64xf32, #tpu.memory_space<vmem>>, vector<1x64xf32>,
    %c0_190 = arith.constant 0 : index
    %c0_191 = arith.constant 0 : index
    %303 = vector.load %arg41[%c0_190, %c0_191] : memref<3x64xf32, #tpu.memory_space<vmem>>, vector<3x64xf32>
    %c0_192 = arith.constant 0 : index
    %c0_193 = arith.constant 0 : index
    %304 = vector.load %arg42[%c0_192, %c0_193] : memref<1x64xf32, #tpu.memory_space<vmem>>, vector<1x64xf32>
    %c0_194 = arith.constant 0 : index
    %c0_195 = arith.constant 0 : index
    %305 = vector.load %arg43[%c0_194, %c0_195] : memref<1x64xf32, #tpu.memory_space<vmem>>, vector<1x64xf32>
    %c0_196 = arith.constant 0 : index
    %c0_197 = arith.constant 0 : index
    %306 = vector.load %arg44[%c0_196, %c0_197] : memref<64x64xf32, #tpu.memory_space<vmem>>, vector<64x64xf32>
    %c0_198 = arith.constant 0 : index
    %c0_199 = arith.constant 0 : index
    %307 = vector.load %arg45[%c0_198, %c0_199] : memref<1x64xf32, #tpu.memory_space<vmem>>, vector<1x64xf32>
    %c0_200 = arith.constant 0 : index
    %c0_201 = arith.constant 0 : index
    %308 = vector.load %arg46[%c0_200, %c0_201] : memref<1x64xf32, #tpu.memory_space<vmem>>, vector<1x64xf32>
    %c0_202 = arith.constant 0 : index
    %c0_203 = arith.constant 0 : index
    %309 = tpu.strided_load %arg60[%c0_202, %c0_203] {strides = array<i32: 2, 1>} : memref<253x64xf32, #tpu.memory_space<vmem>>, vector<4x64xf32>
    %310 = vector.extract_strided_slice %303 {offsets = [0, 0], sizes = [1, 64], strides = [1, 1]} : vector<3x64xf32> to vector<1x64xf32>
    %311 = vector.broadcast %310 : vector<1x64xf32> to vector<4x64xf32>
    %312 = arith.mulf %309, %311 : vector<4x64xf32>
    %c1_204 = arith.constant 1 : index
    %c0_205 = arith.constant 0 : index
    %313 = tpu.strided_load %arg60[%c1_204, %c0_205] {strides = array<i32: 2, 1>} : memref<253x64xf32, #tpu.memory_space<vmem>>, vector<4x64xf32>
    %314 = vector.extract_strided_slice %303 {offsets = [1, 0], sizes = [1, 64], strides = [1, 1]} : vector<3x64xf32> to vector<1x64xf32>
    %315 = vector.broadcast %314 : vector<1x64xf32> to vector<4x64xf32>
    %316 = arith.mulf %313, %315 : vector<4x64xf32>
    %317 = arith.addf %312, %316 : vector<4x64xf32>
    %c2_206 = arith.constant 2 : index
    %c0_207 = arith.constant 0 : index
    %318 = tpu.strided_load %arg60[%c2_206, %c0_207] {strides = array<i32: 2, 1>} : memref<253x64xf32, #tpu.memory_space<vmem>>, vector<4x64xf32>
    %319 = vector.extract_strided_slice %303 {offsets = [2, 0], sizes = [1, 64], strides = [1, 1]} : vector<3x64xf32> to vector<1x64xf32>
    %320 = vector.broadcast %319 : vector<1x64xf32> to vector<4x64xf32>
    %321 = arith.mulf %318, %320 : vector<4x64xf32>
    %322 = arith.addf %317, %321 : vector<4x64xf32>
    %323 = vector.broadcast %304 : vector<1x64xf32> to vector<4x64xf32>
    %324 = arith.mulf %322, %323 : vector<4x64xf32>
    %325 = vector.broadcast %305 : vector<1x64xf32> to vector<4x64xf32>
    %326 = arith.addf %324, %325 : vector<4x64xf32>
    %cst_208 = arith.constant 0.000000e+00 : f32
    %cst_209 = arith.constant 6.000000e+00 : f32
    %327 = vector.broadcast %cst_208 : f32 to vector<4x64xf32>
    %328 = arith.maximumf %327, %326 : vector<4x64xf32>
    %329 = vector.broadcast %cst_209 : f32 to vector<4x64xf32>
    %330 = arith.minimumf %329, %328 : vector<4x64xf32>
    %cst_210 = arith.constant dense<0.000000e+00> : vector<4x64xf32>
    %331 = tpu.matmul %330, %306, %cst_210 {dimension_numbers = #tpu.dot_dimension_numbers<[1], [0], [0], [1], [0, 0, 1, 1], [], []>} : vector<4x64xf32>, vector<64x64xf32>, vector<4x64xf32> -> vector<4x64xf32>
    %332 = vector.broadcast %307 : vector<1x64xf32> to vector<4x64xf32>
    %333 = arith.mulf %331, %332 : vector<4x64xf32>
    %334 = vector.broadcast %308 : vector<1x64xf32> to vector<4x64xf32>
    %335 = arith.addf %333, %334 : vector<4x64xf32>
    %c1_211 = arith.constant 1 : index
    %c0_212 = arith.constant 0 : index
    %336 = vector.load %arg59[%c1_211, %c0_212] : memref<253x64xf32, #tpu.memory_space<vmem>>, vector<4x64xf32>
    tpu.vector_store %arg59[%c1_211, %c0_212], %335 {strides = array<i32>} : memref<253x64xf32, #tpu.memory_space<vmem>>, vector<4x64xf32>,
    %c5_213 = arith.constant 5 : index
    %c0_214 = arith.constant 0 : index
    %337 = vector.load %arg59[%c5_213, %c0_214] : memref<253x64xf32, #tpu.memory_space<vmem>>, vector<1x64xf32>
    tpu.vector_store %arg59[%c5_213, %c0_214], %0 {strides = array<i32>} : memref<253x64xf32, #tpu.memory_space<vmem>>, vector<1x64xf32>,
    %c0_215 = arith.constant 0 : index
    %c0_216 = arith.constant 0 : index
    %338 = vector.load %arg47[%c0_215, %c0_216] : memref<3x64xf32, #tpu.memory_space<vmem>>, vector<3x64xf32>
    %c0_217 = arith.constant 0 : index
    %c0_218 = arith.constant 0 : index
    %339 = vector.load %arg48[%c0_217, %c0_218] : memref<1x64xf32, #tpu.memory_space<vmem>>, vector<1x64xf32>
    %c0_219 = arith.constant 0 : index
    %c0_220 = arith.constant 0 : index
    %340 = vector.load %arg49[%c0_219, %c0_220] : memref<1x64xf32, #tpu.memory_space<vmem>>, vector<1x64xf32>
    %c0_221 = arith.constant 0 : index
    %c0_222 = arith.constant 0 : index
    %341 = vector.load %arg50[%c0_221, %c0_222] : memref<64x64xf32, #tpu.memory_space<vmem>>, vector<64x64xf32>
    %c0_223 = arith.constant 0 : index
    %c0_224 = arith.constant 0 : index
    %342 = vector.load %arg51[%c0_223, %c0_224] : memref<1x64xf32, #tpu.memory_space<vmem>>, vector<1x64xf32>
    %c0_225 = arith.constant 0 : index
    %c0_226 = arith.constant 0 : index
    %343 = vector.load %arg52[%c0_225, %c0_226] : memref<1x64xf32, #tpu.memory_space<vmem>>, vector<1x64xf32>
    %c0_227 = arith.constant 0 : index
    %c0_228 = arith.constant 0 : index
    %344 = tpu.strided_load %arg59[%c0_227, %c0_228] {strides = array<i32: 2, 1>} : memref<253x64xf32, #tpu.memory_space<vmem>>, vector<2x64xf32>
    %345 = vector.extract_strided_slice %338 {offsets = [0, 0], sizes = [1, 64], strides = [1, 1]} : vector<3x64xf32> to vector<1x64xf32>
    %346 = vector.broadcast %345 : vector<1x64xf32> to vector<2x64xf32>
    %347 = arith.mulf %344, %346 : vector<2x64xf32>
    %c1_229 = arith.constant 1 : index
    %c0_230 = arith.constant 0 : index
    %348 = tpu.strided_load %arg59[%c1_229, %c0_230] {strides = array<i32: 2, 1>} : memref<253x64xf32, #tpu.memory_space<vmem>>, vector<2x64xf32>
    %349 = vector.extract_strided_slice %338 {offsets = [1, 0], sizes = [1, 64], strides = [1, 1]} : vector<3x64xf32> to vector<1x64xf32>
    %350 = vector.broadcast %349 : vector<1x64xf32> to vector<2x64xf32>
    %351 = arith.mulf %348, %350 : vector<2x64xf32>
    %352 = arith.addf %347, %351 : vector<2x64xf32>
    %c2_231 = arith.constant 2 : index
    %c0_232 = arith.constant 0 : index
    %353 = tpu.strided_load %arg59[%c2_231, %c0_232] {strides = array<i32: 2, 1>} : memref<253x64xf32, #tpu.memory_space<vmem>>, vector<2x64xf32>
    %354 = vector.extract_strided_slice %338 {offsets = [2, 0], sizes = [1, 64], strides = [1, 1]} : vector<3x64xf32> to vector<1x64xf32>
    %355 = vector.broadcast %354 : vector<1x64xf32> to vector<2x64xf32>
    %356 = arith.mulf %353, %355 : vector<2x64xf32>
    %357 = arith.addf %352, %356 : vector<2x64xf32>
    %358 = vector.broadcast %339 : vector<1x64xf32> to vector<2x64xf32>
    %359 = arith.mulf %357, %358 : vector<2x64xf32>
    %360 = vector.broadcast %340 : vector<1x64xf32> to vector<2x64xf32>
    %361 = arith.addf %359, %360 : vector<2x64xf32>
    %cst_233 = arith.constant 0.000000e+00 : f32
    %cst_234 = arith.constant 6.000000e+00 : f32
    %362 = vector.broadcast %cst_233 : f32 to vector<2x64xf32>
    %363 = arith.maximumf %362, %361 : vector<2x64xf32>
    %364 = vector.broadcast %cst_234 : f32 to vector<2x64xf32>
    %365 = arith.minimumf %364, %363 : vector<2x64xf32>
    %cst_235 = arith.constant dense<0.000000e+00> : vector<2x64xf32>
    %366 = tpu.matmul %365, %341, %cst_235 {dimension_numbers = #tpu.dot_dimension_numbers<[1], [0], [0], [1], [0, 0, 1, 1], [], []>} : vector<2x64xf32>, vector<64x64xf32>, vector<2x64xf32> -> vector<2x64xf32>
    %367 = vector.broadcast %342 : vector<1x64xf32> to vector<2x64xf32>
    %368 = arith.mulf %366, %367 : vector<2x64xf32>
    %369 = vector.broadcast %343 : vector<1x64xf32> to vector<2x64xf32>
    %370 = arith.addf %368, %369 : vector<2x64xf32>
    %c1_236 = arith.constant 1 : index
    %c0_237 = arith.constant 0 : index
    %371 = vector.load %arg60[%c1_236, %c0_237] : memref<253x64xf32, #tpu.memory_space<vmem>>, vector<2x64xf32>
    tpu.vector_store %arg60[%c1_236, %c0_237], %370 {strides = array<i32>} : memref<253x64xf32, #tpu.memory_space<vmem>>, vector<2x64xf32>,
    %c3_238 = arith.constant 3 : index
    %c0_239 = arith.constant 0 : index
    %372 = vector.load %arg60[%c3_238, %c0_239] : memref<253x64xf32, #tpu.memory_space<vmem>>, vector<1x64xf32>
    tpu.vector_store %arg60[%c3_238, %c0_239], %0 {strides = array<i32>} : memref<253x64xf32, #tpu.memory_space<vmem>>, vector<1x64xf32>,
    %c1_240 = arith.constant 1 : index
    %c0_241 = arith.constant 0 : index
    %373 = vector.load %arg60[%c1_240, %c0_241] : memref<253x64xf32, #tpu.memory_space<vmem>>, vector<2x64xf32>
    %c0_242 = arith.constant 0 : index
    %c0_243 = arith.constant 0 : index
    %374 = vector.load %arg53[%c0_242, %c0_243] : memref<64x32xf32, #tpu.memory_space<vmem>>, vector<64x32xf32>
    %cst_244 = arith.constant dense<0.000000e+00> : vector<2x32xf32>
    %375 = tpu.matmul %373, %374, %cst_244 {dimension_numbers = #tpu.dot_dimension_numbers<[1], [0], [0], [1], [0, 0, 1, 1], [], []>} : vector<2x64xf32>, vector<64x32xf32>, vector<2x32xf32> -> vector<2x32xf32>
    %c0_245 = arith.constant 0 : index
    %c0_246 = arith.constant 0 : index
    %376 = vector.load %arg54[%c0_245, %c0_246] : memref<1x32xf32, #tpu.memory_space<vmem>>, vector<1x32xf32>
    %377 = vector.broadcast %376 : vector<1x32xf32> to vector<2x32xf32>
    %378 = arith.mulf %375, %377 : vector<2x32xf32>
    %c0_247 = arith.constant 0 : index
    %c0_248 = arith.constant 0 : index
    %379 = vector.load %arg55[%c0_247, %c0_248] : memref<1x32xf32, #tpu.memory_space<vmem>>, vector<1x32xf32>
    %380 = vector.broadcast %379 : vector<1x32xf32> to vector<2x32xf32>
    %381 = arith.addf %378, %380 : vector<2x32xf32>
    %cst_249 = arith.constant 0.000000e+00 : f32
    %cst_250 = arith.constant 6.000000e+00 : f32
    %382 = vector.broadcast %cst_249 : f32 to vector<2x32xf32>
    %383 = arith.maximumf %382, %381 : vector<2x32xf32>
    %384 = vector.broadcast %cst_250 : f32 to vector<2x32xf32>
    %385 = arith.minimumf %384, %383 : vector<2x32xf32>
    %cst_251 = arith.constant dense<0.000000e+00> : vector<32xf32>
    %386 = vector.multi_reduction <add>, %385, %cst_251 [0] : vector<2x32xf32> to vector<32xf32>
    %387 = vector.shape_cast %386 : vector<32xf32> to vector<1x32xf32>
    %cst_252 = arith.constant 2.000000e+00 : f32
    %388 = vector.broadcast %cst_252 : f32 to vector<1x32xf32>
    %389 = arith.divf %387, %388 : vector<1x32xf32>
    %c0_253 = arith.constant 0 : index
    %c0_254 = arith.constant 0 : index
    %390 = vector.load %arg56[%c0_253, %c0_254] : memref<32x10xf32, #tpu.memory_space<vmem>>, vector<32x10xf32>
    %cst_255 = arith.constant dense<0.000000e+00> : vector<1x10xf32>
    %391 = tpu.matmul %389, %390, %cst_255 {dimension_numbers = #tpu.dot_dimension_numbers<[1], [0], [0], [1], [0, 0, 1, 1], [], []>} : vector<1x32xf32>, vector<32x10xf32>, vector<1x10xf32> -> vector<1x10xf32>
    %c0_256 = arith.constant 0 : index
    %c0_257 = arith.constant 0 : index
    %392 = vector.load %arg57[%c0_256, %c0_257] : memref<1x10xf32, #tpu.memory_space<vmem>>, vector<1x10xf32>
    %393 = arith.addf %391, %392 : vector<1x10xf32>
    %c0_258 = arith.constant 0 : index
    %c0_259 = arith.constant 0 : index
    %c0_260 = arith.constant 0 : index
    %394 = vector.load %arg58[%c0_258, %c0_259, %c0_260] : memref<1x1x10xf32, #tpu.memory_space<vmem>>, vector<1x1x10xf32>
    %395 = vector.shape_cast %394 : vector<1x1x10xf32> to vector<1x10xf32>
    %396 = vector.shape_cast %393 : vector<1x10xf32> to vector<1x1x10xf32>
    tpu.vector_store %arg58[%c0_258, %c0_259, %c0_260], %396 {strides = array<i32>} : memref<1x1x10xf32, #tpu.memory_space<vmem>>, vector<1x1x10xf32>,
    return
  }
  func.func @transform_0(%arg0: i32) -> (i32, i32, i32) {
    %c0_i32 = arith.constant 0 : i32
    %c0_i32_0 = arith.constant 0 : i32
    %c0_i32_1 = arith.constant 0 : i32
    return %arg0, %c0_i32, %c0_i32_0 : i32, i32, i32
  }
  func.func @transform_1(%arg0: i32) -> (i32, i32, i32) {
    %c0_i32 = arith.constant 0 : i32
    %c0_i32_0 = arith.constant 0 : i32
    %c0_i32_1 = arith.constant 0 : i32
    %c0_i32_2 = arith.constant 0 : i32
    return %c0_i32, %c0_i32_0, %c0_i32_1 : i32, i32, i32
  }
  func.func @transform_2(%arg0: i32) -> (i32, i32) {
    %c0_i32 = arith.constant 0 : i32
    %c0_i32_0 = arith.constant 0 : i32
    %c0_i32_1 = arith.constant 0 : i32
    return %c0_i32, %c0_i32_0 : i32, i32
  }
  func.func @transform_3(%arg0: i32) -> (i32, i32) {
    %c0_i32 = arith.constant 0 : i32
    %c0_i32_0 = arith.constant 0 : i32
    %c0_i32_1 = arith.constant 0 : i32
    return %c0_i32, %c0_i32_0 : i32, i32
  }
  func.func @transform_4(%arg0: i32) -> (i32, i32) {
    %c0_i32 = arith.constant 0 : i32
    %c0_i32_0 = arith.constant 0 : i32
    %c0_i32_1 = arith.constant 0 : i32
    return %c0_i32, %c0_i32_0 : i32, i32
  }
  func.func @transform_5(%arg0: i32) -> (i32, i32) {
    %c0_i32 = arith.constant 0 : i32
    %c0_i32_0 = arith.constant 0 : i32
    %c0_i32_1 = arith.constant 0 : i32
    return %c0_i32, %c0_i32_0 : i32, i32
  }
  func.func @transform_6(%arg0: i32) -> (i32, i32) {
    %c0_i32 = arith.constant 0 : i32
    %c0_i32_0 = arith.constant 0 : i32
    %c0_i32_1 = arith.constant 0 : i32
    return %c0_i32, %c0_i32_0 : i32, i32
  }
  func.func @transform_7(%arg0: i32) -> (i32, i32) {
    %c0_i32 = arith.constant 0 : i32
    %c0_i32_0 = arith.constant 0 : i32
    %c0_i32_1 = arith.constant 0 : i32
    return %c0_i32, %c0_i32_0 : i32, i32
  }
  func.func @transform_8(%arg0: i32) -> (i32, i32) {
    %c0_i32 = arith.constant 0 : i32
    %c0_i32_0 = arith.constant 0 : i32
    %c0_i32_1 = arith.constant 0 : i32
    return %c0_i32, %c0_i32_0 : i32, i32
  }
  func.func @transform_9(%arg0: i32) -> (i32, i32) {
    %c0_i32 = arith.constant 0 : i32
    %c0_i32_0 = arith.constant 0 : i32
    %c0_i32_1 = arith.constant 0 : i32
    return %c0_i32, %c0_i32_0 : i32, i32
  }
  func.func @transform_10(%arg0: i32) -> (i32, i32) {
    %c0_i32 = arith.constant 0 : i32
    %c0_i32_0 = arith.constant 0 : i32
    %c0_i32_1 = arith.constant 0 : i32
    return %c0_i32, %c0_i32_0 : i32, i32
  }
  func.func @transform_11(%arg0: i32) -> (i32, i32) {
    %c0_i32 = arith.constant 0 : i32
    %c0_i32_0 = arith.constant 0 : i32
    %c0_i32_1 = arith.constant 0 : i32
    return %c0_i32, %c0_i32_0 : i32, i32
  }
  func.func @transform_12(%arg0: i32) -> (i32, i32) {
    %c0_i32 = arith.constant 0 : i32
    %c0_i32_0 = arith.constant 0 : i32
    %c0_i32_1 = arith.constant 0 : i32
    return %c0_i32, %c0_i32_0 : i32, i32
  }
  func.func @transform_13(%arg0: i32) -> (i32, i32) {
    %c0_i32 = arith.constant 0 : i32
    %c0_i32_0 = arith.constant 0 : i32
    %c0_i32_1 = arith.constant 0 : i32
    return %c0_i32, %c0_i32_0 : i32, i32
  }
  func.func @transform_14(%arg0: i32) -> (i32, i32) {
    %c0_i32 = arith.constant 0 : i32
    %c0_i32_0 = arith.constant 0 : i32
    %c0_i32_1 = arith.constant 0 : i32
    return %c0_i32, %c0_i32_0 : i32, i32
  }
  func.func @transform_15(%arg0: i32) -> (i32, i32) {
    %c0_i32 = arith.constant 0 : i32
    %c0_i32_0 = arith.constant 0 : i32
    %c0_i32_1 = arith.constant 0 : i32
    return %c0_i32, %c0_i32_0 : i32, i32
  }
  func.func @transform_16(%arg0: i32) -> (i32, i32) {
    %c0_i32 = arith.constant 0 : i32
    %c0_i32_0 = arith.constant 0 : i32
    %c0_i32_1 = arith.constant 0 : i32
    return %c0_i32, %c0_i32_0 : i32, i32
  }
  func.func @transform_17(%arg0: i32) -> (i32, i32) {
    %c0_i32 = arith.constant 0 : i32
    %c0_i32_0 = arith.constant 0 : i32
    %c0_i32_1 = arith.constant 0 : i32
    return %c0_i32, %c0_i32_0 : i32, i32
  }
  func.func @transform_18(%arg0: i32) -> (i32, i32) {
    %c0_i32 = arith.constant 0 : i32
    %c0_i32_0 = arith.constant 0 : i32
    %c0_i32_1 = arith.constant 0 : i32
    return %c0_i32, %c0_i32_0 : i32, i32
  }
  func.func @transform_19(%arg0: i32) -> (i32, i32) {
    %c0_i32 = arith.constant 0 : i32
    %c0_i32_0 = arith.constant 0 : i32
    %c0_i32_1 = arith.constant 0 : i32
    return %c0_i32, %c0_i32_0 : i32, i32
  }
  func.func @transform_20(%arg0: i32) -> (i32, i32) {
    %c0_i32 = arith.constant 0 : i32
    %c0_i32_0 = arith.constant 0 : i32
    %c0_i32_1 = arith.constant 0 : i32
    return %c0_i32, %c0_i32_0 : i32, i32
  }
  func.func @transform_21(%arg0: i32) -> (i32, i32) {
    %c0_i32 = arith.constant 0 : i32
    %c0_i32_0 = arith.constant 0 : i32
    %c0_i32_1 = arith.constant 0 : i32
    return %c0_i32, %c0_i32_0 : i32, i32
  }
  func.func @transform_22(%arg0: i32) -> (i32, i32) {
    %c0_i32 = arith.constant 0 : i32
    %c0_i32_0 = arith.constant 0 : i32
    %c0_i32_1 = arith.constant 0 : i32
    return %c0_i32, %c0_i32_0 : i32, i32
  }
  func.func @transform_23(%arg0: i32) -> (i32, i32) {
    %c0_i32 = arith.constant 0 : i32
    %c0_i32_0 = arith.constant 0 : i32
    %c0_i32_1 = arith.constant 0 : i32
    return %c0_i32, %c0_i32_0 : i32, i32
  }
  func.func @transform_24(%arg0: i32) -> (i32, i32) {
    %c0_i32 = arith.constant 0 : i32
    %c0_i32_0 = arith.constant 0 : i32
    %c0_i32_1 = arith.constant 0 : i32
    return %c0_i32, %c0_i32_0 : i32, i32
  }
  func.func @transform_25(%arg0: i32) -> (i32, i32) {
    %c0_i32 = arith.constant 0 : i32
    %c0_i32_0 = arith.constant 0 : i32
    %c0_i32_1 = arith.constant 0 : i32
    return %c0_i32, %c0_i32_0 : i32, i32
  }
  func.func @transform_26(%arg0: i32) -> (i32, i32) {
    %c0_i32 = arith.constant 0 : i32
    %c0_i32_0 = arith.constant 0 : i32
    %c0_i32_1 = arith.constant 0 : i32
    return %c0_i32, %c0_i32_0 : i32, i32
  }
  func.func @transform_27(%arg0: i32) -> (i32, i32) {
    %c0_i32 = arith.constant 0 : i32
    %c0_i32_0 = arith.constant 0 : i32
    %c0_i32_1 = arith.constant 0 : i32
    return %c0_i32, %c0_i32_0 : i32, i32
  }
  func.func @transform_28(%arg0: i32) -> (i32, i32) {
    %c0_i32 = arith.constant 0 : i32
    %c0_i32_0 = arith.constant 0 : i32
    %c0_i32_1 = arith.constant 0 : i32
    return %c0_i32, %c0_i32_0 : i32, i32
  }
  func.func @transform_29(%arg0: i32) -> (i32, i32) {
    %c0_i32 = arith.constant 0 : i32
    %c0_i32_0 = arith.constant 0 : i32
    %c0_i32_1 = arith.constant 0 : i32
    return %c0_i32, %c0_i32_0 : i32, i32
  }
  func.func @transform_30(%arg0: i32) -> (i32, i32) {
    %c0_i32 = arith.constant 0 : i32
    %c0_i32_0 = arith.constant 0 : i32
    %c0_i32_1 = arith.constant 0 : i32
    return %c0_i32, %c0_i32_0 : i32, i32
  }
  func.func @transform_31(%arg0: i32) -> (i32, i32) {
    %c0_i32 = arith.constant 0 : i32
    %c0_i32_0 = arith.constant 0 : i32
    %c0_i32_1 = arith.constant 0 : i32
    return %c0_i32, %c0_i32_0 : i32, i32
  }
  func.func @transform_32(%arg0: i32) -> (i32, i32) {
    %c0_i32 = arith.constant 0 : i32
    %c0_i32_0 = arith.constant 0 : i32
    %c0_i32_1 = arith.constant 0 : i32
    return %c0_i32, %c0_i32_0 : i32, i32
  }
  func.func @transform_33(%arg0: i32) -> (i32, i32) {
    %c0_i32 = arith.constant 0 : i32
    %c0_i32_0 = arith.constant 0 : i32
    %c0_i32_1 = arith.constant 0 : i32
    return %c0_i32, %c0_i32_0 : i32, i32
  }
  func.func @transform_34(%arg0: i32) -> (i32, i32) {
    %c0_i32 = arith.constant 0 : i32
    %c0_i32_0 = arith.constant 0 : i32
    %c0_i32_1 = arith.constant 0 : i32
    return %c0_i32, %c0_i32_0 : i32, i32
  }
  func.func @transform_35(%arg0: i32) -> (i32, i32) {
    %c0_i32 = arith.constant 0 : i32
    %c0_i32_0 = arith.constant 0 : i32
    %c0_i32_1 = arith.constant 0 : i32
    return %c0_i32, %c0_i32_0 : i32, i32
  }
  func.func @transform_36(%arg0: i32) -> (i32, i32) {
    %c0_i32 = arith.constant 0 : i32
    %c0_i32_0 = arith.constant 0 : i32
    %c0_i32_1 = arith.constant 0 : i32
    return %c0_i32, %c0_i32_0 : i32, i32
  }
  func.func @transform_37(%arg0: i32) -> (i32, i32) {
    %c0_i32 = arith.constant 0 : i32
    %c0_i32_0 = arith.constant 0 : i32
    %c0_i32_1 = arith.constant 0 : i32
    return %c0_i32, %c0_i32_0 : i32, i32
  }
  func.func @transform_38(%arg0: i32) -> (i32, i32) {
    %c0_i32 = arith.constant 0 : i32
    %c0_i32_0 = arith.constant 0 : i32
    %c0_i32_1 = arith.constant 0 : i32
    return %c0_i32, %c0_i32_0 : i32, i32
  }
  func.func @transform_39(%arg0: i32) -> (i32, i32) {
    %c0_i32 = arith.constant 0 : i32
    %c0_i32_0 = arith.constant 0 : i32
    %c0_i32_1 = arith.constant 0 : i32
    return %c0_i32, %c0_i32_0 : i32, i32
  }
  func.func @transform_40(%arg0: i32) -> (i32, i32) {
    %c0_i32 = arith.constant 0 : i32
    %c0_i32_0 = arith.constant 0 : i32
    %c0_i32_1 = arith.constant 0 : i32
    return %c0_i32, %c0_i32_0 : i32, i32
  }
  func.func @transform_41(%arg0: i32) -> (i32, i32) {
    %c0_i32 = arith.constant 0 : i32
    %c0_i32_0 = arith.constant 0 : i32
    %c0_i32_1 = arith.constant 0 : i32
    return %c0_i32, %c0_i32_0 : i32, i32
  }
  func.func @transform_42(%arg0: i32) -> (i32, i32) {
    %c0_i32 = arith.constant 0 : i32
    %c0_i32_0 = arith.constant 0 : i32
    %c0_i32_1 = arith.constant 0 : i32
    return %c0_i32, %c0_i32_0 : i32, i32
  }
  func.func @transform_43(%arg0: i32) -> (i32, i32) {
    %c0_i32 = arith.constant 0 : i32
    %c0_i32_0 = arith.constant 0 : i32
    %c0_i32_1 = arith.constant 0 : i32
    return %c0_i32, %c0_i32_0 : i32, i32
  }
  func.func @transform_44(%arg0: i32) -> (i32, i32) {
    %c0_i32 = arith.constant 0 : i32
    %c0_i32_0 = arith.constant 0 : i32
    %c0_i32_1 = arith.constant 0 : i32
    return %c0_i32, %c0_i32_0 : i32, i32
  }
  func.func @transform_45(%arg0: i32) -> (i32, i32) {
    %c0_i32 = arith.constant 0 : i32
    %c0_i32_0 = arith.constant 0 : i32
    %c0_i32_1 = arith.constant 0 : i32
    return %c0_i32, %c0_i32_0 : i32, i32
  }
  func.func @transform_46(%arg0: i32) -> (i32, i32) {
    %c0_i32 = arith.constant 0 : i32
    %c0_i32_0 = arith.constant 0 : i32
    %c0_i32_1 = arith.constant 0 : i32
    return %c0_i32, %c0_i32_0 : i32, i32
  }
  func.func @transform_47(%arg0: i32) -> (i32, i32) {
    %c0_i32 = arith.constant 0 : i32
    %c0_i32_0 = arith.constant 0 : i32
    %c0_i32_1 = arith.constant 0 : i32
    return %c0_i32, %c0_i32_0 : i32, i32
  }
  func.func @transform_48(%arg0: i32) -> (i32, i32) {
    %c0_i32 = arith.constant 0 : i32
    %c0_i32_0 = arith.constant 0 : i32
    %c0_i32_1 = arith.constant 0 : i32
    return %c0_i32, %c0_i32_0 : i32, i32
  }
  func.func @transform_49(%arg0: i32) -> (i32, i32) {
    %c0_i32 = arith.constant 0 : i32
    %c0_i32_0 = arith.constant 0 : i32
    %c0_i32_1 = arith.constant 0 : i32
    return %c0_i32, %c0_i32_0 : i32, i32
  }
  func.func @transform_50(%arg0: i32) -> (i32, i32) {
    %c0_i32 = arith.constant 0 : i32
    %c0_i32_0 = arith.constant 0 : i32
    %c0_i32_1 = arith.constant 0 : i32
    return %c0_i32, %c0_i32_0 : i32, i32
  }
  func.func @transform_51(%arg0: i32) -> (i32, i32) {
    %c0_i32 = arith.constant 0 : i32
    %c0_i32_0 = arith.constant 0 : i32
    %c0_i32_1 = arith.constant 0 : i32
    return %c0_i32, %c0_i32_0 : i32, i32
  }
  func.func @transform_52(%arg0: i32) -> (i32, i32) {
    %c0_i32 = arith.constant 0 : i32
    %c0_i32_0 = arith.constant 0 : i32
    %c0_i32_1 = arith.constant 0 : i32
    return %c0_i32, %c0_i32_0 : i32, i32
  }
  func.func @transform_53(%arg0: i32) -> (i32, i32) {
    %c0_i32 = arith.constant 0 : i32
    %c0_i32_0 = arith.constant 0 : i32
    %c0_i32_1 = arith.constant 0 : i32
    return %c0_i32, %c0_i32_0 : i32, i32
  }
  func.func @transform_54(%arg0: i32) -> (i32, i32) {
    %c0_i32 = arith.constant 0 : i32
    %c0_i32_0 = arith.constant 0 : i32
    %c0_i32_1 = arith.constant 0 : i32
    return %c0_i32, %c0_i32_0 : i32, i32
  }
  func.func @transform_55(%arg0: i32) -> (i32, i32) {
    %c0_i32 = arith.constant 0 : i32
    %c0_i32_0 = arith.constant 0 : i32
    %c0_i32_1 = arith.constant 0 : i32
    return %c0_i32, %c0_i32_0 : i32, i32
  }
  func.func @transform_56(%arg0: i32) -> (i32, i32) {
    %c0_i32 = arith.constant 0 : i32
    %c0_i32_0 = arith.constant 0 : i32
    %c0_i32_1 = arith.constant 0 : i32
    return %c0_i32, %c0_i32_0 : i32, i32
  }
  func.func @transform_57(%arg0: i32) -> (i32, i32, i32) {
    %c0_i32 = arith.constant 0 : i32
    %c0_i32_0 = arith.constant 0 : i32
    %c0_i32_1 = arith.constant 0 : i32
    return %arg0, %c0_i32, %c0_i32_0 : i32, i32, i32
  }
}

</mosaic_0001>

<bundles_post_ra>
// kernel: _lambda_.1
= control target key start
LH: loop header
LB: loop body
LE: loop exit
PB: predicated region body
PF: predicated region fallthrough
CT: control target
= control target key end

     0   :  { %s7797_s6 = smov 1   ;;  %s7798_s10 = smov 2   ;;  %s10864_s0 = inlined_call_operand.smem [shape: u32[58], index: -1, kind: input, shape index: {}] }
   0x1   :  { %s7888_s5 = sld [smem:[%s10864_s0]]   ;;  %s7799_s14 = smov 3  }
   0x2   :  { %s7893_s9 = sld [smem:[%s10864_s0 + %s7797_s6]]   ;;  %s7800_s18 = smov 4  }
   0x3   :  { %s7898_s13 = sld [smem:[%s10864_s0 + %s7798_s10]]   ;;  %s7801_s22 = smov 5  }
   0x4   :  { %s7903_s17 = sld [smem:[%s10864_s0 + %s7799_s14]]   ;;  %s7802_s26 = smov 6  }
   0x5   :  { %s7908_s21 = sld [smem:[%s10864_s0 + %s7800_s18]]   ;;  %s7803_s30 = smov 7  }
   0x6   :  { %s7913_s25 = sld [smem:[%s10864_s0 + %s7801_s22]]   ;;  %s7804_s4 = smov 8  }
   0x7   :  { %10947 = sst [smem:[#allocation41_spill]] %s7888_s5  ;;  %s7805_s10 = smov 9  }
   0x8   :  { %10948 = sst [smem:[#allocation42_spill]] %s7893_s9  ;;  %s7806_s15 = smov 10  }
   0x9   :  { %10949 = sst [smem:[#allocation43_spill]] %s7898_s13  ;;  %s7807_s20 = smov 11  }
   0xa   :  { %10950 = sst [smem:[#allocation44_spill]] %s7903_s17  ;;  %s7809_s1 = smov 13  }
   0xb   :  { %10951 = sst [smem:[#allocation45_spill]] %s7908_s21  ;;  %s7810_s7 = smov 14  }
   0xc   :  { %10952 = sst [smem:[#allocation46_spill]] %s7913_s25  ;;  %s7812_s22 = smov 16  }
   0xd   :  { %s7918_s29 = sld [smem:[%s10864_s0 + %s7802_s26]]   ;;  %s7808_s26 = smov 12  }
   0xe   :  { %s7923_s3 = sld [smem:[%s10864_s0 + %s7803_s30]]   ;;  %s7813_s28 = smov 17  }
   0xf   :  { %s7928_s8 = sld [smem:[%s10864_s0 + %s7804_s4]]  }
  0x10   :  { %s7933_s14 = sld [smem:[%s10864_s0 + %s7805_s10]]  }
  0x11   :  { %s7938_s19 = sld [smem:[%s10864_s0 + %s7806_s15]]   ;;  %s7811_s15 = smov 15  }
  0x12   :  { %s7943_s24 = sld [smem:[%s10864_s0 + %s7807_s20]]  }
  0x13   :  { %10953 = sst [smem:[#allocation47_spill]] %s7918_s29 }
  0x14   :  { %10954 = sst [smem:[#allocation48_spill]] %s7923_s3 }
  0x15   :  { %10955 = sst [smem:[#allocation49_spill]] %s7928_s8 }
  0x16   :  { %10956 = sst [smem:[#allocation50_spill]] %s7933_s14 }
  0x17   :  { %10957 = sst [smem:[#allocation51_spill]] %s7938_s19 }
  0x18   :  { %10958 = sst [smem:[#allocation52_spill]] %s7943_s24 }
  0x19   :  { %s7948_s30 = sld [smem:[%s10864_s0 + %s7808_s26]]  }
  0x1a   :  { %s7953_s6 = sld [smem:[%s10864_s0 + %s7809_s1]]  }
  0x1b   :  { %s7958_s12 = sld [smem:[%s10864_s0 + %s7810_s7]]   ;;  %s7814_s7 = smov 18  }
  0x1c   :  { %s7963_s20 = sld [smem:[%s10864_s0 + %s7811_s15]]   ;;  %s7815_s15 = smov 19  }
  0x1d   :  { %s7968_s27 = sld [smem:[%s10864_s0 + %s7812_s22]]   ;;  %s7816_s22 = smov 20  }
  0x1e   :  { %s7973_s4 = sld [smem:[%s10864_s0 + %s7813_s28]]   ;;  %s7817_s28 = smov 21  }
  0x1f   :  { %10959 = sst [smem:[#allocation53_spill]] %s7948_s30 }
  0x20   :  { %10960 = sst [smem:[#allocation54_spill]] %s7953_s6 }
  0x21   :  { %10961 = sst [smem:[#allocation55_spill]] %s7958_s12 }
  0x22   :  { %10962 = sst [smem:[#allocation56_spill]] %s7963_s20 }
  0x23   :  { %10963 = sst [smem:[#allocation57_spill]] %s7968_s27 }
  0x24   :  { %10964 = sst [smem:[#allocation58_spill]] %s7973_s4 }
  0x25   :  { %s7978_s12 = sld [smem:[%s10864_s0 + %s7814_s7]]   ;;  %s7818_s7 = smov 22  }
  0x26   :  { %s7983_s20 = sld [smem:[%s10864_s0 + %s7815_s15]]   ;;  %s7819_s15 = smov 23  }
  0x27   :  { %s7988_s27 = sld [smem:[%s10864_s0 + %s7816_s22]]   ;;  %s7820_s22 = smov 24  }
  0x28   :  { %s7993_s4 = sld [smem:[%s10864_s0 + %s7817_s28]]   ;;  %s7821_s28 = smov 25  }
  0x2b   :  { %10965 = sst [smem:[#allocation59_spill]] %s7978_s12 }
  0x2c   :  { %10966 = sst [smem:[#allocation60_spill]] %s7983_s20 }
  0x2d   :  { %10967 = sst [smem:[#allocation61_spill]] %s7988_s27 }
  0x2e   :  { %10968 = sst [smem:[#allocation62_spill]] %s7993_s4 }
  0x2f   :  { %s7998_s12 = sld [smem:[%s10864_s0 + %s7818_s7]]   ;;  %s7822_s7 = smov 26  }
  0x30   :  { %s8003_s20 = sld [smem:[%s10864_s0 + %s7819_s15]]   ;;  %s7823_s15 = smov 27  }
  0x31   :  { %s8008_s27 = sld [smem:[%s10864_s0 + %s7820_s22]]   ;;  %s7824_s22 = smov 28  }
  0x32   :  { %s8013_s4 = sld [smem:[%s10864_s0 + %s7821_s28]]   ;;  %s7825_s28 = smov 29  }
  0x35   :  { %10969 = sst [smem:[#allocation63_spill]] %s7998_s12 }
  0x36   :  { %10970 = sst [smem:[#allocation64_spill]] %s8003_s20 }
  0x37   :  { %10971 = sst [smem:[#allocation65_spill]] %s8008_s27 }
  0x38   :  { %10972 = sst [smem:[#allocation66_spill]] %s8013_s4 }
  0x39   :  { %s8018_s12 = sld [smem:[%s10864_s0 + %s7822_s7]]   ;;  %s7826_s7 = smov 30  }
  0x3a   :  { %s8023_s20 = sld [smem:[%s10864_s0 + %s7823_s15]]   ;;  %s7827_s15 = smov 31  }
  0x3b   :  { %s8028_s27 = sld [smem:[%s10864_s0 + %s7824_s22]]   ;;  %s7828_s22 = smov 32  }
  0x3c   :  { %s8033_s4 = sld [smem:[%s10864_s0 + %s7825_s28]]   ;;  %s7829_s28 = smov 33  }
  0x3f   :  { %10973 = sst [smem:[#allocation67_spill]] %s8018_s12 }
  0x40   :  { %10974 = sst [smem:[#allocation68_spill]] %s8023_s20 }
  0x41   :  { %10975 = sst [smem:[#allocation69_spill]] %s8028_s27 }
  0x42   :  { %10976 = sst [smem:[#allocation70_spill]] %s8033_s4 }
  0x43   :  { %s8038_s12 = sld [smem:[%s10864_s0 + %s7826_s7]]   ;;  %s7830_s7 = smov 34  }
  0x44   :  { %s8043_s20 = sld [smem:[%s10864_s0 + %s7827_s15]]   ;;  %s7831_s15 = smov 35  }
  0x45   :  { %s8048_s27 = sld [smem:[%s10864_s0 + %s7828_s22]]   ;;  %s7832_s22 = smov 36  }
  0x46   :  { %s8053_s4 = sld [smem:[%s10864_s0 + %s7829_s28]]   ;;  %s7833_s28 = smov 37  }
  0x47   :  { %s8073_s30 = sld [smem:[%s10864_s0 + %s7833_s28]]   ;;  %s7837_s28 = smov 41  }
  0x49   :  { %10977 = sst [smem:[#allocation71_spill]] %s8038_s12 }
  0x4a   :  { %10978 = sst [smem:[#allocation72_spill]] %s8043_s20 }
  0x4b   :  { %10979 = sst [smem:[#allocation73_spill]] %s8048_s27 }
  0x4c   :  { %10980 = sst [smem:[#allocation74_spill]] %s8053_s4 }
  0x4d   :  { %s8058_s12 = sld [smem:[%s10864_s0 + %s7830_s7]]   ;;  %s7834_s7 = smov 38  }
  0x4e   :  { %s8063_s20 = sld [smem:[%s10864_s0 + %s7831_s15]]   ;;  %s7835_s15 = smov 39  }
  0x4f   :  { %s8068_s27 = sld [smem:[%s10864_s0 + %s7832_s22]]   ;;  %s7836_s22 = smov 40  }
  0x50   :  { %10982 = sst [smem:[#allocation76_spill]] %s8073_s30 }
  0x51   :  { %s8083_s24 = sld [smem:[%s10864_s0 + %s7835_s15]]   ;;  %s7839_s15 = smov 43  }
  0x52   :  { %s8088_s19 = sld [smem:[%s10864_s0 + %s7836_s22]]   ;;  %s7840_s22 = smov 44  }
  0x53   :  { %10981 = sst [smem:[#allocation75_spill]] %s8058_s12 }
  0x54   :  { %s8078_s12 = sld [smem:[%s10864_s0 + %s7834_s7]]   ;;  %s7838_s7 = smov 42  }
  0x55   :  { %s8093_s30 = sld [smem:[%s10864_s0 + %s7837_s28]]   ;;  %s7841_s28 = smov 45  }
  0x56   :  { %s8098_s6 = sld [smem:[%s10864_s0 + %s7838_s7]]   ;;  %s7842_s7 = smov 46  }
  0x57   :  { %s8103_s14 = sld [smem:[%s10864_s0 + %s7839_s15]]   ;;  %s7843_s15 = smov 47  }
  0x58   :  { %10983 = sst [smem:[#allocation77_spill]] %s8088_s19 }
  0x59   :  { %s8108_s19 = sld [smem:[%s10864_s0 + %s7840_s22]]   ;;  %s7844_s22 = smov 48  }
  0x5a   :  { %s8113_s8 = sld [smem:[%s10864_s0 + %s7841_s28]]   ;;  %s7845_s28 = smov 49  }
  0x5b   :  { %s8118_s29 = sld [smem:[%s10864_s0 + %s7842_s7]]   ;;  %s7846_s7 = smov 50  }
  0x5c   :  { %10984 = sst [smem:[#allocation78_spill]] %s8098_s6 }
  0x5d   :  { %10985 = sst [smem:[#allocation79_spill]] %s8103_s14 }
  0x5e   :  { %s8123_s14 = sld [smem:[%s10864_s0 + %s7843_s15]]   ;;  %s7847_s15 = smov 51  }
  0x5f   :  { %s8128_s25 = sld [smem:[%s10864_s0 + %s7844_s22]]   ;;  %s7848_s22 = smov 52  }
  0x60   :  { %10986 = sst [smem:[#allocation80_spill]] %s8113_s8 }
  0x61   :  { %10987 = sst [smem:[#allocation81_spill]] %s8118_s29 }
  0x62   :  { %s8133_s21 = sld [smem:[%s10864_s0 + %s7845_s28]]   ;;  %s7849_s28 = smov 53  }
  0x63   :  { %s8138_s29 = sld [smem:[%s10864_s0 + %s7846_s7]]   ;;  %s7850_s7 = smov 54  }
  0x64   :  { %s8143_s3 = sld [smem:[%s10864_s0 + %s7847_s15]]   ;;  %s7851_s15 = smov 55  }
  0x65   :  { %s8148_s17 = sld [smem:[%s10864_s0 + %s7848_s22]]   ;;  %s7852_s22 = smov 56  }
  0x66   :  { %s8158_s13 = sld [smem:[%s10864_s0 + %s7850_s7]]  }
  0x67   :  { %s8163_s9 = sld [smem:[%s10864_s0 + %s7851_s15]]  }
  0x68   :  { %10988 = sst [smem:[#allocation82_spill]] %s8133_s21 }
  0x69   :  { %s8153_s21 = sld [smem:[%s10864_s0 + %s7849_s28]]   ;;  %s7853_s28 = smov 57  }
  0x6a   :  { %10989 = sst [smem:[#allocation83_spill]] %s8143_s3 }
  0x6b   :  { %10990 = sst [smem:[#allocation84_spill]] %s8148_s17 }
  0x6c   :  { %s8168_s17 = sld [smem:[%s10864_s0 + %s7852_s22]]  }
  0x6d   :  { %10991 = sst [smem:[#allocation85_spill]] %s8163_s9 }
  0x6e   :  { %s8173_s5 = sld [smem:[%s10864_s0 + %s7853_s28]]  }
  0x74   :  { %10992 = sst [smem:[#allocation86_spill]] %s8173_s5 }
  0x75   :  { %120 = vsyncpa [#allocation5], 0 }
  0x76   :  { %121 = vsyncpa [#allocation8], 0 }
  0x77   :  { %122 = vsyncpa [#allocation11], 0 }
  0x78   :  { %123 = vsyncpa [#allocation14], 0 }
  0x79   :  { %124 = vsyncpa [#allocation17], 0 }
  0x7a   :  { %125 = vsyncpa [#allocation20], 0 }
  0x7b   :  { %126 = vsyncpa [#allocation23], 0 }
  0x7c   :  { %127 = vsyncpa [#allocation26], 0 }
  0x7d   :  { %128 = vsyncpa [#allocation29], 0 }
  0x7e   :  { %129 = vsyncpa [#allocation6], 0 }
  0x7f   :  { %131 = vsyncpa [#allocation6 + $0x1], 0  ;;  %s8175_s7 = smov 0   ;;  %s8177_s10 = smov 0  }
  0x80   :  { %s8179_s11 = smov 0   ;;  %s8181_s15 = smov 0  }
  0x81 LB: > { %s10993_s9 = sld [smem:[#allocation85_spill]]  ;;  %s8196_s0 = sadd.s32 4294967295, %s7795_s15   ;;  %s7783_s7 = sphi %s8175_s7, %s11225_s7   ;;  %s7795_s15 = sphi %s8181_s15, %s11224_s15   ;;  %s7791_s11 = sphi %s8179_s11, %s11227_s11   ;;  %s7787_s10 = sphi %s8177_s10, %s11226_s10  }
  0x82   : > { %s10994_s8 = sld [smem:[#allocation80_spill]]  ;;  %s6614_s16 = sadd.s32 4294967294, %s7795_s15  }
  0x83   : > { %s10995_s6 = sld [smem:[#allocation78_spill]]  ;;  %s8200_s18 = sadd.s32 1, %s7795_s15  }
  0x84   : > { %s10996_s4 = sld [smem:[#allocation74_spill]]  ;;  %s1346_s22 = sadd.s32 1, %s7791_s11 }
  0x85   : > { %s10997_s3 = sld [smem:[#allocation83_spill]]  ;;  %s1343_s23 = ssub.s32 %s7795_s15, %s8200_s18 }
  0x86   : > { %10998 = sst [smem:[#allocation87_spill]] %s7783_s7  ;;  %p1356_p0 = scmp.ne.s32.totalorder %s7791_s11, %s7787_s10 }
  0x87   : > { %10999 = sst [smem:[#allocation88_spill]] %s7787_s10  ;;  %p1344_p1 = scmp.eq.s32.totalorder %s1343_s23, 0 }
  0x88   : > { %11000 = sst [smem:[#allocation89_spill]] %s7791_s11  ;;  %p1357_p2 = scmp.eq.s32.totalorder %s8196_s0, 1 }
  0x89   : > { %11001 = sst [smem:[#allocation90_spill]] %s7795_s15  ;;  %p1362_p3 = scmp.ne.s32.totalorder %s7787_s10, %s7783_s7 }
  0x8a   : > { %11002 = sst [smem:[#allocation91_spill]] %s8200_s18  ;;  %p1363_p4 = scmp.eq.s32.totalorder %s6614_s16, 1 }
  0x8b   : > { %s8211_s26 = scalar_select %p1344_p1, %s7791_s11, %s1346_s22  }
  0x8c   : > { %p8213_p5 = por %p1357_p2, %p1356_p0  ;;  %p8217_p6 = por %p1363_p4, %p1362_p3 }
  0x8d   : > { %11003 = sst [smem:[#allocation92_spill]] %s8211_s26  ;;  %p6615_p7 = scmp.ge.s32.totalorder %s7795_s15, 1 }
  0x8e   : > { %s11004_s28 = scalar_select %p8213_p5, 1, 0 }
  0x8f   : > { %s11006_s1 = scalar_select %p8217_p6, 1, 0 }
  0x90   : > { %11005 = sst [smem:[#allocation93_spill]] %s11004_s28  ;;  %p1370_p8 = scmp.lt.s32.totalorder %s7795_s15, 3 }
  0x91   : > { %11007 = sst [smem:[#allocation94_spill]] %s11006_s1  ;;  %p7017_p9 = scmp.eq.s32.totalorder %s8196_s0, 0 }
  0x92   : > { %p8224_p10 = pnand %p6615_p7, %p1370_p8  ;;  %s1493_s16 = sshll.u32 %s8063_s20, 4  ;;  %s1494_s16 = int_to_ptr.hbm [resolvable:$true] %s1493_s16 }
  0x93   : > { %s7854_s22 = smov [#allocation7]   ;;  %s1520_s26 = sshll.u32 %s8078_s12, 4  ;;  %s8238_s26 = int_to_ptr.hbm [resolvable:$true] %s1520_s26 }
  0x94   : > { %p6964_p11 = pneg %p8224_p10  ;;  %s1495_s23 = sshll.u32 %s7854_s22, 4  ;;  %s1496_s23 = int_to_ptr.vmem [resolvable:$true] %s1495_s23 }
  0x95   : > { %s1547_s18 = sshll.u32 %s8093_s30, 4  ;;  %s7855_s1 = smov [#allocation10]   ;;  %s8256_s18 = int_to_ptr.hbm [resolvable:$true] %s1547_s18 }
  0x96   : > { %p8234_p12 = pnand %p7017_p9, %p6964_p11  ;;  %s8241_s7 = sshll.u32 %s7855_s1, 4  ;;  %s1523_s7 = int_to_ptr.vmem [resolvable:$true] %s8241_s7 }
  0x97   : > { %s7217_s15 = sshra.s32 %s1494_s16, 4  ;;  %s7224_s5 = scalar_lea.hbm %s8063_s20, 1  ;;  %s7218_s15 = int_to_ptr.hbm [resolvable:$true] %s7217_s15 }
  0x98   : > { %s7219_s28 = scalar_lea.hbm %s7218_s15, 1  ;;  %p8245_p0 = pneg %p8234_p12 }
  0x99   : > { %p7220_p13 = scmp.ne.s32.totalorder %s7218_s15, %s7219_s28  ;;  %p7225_p3 = scmp.lt.s32.totalorder %s7218_s15, %s8063_s20 }
  0x9a   : > { %p7226_p4 = scmp.lt.s32.totalorder %s7224_s5, %s7219_s28 }
  0x9b   : > { %p7222_p1 = pnand %p8245_p0, %p7220_p13 }
  0x9c   : > { %p7227_p7 = por %p7226_p4, %p7225_p3 }
  0x9d   : > { %p7223_p2 = pneg %p7222_p1 }
  0x9f   : > { %p7228_p8 = pnand %p7227_p7, %p7223_p2 }
  0xa1   : > { %7231 = shalt.err (!%p7228_p8)
}
  0xa2   : > { %6970 = dma.hbm_to_vmem [thread:$0]  (!%p8234_p12), %s1494_s16, 16, %s1496_s23, [#allocation8]  }
  0xa3   : > { %s7247_s1 = sshra.s32 %s8238_s26, 4  ;;  %s7254_s5 = scalar_lea.hbm %s8078_s12, 1  ;;  %s7248_s1 = int_to_ptr.hbm [resolvable:$true] %s7247_s1 }
  0xa4   : > { %s7249_s10 = scalar_lea.hbm %s7248_s1, 1  ;;  %p7255_p2 = scmp.lt.s32.totalorder %s7248_s1, %s8078_s12 }
  0xa5   : > { %p7250_p11 = scmp.ne.s32.totalorder %s7248_s1, %s7249_s10  ;;  %p7256_p3 = scmp.lt.s32.totalorder %s7254_s5, %s7249_s10 }
  0xa7   : > { %p7252_p13 = pnand %p7250_p11, %p8245_p0  ;;  %p7257_p4 = por %p7256_p3, %p7255_p2 }
  0xa9   : > { %p7253_p1 = pneg %p7252_p13 }
  0xab   : > { %p7258_p7 = pnand %p7257_p4, %p7253_p1 }
  0xad   : > { %7261 = shalt.err (!%p7258_p7)
}
  0xae   : > { %6976 = dma.hbm_to_vmem [thread:$0]  (!%p8234_p12), %s8238_s26, 16, %s1523_s7, [#allocation11]  }
  0xaf   : > { %s1574_s15 = sshll.u32 %s8108_s19, 4  ;;  %s7856_s28 = smov [#allocation13]   ;;  %s8267_s15 = int_to_ptr.hbm [resolvable:$true] %s1574_s15 }
  0xb0   : > { %s1549_s16 = sshll.u32 %s7856_s28, 4  ;;  %s7277_s23 = sshra.s32 %s8256_s18, 4  ;;  %s1550_s16 = int_to_ptr.vmem [resolvable:$true] %s1549_s16  ;;  %s7278_s23 = int_to_ptr.hbm [resolvable:$true] %s7277_s23 }
  0xb1   : > { %s7279_s10 = scalar_lea.hbm %s7278_s23, 1  ;;  %s7284_s1 = scalar_lea.hbm %s8093_s30, 1 }
  0xb2   : > { %p7280_p8 = scmp.ne.s32.totalorder %s7278_s23, %s7279_s10  ;;  %p7285_p1 = scmp.lt.s32.totalorder %s7278_s23, %s8093_s30 }
  0xb3   : > { %p7286_p2 = scmp.lt.s32.totalorder %s7284_s1, %s7279_s10 }
  0xb4   : > { %p7282_p11 = pnand %p7280_p8, %p8245_p0 }
  0xb5   : > { %p7287_p3 = por %p7286_p2, %p7285_p1 }
  0xb6   : > { %p7283_p13 = pneg %p7282_p11 }
  0xb8   : > { %p7288_p4 = pnand %p7287_p3, %p7283_p13 }
  0xba   : > { %7291 = shalt.err (!%p7288_p4)
}
  0xbb   : > { %6982 = dma.hbm_to_vmem [thread:$0]  (!%p8234_p12), %s8256_s18, 16, %s1550_s16, [#allocation14]  }
  0xbc   : > { %s7857_s7 = smov [#allocation16]   ;;  %s1601_s5 = sshll.u32 %s8123_s14, 4  ;;  %s8278_s5 = int_to_ptr.hbm [resolvable:$true] %s1601_s5 }
  0xbd   : > { %s1576_s26 = sshll.u32 %s7857_s7, 4  ;;  %s7307_s28 = sshra.s32 %s8267_s15, 4  ;;  %s1577_s26 = int_to_ptr.vmem [resolvable:$true] %s1576_s26  ;;  %s7308_s28 = int_to_ptr.hbm [resolvable:$true] %s7307_s28 }
  0xbe   : > { %s7309_s23 = scalar_lea.hbm %s7308_s28, 1  ;;  %s7314_s10 = scalar_lea.hbm %s8108_s19, 1 }
  0xbf   : > { %p7310_p7 = scmp.ne.s32.totalorder %s7308_s28, %s7309_s23  ;;  %p7315_p13 = scmp.lt.s32.totalorder %s7308_s28, %s8108_s19 }
  0xc0   : > { %p7316_p1 = scmp.lt.s32.totalorder %s7314_s10, %s7309_s23 }
  0xc1   : > { %p7312_p8 = pnand %p7310_p7, %p8245_p0 }
  0xc2   : > { %p7317_p2 = por %p7316_p1, %p7315_p13 }
  0xc3   : > { %p7313_p11 = pneg %p7312_p8 }
  0xc5   : > { %p7318_p3 = pnand %p7317_p2, %p7313_p11 }
  0xc7   : > { %7321 = shalt.err (!%p7318_p3)
}
  0xc8   : > { %6988 = dma.hbm_to_vmem [thread:$0]  (!%p8234_p12), %s8267_s15, 16, %s1577_s26, [#allocation17]  }
  0xc9   : > { %s1628_s18 = sshll.u32 %s8138_s29, 4  ;;  %s7858_s16 = smov [#allocation19]   ;;  %s8289_s18 = int_to_ptr.hbm [resolvable:$true] %s1628_s18 }
  0xca   : > { %s1603_s1 = sshll.u32 %s7858_s16, 4  ;;  %s7337_s7 = sshra.s32 %s8278_s5, 4  ;;  %s1604_s1 = int_to_ptr.vmem [resolvable:$true] %s1603_s1  ;;  %s7338_s7 = int_to_ptr.hbm [resolvable:$true] %s7337_s7 }
  0xcb   : > { %s7339_s28 = scalar_lea.hbm %s7338_s7, 1  ;;  %s7344_s23 = scalar_lea.hbm %s8123_s14, 1 }
  0xcc   : > { %p7340_p4 = scmp.ne.s32.totalorder %s7338_s7, %s7339_s28  ;;  %p7345_p11 = scmp.lt.s32.totalorder %s7338_s7, %s8123_s14 }
  0xcd   : > { %p7346_p13 = scmp.lt.s32.totalorder %s7344_s23, %s7339_s28 }
  0xce   : > { %p7342_p7 = pnand %p7340_p4, %p8245_p0 }
  0xcf   : > { %p7347_p1 = por %p7346_p13, %p7345_p11 }
  0xd0   : > { %p7343_p8 = pneg %p7342_p7 }
  0xd2   : > { %p7348_p2 = pnand %p7347_p1, %p7343_p8 }
  0xd4   : > { %7351 = shalt.err (!%p7348_p2)
}
  0xd5   : > { %6994 = dma.hbm_to_vmem [thread:$0]  (!%p8234_p12), %s8278_s5, 16, %s1604_s1, [#allocation20]  }
  0xd6   : > { %s7859_s15 = smov [#allocation22]   ;;  %s1655_s10 = sshll.u32 %s8153_s21, 4  ;;  %s8300_s10 = int_to_ptr.hbm [resolvable:$true] %s1655_s10 }
  0xd7   : > { %s1630_s26 = sshll.u32 %s7859_s15, 4  ;;  %s7367_s16 = sshra.s32 %s8289_s18, 4  ;;  %s1631_s26 = int_to_ptr.vmem [resolvable:$true] %s1630_s26  ;;  %s7368_s16 = int_to_ptr.hbm [resolvable:$true] %s7367_s16 }
  0xd8   : > { %s7369_s7 = scalar_lea.hbm %s7368_s16, 1  ;;  %s7374_s28 = scalar_lea.hbm %s8138_s29, 1 }
  0xd9   : > { %p7370_p3 = scmp.ne.s32.totalorder %s7368_s16, %s7369_s7  ;;  %p7375_p8 = scmp.lt.s32.totalorder %s7368_s16, %s8138_s29 }
  0xda   : > { %p7376_p11 = scmp.lt.s32.totalorder %s7374_s28, %s7369_s7 }
  0xdb   : > { %p7372_p4 = pnand %p7370_p3, %p8245_p0 }
  0xdc   : > { %p7377_p13 = por %p7376_p11, %p7375_p8 }
  0xdd   : > { %p7373_p7 = pneg %p7372_p4 }
  0xdf   : > { %p7378_p1 = pnand %p7377_p13, %p7373_p7 }
  0xe1   : > { %7381 = shalt.err (!%p7378_p1)
}
  0xe2   : > { %7000 = dma.hbm_to_vmem [thread:$0]  (!%p8234_p12), %s8289_s18, 16, %s1631_s26, [#allocation23]  }
  0xe3   : > { %s1478_s5 = sshll.u32 %s10996_s4, 4  ;;  %s7860_s1 = smov [#allocation25]   ;;  %s8311_s5 = int_to_ptr.hbm [resolvable:$true] %s1478_s5 }
  0xe4   : > { %s1657_s23 = sshll.u32 %s7860_s1, 4  ;;  %s7397_s15 = sshra.s32 %s8300_s10, 4  ;;  %s1658_s23 = int_to_ptr.vmem [resolvable:$true] %s1657_s23  ;;  %s7398_s15 = int_to_ptr.hbm [resolvable:$true] %s7397_s15 }
  0xe5   : > { %s7399_s16 = scalar_lea.hbm %s7398_s15, 1  ;;  %s7404_s7 = scalar_lea.hbm %s8153_s21, 1 }
  0xe6   : > { %p7400_p2 = scmp.ne.s32.totalorder %s7398_s15, %s7399_s16  ;;  %p7405_p7 = scmp.lt.s32.totalorder %s7398_s15, %s8153_s21 }
  0xe7   : > { %p7406_p8 = scmp.lt.s32.totalorder %s7404_s7, %s7399_s16 }
  0xe8   : > { %p7402_p3 = pnand %p7400_p2, %p8245_p0 }
  0xe9   : > { %p7407_p11 = por %p7406_p8, %p7405_p7 }
  0xea   : > { %p7403_p4 = pneg %p7402_p3 }
  0xec   : > { %p7408_p13 = pnand %p7407_p11, %p7403_p4 }
  0xee   : > { %7411 = shalt.err (!%p7408_p13)
}
  0xef   : > { %7006 = dma.hbm_to_vmem [thread:$0]  (!%p8234_p12), %s8300_s10, 16, %s1658_s23, [#allocation26]  }
  0xf0   : > { %s7861_s18 = smov [#allocation4]   ;;  %s1505_s28 = sshll.u32 %s8068_s27, 4  ;;  %s8322_s28 = int_to_ptr.hbm [resolvable:$true] %s1505_s28 }
  0xf1   : > { %s1480_s26 = sshll.u32 %s7861_s18, 4  ;;  %s7427_s1 = sshra.s32 %s8311_s5, 4  ;;  %s1481_s26 = int_to_ptr.vmem [resolvable:$true] %s1480_s26  ;;  %s7428_s1 = int_to_ptr.hbm [resolvable:$true] %s7427_s1 }
  0xf2   : > { %s7429_s15 = scalar_lea.hbm %s7428_s1, 1  ;;  %s7434_s16 = scalar_lea.hbm %s10996_s4, 1 }
  0xf3   : > { %p7430_p1 = scmp.ne.s32.totalorder %s7428_s1, %s7429_s15  ;;  %p7435_p4 = scmp.lt.s32.totalorder %s7428_s1, %s10996_s4 }
  0xf4   : > { %p7436_p7 = scmp.lt.s32.totalorder %s7434_s16, %s7429_s15 }
  0xf5   : > { %p7432_p2 = pnand %p7430_p1, %p8245_p0 }
  0xf6   : > { %p7437_p8 = por %p7436_p7, %p7435_p4 }
  0xf7   : > { %p7433_p3 = pneg %p7432_p2 }
  0xf9   : > { %p7438_p11 = pnand %p7437_p8, %p7433_p3 }
  0xfb   : > { %7441 = shalt.err (!%p7438_p11)
}
  0xfc   : > { %6967 = dma.hbm_to_vmem [thread:$0]  (!%p8234_p12), %s8311_s5, 16, %s1481_s26, [#allocation5]  }
  0xfd   : > { %s1532_s10 = sshll.u32 %s8083_s24, 4  ;;  %s7862_s23 = smov [#allocation9]   ;;  %s8333_s10 = int_to_ptr.hbm [resolvable:$true] %s1532_s10 }
  0xfe   : > { %s1507_s7 = sshll.u32 %s7862_s23, 4  ;;  %s7457_s18 = sshra.s32 %s8322_s28, 4  ;;  %s1508_s7 = int_to_ptr.vmem [resolvable:$true] %s1507_s7  ;;  %s7458_s18 = int_to_ptr.hbm [resolvable:$true] %s7457_s18 }
  0xff   : > { %s7459_s1 = scalar_lea.hbm %s7458_s18, 1  ;;  %s7464_s15 = scalar_lea.hbm %s8068_s27, 1 }
 0x100   : > { %p7460_p13 = scmp.ne.s32.totalorder %s7458_s18, %s7459_s1  ;;  %p7465_p3 = scmp.lt.s32.totalorder %s7458_s18, %s8068_s27 }
 0x101   : > { %p7466_p4 = scmp.lt.s32.totalorder %s7464_s15, %s7459_s1 }
 0x102   : > { %p7462_p1 = pnand %p7460_p13, %p8245_p0 }
 0x103   : > { %p7467_p7 = por %p7466_p4, %p7465_p3 }
 0x104   : > { %p7463_p2 = pneg %p7462_p1 }
 0x106   : > { %p7468_p8 = pnand %p7467_p7, %p7463_p2 }
 0x108   : > { %7471 = shalt.err (!%p7468_p8)
}
 0x109   : > { %6973 = dma.hbm_to_vmem [thread:$0]  (!%p8234_p12), %s8322_s28, 16, %s1508_s7, [#allocation8]  }
 0x10a   : > { %s7863_s5 = smov [#allocation12]   ;;  %s1559_s16 = sshll.u32 %s10995_s6, 4  ;;  %s8344_s16 = int_to_ptr.hbm [resolvable:$true] %s1559_s16 }
 0x10b   : > { %s1534_s26 = sshll.u32 %s7863_s5, 4  ;;  %s7487_s23 = sshra.s32 %s8333_s10, 4  ;;  %s1535_s26 = int_to_ptr.vmem [resolvable:$true] %s1534_s26  ;;  %s7488_s23 = int_to_ptr.hbm [resolvable:$true] %s7487_s23 }
 0x10c   : > { %s7489_s18 = scalar_lea.hbm %s7488_s23, 1  ;;  %s7494_s1 = scalar_lea.hbm %s8083_s24, 1 }
 0x10d   : > { %p7490_p11 = scmp.ne.s32.totalorder %s7488_s23, %s7489_s18  ;;  %p7495_p2 = scmp.lt.s32.totalorder %s7488_s23, %s8083_s24 }
 0x10e   : > { %p7496_p3 = scmp.lt.s32.totalorder %s7494_s1, %s7489_s18 }
 0x10f   : > { %p7492_p13 = pnand %p7490_p11, %p8245_p0 }
 0x110   : > { %p7497_p4 = por %p7496_p3, %p7495_p2 }
 0x111   : > { %p7493_p1 = pneg %p7492_p13 }
 0x113   : > { %p7498_p7 = pnand %p7497_p4, %p7493_p1 }
 0x115   : > { %7501 = shalt.err (!%p7498_p7)
}
 0x116   : > { %6979 = dma.hbm_to_vmem [thread:$0]  (!%p8234_p12), %s8333_s10, 16, %s1535_s26, [#allocation11]  }
 0x117   : > { %s1586_s28 = sshll.u32 %s10994_s8, 4  ;;  %s7864_s7 = smov [#allocation15]   ;;  %s8355_s28 = int_to_ptr.hbm [resolvable:$true] %s1586_s28 }
 0x118   : > { %s1561_s15 = sshll.u32 %s7864_s7, 4  ;;  %s7517_s5 = sshra.s32 %s8344_s16, 4  ;;  %s1562_s15 = int_to_ptr.vmem [resolvable:$true] %s1561_s15  ;;  %s7518_s5 = int_to_ptr.hbm [resolvable:$true] %s7517_s5 }
 0x119   : > { %s7519_s23 = scalar_lea.hbm %s7518_s5, 1  ;;  %s7524_s18 = scalar_lea.hbm %s10995_s6, 1 }
 0x11a   : > { %p7520_p8 = scmp.ne.s32.totalorder %s7518_s5, %s7519_s23  ;;  %p7525_p1 = scmp.lt.s32.totalorder %s7518_s5, %s10995_s6 }
 0x11b   : > { %p7526_p2 = scmp.lt.s32.totalorder %s7524_s18, %s7519_s23 }
 0x11c   : > { %p7522_p11 = pnand %p7520_p8, %p8245_p0 }
 0x11d   : > { %p7527_p3 = por %p7526_p2, %p7525_p1 }
 0x11e   : > { %p7523_p13 = pneg %p7522_p11 }
 0x120   : > { %p7528_p4 = pnand %p7527_p3, %p7523_p13 }
 0x122   : > { %7531 = shalt.err (!%p7528_p4)
}
 0x123   : > { %6985 = dma.hbm_to_vmem [thread:$0]  (!%p8234_p12), %s8344_s16, 16, %s1562_s15, [#allocation14]  }
 0x124   : > { %s7865_s10 = smov [#allocation18]   ;;  %s1613_s1 = sshll.u32 %s8128_s25, 4  ;;  %s8366_s1 = int_to_ptr.hbm [resolvable:$true] %s1613_s1 }
 0x125   : > { %s1588_s26 = sshll.u32 %s7865_s10, 4  ;;  %s7547_s7 = sshra.s32 %s8355_s28, 4  ;;  %s1589_s26 = int_to_ptr.vmem [resolvable:$true] %s1588_s26  ;;  %s7548_s7 = int_to_ptr.hbm [resolvable:$true] %s7547_s7 }
 0x126   : > { %s7549_s5 = scalar_lea.hbm %s7548_s7, 1  ;;  %s7554_s23 = scalar_lea.hbm %s10994_s8, 1 }
 0x127   : > { %p7550_p7 = scmp.ne.s32.totalorder %s7548_s7, %s7549_s5  ;;  %p7555_p13 = scmp.lt.s32.totalorder %s7548_s7, %s10994_s8 }
 0x128   : > { %p7556_p1 = scmp.lt.s32.totalorder %s7554_s23, %s7549_s5 }
 0x129   : > { %p7552_p8 = pnand %p7550_p7, %p8245_p0 }
 0x12a   : > { %p7557_p2 = por %p7556_p1, %p7555_p13 }
 0x12b   : > { %p7553_p11 = pneg %p7552_p8 }
 0x12d   : > { %p7558_p3 = pnand %p7557_p2, %p7553_p11 }
 0x12f   : > { %7561 = shalt.err (!%p7558_p3)
}
 0x130   : > { %6991 = dma.hbm_to_vmem [thread:$0]  (!%p8234_p12), %s8355_s28, 16, %s1589_s26, [#allocation17]  }
 0x131   : > { %s1640_s16 = sshll.u32 %s10997_s3, 4  ;;  %s7866_s15 = smov [#allocation21]   ;;  %s8377_s16 = int_to_ptr.hbm [resolvable:$true] %s1640_s16 }
 0x132   : > { %s1615_s18 = sshll.u32 %s7866_s15, 4  ;;  %s7577_s10 = sshra.s32 %s8366_s1, 4  ;;  %s1616_s18 = int_to_ptr.vmem [resolvable:$true] %s1615_s18  ;;  %s7578_s10 = int_to_ptr.hbm [resolvable:$true] %s7577_s10 }
 0x133   : > { %s7579_s7 = scalar_lea.hbm %s7578_s10, 1  ;;  %s7584_s5 = scalar_lea.hbm %s8128_s25, 1 }
 0x134   : > { %p7580_p4 = scmp.ne.s32.totalorder %s7578_s10, %s7579_s7  ;;  %p7585_p11 = scmp.lt.s32.totalorder %s7578_s10, %s8128_s25 }
 0x135   : > { %p7586_p13 = scmp.lt.s32.totalorder %s7584_s5, %s7579_s7 }
 0x136   : > { %p7582_p7 = pnand %p7580_p4, %p8245_p0 }
 0x137   : > { %p7587_p1 = por %p7586_p13, %p7585_p11 }
 0x138   : > { %p7583_p8 = pneg %p7582_p7 }
 0x13a   : > { %p7588_p2 = pnand %p7587_p1, %p7583_p8 }
 0x13c   : > { %7591 = shalt.err (!%p7588_p2)
}
 0x13d   : > { %6997 = dma.hbm_to_vmem [thread:$0]  (!%p8234_p12), %s8366_s1, 16, %s1616_s18, [#allocation20]  }
 0x13e   : > { %s7867_s28 = smov [#allocation24]   ;;  %s1667_s23 = sshll.u32 %s8158_s13, 4  ;;  %s8388_s23 = int_to_ptr.hbm [resolvable:$true] %s1667_s23 }
 0x13f   : > { %s1642_s26 = sshll.u32 %s7867_s28, 4  ;;  %s7607_s15 = sshra.s32 %s8377_s16, 4  ;;  %s1643_s26 = int_to_ptr.vmem [resolvable:$true] %s1642_s26  ;;  %s7608_s15 = int_to_ptr.hbm [resolvable:$true] %s7607_s15 }
 0x140   : > { %s7609_s10 = scalar_lea.hbm %s7608_s15, 1  ;;  %s7614_s7 = scalar_lea.hbm %s10997_s3, 1 }
 0x141   : > { %p7610_p3 = scmp.ne.s32.totalorder %s7608_s15, %s7609_s10  ;;  %p7615_p8 = scmp.lt.s32.totalorder %s7608_s15, %s10997_s3 }
 0x142   : > { %p7616_p11 = scmp.lt.s32.totalorder %s7614_s7, %s7609_s10 }
 0x143   : > { %p7612_p4 = pnand %p7610_p3, %p8245_p0 }
 0x144   : > { %p7617_p13 = por %p7616_p11, %p7615_p8 }
 0x145   : > { %p7613_p7 = pneg %p7612_p4 }
 0x147   : > { %p7618_p1 = pnand %p7617_p13, %p7613_p7 }
 0x149   : > { %7621 = shalt.err (!%p7618_p1)
}
 0x14a   : > { %7003 = dma.hbm_to_vmem [thread:$0]  (!%p8234_p12), %s8377_s16, 16, %s1643_s26, [#allocation23]  }
 0x14b   : > { %s1682_s1 = sshll.u32 %s8168_s17, 4  ;;  %s7868_s18 = smov [#allocation27]   ;;  %s8399_s1 = int_to_ptr.hbm [resolvable:$true] %s1682_s1 }
 0x14c   : > { %s1669_s5 = sshll.u32 %s7868_s18, 4  ;;  %s7637_s28 = sshra.s32 %s8388_s23, 4  ;;  %s1670_s5 = int_to_ptr.vmem [resolvable:$true] %s1669_s5  ;;  %s7638_s28 = int_to_ptr.hbm [resolvable:$true] %s7637_s28 }
 0x14d   : > { %s7639_s15 = scalar_lea.hbm %s7638_s28, 1  ;;  %s7644_s10 = scalar_lea.hbm %s8158_s13, 1 }
 0x14e   : > { %p7640_p2 = scmp.ne.s32.totalorder %s7638_s28, %s7639_s15  ;;  %p7645_p7 = scmp.lt.s32.totalorder %s7638_s28, %s8158_s13 }
 0x14f   : > { %p7646_p8 = scmp.lt.s32.totalorder %s7644_s10, %s7639_s15 }
 0x150   : > { %p7642_p3 = pnand %p7640_p2, %p8245_p0 }
 0x151   : > { %p7647_p11 = por %p7646_p8, %p7645_p7 }
 0x152   : > { %p7643_p4 = pneg %p7642_p3 }
 0x154   : > { %p7648_p13 = pnand %p7647_p11, %p7643_p4 }
 0x156   : > { %7651 = shalt.err (!%p7648_p13)
}
 0x157   : > { %7009 = dma.hbm_to_vmem [thread:$0]  (!%p8234_p12), %s8388_s23, 16, %s1670_s5, [#allocation26]  }
 0x158   : > { %s7869_s16 = smov [#allocation28]   ;;  %s7667_s7 = sshra.s32 %s8399_s1, 4  ;;  %s7668_s7 = int_to_ptr.hbm [resolvable:$true] %s7667_s7 }
 0x159   : > { %s1684_s26 = sshll.u32 %s7869_s16, 4  ;;  %s7669_s18 = scalar_lea.hbm %s7668_s7, 1  ;;  %s1685_s26 = int_to_ptr.vmem [resolvable:$true] %s1684_s26 }
 0x15a   : > { %p7670_p1 = scmp.ne.s32.totalorder %s7668_s7, %s7669_s18  ;;  %s7674_s28 = scalar_lea.hbm %s8168_s17, 1 }
 0x15b   : > { %p7675_p4 = scmp.lt.s32.totalorder %s7668_s7, %s8168_s17  ;;  %p7676_p7 = scmp.lt.s32.totalorder %s7674_s28, %s7669_s18 }
 0x15c   : > { %p7672_p2 = pnand %p7670_p1, %p8245_p0 }
 0x15d   : > { %p7677_p8 = por %p7676_p7, %p7675_p4 }
 0x15e   : > { %p7673_p3 = pneg %p7672_p2 }
 0x160   : > { %p7678_p11 = pnand %p7677_p8, %p7673_p3 }
 0x162   : > { %7681 = shalt.err (!%p7678_p11)
}
 0x163   : > { %7012 = dma.hbm_to_vmem [thread:$0]  (!%p8234_p12), %s8399_s1, 16, %s1685_s26, [#allocation29]  }
 0x164   : > { %1705 = sbr.rel (%p8224_p10) target bundleno = 3237 (0xca5), region = 248 }
 0x169   : > { %7742 = dma.done.wait (%p7017_p9), [#allocation5], 16  }
 0x16a   : > { %7744 = vsyncadd (%p7017_p9), [#allocation5], 4294967280 }
 0x16b   : > { %7746 = dma.done.wait (%p7017_p9), [#allocation8], 32  }
 0x16c   : > { %7748 = vsyncadd (%p7017_p9), [#allocation8], 4294967264 }
 0x16d   : > { %7750 = dma.done.wait (%p7017_p9), [#allocation11], 32  }
 0x16e   : > { %7752 = vsyncadd (%p7017_p9), [#allocation11], 4294967264 }
 0x16f   : > { %7754 = dma.done.wait (%p7017_p9), [#allocation14], 32  }
 0x170   : > { %7756 = vsyncadd (%p7017_p9), [#allocation14], 4294967264 }
 0x171   : > { %7758 = dma.done.wait (%p7017_p9), [#allocation17], 32  }
 0x172   : > { %7760 = vsyncadd (%p7017_p9), [#allocation17], 4294967264 }
 0x173   : > { %7762 = dma.done.wait (%p7017_p9), [#allocation20], 32  }
 0x174   : > { %7764 = vsyncadd (%p7017_p9), [#allocation20], 4294967264 }
 0x175   : > { %7766 = dma.done.wait (%p7017_p9), [#allocation23], 32  }
 0x176   : > { %7768 = vsyncadd (%p7017_p9), [#allocation23], 4294967264 }
 0x177   : > { %7770 = dma.done.wait (%p7017_p9), [#allocation26], 32  }
 0x178   : > { %7772 = vsyncadd (%p7017_p9), [#allocation26], 4294967264 }
 0x179   : > { %7774 = dma.done.wait (%p7017_p9), [#allocation29], 16  }
 0x17a   : > { %7776 = vsyncadd (%p7017_p9), [#allocation29], 4294967280  ;;  %s11011_s11 = sld [smem:[#allocation41_spill]]  ;;  %p1912_p10 = scmp.lt.s32.totalorder %s8196_s0, 1  ;;  %vm2038_vm0 = vcmask 261120   ;;  %vm1918_vm1 = vcmask 516096  }
 0x17b   : > { %s11012_s2 = sld [smem:[#allocation42_spill]]  ;;  %s10919_s10 = smov 88   ;;  %vm4453_vm2 = vcmask 64512   ;;  %vm5133_vm3 = vcmask 130048   ;;  %vm5574_vm4 = vcmask 195584   ;;  %vm4485_vm5 = vcmask 59392  }
 0x17c   : > { %s1913_s22 = scalar_select %p1912_p10, %s8196_s0, 1  ;;  %vm5165_vm6 = vcmask 124928   ;;  %vm5590_vm7 = vcmask 193536   ;;  %vm5823_vm8 = vcmask 260096   ;;  %vm5947_vm9 = vcmask 523264  }
 0x17d   : > { %s11020_s5 = sld [smem:[#allocation43_spill]]  ;;  %s10908_s26 = smov 104   ;;  %vm6173_vm10 = vcmask 519168   ;;  %vm6241_vm11 = vcmask 517120   ;;  %vm6288_vm12 = vcmask 254976   ;;  %vm6332_vm14 = vcmask 73728  }
 0x17e   : > { %s6885_s23 = sshll.u32 %s1913_s22, 8  ;;  %s11022_s15 = sld [smem:[#allocation44_spill]] }
 0x17f   : > { %s10915_s7 = smov 120   ;;  %s10923_s18 = smov 96  }
 0x180   : > { %s8458_s1 = scalar_lea.vmem %s11011_s11, %s6885_s23  ;;  %s10927_s28 = smov 112  }
 0x181   : > { %v6889_v0 = vld [vmem:[%s11012_s2 + $0x18] sm:$0xff]  ;;  %v6887_v1 = vld [vmem:[%s11012_s2 + $0x8] sm:$0xff]  ;;  %v6888_v4 = vld [vmem:[%s11012_s2 + $0x10] sm:$0xff]  ;;  %s10925_s11 = smov 80   ;;  %s10917_s22 = smov 72  }
 0x182   : > { %v6891_v2 = vld [vmem:[%s11012_s2 + $0x28] sm:$0xff]  ;;  %v6893_v3 = vld [vmem:[%s11012_s2 + $0x38] sm:$0xff]  ;;  %v6886_v5 = vld [vmem:[%s11012_s2] sm:$0xff]  ;;  %2093 = vmatpush.bf16.msra.mxu0 %v6889_v0  ;;  %2242 = vmatpush.bf16.msra.mxu1 %v6887_v1  ;;  %s10921_s23 = smov 64   ;;  %s11178_s3 = smov 112  }
 0x183   : > { %v6890_v6 = vld [vmem:[%s11012_s2 + $0x20] sm:$0xff]  ;;  %v6892_v7 = vld [vmem:[%s11012_s2 + $0x30] sm:$0xff]  ;;  %2444 = vmatpush.bf16.msra.mxu2 %v6891_v2  ;;  %2678 = vmatpush.bf16.msra.mxu3 %v6893_v3  ;;  %v1922_v11 = vld [vmem:[%s8458_s1 + $0x8] sm:$0xff]  ;;  %s11180_s4 = sld [smem:[#allocation52_spill]]  ;;  %s11183_s6 = smov 80  }
 0x184   : > { %v1973_v8 = vld [vmem:[%s8458_s1 + $0x1] sm:$0xff]  ;;  %v1974_v9 = vld [vmem:[%s8458_s1 + $0x9] sm:$0xff]  ;;  %v6897_v19 = vld [vmem:[%s11012_s2 + $0x58] sm:$0xff]  ;;  %s11023_s16 = smov %s11022_s15 }
 0x185   : > { %v1921_v10 = vld [vmem:[%s8458_s1] sm:$0xff]  ;;  %v2326_v13 = vld [vmem:[%s8458_s1 + $0xa] sm:$0xff]  ;;  %v2005_v15 = vpack.c.bf16 %v1974_v9, %v1973_v8  ;;  %v1924_v25 = vld [vmem:[%s8458_s1 + $0x18] sm:$0xff] }
 0x186   : > { %v2325_v12 = vld [vmem:[%s8458_s1 + $0x2] sm:$0xff]  ;;  %v1953_v16 = vpack.c.bf16 %v1922_v11, %v1921_v10  ;;  %v2560_v18 = vld [vmem:[%s8458_s1 + $0xb] sm:$0xff]  ;;  %2094 = vmatpush.bf16.msra.mxu0 %v6888_v4  ;;  %2243 = vmatpush.bf16.msra.mxu1 %v6886_v5  ;;  %v1976_v23 = vld [vmem:[%s8458_s1 + $0x19] sm:$0xff] }
 0x187   : > { %v6895_v14 = vld [vmem:[%s11012_s2 + $0x48] sm:$0xff]  ;;  %v2357_v20 = vpack.c.bf16 %v2326_v13, %v2325_v12  ;;  %2445 = vmatpush.bf16.msra.mxu2 %v6890_v6  ;;  %2679 = vmatpush.bf16.msra.mxu3 %v6892_v7  ;;  %v1975_v22 = vld [vmem:[%s8458_s1 + $0x11] sm:$0xff]  ;;  %v2328_v27 = vld [vmem:[%s8458_s1 + $0x1a] sm:$0xff] }
 0x188   : > { %v2559_v17 = vld [vmem:[%s8458_s1 + $0x3] sm:$0xff]  ;;  %v1923_v24 = vld [vmem:[%s8458_s1 + $0x10] sm:$0xff]  ;;  %v2562_v29 = vld [vmem:[%s8458_s1 + $0x1b] sm:$0xff]  ;;  %v2006_v30 = vpack.c.bf16 %v1976_v23, %v1975_v22 }
 0x189   : > { %v2591_v21 = vpack.c.bf16 %v2560_v18, %v2559_v17  ;;  %6664 = vmatmul.msk.bf16.vlgmr.msra.gmra.mxu0 %vm2038_vm0, %v2005_v15  ;;  %6688 = vmatmul.msk.bf16.vlgmr.msra.gmra.mxu1 %vm2038_vm0, %v1953_v16  ;;  %v2327_v26 = vld [vmem:[%s8458_s1 + $0x12] sm:$0xff]  ;;  %v1954_v31 = vpack.c.bf16 %v1924_v25, %v1923_v24  ;;  %v1977_v34 = vld [vmem:[%s8458_s1 + $0x21] sm:$0xff]  ;;  %v1978_v35 = vld [vmem:[%s8458_s1 + $0x29] sm:$0xff] }
 0x18a   : > { %2912 = vmatpush.bf16.msrb.mxu0 %v6895_v14  ;;  %3146 = vmatpush.bf16.msrb.mxu1 %v6897_v19  ;;  %v2561_v28 = vld [vmem:[%s8458_s1 + $0x13] sm:$0xff]  ;;  %v2358_v32 = vpack.c.bf16 %v2328_v27, %v2327_v26  ;;  %v1925_v36 = vld [vmem:[%s8458_s1 + $0x20] sm:$0xff]  ;;  %v1926_v37 = vld [vmem:[%s8458_s1 + $0x28] sm:$0xff]  ;;  %v2007_v42 = vpack.c.bf16 %v1978_v35, %v1977_v34 }
 0x18b   : > { %6716 = vmatmul.msk.bf16.vlgmr.msra.gmra.mxu2 %vm2038_vm0, %v2357_v20  ;;  %6744 = vmatmul.msk.bf16.vlgmr.msra.gmra.mxu3 %vm2038_vm0, %v2591_v21  ;;  %v2592_v33 = vpack.c.bf16 %v2562_v29, %v2561_v28  ;;  %v2329_v38 = vld [vmem:[%s8458_s1 + $0x22] sm:$0xff]  ;;  %v2330_v39 = vld [vmem:[%s8458_s1 + $0x2a] sm:$0xff]  ;;  %v1955_v43 = vpack.c.bf16 %v1926_v37, %v1925_v36  ;;  %v1980_v47 = vld [vmem:[%s8458_s1 + $0x39] sm:$0xff] }
 0x18c   : > { %v2563_v40 = vld [vmem:[%s8458_s1 + $0x23] sm:$0xff]  ;;  %v2564_v41 = vld [vmem:[%s8458_s1 + $0x2b] sm:$0xff]  ;;  %v2359_v44 = vpack.c.bf16 %v2330_v39, %v2329_v38  ;;  %v1928_v49 = vld [vmem:[%s8458_s1 + $0x38] sm:$0xff] }
 0x18d   : > { %v2593_v45 = vpack.c.bf16 %v2564_v41, %v2563_v40  ;;  %v1979_v46 = vld [vmem:[%s8458_s1 + $0x31] sm:$0xff]  ;;  %v2332_v51 = vld [vmem:[%s8458_s1 + $0x3a] sm:$0xff]  ;;  %v1982_v59 = vld [vmem:[%s8458_s1 + $0x49] sm:$0xff] }
 0x18e   : > { %v1927_v48 = vld [vmem:[%s8458_s1 + $0x30] sm:$0xff]  ;;  %v2566_v53 = vld [vmem:[%s8458_s1 + $0x3b] sm:$0xff]  ;;  %v2008_v54 = vpack.c.bf16 %v1980_v47, %v1979_v46  ;;  %v1930_v61 = vld [vmem:[%s8458_s1 + $0x48] sm:$0xff] }
 0x18f   : > { %v2331_v50 = vld [vmem:[%s8458_s1 + $0x32] sm:$0xff]  ;;  %v1956_v55 = vpack.c.bf16 %v1928_v49, %v1927_v48  ;;  %v1981_v58 = vld [vmem:[%s8458_s1 + $0x41] sm:$0xff]  ;;  %v2334_v63 = vld [vmem:[%s8458_s1 + $0x4a] sm:$0xff] }
 0x190   : > { %v2565_v52 = vld [vmem:[%s8458_s1 + $0x33] sm:$0xff]  ;;  %v2360_v56 = vpack.c.bf16 %v2332_v51, %v2331_v50  ;;  %v1929_v60 = vld [vmem:[%s8458_s1 + $0x40] sm:$0xff]  ;;  %v2568_v1 = vld [vmem:[%s8458_s1 + $0x4b] sm:$0xff]  ;;  %v2009_v2 = vpack.c.bf16 %v1982_v59, %v1981_v58 }
 0x191   : > { %v2594_v57 = vpack.c.bf16 %v2566_v53, %v2565_v52  ;;  %v2333_v62 = vld [vmem:[%s8458_s1 + $0x42] sm:$0xff]  ;;  %v1957_v3 = vpack.c.bf16 %v1930_v61, %v1929_v60  ;;  %v1983_v6 = vld [vmem:[%s8458_s1 + $0x51] sm:$0xff]  ;;  %v1984_v7 = vld [vmem:[%s8458_s1 + $0x59] sm:$0xff] }
 0x192   : > { %v2567_v0 = vld [vmem:[%s8458_s1 + $0x43] sm:$0xff]  ;;  %v2361_v4 = vpack.c.bf16 %v2334_v63, %v2333_v62  ;;  %v1931_v8 = vld [vmem:[%s8458_s1 + $0x50] sm:$0xff]  ;;  %v1932_v9 = vld [vmem:[%s8458_s1 + $0x58] sm:$0xff]  ;;  %v2010_v14 = vpack.c.bf16 %v1984_v7, %v1983_v6 }
 0x193   : > { %v2595_v5 = vpack.c.bf16 %v2568_v1, %v2567_v0  ;;  %v2335_v10 = vld [vmem:[%s8458_s1 + $0x52] sm:$0xff]  ;;  %v2336_v11 = vld [vmem:[%s8458_s1 + $0x5a] sm:$0xff]  ;;  %v1958_v15 = vpack.c.bf16 %v1932_v9, %v1931_v8  ;;  %v1986_v19 = vld [vmem:[%s8458_s1 + $0x69] sm:$0xff] }
 0x194   : > { %v2569_v12 = vld [vmem:[%s8458_s1 + $0x53] sm:$0xff]  ;;  %v2570_v13 = vld [vmem:[%s8458_s1 + $0x5b] sm:$0xff]  ;;  %v2362_v16 = vpack.c.bf16 %v2336_v11, %v2335_v10  ;;  %v1934_v21 = vld [vmem:[%s8458_s1 + $0x68] sm:$0xff] }
 0x195   : > { %v2596_v17 = vpack.c.bf16 %v2570_v13, %v2569_v12  ;;  %v1985_v18 = vld [vmem:[%s8458_s1 + $0x61] sm:$0xff]  ;;  %v2338_v23 = vld [vmem:[%s8458_s1 + $0x6a] sm:$0xff]  ;;  %v1936_v35 = vld [vmem:[%s8458_s1 + $0x78] sm:$0xff] }
 0x196   : > { %v1933_v20 = vld [vmem:[%s8458_s1 + $0x60] sm:$0xff]  ;;  %v2572_v25 = vld [vmem:[%s8458_s1 + $0x6b] sm:$0xff]  ;;  %v2011_v26 = vpack.c.bf16 %v1986_v19, %v1985_v18  ;;  %v2573_v38 = vld [vmem:[%s8458_s1 + $0x73] sm:$0xff] }
 0x197   : > { %v2337_v22 = vld [vmem:[%s8458_s1 + $0x62] sm:$0xff]  ;;  %v1959_v27 = vpack.c.bf16 %v1934_v21, %v1933_v20  ;;  %v1935_v34 = vld [vmem:[%s8458_s1 + $0x70] sm:$0xff]  ;;  %v2340_v37 = vld [vmem:[%s8458_s1 + $0x7a] sm:$0xff] }
 0x198   : > { %v2571_v24 = vld [vmem:[%s8458_s1 + $0x63] sm:$0xff]  ;;  %v2363_v28 = vpack.c.bf16 %v2338_v23, %v2337_v22  ;;  %v2339_v36 = vld [vmem:[%s8458_s1 + $0x72] sm:$0xff]  ;;  %v2574_v39 = vld [vmem:[%s8458_s1 + $0x7b] sm:$0xff]  ;;  %v1960_v41 = vpack.c.bf16 %v1936_v35, %v1935_v34 }
 0x199   : > { %6665 = vmatmul.msk.bf16.gmra.mxu0 %vm2038_vm0, %v2006_v30  ;;  %6689 = vmatmul.msk.bf16.gmra.mxu1 %vm2038_vm0, %v1954_v31  ;;  %v2597_v29 = vpack.c.bf16 %v2572_v25, %v2571_v24  ;;  %v6894_v30 = vld [vmem:[%s11012_s2 + $0x40] sm:$0xff]  ;;  %v6896_v31 = vld [vmem:[%s11012_s2 + $0x50] sm:$0xff]  ;;  %v1938_v47 = vld [vmem:[%s8458_s1 + $0x88] sm:$0xff]  ;;  %s11175_s2 = smov 88  }
 0x19a   : > { %2913 = vmatpush.bf16.msrb.mxu0 %v6894_v30  ;;  %3147 = vmatpush.bf16.msrb.mxu1 %v6896_v31  ;;  %v1937_v46 = vld [vmem:[%s8458_s1 + $0x80] sm:$0xff]  ;;  %v2342_v49 = vld [vmem:[%s8458_s1 + $0x8a] sm:$0xff]  ;;  %v2343_v6 = vld [vmem:[%s8458_s1 + $0x92] sm:$0xff] }
 0x19b   : > { %6717 = vmatmul.msk.bf16.gmra.mxu2 %vm2038_vm0, %v2358_v32  ;;  %6745 = vmatmul.msk.bf16.gmra.mxu3 %vm2038_vm0, %v2592_v33  ;;  %v1987_v32 = vld [vmem:[%s8458_s1 + $0x71] sm:$0xff]  ;;  %v1988_v33 = vld [vmem:[%s8458_s1 + $0x79] sm:$0xff]  ;;  %v2341_v48 = vld [vmem:[%s8458_s1 + $0x82] sm:$0xff]  ;;  %v1961_v53 = vpack.c.bf16 %v1938_v47, %v1937_v46 }
 0x19c   : > { %v2012_v40 = vpack.c.bf16 %v1988_v33, %v1987_v32  ;;  %v2575_v50 = vld [vmem:[%s8458_s1 + $0x83] sm:$0xff]  ;;  %v2576_v51 = vld [vmem:[%s8458_s1 + $0x8b] sm:$0xff]  ;;  %v2344_v7 = vld [vmem:[%s8458_s1 + $0x9a] sm:$0xff] }
 0x19d   : > { %v2577_v8 = vld [vmem:[%s8458_s1 + $0x93] sm:$0xff]  ;;  %v2578_v9 = vld [vmem:[%s8458_s1 + $0x9b] sm:$0xff]  ;;  %v1942_v31 = vld [vmem:[%s8458_s1 + $0xa8] sm:$0xff] }
 0x19e   : > { %v2600_v18 = vpack.c.bf16 %v2578_v9, %v2577_v8  ;;  %v1941_v30 = vld [vmem:[%s8458_s1 + $0xa0] sm:$0xff]  ;;  %v2346_v33 = vld [vmem:[%s8458_s1 + $0xaa] sm:$0xff] }
 0x19f   : > { %v2345_v32 = vld [vmem:[%s8458_s1 + $0xa2] sm:$0xff]  ;;  %v2580_v35 = vld [vmem:[%s8458_s1 + $0xab] sm:$0xff] }
 0x1a0   : > { %v2579_v34 = vld [vmem:[%s8458_s1 + $0xa3] sm:$0xff] }
 0x1a9   : > { %6666 = vmatmul.msk.bf16.gmra.mxu0 %vm2038_vm0, %v2007_v42  ;;  %6690 = vmatmul.msk.bf16.gmra.mxu1 %vm2038_vm0, %v1955_v43  ;;  %v2364_v42 = vpack.c.bf16 %v2340_v37, %v2339_v36  ;;  %v2598_v43 = vpack.c.bf16 %v2574_v39, %v2573_v38  ;;  %v1963_v39 = vpack.c.bf16 %v1942_v31, %v1941_v30 }
 0x1ab   : > { %6718 = vmatmul.msk.bf16.gmra.mxu2 %vm2038_vm0, %v2359_v44  ;;  %6746 = vmatmul.msk.bf16.gmra.mxu3 %vm2038_vm0, %v2593_v45  ;;  %v1989_v44 = vld [vmem:[%s8458_s1 + $0x81] sm:$0xff]  ;;  %v1990_v45 = vld [vmem:[%s8458_s1 + $0x89] sm:$0xff] }
 0x1ac   : > { %v2013_v52 = vpack.c.bf16 %v1990_v45, %v1989_v44  ;;  %v2601_v44 = vpack.c.bf16 %v2580_v35, %v2579_v34 }
 0x1b9   : > { %6667 = vmatmul.msk.bf16.gmra.mxu0 %vm2038_vm0, %v2008_v54  ;;  %6691 = vmatmul.msk.bf16.gmra.mxu1 %vm2038_vm0, %v1956_v55 }
 0x1bb   : > { %6719 = vmatmul.msk.bf16.gmra.mxu2 %vm2038_vm0, %v2360_v56  ;;  %6747 = vmatmul.msk.bf16.gmra.mxu3 %vm2038_vm0, %v2594_v57  ;;  %v2365_v56 = vpack.c.bf16 %v2342_v49, %v2341_v48  ;;  %v2599_v57 = vpack.c.bf16 %v2576_v51, %v2575_v50 }
 0x1c9   : > { %6668 = vmatmul.msk.bf16.gmra.mxu0 %vm2038_vm0, %v2009_v2  ;;  %6692 = vmatmul.msk.bf16.gmra.mxu1 %vm2038_vm0, %v1957_v3  ;;  %v1991_v2 = vld [vmem:[%s8458_s1 + $0x91] sm:$0xff]  ;;  %v1992_v3 = vld [vmem:[%s8458_s1 + $0x99] sm:$0xff] }
 0x1ca   : > { %v2014_v12 = vpack.c.bf16 %v1992_v3, %v1991_v2 }
 0x1cb   : > { %6720 = vmatmul.msk.bf16.gmra.mxu2 %vm2038_vm0, %v2361_v4  ;;  %6748 = vmatmul.msk.bf16.gmra.mxu3 %vm2038_vm0, %v2595_v5  ;;  %v1939_v4 = vld [vmem:[%s8458_s1 + $0x90] sm:$0xff]  ;;  %v1940_v5 = vld [vmem:[%s8458_s1 + $0x98] sm:$0xff] }
 0x1cc   : > { %v1962_v13 = vpack.c.bf16 %v1940_v5, %v1939_v4 }
 0x1d9   : > { %6669 = vmatmul.msk.bf16.gmra.mxu0 %vm2038_vm0, %v2010_v14  ;;  %6693 = vmatmul.msk.bf16.gmra.mxu1 %vm2038_vm0, %v1958_v15 }
 0x1db   : > { %6721 = vmatmul.msk.bf16.gmra.mxu2 %vm2038_vm0, %v2362_v16  ;;  %6749 = vmatmul.msk.bf16.gmra.mxu3 %vm2038_vm0, %v2596_v17  ;;  %v2366_v17 = vpack.c.bf16 %v2344_v7, %v2343_v6 }
 0x1e9   : > { %6670 = vmatmul.msk.bf16.gmra.mxu0 %vm2038_vm0, %v2011_v26  ;;  %6694 = vmatmul.msk.bf16.gmra.mxu1 %vm2038_vm0, %v1959_v27 }
 0x1eb   : > { %6722 = vmatmul.msk.bf16.gmra.mxu2 %vm2038_vm0, %v2363_v28  ;;  %6750 = vmatmul.msk.bf16.gmra.mxu3 %vm2038_vm0, %v2597_v29  ;;  %v1993_v28 = vld [vmem:[%s8458_s1 + $0xa1] sm:$0xff]  ;;  %v1994_v29 = vld [vmem:[%s8458_s1 + $0xa9] sm:$0xff] }
 0x1ec   : > { %v2015_v38 = vpack.c.bf16 %v1994_v29, %v1993_v28 }
 0x1f9   : > { %6671 = vmatmul.msk.bf16.gmra.mxu0 %vm2038_vm0, %v2012_v40  ;;  %6695 = vmatmul.msk.bf16.gmra.mxu1 %vm2038_vm0, %v1960_v41 }
 0x1fb   : > { %6723 = vmatmul.msk.bf16.gmra.mxu2 %vm2038_vm0, %v2364_v42  ;;  %6751 = vmatmul.msk.bf16.gmra.mxu3 %vm2038_vm0, %v2598_v43  ;;  %v2367_v43 = vpack.c.bf16 %v2346_v33, %v2345_v32 }
 0x206   : > { %v2096_v54 = vpop.f32.mrf.mxu0  ;;  %v2245_v55 = vpop.f32.mrf.mxu1 }
 0x207   : > { %v2246_v58 = vadd.f32 %v2245_v55, %v2096_v54  ;;  %v1995_v54 = vld [vmem:[%s8458_s1 + $0xb1] sm:$0xff]  ;;  %v1996_v55 = vld [vmem:[%s8458_s1 + $0xb9] sm:$0xff] }
 0x209   : > { %6672 = vmatmul.msk.bf16.gmra.mxu0 %vm2038_vm0, %v2013_v52  ;;  %6696 = vmatmul.msk.bf16.gmra.mxu1 %vm2038_vm0, %v1961_v53 }
 0x20b   : > { %6724 = vmatmul.msk.bf16.gmra.mxu2 %vm2038_vm0, %v2365_v56  ;;  %6752 = vmatmul.msk.bf16.gmra.mxu3 %vm2038_vm0, %v2599_v57  ;;  %v1943_v56 = vld [vmem:[%s8458_s1 + $0xb0] sm:$0xff]  ;;  %v1944_v57 = vld [vmem:[%s8458_s1 + $0xb8] sm:$0xff] }
 0x20c   : > { %v1964_v2 = vpack.c.bf16 %v1944_v57, %v1943_v56 }
 0x20e   : > { %v2447_v59 = vpop.f32.mrf.mxu2  ;;  %v2681_v60 = vpop.f32.mrf.mxu3 }
 0x20f   : > { %v2527_v61 = vadd.f32 %v2447_v59, %v2246_v58  ;;  %v2098_v62 = vpop.f32.mrf.mxu0  ;;  %v2247_v63 = vpop.f32.mrf.mxu1  ;;  %v2347_v58 = vld [vmem:[%s8458_s1 + $0xb2] sm:$0xff]  ;;  %v2348_v59 = vld [vmem:[%s8458_s1 + $0xba] sm:$0xff] }
 0x210   : > { %v2248_v0 = vadd.f32 %v2247_v63, %v2098_v62  ;;  %v2368_v6 = vpack.c.bf16 %v2348_v59, %v2347_v58 }
 0x211   : > { %v8580_v1 = vadd.f32 %v2681_v60, %v2527_v61  ;;  %v2581_v60 = vld [vmem:[%s8458_s1 + $0xb3] sm:$0xff]  ;;  %v2582_v61 = vld [vmem:[%s8458_s1 + $0xbb] sm:$0xff] }
 0x212   : > { %v2602_v7 = vpack.c.bf16 %v2582_v61, %v2581_v60  ;;  %v2001_v61 = vld [vmem:[%s8458_s1 + $0xe1] sm:$0xff] }
 0x216   : > { %v2449_v10 = vpop.f32.mrf.mxu2  ;;  %v2683_v11 = vpop.f32.mrf.mxu3 }
 0x217   : > { %v2528_v14 = vadd.f32 %v2449_v10, %v2248_v0  ;;  %v2101_v15 = vpop.f32.mrf.mxu0  ;;  %v2250_v16 = vpop.f32.mrf.mxu1  ;;  %v2016_v0 = vpack.c.bf16 %v1996_v55, %v1995_v54 }
 0x218   : > { %v2251_v19 = vadd.f32 %v2250_v16, %v2101_v15 }
 0x219   : > { %v8590_v20 = vadd.f32 %v2683_v11, %v2528_v14  ;;  %6673 = vmatmul.msk.bf16.gmra.mxu0 %vm2038_vm0, %v2014_v12  ;;  %6697 = vmatmul.msk.bf16.gmra.mxu1 %vm2038_vm0, %v1962_v13 }
 0x21b   : > { %6725 = vmatmul.msk.bf16.gmra.mxu2 %vm2038_vm0, %v2366_v17  ;;  %6753 = vmatmul.msk.bf16.gmra.mxu3 %vm2038_vm0, %v2600_v18  ;;  %v1997_v17 = vld [vmem:[%s8458_s1 + $0xc1] sm:$0xff]  ;;  %v1998_v18 = vld [vmem:[%s8458_s1 + $0xc9] sm:$0xff] }
 0x21c   : > { %v2017_v29 = vpack.c.bf16 %v1998_v18, %v1997_v17  ;;  %v2003_v18 = vld [vmem:[%s8458_s1 + $0xf1] sm:$0xff] }
 0x21e   : > { %v2452_v21 = vpop.f32.mrf.mxu2  ;;  %v2686_v22 = vpop.f32.mrf.mxu3 }
 0x21f   : > { %v2529_v23 = vadd.f32 %v2452_v21, %v2251_v19  ;;  %v2103_v24 = vpop.f32.mrf.mxu0  ;;  %v2252_v25 = vpop.f32.mrf.mxu1  ;;  %v1945_v19 = vld [vmem:[%s8458_s1 + $0xc0] sm:$0xff]  ;;  %v1946_v21 = vld [vmem:[%s8458_s1 + $0xc8] sm:$0xff] }
 0x220   : > { %v2253_v26 = vadd.f32 %v2252_v25, %v2103_v24  ;;  %v2583_v24 = vld [vmem:[%s8458_s1 + $0xc3] sm:$0xff]  ;;  %v2584_v25 = vld [vmem:[%s8458_s1 + $0xcb] sm:$0xff]  ;;  %v1965_v30 = vpack.c.bf16 %v1946_v21, %v1945_v19  ;;  %v2004_v19 = vld [vmem:[%s8458_s1 + $0xf9] sm:$0x7] }
 0x221   : > { %v8596_v27 = vadd.f32 %v2686_v22, %v2529_v23  ;;  %v2349_v22 = vld [vmem:[%s8458_s1 + $0xc2] sm:$0xff]  ;;  %v2350_v23 = vld [vmem:[%s8458_s1 + $0xca] sm:$0xff]  ;;  %v2603_v35 = vpack.c.bf16 %v2584_v25, %v2583_v24  ;;  %v2356_v24 = vld [vmem:[%s8458_s1 + $0xfa] sm:$0x7] }
 0x222   : > { %v2369_v34 = vpack.c.bf16 %v2350_v23, %v2349_v22  ;;  %v1951_v21 = vld [vmem:[%s8458_s1 + $0xf0] sm:$0xff]  ;;  %v1952_v22 = vld [vmem:[%s8458_s1 + $0xf8] sm:$0x7] }
 0x223   : > { %v2355_v23 = vld [vmem:[%s8458_s1 + $0xf2] sm:$0xff] }
 0x224   : > { %v2589_v25 = vld [vmem:[%s8458_s1 + $0xf3] sm:$0xff] }
 0x226   : > { %v2454_v36 = vpop.f32.mrf.mxu2  ;;  %v2688_v37 = vpop.f32.mrf.mxu3 }
 0x227   : > { %v2530_v40 = vadd.f32 %v2454_v36, %v2253_v26  ;;  %v2106_v41 = vpop.f32.mrf.mxu0  ;;  %v2255_v42 = vpop.f32.mrf.mxu1 }
 0x228   : > { %v2256_v45 = vadd.f32 %v2255_v42, %v2106_v41  ;;  %v1999_v41 = vld [vmem:[%s8458_s1 + $0xd1] sm:$0xff]  ;;  %v2000_v42 = vld [vmem:[%s8458_s1 + $0xd9] sm:$0xff] }
 0x229   : > { %v8606_v46 = vadd.f32 %v2688_v37, %v2530_v40  ;;  %6674 = vmatmul.msk.bf16.gmra.mxu0 %vm2038_vm0, %v2015_v38  ;;  %6698 = vmatmul.msk.bf16.gmra.mxu1 %vm2038_vm0, %v1963_v39 }
 0x22b   : > { %6726 = vmatmul.msk.bf16.gmra.mxu2 %vm2038_vm0, %v2367_v43  ;;  %6754 = vmatmul.msk.bf16.gmra.mxu3 %vm2038_vm0, %v2601_v44  ;;  %v1947_v43 = vld [vmem:[%s8458_s1 + $0xd0] sm:$0xff]  ;;  %v1948_v44 = vld [vmem:[%s8458_s1 + $0xd8] sm:$0xff] }
 0x22e   : > { %v2457_v47 = vpop.f32.mrf.mxu2  ;;  %v2691_v48 = vpop.f32.mrf.mxu3 }
 0x22f   : > { %v2531_v49 = vadd.f32 %v2457_v47, %v2256_v45  ;;  %v2108_v50 = vpop.f32.mrf.mxu0  ;;  %v2257_v51 = vpop.f32.mrf.mxu1  ;;  %v2351_v45 = vld [vmem:[%s8458_s1 + $0xd2] sm:$0xff]  ;;  %v2352_v47 = vld [vmem:[%s8458_s1 + $0xda] sm:$0xff] }
 0x230   : > { %v2258_v52 = vadd.f32 %v2257_v51, %v2108_v50  ;;  %v2018_v50 = vpack.c.bf16 %v2000_v42, %v1999_v41  ;;  %v1966_v51 = vpack.c.bf16 %v1948_v44, %v1947_v43  ;;  %v2370_v55 = vpack.c.bf16 %v2352_v47, %v2351_v45  ;;  %v2793_v41 = vld [vmem:[%s8458_s1 + $0x4] sm:$0xff]  ;;  %v2794_v42 = vld [vmem:[%s8458_s1 + $0xc] sm:$0xff] }
 0x231   : > { %v8612_v53 = vadd.f32 %v2691_v48, %v2531_v49  ;;  %v2585_v48 = vld [vmem:[%s8458_s1 + $0xd3] sm:$0xff]  ;;  %v2586_v49 = vld [vmem:[%s8458_s1 + $0xdb] sm:$0xff]  ;;  %v3027_v43 = vld [vmem:[%s8458_s1 + $0x5] sm:$0xff]  ;;  %v2825_v45 = vpack.c.bf16 %v2794_v42, %v2793_v41 }
 0x232   : > { %v2604_v56 = vpack.c.bf16 %v2586_v49, %v2585_v48  ;;  %v3028_v44 = vld [vmem:[%s8458_s1 + $0xd] sm:$0xff]  ;;  %v2801_v41 = vld [vmem:[%s8458_s1 + $0x44] sm:$0xff] }
 0x233   : > { %v3059_v47 = vpack.c.bf16 %v3028_v44, %v3027_v43  ;;  %v2802_v42 = vld [vmem:[%s8458_s1 + $0x4c] sm:$0xff] }
 0x234   : > { %v3035_v43 = vld [vmem:[%s8458_s1 + $0x45] sm:$0xff]  ;;  %v3036_v44 = vld [vmem:[%s8458_s1 + $0x4d] sm:$0xff] }
 0x236   : > { %v2459_v62 = vpop.f32.mrf.mxu2  ;;  %v2693_v63 = vpop.f32.mrf.mxu3 }
 0x237   : > { %v2532_v3 = vadd.f32 %v2459_v62, %v2258_v52  ;;  %v2111_v4 = vpop.f32.mrf.mxu0  ;;  %v2260_v5 = vpop.f32.mrf.mxu1  ;;  %v2002_v62 = vld [vmem:[%s8458_s1 + $0xe9] sm:$0xff] }
 0x238   : > { %v2261_v8 = vadd.f32 %v2260_v5, %v2111_v4  ;;  %v2587_v4 = vld [vmem:[%s8458_s1 + $0xe3] sm:$0xff]  ;;  %v2588_v5 = vld [vmem:[%s8458_s1 + $0xeb] sm:$0xff] }
 0x239   : > { %v8622_v9 = vadd.f32 %v2693_v63, %v2532_v3  ;;  %6675 = vmatmul.msk.bf16.gmra.mxu0 %vm2038_vm0, %v2016_v0  ;;  %6699 = vmatmul.msk.bf16.gmra.mxu1 %vm2038_vm0, %v1964_v2  ;;  %v1949_v63 = vld [vmem:[%s8458_s1 + $0xe0] sm:$0xff]  ;;  %v1950_v0 = vld [vmem:[%s8458_s1 + $0xe8] sm:$0xff] }
 0x23a   : > { %v2353_v2 = vld [vmem:[%s8458_s1 + $0xe2] sm:$0xff]  ;;  %v2354_v3 = vld [vmem:[%s8458_s1 + $0xea] sm:$0xff] }
 0x23b   : > { %6727 = vmatmul.msk.bf16.gmra.mxu2 %vm2038_vm0, %v2368_v6  ;;  %6755 = vmatmul.msk.bf16.gmra.mxu3 %vm2038_vm0, %v2602_v7  ;;  %v2019_v6 = vpack.c.bf16 %v2002_v62, %v2001_v61  ;;  %v1967_v7 = vpack.c.bf16 %v1950_v0, %v1949_v63 }
 0x23e   : > { %v2462_v10 = vpop.f32.mrf.mxu2  ;;  %v2696_v11 = vpop.f32.mrf.mxu3 }
 0x23f   : > { %v2533_v12 = vadd.f32 %v2462_v10, %v2261_v8  ;;  %v2113_v13 = vpop.f32.mrf.mxu0  ;;  %v2262_v14 = vpop.f32.mrf.mxu1 }
 0x240   : > { %v2263_v15 = vadd.f32 %v2262_v14, %v2113_v13 }
 0x241   : > { %v8628_v16 = vadd.f32 %v2696_v11, %v2533_v12  ;;  %v2371_v11 = vpack.c.bf16 %v2354_v3, %v2353_v2  ;;  %v2605_v12 = vpack.c.bf16 %v2588_v5, %v2587_v4 }
 0x246   : > { %v2464_v26 = vpop.f32.mrf.mxu2  ;;  %v2698_v28 = vpop.f32.mrf.mxu3 }
 0x247   : > { %v2534_v31 = vadd.f32 %v2464_v26, %v2263_v15  ;;  %v2116_v32 = vpop.f32.mrf.mxu0  ;;  %v2265_v33 = vpop.f32.mrf.mxu1  ;;  %v2590_v26 = vld [vmem:[%s8458_s1 + $0xfb] sm:$0x7] }
 0x248   : > { %v8638_v36 = vadd.f32 %v2265_v33, %v2116_v32  ;;  %v2372_v32 = vpack.c.bf16 %v2356_v24, %v2355_v23  ;;  %v2606_v33 = vpack.c.bf16 %v2590_v26, %v2589_v25  ;;  %v2799_v23 = vld [vmem:[%s8458_s1 + $0x34] sm:$0xff]  ;;  %v2800_v24 = vld [vmem:[%s8458_s1 + $0x3c] sm:$0xff] }
 0x249   : > { %v8640_v37 = vadd.f32 %v2698_v28, %v2534_v31  ;;  %6676 = vmatmul.msk.bf16.gmra.mxu0 %vm2038_vm0, %v2017_v29  ;;  %6700 = vmatmul.msk.bf16.gmra.mxu1 %vm2038_vm0, %v1965_v30  ;;  %v2020_v28 = vpack.c.bf16 %v2004_v19, %v2003_v18  ;;  %v1968_v29 = vpack.c.bf16 %v1952_v22, %v1951_v21  ;;  %v3033_v25 = vld [vmem:[%s8458_s1 + $0x35] sm:$0xff]  ;;  %v3034_v26 = vld [vmem:[%s8458_s1 + $0x3d] sm:$0xff] }
 0x24b   : > { %6728 = vmatmul.msk.bf16.gmra.mxu2 %vm2038_vm0, %v2369_v34  ;;  %6756 = vmatmul.msk.bf16.gmra.mxu3 %vm2038_vm0, %v2603_v35 }
 0x24f   : > { %v2118_v38 = vpop.f32.mrf.mxu0  ;;  %v2267_v39 = vpop.f32.mrf.mxu1 }
 0x250   : > { %v8646_v40 = vadd.f32 %v2267_v39, %v2118_v38 }
 0x257   : > { %v2121_v52 = vpop.f32.mrf.mxu0  ;;  %v2270_v54 = vpop.f32.mrf.mxu1 }
 0x258   : > { %v8656_v57 = vadd.f32 %v2270_v54, %v2121_v52 }
 0x259   : > { %6677 = vmatmul.msk.bf16.gmra.mxu0 %vm2038_vm0, %v2018_v50  ;;  %6701 = vmatmul.msk.bf16.gmra.mxu1 %vm2038_vm0, %v1966_v51 }
 0x25b   : > { %6729 = vmatmul.msk.bf16.gmra.mxu2 %vm2038_vm0, %v2370_v55  ;;  %6757 = vmatmul.msk.bf16.gmra.mxu3 %vm2038_vm0, %v2604_v56  ;;  %v2795_v55 = vld [vmem:[%s8458_s1 + $0x14] sm:$0xff]  ;;  %v2796_v56 = vld [vmem:[%s8458_s1 + $0x1c] sm:$0xff] }
 0x25c   : > { %v2826_v61 = vpack.c.bf16 %v2796_v56, %v2795_v55 }
 0x25f   : > { %v2123_v58 = vpop.f32.mrf.mxu0  ;;  %v2272_v59 = vpop.f32.mrf.mxu1 }
 0x260   : > { %v8662_v60 = vadd.f32 %v2272_v59, %v2123_v58  ;;  %v3029_v58 = vld [vmem:[%s8458_s1 + $0x15] sm:$0xff]  ;;  %v3030_v59 = vld [vmem:[%s8458_s1 + $0x1d] sm:$0xff] }
 0x261   : > { %v3060_v62 = vpack.c.bf16 %v3030_v59, %v3029_v58  ;;  %v2803_v58 = vld [vmem:[%s8458_s1 + $0x54] sm:$0xff]  ;;  %v2804_v59 = vld [vmem:[%s8458_s1 + $0x5c] sm:$0xff] }
 0x267   : > { %v2126_v8 = vpop.f32.mrf.mxu0  ;;  %v2275_v10 = vpop.f32.mrf.mxu1 }
 0x268   : > { %v8672_v13 = vadd.f32 %v2275_v10, %v2126_v8  ;;  %v3031_v8 = vld [vmem:[%s8458_s1 + $0x25] sm:$0xff]  ;;  %v3032_v10 = vld [vmem:[%s8458_s1 + $0x2d] sm:$0xff] }
 0x269   : > { %6678 = vmatmul.msk.bf16.gmra.mxu0 %vm2038_vm0, %v2019_v6  ;;  %6702 = vmatmul.msk.bf16.gmra.mxu1 %vm2038_vm0, %v1967_v7  ;;  %v2797_v6 = vld [vmem:[%s8458_s1 + $0x24] sm:$0xff]  ;;  %v2798_v7 = vld [vmem:[%s8458_s1 + $0x2c] sm:$0xff] }
 0x26b   : > { %6730 = vmatmul.msk.bf16.gmra.mxu2 %vm2038_vm0, %v2371_v11  ;;  %6758 = vmatmul.msk.bf16.gmra.mxu3 %vm2038_vm0, %v2605_v12  ;;  %v2827_v11 = vpack.c.bf16 %v2798_v7, %v2797_v6  ;;  %v3061_v12 = vpack.c.bf16 %v3032_v10, %v3031_v8 }
 0x26f   : > { %v2128_v14 = vpop.f32.mrf.mxu0  ;;  %v2277_v15 = vpop.f32.mrf.mxu1 }
 0x270   : > { %v8678_v17 = vadd.f32 %v2277_v15, %v2128_v14 }
 0x277   : > { %v2131_v30 = vpop.f32.mrf.mxu0  ;;  %v2280_v31 = vpop.f32.mrf.mxu1 }
 0x278   : > { %v8688_v34 = vadd.f32 %v2280_v31, %v2131_v30 }
 0x279   : > { %6679 = vmatmul.msk.bf16.gmra.mxu0 %vm2038_vm0, %v2020_v28  ;;  %6703 = vmatmul.msk.bf16.gmra.mxu1 %vm2038_vm0, %v1968_v29  ;;  %v2828_v28 = vpack.c.bf16 %v2800_v24, %v2799_v23  ;;  %v3062_v29 = vpack.c.bf16 %v3034_v26, %v3033_v25 }
 0x27b   : > { %6731 = vmatmul.msk.bf16.gmra.mxu2 %vm2038_vm0, %v2372_v32  ;;  %6759 = vmatmul.msk.bf16.gmra.mxu3 %vm2038_vm0, %v2606_v33 }
 0x27f   : > { %v2133_v35 = vpop.f32.mrf.mxu0  ;;  %v2282_v38 = vpop.f32.mrf.mxu1 }
 0x280   : > { %v8694_v39 = vadd.f32 %v2282_v38, %v2133_v35 }
 0x287   : > { %v2136_v48 = vpop.f32.mrf.mxu0  ;;  %v2285_v49 = vpop.f32.mrf.mxu1 }
 0x288   : > { %v8700_v50 = vadd.f32 %v2285_v49, %v2136_v48 }
 0x289   : > { %6772 = vmatmul.msk.bf16.vlgmr.msrb.gmra.mxu0 %vm2038_vm0, %v2825_v45  ;;  %6800 = vmatmul.msk.bf16.vlgmr.msrb.gmra.mxu1 %vm2038_vm0, %v3059_v47  ;;  %v2829_v45 = vpack.c.bf16 %v2802_v42, %v2801_v41  ;;  %v3063_v47 = vpack.c.bf16 %v3036_v44, %v3035_v43 }
 0x28f   : > { %v2138_v51 = vpop.f32.mrf.mxu0  ;;  %v2287_v52 = vpop.f32.mrf.mxu1 }
 0x290   : > { %v8704_v54 = vadd.f32 %v2287_v52, %v2138_v51 }
 0x297   : > { %v2141_v63 = vpop.f32.mrf.mxu0  ;;  %v2290_v0 = vpop.f32.mrf.mxu1 }
 0x298   : > { %v8710_v2 = vadd.f32 %v2290_v0, %v2141_v63  ;;  %v2830_v63 = vpack.c.bf16 %v2804_v59, %v2803_v58  ;;  %v3043_v58 = vld [vmem:[%s8458_s1 + $0x85] sm:$0xff]  ;;  %v3044_v59 = vld [vmem:[%s8458_s1 + $0x8d] sm:$0xff] }
 0x299   : > { %6773 = vmatmul.msk.bf16.gmra.mxu0 %vm2038_vm0, %v2826_v61  ;;  %6801 = vmatmul.msk.bf16.gmra.mxu1 %vm2038_vm0, %v3060_v62  ;;  %v3037_v61 = vld [vmem:[%s8458_s1 + $0x55] sm:$0xff]  ;;  %v3038_v62 = vld [vmem:[%s8458_s1 + $0x5d] sm:$0xff] }
 0x29a   : > { %v3064_v0 = vpack.c.bf16 %v3038_v62, %v3037_v61  ;;  %v3067_v62 = vpack.c.bf16 %v3044_v59, %v3043_v58  ;;  %v3047_v58 = vld [vmem:[%s8458_s1 + $0xa5] sm:$0xff]  ;;  %v3048_v59 = vld [vmem:[%s8458_s1 + $0xad] sm:$0xff] }
 0x29f   : > { %v2143_v3 = vpop.f32.mrf.mxu0  ;;  %v2292_v4 = vpop.f32.mrf.mxu1 }
 0x2a0   : > { %v8714_v5 = vadd.f32 %v2292_v4, %v2143_v3 }
 0x2a7   : > { %v2146_v14 = vpop.f32.mrf.mxu0  ;;  %v2295_v15 = vpop.f32.mrf.mxu1 }
 0x2a8   : > { %v8720_v18 = vadd.f32 %v2295_v15, %v2146_v14  ;;  %v3039_v14 = vld [vmem:[%s8458_s1 + $0x65] sm:$0xff]  ;;  %v3040_v15 = vld [vmem:[%s8458_s1 + $0x6d] sm:$0xff] }
 0x2a9   : > { %6774 = vmatmul.msk.bf16.gmra.mxu0 %vm2038_vm0, %v2827_v11  ;;  %6802 = vmatmul.msk.bf16.gmra.mxu1 %vm2038_vm0, %v3061_v12  ;;  %v2805_v11 = vld [vmem:[%s8458_s1 + $0x64] sm:$0xff]  ;;  %v2806_v12 = vld [vmem:[%s8458_s1 + $0x6c] sm:$0xff] }
 0x2af   : > { %v2148_v19 = vpop.f32.mrf.mxu0  ;;  %v2297_v21 = vpop.f32.mrf.mxu1 }
 0x2b0   : > { %v8724_v22 = vadd.f32 %v2297_v21, %v2148_v19  ;;  %v2831_v19 = vpack.c.bf16 %v2806_v12, %v2805_v11  ;;  %v3065_v21 = vpack.c.bf16 %v3040_v15, %v3039_v14 }
 0x2b7   : > { %v2151_v30 = vpop.f32.mrf.mxu0  ;;  %v2300_v31 = vpop.f32.mrf.mxu1 }
 0x2b8   : > { %v8730_v32 = vadd.f32 %v2300_v31, %v2151_v30  ;;  %v2807_v30 = vld [vmem:[%s8458_s1 + $0x74] sm:$0xff]  ;;  %v2808_v31 = vld [vmem:[%s8458_s1 + $0x7c] sm:$0xff] }
 0x2b9   : > { %6775 = vmatmul.msk.bf16.gmra.mxu0 %vm2038_vm0, %v2828_v28  ;;  %6803 = vmatmul.msk.bf16.gmra.mxu1 %vm2038_vm0, %v3062_v29  ;;  %v2832_v41 = vpack.c.bf16 %v2808_v31, %v2807_v30  ;;  %v3046_v30 = vld [vmem:[%s8458_s1 + $0x9d] sm:$0xff] }
 0x2bf   : > { %v2153_v33 = vpop.f32.mrf.mxu0  ;;  %v2302_v35 = vpop.f32.mrf.mxu1 }
 0x2c0   : > { %v8734_v38 = vadd.f32 %v2302_v35, %v2153_v33  ;;  %v3041_v33 = vld [vmem:[%s8458_s1 + $0x75] sm:$0xff]  ;;  %v3042_v35 = vld [vmem:[%s8458_s1 + $0x7d] sm:$0xff] }
 0x2c1   : > { %v3066_v42 = vpack.c.bf16 %v3042_v35, %v3041_v33 }
 0x2c2   : > { %11013 = vst [vmem:[#allocation95_spill] sm:$0xff] %v8734_v38 }
 0x2c7   : > { %v2156_v48 = vpop.f32.mrf.mxu0  ;;  %v2305_v49 = vpop.f32.mrf.mxu1 }
 0x2c8   : > { %v8740_v51 = vadd.f32 %v2305_v49, %v2156_v48 }
 0x2c9   : > { %6776 = vmatmul.msk.bf16.gmra.mxu0 %vm2038_vm0, %v2829_v45  ;;  %6804 = vmatmul.msk.bf16.gmra.mxu1 %vm2038_vm0, %v3063_v47 }
 0x2ca   : > { %11014 = vst [vmem:[#allocation96_spill] sm:$0xff] %v8740_v51 }
 0x2cf   : > { %v2158_v52 = vpop.f32.mrf.mxu0  ;;  %v2307_v55 = vpop.f32.mrf.mxu1 }
 0x2d0   : > { %v8744_v56 = vadd.f32 %v2307_v55, %v2158_v52  ;;  %v2809_v52 = vld [vmem:[%s8458_s1 + $0x84] sm:$0xff]  ;;  %v2810_v55 = vld [vmem:[%s8458_s1 + $0x8c] sm:$0xff] }
 0x2d1   : > { %v2833_v61 = vpack.c.bf16 %v2810_v55, %v2809_v52  ;;  %v2813_v52 = vld [vmem:[%s8458_s1 + $0xa4] sm:$0xff]  ;;  %v2814_v55 = vld [vmem:[%s8458_s1 + $0xac] sm:$0xff] }
 0x2d2   : > { %11015 = vst [vmem:[#allocation97_spill] sm:$0xff] %v8744_v56 }
 0x2d7   : > { %v2161_v3 = vpop.f32.mrf.mxu0  ;;  %v2310_v4 = vpop.f32.mrf.mxu1 }
 0x2d8   : > { %v8750_v6 = vadd.f32 %v2310_v4, %v2161_v3  ;;  %v8782_v4 = vld [vmem:[%s11020_s5] ss:$0 sm:$0xff] }
 0x2d9   : > { %6777 = vmatmul.msk.bf16.gmra.mxu0 %vm2038_vm0, %v2830_v63  ;;  %6805 = vmatmul.msk.bf16.gmra.mxu1 %vm2038_vm0, %v3064_v0 }
 0x2da   : > { %11016 = vst [vmem:[#allocation98_spill] sm:$0xff] %v8750_v6 }
 0x2df   : > { %v2163_v7 = vpop.f32.mrf.mxu0  ;;  %v2312_v8 = vpop.f32.mrf.mxu1 }
 0x2e0   : > { %v8754_v10 = vadd.f32 %v2312_v8, %v2163_v7  ;;  %v8785_v8 = vld [vmem:[%s11022_s15] ss:$0 sm:$0xff]  ;;  %s11097_s15 = sld [smem:[#allocation45_spill]] }
 0x2e2   : > { %11017 = vst [vmem:[#allocation99_spill] sm:$0xff] %v8754_v10 }
 0x2e7   : > { %v2166_v23 = vpop.f32.mrf.mxu0  ;;  %v2315_v24 = vpop.f32.mrf.mxu1 }
 0x2e8   : > { %v8760_v25 = vadd.f32 %v2315_v24, %v2166_v23  ;;  %v2811_v24 = vld [vmem:[%s8458_s1 + $0x94] sm:$0xff] }
 0x2e9   : > { %6778 = vmatmul.msk.bf16.gmra.mxu0 %vm2038_vm0, %v2831_v19  ;;  %6806 = vmatmul.msk.bf16.gmra.mxu1 %vm2038_vm0, %v3065_v21 }
 0x2ea   : > { %11018 = vst [vmem:[#allocation100_spill] sm:$0xff] %v8760_v25 }
 0x2ef   : > { %v2168_v26 = vpop.f32.mrf.mxu0  ;;  %v2317_v28 = vpop.f32.mrf.mxu1 }
 0x2f0   : > { %v8764_v29 = vadd.f32 %v2317_v28, %v2168_v26  ;;  %v2812_v26 = vld [vmem:[%s8458_s1 + $0x9c] sm:$0xff] }
 0x2f1   : > { %v3045_v28 = vld [vmem:[%s8458_s1 + $0x95] sm:$0xff]  ;;  %v2834_v33 = vpack.c.bf16 %v2812_v26, %v2811_v24 }
 0x2f2   : > { %11019 = vst [vmem:[#allocation101_spill] sm:$0xff] %v8764_v29  ;;  %v3068_v35 = vpack.c.bf16 %v3046_v30, %v3045_v28  ;;  %v2817_v30 = vld [vmem:[%s8458_s1 + $0xc4] sm:$0xff] }
 0x2f7   : > { %v2171_v43 = vpop.f32.mrf.mxu0  ;;  %v2320_v44 = vpop.f32.mrf.mxu1 }
 0x2f8   : > { %v8770_v45 = vadd.f32 %v2320_v44, %v2171_v43 }
 0x2f9   : > { %6779 = vmatmul.msk.bf16.gmra.mxu0 %vm2038_vm0, %v2832_v41  ;;  %6807 = vmatmul.msk.bf16.gmra.mxu1 %vm2038_vm0, %v3066_v42 }
 0x2fa   : > { %11021 = vst [vmem:[#allocation102_spill] sm:$0xff] %v8770_v45 }
 0x2ff   : > { %v2173_v47 = vpop.f32.mrf.mxu0  ;;  %v2322_v48 = vpop.f32.mrf.mxu1 }
 0x300   : > { %v8774_v49 = vadd.f32 %v2322_v48, %v2173_v47 }
 0x302   : > { %11024 = vst [vmem:[#allocation103_spill] sm:$0xff] %v8774_v49 }
 0x307   : > { %v2915_v63 = vpop.f32.mrf.mxu0  ;;  %v3149_v0 = vpop.f32.mrf.mxu1 }
 0x308   : > { %v2995_v3 = vadd.f32 %v2915_v63, %v8580_v1 }
 0x309   : > { %6780 = vmatmul.msk.bf16.gmra.mxu0 %vm2038_vm0, %v2833_v61  ;;  %6808 = vmatmul.msk.bf16.gmra.mxu1 %vm2038_vm0, %v3067_v62  ;;  %v2835_v61 = vpack.c.bf16 %v2814_v55, %v2813_v52  ;;  %v3069_v62 = vpack.c.bf16 %v3048_v59, %v3047_v58  ;;  %v2819_v59 = vld [vmem:[%s8458_s1 + $0xd4] sm:$0xff] }
 0x30a   : > { %v3229_v7 = vadd.f32 %v3149_v0, %v2995_v3 }
 0x30c   : > { %v3265_v11 = vmul.f32 %v8782_v4, %v3229_v7  ;;  %v2815_v7 = vld [vmem:[%s8458_s1 + $0xb4] sm:$0xff] }
 0x30e   : > { %v3301_v12 = vadd.f32 %v8785_v8, %v3265_v11 }
 0x30f   : > { %v2917_v14 = vpop.f32.mrf.mxu0  ;;  %v3151_v1 = vpop.f32.mrf.mxu1 }
 0x310   : > { %v3333_v15 = vmax.f32 %v3301_v12, 0.0  ;;  %v2996_v19 = vadd.f32 %v2917_v14, %v8590_v20  ;;  %v2816_v12 = vld [vmem:[%s8458_s1 + $0xbc] sm:$0xff] }
 0x311   : > { %v3049_v14 = vld [vmem:[%s8458_s1 + $0xb5] sm:$0xff] }
 0x312   : > { %v8792_v21 = vmin.f32 %v3333_v15, 6.0  ;;  %v3230_v23 = vadd.f32 %v3151_v1, %v2996_v19  ;;  %v3050_v15 = vld [vmem:[%s8458_s1 + $0xbd] sm:$0xff]  ;;  %v2836_v1 = vpack.c.bf16 %v2816_v12, %v2815_v7 }
 0x314   : > { %v3266_v31 = vmul.f32 %v8782_v4, %v3230_v23  ;;  %3941 = vrot.lane.b32.xlu2 %v8792_v21, %s10919_s10  ;;  %3685 = vrot.lane.b32.xlu1 %v8792_v21, %s10908_s26  ;;  %v3070_v23 = vpack.c.bf16 %v3050_v15, %v3049_v14 }
 0x315   : > { %3429 = vrot.lane.b32.xlu0 %v8792_v21, %s10915_s7 }
 0x316   : > { %v3302_v20 = vadd.f32 %v8785_v8, %v3266_v31 }
 0x317   : > { %v2920_v43 = vpop.f32.mrf.mxu0  ;;  %v3154_v47 = vpop.f32.mrf.mxu1 }
 0x318   : > { %v3334_v41 = vmax.f32 %v3302_v20, 0.0  ;;  %v2997_v44 = vadd.f32 %v2920_v43, %v8596_v27  ;;  %v2818_v20 = vld [vmem:[%s8458_s1 + $0xcc] sm:$0xff] }
 0x319   : > { %6781 = vmatmul.msk.bf16.gmra.mxu0 %vm2038_vm0, %v2834_v33  ;;  %6809 = vmatmul.msk.bf16.gmra.mxu1 %vm2038_vm0, %v3068_v35  ;;  %v3051_v33 = vld [vmem:[%s8458_s1 + $0xc5] sm:$0xff]  ;;  %v3052_v35 = vld [vmem:[%s8458_s1 + $0xcd] sm:$0xff] }
 0x31a   : > { %v8806_v42 = vmin.f32 %v3334_v41, 6.0  ;;  %v3231_v48 = vadd.f32 %v3154_v47, %v2997_v44  ;;  %v2837_v44 = vpack.c.bf16 %v2818_v20, %v2817_v30  ;;  %v3071_v47 = vpack.c.bf16 %v3052_v35, %v3051_v33 }
 0x31c   : > { %3431 = vrot.lane.b32.xlu2 %v8806_v42, %s10915_s7  ;;  %3813 = vrot.lane.b32.xlu1 %v8792_v21, %s10923_s18  ;;  %v3267_v27 = vmul.f32 %v8782_v4, %v3231_v48 }
 0x31d   : > { %3557 = vrot.lane.b32.xlu0 %v8792_v21, %s10927_s28 }
 0x31e   : > { %v3303_v63 = vadd.f32 %v8785_v8, %v3267_v27 }
 0x31f   : > { %v2922_v11 = vpop.f32.mrf.mxu0  ;;  %v3156_v24 = vpop.f32.mrf.mxu1 }
 0x320   : > { %v3335_v0 = vmax.f32 %v3303_v63, 0.0  ;;  %v2998_v19 = vadd.f32 %v2922_v11, %v8606_v46  ;;  %v3054_v63 = vld [vmem:[%s8458_s1 + $0xdd] sm:$0xff] }
 0x322   : > { %v8837_v3 = vmin.f32 %v3335_v0, 6.0  ;;  %v3232_v26 = vadd.f32 %v3156_v24, %v2998_v19  ;;  %v2822_v24 = vld [vmem:[%s8458_s1 + $0xec] sm:$0xff] }
 0x324   : > { %3687 = vrot.lane.b32.xlu2 %v8806_v42, %s10908_s26  ;;  %4069 = vrot.lane.b32.xlu1 %v8792_v21, %s10925_s11  ;;  %v3268_v46 = vmul.f32 %v8782_v4, %v3232_v26  ;;  %v3055_v26 = vld [vmem:[%s8458_s1 + $0xe5] sm:$0xff] }
 0x325   : > { %4197 = vrot.lane.b32.xlu0 %v8792_v21, %s10917_s22 }
 0x326   : > { %v3304_v28 = vadd.f32 %v8785_v8, %v3268_v46  ;;  %v3056_v46 = vld [vmem:[%s8458_s1 + $0xed] sm:$0xff] }
 0x327   : > { %v2925_v31 = vpop.f32.mrf.mxu0  ;;  %v3159_v48 = vpop.f32.mrf.mxu1 }
 0x328   : > { %v3336_v41 = vmax.f32 %v3304_v28, 0.0  ;;  %v2999_v43 = vadd.f32 %v2925_v31, %v8612_v53  ;;  %v3073_v31 = vpack.c.bf16 %v3056_v46, %v3055_v26  ;;  %v2701_v26 = vpop.f32.mrf.mxu3 }
 0x329   : > { %6782 = vmatmul.msk.bf16.gmra.mxu0 %vm2038_vm0, %v2835_v61  ;;  %6810 = vmatmul.msk.bf16.gmra.mxu1 %vm2038_vm0, %v3069_v62  ;;  %v2820_v61 = vld [vmem:[%s8458_s1 + $0xdc] sm:$0xff] }
 0x32a   : > { %v8871_v52 = vmin.f32 %v3336_v41, 6.0  ;;  %v3233_v55 = vadd.f32 %v3159_v48, %v2999_v43  ;;  %v3053_v62 = vld [vmem:[%s8458_s1 + $0xd5] sm:$0xff]  ;;  %v2838_v11 = vpack.c.bf16 %v2820_v61, %v2819_v59 }
 0x32b   : > { %v3072_v12 = vpack.c.bf16 %v3054_v63, %v3053_v62  ;;  %v2824_v48 = vld [vmem:[%s8458_s1 + $0xfc] sm:$0x7] }
 0x32c   : > { %4071 = vrot.lane.b32.xlu2 %v8806_v42, %s10925_s11  ;;  %3815 = vrot.lane.b32.xlu1 %v8806_v42, %s10923_s18  ;;  %v3269_v53 = vmul.f32 %v8782_v4, %v3233_v55  ;;  %v3057_v55 = vld [vmem:[%s8458_s1 + $0xf5] sm:$0xff] }
 0x32d   : > { %3559 = vrot.lane.b32.xlu0 %v8806_v42, %s10927_s28 }
 0x32e   : > { %v3305_v58 = vadd.f32 %v8785_v8, %v3269_v53  ;;  %v3058_v53 = vld [vmem:[%s8458_s1 + $0xfd] sm:$0x7] }
 0x32f   : > { %v2927_v27 = vpop.f32.mrf.mxu0  ;;  %v3161_v14 = vpop.f32.mrf.mxu1 }
 0x330   : > { %v3337_v0 = vmax.f32 %v3305_v58, 0.0  ;;  %v3000_v7 = vadd.f32 %v2927_v27, %v8622_v9  ;;  %v3074_v27 = vpack.c.bf16 %v3058_v53, %v3057_v55 }
 0x332   : > { %v8894_v15 = vmin.f32 %v3337_v0, 6.0  ;;  %v3234_v19 = vadd.f32 %v3161_v14, %v3000_v7 }
 0x334   : > { %3433 = vrot.lane.b32.xlu2 %v8837_v3, %s10915_s7  ;;  %4199 = vrot.lane.b32.xlu1 %v8806_v42, %s10917_s22  ;;  %v3270_v9 = vmul.f32 %v8782_v4, %v3234_v19  ;;  %v2467_v19 = vpop.f32.mrf.mxu2 }
 0x335   : > { %3943 = vrot.lane.b32.xlu0 %v8806_v42, %s10919_s10 }
 0x337   : > { %v2930_v33 = vpop.f32.mrf.mxu0  ;;  %v3164_v43 = vpop.f32.mrf.mxu1 }
 0x338   : > { %v3001_v35 = vadd.f32 %v2930_v33, %v8628_v16 }
 0x339   : > { %6783 = vmatmul.msk.bf16.gmra.mxu0 %vm2038_vm0, %v2836_v1  ;;  %6811 = vmatmul.msk.bf16.gmra.mxu1 %vm2038_vm0, %v3070_v23  ;;  %v3306_v1 = vadd.f32 %v8785_v8, %v3270_v9  ;;  %v2821_v23 = vld [vmem:[%s8458_s1 + $0xe4] sm:$0xff] }
 0x33a   : > { %v2839_v30 = vpack.c.bf16 %v2822_v24, %v2821_v23  ;;  %v2535_v24 = vadd.f32 %v2467_v19, %v8638_v36  ;;  %v2703_v19 = vpop.f32.mrf.mxu3 }
 0x33b   : > { %v3338_v28 = vmax.f32 %v3306_v1, 0.0 }
 0x33c   : > { %3817 = vrot.lane.b32.xlu2 %v8837_v3, %s10923_s18  ;;  %3561 = vrot.lane.b32.xlu1 %v8837_v3, %s10927_s28 }
 0x33d   : > { %3689 = vrot.lane.b32.xlu0 %v8837_v3, %s10908_s26  ;;  %v8916_v20 = vmin.f32 %v3338_v28, 6.0 }
 0x33f   : > { %11025 = vst [vmem:[#allocation104_spill] sm:$0xff] %v8916_v20  ;;  %v2932_v62 = vpop.f32.mrf.mxu0  ;;  %v3166_v63 = vpop.f32.mrf.mxu1 }
 0x340   : > { %v3002_v7 = vadd.f32 %v2932_v62, %v8640_v37 }
 0x342   : > { %v3236_v14 = vadd.f32 %v3166_v63, %v3002_v7 }
 0x344   : > { %4201 = vrot.lane.b32.xlu2 %v8837_v3, %s10917_s22  ;;  %3945 = vrot.lane.b32.xlu1 %v8837_v3, %s10919_s10  ;;  %v3272_v9 = vmul.f32 %v8782_v4, %v3236_v14 }
 0x345   : > { %4073 = vrot.lane.b32.xlu0 %v8837_v3, %s10925_s11 }
 0x346   : > { %v3308_v46 = vadd.f32 %v8785_v8, %v3272_v9 }
 0x347   : > { %v2935_v28 = vpop.f32.mrf.mxu0  ;;  %v3169_v36 = vpop.f32.mrf.mxu1 }
 0x349   : > { %6784 = vmatmul.msk.bf16.gmra.mxu0 %vm2038_vm0, %v2837_v44  ;;  %6812 = vmatmul.msk.bf16.gmra.mxu1 %vm2038_vm0, %v3071_v47  ;;  %v3235_v44 = vadd.f32 %v3164_v43, %v3001_v35  ;;  %v2823_v47 = vld [vmem:[%s8458_s1 + $0xf4] sm:$0xff]  ;;  %s11079_s1 = sld [smem:[#allocation48_spill]] }
 0x34a   : > { %v2840_v59 = vpack.c.bf16 %v2824_v48, %v2823_v47 }
 0x34b   : > { %v3271_v58 = vmul.f32 %v8782_v4, %v3235_v44 }
 0x34c   : > { %3563 = vrot.lane.b32.xlu2 %v8871_v52, %s10927_s28  ;;  %3691 = vrot.lane.b32.xlu1 %v8871_v52, %s10908_s26 }
 0x34d   : > { %3435 = vrot.lane.b32.xlu0 %v8871_v52, %s10915_s7  ;;  %v3307_v61 = vadd.f32 %v8785_v8, %v3271_v58 }
 0x34f   : > { %v3339_v0 = vmax.f32 %v3307_v61, 0.0  ;;  %v2469_v61 = vpop.f32.mrf.mxu2 }
 0x350   : > { %v2536_v14 = vadd.f32 %v2469_v61, %v8646_v40  ;;  %v3171_v40 = vpop.f32.mrf.mxu1 }
 0x354   : > { %3947 = vrot.lane.b32.xlu2 %v8871_v52, %s10919_s10  ;;  %4075 = vrot.lane.b32.xlu1 %v8871_v52, %s10925_s11 }
 0x355   : > { %3819 = vrot.lane.b32.xlu0 %v8871_v52, %s10923_s18 }
 0x359   : > { %6785 = vmatmul.msk.bf16.gmra.mxu0 %vm2038_vm0, %v2838_v11  ;;  %6813 = vmatmul.msk.bf16.gmra.mxu1 %vm2038_vm0, %v3072_v12  ;;  %v8954_v12 = vmin.f32 %v3339_v0, 6.0 }
 0x35b   : > { %11026 = vst [vmem:[#allocation105_spill] sm:$0xff] %v8954_v12 }
 0x35c   : > { %3693 = vrot.lane.b32.xlu2 %v8894_v15, %s10908_s26  ;;  %3437 = vrot.lane.b32.xlu1 %v8894_v15, %s10915_s7 }
 0x35d   : > { %4203 = vrot.lane.b32.xlu0 %v8871_v52, %s10917_s22 }
 0x364   : > { %4077 = vrot.lane.b32.xlu2 %v8894_v15, %s10925_s11  ;;  %3821 = vrot.lane.b32.xlu1 %v8894_v15, %s10923_s18 }
 0x365   : > { %3565 = vrot.lane.b32.xlu0 %v8894_v15, %s10927_s28 }
 0x369   : > { %6786 = vmatmul.msk.bf16.gmra.mxu0 %vm2038_vm0, %v2839_v30  ;;  %6814 = vmatmul.msk.bf16.gmra.mxu1 %vm2038_vm0, %v3073_v31  ;;  %v2769_v30 = vadd.f32 %v2701_v26, %v2535_v24  ;;  %v3340_v31 = vmax.f32 %v3308_v46, 0.0  ;;  %v2937_v24 = vpop.f32.mrf.mxu0  ;;  %v2770_v26 = vadd.f32 %v2703_v19, %v2536_v14  ;;  %v2706_v14 = vpop.f32.mrf.mxu3 }
 0x36b   : > { %v3003_v33 = vadd.f32 %v2935_v28, %v2769_v30  ;;  %v8983_v47 = vmin.f32 %v3340_v31, 6.0  ;;  %v3004_v46 = vadd.f32 %v2937_v24, %v2770_v26 }
 0x36c   : > { %3439 = vrot.lane.b32.xlu2 %v8916_v20, %s10915_s7  ;;  %4205 = vrot.lane.b32.xlu1 %v8894_v15, %s10917_s22 }
 0x36d   : > { %3949 = vrot.lane.b32.xlu0 %v8894_v15, %s10919_s10  ;;  %11027 = vst [vmem:[#allocation106_spill] sm:$0xff] %v8983_v47  ;;  %v3237_v48 = vadd.f32 %v3169_v36, %v3003_v33  ;;  %v3238_v33 = vadd.f32 %v3171_v40, %v3004_v46  ;;  %v2472_v36 = vpop.f32.mrf.mxu2 }
 0x36e   : > { %v8927_v41 = vpop.permute.xlu2 %3941 }
 0x36f   : > { %v3273_v55 = vmul.f32 %v8782_v4, %v3237_v48  ;;  %v3274_v48 = vmul.f32 %v8782_v4, %v3238_v33 }
 0x371   : > { %v3310_v19 = vadd.f32 %v8785_v8, %v3274_v48  ;;  %v2940_v24 = vpop.f32.mrf.mxu0 }
 0x373   : > { %v3342_v46 = vmax.f32 %v3310_v19, 0.0 }
 0x374   : > { %3823 = vrot.lane.b32.xlu2 %v8916_v20, %s10923_s18  ;;  %3567 = vrot.lane.b32.xlu1 %v8916_v20, %s10927_s28 }
 0x375   : > { %3695 = vrot.lane.b32.xlu0 %v8916_v20, %s10908_s26  ;;  %v9053_v48 = vmin.f32 %v3342_v46, 6.0 }
 0x376   : > { %v8940_v16 = vpop.permute.xlu2 %3431 }
 0x377   : > { %11029 = vst [vmem:[#allocation108_spill] sm:$0xff] %v9053_v48 }
 0x379   : > { %6787 = vmatmul.msk.bf16.gmra.mxu0 %vm2038_vm0, %v2840_v59  ;;  %6815 = vmatmul.msk.bf16.gmra.mxu1 %vm2038_vm0, %v3074_v27  ;;  %v3309_v27 = vadd.f32 %v8785_v8, %v3273_v55  ;;  %v2942_v29 = vpop.f32.mrf.mxu0 }
 0x37b   : > { %v3341_v62 = vmax.f32 %v3309_v27, 0.0 }
 0x37c   : > { %4207 = vrot.lane.b32.xlu2 %v8916_v20, %s10917_s22  ;;  %3951 = vrot.lane.b32.xlu1 %v8916_v20, %s10919_s10 }
 0x37d   : > { %4079 = vrot.lane.b32.xlu0 %v8916_v20, %s10925_s11  ;;  %v9012_v9 = vmin.f32 %v3341_v62, 6.0  ;;  %v2537_v62 = vadd.f32 %v2472_v36, %v8656_v57  ;;  %v3174_v57 = vpop.f32.mrf.mxu1 }
 0x37e   : > { %v8952_v11 = vpop.permute.xlu2 %3687 }
 0x37f   : > { %11028 = vst [vmem:[#allocation107_spill] sm:$0xff] %v9012_v9  ;;  %v2771_v26 = vadd.f32 %v2706_v14, %v2537_v62  ;;  %v2474_v14 = vpop.f32.mrf.mxu2 }
 0x380   : > { %v2538_v46 = vadd.f32 %v2474_v14, %v8662_v60 }
 0x381   : > { %v3005_v40 = vadd.f32 %v2940_v24, %v2771_v26 }
 0x383   : > { %v3239_v62 = vadd.f32 %v3174_v57, %v3005_v40  ;;  %v2708_v40 = vpop.f32.mrf.mxu3 }
 0x384   : > { %3569 = vrot.lane.b32.xlu2 %v8954_v12, %s10927_s28  ;;  %3697 = vrot.lane.b32.xlu1 %v8954_v12, %s10908_s26  ;;  %v2772_v25 = vadd.f32 %v2708_v40, %v2538_v46 }
 0x385   : > { %3441 = vrot.lane.b32.xlu0 %v8954_v12, %s10915_s7  ;;  %v3275_v19 = vmul.f32 %v8782_v4, %v3239_v62  ;;  %v3176_v60 = vpop.f32.mrf.mxu1 }
 0x386   : > { %v8963_v1 = vpop.permute.xlu2 %4071  ;;  %v8965_v37 = vpop.permute.xlu1 %3685  ;;  %v3006_v10 = vadd.f32 %v2942_v29, %v2772_v25 }
 0x387   : > { %v8967_v23 = vpop.permute.xlu0 %3429  ;;  %v3311_v57 = vadd.f32 %v8785_v8, %v3275_v19 }
 0x388   : > { %v3240_v46 = vadd.f32 %v3176_v60, %v3006_v10  ;;  %v2477_v10 = vpop.f32.mrf.mxu2 }
 0x389   : > { %v3343_v62 = vmax.f32 %v3311_v57, 0.0 }
 0x38a   : > { %v3276_v25 = vmul.f32 %v8782_v4, %v3240_v46 }
 0x38b   : > { %v9082_v19 = vmin.f32 %v3343_v62, 6.0 }
 0x38c   : > { %4081 = vrot.lane.b32.xlu2 %v8954_v12, %s10925_s11  ;;  %3825 = vrot.lane.b32.xlu1 %v8954_v12, %s10923_s18  ;;  %v3312_v62 = vadd.f32 %v8785_v8, %v3276_v25  ;;  %v2711_v25 = vpop.f32.mrf.mxu3 }
 0x38d   : > { %3953 = vrot.lane.b32.xlu0 %v8954_v12, %s10919_s10  ;;  %11031 = vst [vmem:[#allocation110_spill] sm:$0xff] %v9082_v19 }
 0x38e   : > { %v8977_v35 = vpop.permute.xlu2 %3433  ;;  %v8979_v43 = vpop.permute.xlu1 %3813  ;;  %v3344_v60 = vmax.f32 %v3312_v62, 0.0 }
 0x38f   : > { %v8981_v44 = vpop.permute.xlu0 %3557 }
 0x390   : > { %v9111_v51 = vmin.f32 %v3344_v60, 6.0 }
 0x392   : > { %11034 = vst [vmem:[#allocation113_spill] sm:$0xff] %v9111_v51 }
 0x394   : > { %3443 = vrot.lane.b32.xlu2 %v8983_v47, %s10915_s7  ;;  %4209 = vrot.lane.b32.xlu1 %v8954_v12, %s10917_s22  ;;  %v2945_v12 = vpop.f32.mrf.mxu0 }
 0x395   : > { %3699 = vrot.lane.b32.xlu0 %v8983_v47, %s10908_s26 }
 0x396   : > { %v8992_v53 = vpop.permute.xlu2 %3817  ;;  %v8994_v58 = vpop.permute.xlu1 %4069 }
 0x397   : > { %v8996_v59 = vpop.permute.xlu0 %4197 }
 0x39c   : > { %3955 = vrot.lane.b32.xlu2 %v8983_v47, %s10919_s10  ;;  %3571 = vrot.lane.b32.xlu1 %v8983_v47, %s10927_s28  ;;  %v2947_v20 = vpop.f32.mrf.mxu0 }
 0x39d   : > { %3827 = vrot.lane.b32.xlu0 %v8983_v47, %s10923_s18 }
 0x39e   : > { %v9005_v63 = vpop.permute.xlu2 %4201  ;;  %v9007_v0 = vpop.permute.xlu1 %3815 }
 0x39f   : > { %v9009_v7 = vpop.permute.xlu0 %3559 }
 0x3a4   : > { %3701 = vrot.lane.b32.xlu2 %v9012_v9, %s10908_s26  ;;  %4083 = vrot.lane.b32.xlu1 %v8983_v47, %s10925_s11 }
 0x3a5   : > { %4211 = vrot.lane.b32.xlu0 %v8983_v47, %s10917_s22  ;;  %v2539_v47 = vadd.f32 %v2477_v10, %v8672_v13  ;;  %v3179_v13 = vpop.f32.mrf.mxu1 }
 0x3a6   : > { %v9020_v28 = vpop.permute.xlu2 %3563  ;;  %v9022_v30 = vpop.permute.xlu1 %4199 }
 0x3a7   : > { %v9024_v31 = vpop.permute.xlu0 %3943 }
 0x3ac   : > { %3829 = vrot.lane.b32.xlu2 %v9012_v9, %s10923_s18  ;;  %3445 = vrot.lane.b32.xlu1 %v9012_v9, %s10915_s7 }
 0x3ad   : > { %3573 = vrot.lane.b32.xlu0 %v9012_v9, %s10927_s28 }
 0x3ae   : > { %v9033_v55 = vpop.permute.xlu2 %3947  ;;  %v9035_v27 = vpop.permute.xlu1 %3561 }
 0x3af   : > { %v9037_v61 = vpop.permute.xlu0 %3689 }
 0x3b4   : > { %4213 = vrot.lane.b32.xlu2 %v9012_v9, %s10917_s22  ;;  %3957 = vrot.lane.b32.xlu1 %v9012_v9, %s10919_s10 }
 0x3b5   : > { %4085 = vrot.lane.b32.xlu0 %v9012_v9, %s10925_s11 }
 0x3b6   : > { %v9047_v33 = vpop.permute.xlu2 %3693  ;;  %v9049_v49 = vpop.permute.xlu1 %3945 }
 0x3b7   : > { %v9051_v36 = vpop.permute.xlu0 %4073 }
 0x3bc   : > { %3575 = vrot.lane.b32.xlu2 %v9053_v48, %s10927_s28  ;;  %3703 = vrot.lane.b32.xlu1 %v9053_v48, %s10908_s26 }
 0x3bd   : > { %3447 = vrot.lane.b32.xlu0 %v9053_v48, %s10915_s7 }
 0x3be   : > { %v9062_v24 = vpop.permute.xlu2 %4077  ;;  %v9064_v26 = vpop.permute.xlu1 %3691 }
 0x3bf   : > { %v9066_v45 = vpop.permute.xlu0 %3435 }
 0x3c4   : > { %4087 = vrot.lane.b32.xlu2 %v9053_v48, %s10925_s11  ;;  %3831 = vrot.lane.b32.xlu1 %v9053_v48, %s10923_s18 }
 0x3c5   : > { %3959 = vrot.lane.b32.xlu0 %v9053_v48, %s10919_s10 }
 0x3c6   : > { %v9076_v6 = vpop.permute.xlu2 %3439  ;;  %v9078_v9 = vpop.permute.xlu1 %4075 }
 0x3c7   : > { %11030 = vst [vmem:[#allocation109_spill] sm:$0xff] %v9076_v6  ;;  %v9080_v14 = vpop.permute.xlu0 %3819 }
 0x3cc   : > { %3449 = vrot.lane.b32.xlu2 %v9082_v19, %s10915_s7  ;;  %4215 = vrot.lane.b32.xlu1 %v9053_v48, %s10917_s22 }
 0x3cd   : > { %3705 = vrot.lane.b32.xlu0 %v9082_v19, %s10908_s26 }
 0x3ce   : > { %v9091_v29 = vpop.permute.xlu2 %3823  ;;  %v9093_v40 = vpop.permute.xlu1 %3437 }
 0x3cf   : > { %11032 = vst [vmem:[#allocation111_spill] sm:$0xff] %v9091_v29  ;;  %v9095_v57 = vpop.permute.xlu0 %4203  ;;  %v2773_v29 = vadd.f32 %v2711_v25, %v2539_v47  ;;  %v2479_v47 = vpop.f32.mrf.mxu2 }
 0x3d1   : > { %v3007_v62 = vadd.f32 %v2945_v12, %v2773_v29 }
 0x3d3   : > { %v3241_v60 = vadd.f32 %v3179_v13, %v3007_v62  ;;  %v2540_v62 = vadd.f32 %v2479_v47, %v8678_v17  ;;  %v2713_v13 = vpop.f32.mrf.mxu3  ;;  %v3181_v17 = vpop.f32.mrf.mxu1 }
 0x3d4   : > { %3961 = vrot.lane.b32.xlu2 %v9082_v19, %s10919_s10  ;;  %3577 = vrot.lane.b32.xlu1 %v9082_v19, %s10927_s28 }
 0x3d5   : > { %3833 = vrot.lane.b32.xlu0 %v9082_v19, %s10923_s18  ;;  %v3277_v12 = vmul.f32 %v8782_v4, %v3241_v60  ;;  %v2774_v6 = vadd.f32 %v2713_v13, %v2540_v62 }
 0x3d6   : > { %v9104_v46 = vpop.permute.xlu2 %4207  ;;  %v9106_v48 = vpop.permute.xlu1 %3821 }
 0x3d7   : > { %11033 = vst [vmem:[#allocation112_spill] sm:$0xff] %v9104_v46  ;;  %v9108_v56 = vpop.permute.xlu0 %3565  ;;  %v2482_v13 = vpop.f32.mrf.mxu2 }
 0x3dc   : > { %3707 = vrot.lane.b32.xlu2 %v9111_v51, %s10908_s26  ;;  %4089 = vrot.lane.b32.xlu1 %v9082_v19, %s10925_s11 }
 0x3dd   : > { %4217 = vrot.lane.b32.xlu0 %v9082_v19, %s10917_s22 }
 0x3de   : > { %v9119_v46 = vpop.permute.xlu2 %3569  ;;  %v9121_v38 = vpop.permute.xlu1 %4205 }
 0x3df   : > { %11035 = vst [vmem:[#allocation114_spill] sm:$0xff] %v9119_v46  ;;  %v9123_v10 = vpop.permute.xlu0 %3949  ;;  %v3313_v46 = vadd.f32 %v8785_v8, %v3277_v12 }
 0x3e1   : > { %v3345_v60 = vmax.f32 %v3313_v46, 0.0 }
 0x3e3   : > { %v9152_v12 = vmin.f32 %v3345_v60, 6.0  ;;  %v2716_v60 = vpop.f32.mrf.mxu3 }
 0x3e4   : > { %3835 = vrot.lane.b32.xlu2 %v9111_v51, %s10923_s18  ;;  %3451 = vrot.lane.b32.xlu1 %v9111_v51, %s10915_s7 }
 0x3e5   : > { %3579 = vrot.lane.b32.xlu0 %v9111_v51, %s10927_s28  ;;  %11041 = vst [vmem:[#allocation120_spill] sm:$0xff] %v9152_v12 }
 0x3e6   : > { %v9132_v29 = vpop.permute.xlu2 %4081  ;;  %v9134_v25 = vpop.permute.xlu1 %3567 }
 0x3e7   : > { %11036 = vst [vmem:[#allocation115_spill] sm:$0xff] %v9132_v29  ;;  %v9136_v19 = vpop.permute.xlu0 %3695  ;;  %v3008_v29 = vadd.f32 %v2947_v20, %v2774_v6 }
 0x3e8   : > { %11037 = vst [vmem:[#allocation116_spill] sm:$0xff] %v9134_v25 }
 0x3e9   : > { %11038 = vst [vmem:[#allocation117_spill] sm:$0xff] %v9136_v19  ;;  %v3242_v62 = vadd.f32 %v3181_v17, %v3008_v29  ;;  %v2541_v29 = vadd.f32 %v2482_v13, %v8688_v34  ;;  %v3184_v34 = vpop.f32.mrf.mxu1 }
 0x3eb   : > { %v3278_v6 = vmul.f32 %v8782_v4, %v3242_v62 }
 0x3ec   : > { %4219 = vrot.lane.b32.xlu2 %v9111_v51, %s10917_s22  ;;  %3963 = vrot.lane.b32.xlu1 %v9111_v51, %s10919_s10 }
 0x3ed   : > { %4091 = vrot.lane.b32.xlu0 %v9111_v51, %s10925_s11  ;;  %v3314_v17 = vadd.f32 %v8785_v8, %v3278_v6 }
 0x3ee   : > { %v9146_v25 = vpop.permute.xlu2 %3443  ;;  %v9148_v19 = vpop.permute.xlu1 %3951 }
 0x3ef   : > { %11039 = vst [vmem:[#allocation118_spill] sm:$0xff] %v9146_v25  ;;  %v9150_v47 = vpop.permute.xlu0 %4079  ;;  %v2950_v25 = vpop.f32.mrf.mxu0  ;;  %v3346_v62 = vmax.f32 %v3314_v17, 0.0 }
 0x3f0   : > { %11040 = vst [vmem:[#allocation119_spill] sm:$0xff] %v9150_v47  ;;  %v2775_v47 = vadd.f32 %v2716_v60, %v2541_v29 }
 0x3f1   : > { %v9181_v6 = vmin.f32 %v3346_v62, 6.0 }
 0x3f3   : > { %11047 = vst [vmem:[#allocation126_spill] sm:$0xff] %v9181_v6 }
 0x3f4   : > { %3581 = vrot.lane.b32.xlu2 %v9152_v12, %s10927_s28  ;;  %3709 = vrot.lane.b32.xlu1 %v9152_v12, %s10908_s26 }
 0x3f5   : > { %3453 = vrot.lane.b32.xlu0 %v9152_v12, %s10915_s7 }
 0x3f6   : > { %v9161_v20 = vpop.permute.xlu2 %3955  ;;  %v9163_v46 = vpop.permute.xlu1 %3697 }
 0x3f7   : > { %11042 = vst [vmem:[#allocation121_spill] sm:$0xff] %v9161_v20  ;;  %v9165_v51 = vpop.permute.xlu0 %3441  ;;  %v3009_v20 = vadd.f32 %v2950_v25, %v2775_v47 }
 0x3f8   : > { %11043 = vst [vmem:[#allocation122_spill] sm:$0xff] %v9163_v46 }
 0x3f9   : > { %11044 = vst [vmem:[#allocation123_spill] sm:$0xff] %v9165_v51  ;;  %v3243_v29 = vadd.f32 %v3184_v34, %v3009_v20  ;;  %v2484_v20 = vpop.f32.mrf.mxu2 }
 0x3fb   : > { %v3279_v25 = vmul.f32 %v8782_v4, %v3243_v29 }
 0x3fc   : > { %4093 = vrot.lane.b32.xlu2 %v9152_v12, %s10925_s11  ;;  %3837 = vrot.lane.b32.xlu1 %v9152_v12, %s10923_s18 }
 0x3fd   : > { %3965 = vrot.lane.b32.xlu0 %v9152_v12, %s10919_s10  ;;  %v3315_v62 = vadd.f32 %v8785_v8, %v3279_v25  ;;  %v2718_v25 = vpop.f32.mrf.mxu3 }
 0x3fe   : > { %v9175_v46 = vpop.permute.xlu2 %3701  ;;  %v9177_v51 = vpop.permute.xlu1 %3825 }
 0x3ff   : > { %11045 = vst [vmem:[#allocation124_spill] sm:$0xff] %v9175_v46  ;;  %v9179_v13 = vpop.permute.xlu0 %3953  ;;  %v3347_v34 = vmax.f32 %v3315_v62, 0.0  ;;  %v2542_v46 = vadd.f32 %v2484_v20, %v8694_v39  ;;  %v3186_v39 = vpop.f32.mrf.mxu1 }
 0x400   : > { %11046 = vst [vmem:[#allocation125_spill] sm:$0xff] %v9179_v13 }
 0x401   : > { %v2776_v13 = vadd.f32 %v2718_v25, %v2542_v46  ;;  %v2487_v46 = vpop.f32.mrf.mxu2 }
 0x404   : > { %3455 = vrot.lane.b32.xlu2 %v9181_v6, %s10915_s7  ;;  %4221 = vrot.lane.b32.xlu1 %v9152_v12, %s10917_s22 }
 0x405   : > { %3711 = vrot.lane.b32.xlu0 %v9181_v6, %s10908_s26 }
 0x406   : > { %v9190_v47 = vpop.permute.xlu2 %3829  ;;  %v9192_v60 = vpop.permute.xlu1 %4209 }
 0x407   : > { %11048 = vst [vmem:[#allocation127_spill] sm:$0xff] %v9190_v47  ;;  %v9194_v17 = vpop.permute.xlu0 %3699 }
 0x408   : > { %11049 = vst [vmem:[#allocation128_spill] sm:$0xff] %v9192_v60  ;;  %v9210_v60 = vmin.f32 %v3347_v34, 6.0 }
 0x409   : > { %11050 = vst [vmem:[#allocation129_spill] sm:$0xff] %v9194_v17  ;;  %v2952_v17 = vpop.f32.mrf.mxu0 }
 0x40a   : > { %11053 = vst [vmem:[#allocation132_spill] sm:$0xff] %v9210_v60  ;;  %v3010_v62 = vadd.f32 %v2952_v17, %v2776_v13 }
 0x40c   : > { %3967 = vrot.lane.b32.xlu2 %v9181_v6, %s10919_s10  ;;  %3583 = vrot.lane.b32.xlu1 %v9181_v6, %s10927_s28  ;;  %v3244_v34 = vadd.f32 %v3186_v39, %v3010_v62  ;;  %v2543_v62 = vadd.f32 %v2487_v46, %v8700_v50  ;;  %v2721_v39 = vpop.f32.mrf.mxu3  ;;  %v3189_v50 = vpop.f32.mrf.mxu1 }
 0x40d   : > { %3839 = vrot.lane.b32.xlu0 %v9181_v6, %s10923_s18 }
 0x40e   : > { %v9203_v29 = vpop.permute.xlu2 %4213  ;;  %v9205_v12 = vpop.permute.xlu1 %3571  ;;  %v3280_v13 = vmul.f32 %v8782_v4, %v3244_v34 }
 0x40f   : > { %11051 = vst [vmem:[#allocation130_spill] sm:$0xff] %v9203_v29  ;;  %v9207_v47 = vpop.permute.xlu0 %3827 }
 0x410   : > { %11052 = vst [vmem:[#allocation131_spill] sm:$0xff] %v9207_v47 }
 0x414   : > { %3713 = vrot.lane.b32.xlu2 %v9210_v60, %s10908_s26  ;;  %4095 = vrot.lane.b32.xlu1 %v9181_v6, %s10925_s11 }
 0x415   : > { %4223 = vrot.lane.b32.xlu0 %v9181_v6, %s10917_s22 }
 0x416   : > { %v9218_v29 = vpop.permute.xlu2 %3575  ;;  %v9220_v47 = vpop.permute.xlu1 %4083 }
 0x417   : > { %11054 = vst [vmem:[#allocation133_spill] sm:$0xff] %v9218_v29  ;;  %v9222_v20 = vpop.permute.xlu0 %4211  ;;  %v3316_v29 = vadd.f32 %v8785_v8, %v3280_v13 }
 0x418   : > { %11055 = vst [vmem:[#allocation134_spill] sm:$0xff] %v9220_v47  ;;  %v2777_v47 = vadd.f32 %v2721_v39, %v2543_v62  ;;  %v2489_v39 = vpop.f32.mrf.mxu2 }
 0x419   : > { %11056 = vst [vmem:[#allocation135_spill] sm:$0xff] %v9222_v20  ;;  %v2955_v20 = vpop.f32.mrf.mxu0  ;;  %v3348_v34 = vmax.f32 %v3316_v29, 0.0 }
 0x41b   : > { %v9251_v13 = vmin.f32 %v3348_v34, 6.0  ;;  %v2723_v34 = vpop.f32.mrf.mxu3 }
 0x41c   : > { %3841 = vrot.lane.b32.xlu2 %v9210_v60, %s10923_s18  ;;  %3457 = vrot.lane.b32.xlu1 %v9210_v60, %s10915_s7 }
 0x41d   : > { %3585 = vrot.lane.b32.xlu0 %v9210_v60, %s10927_s28 }
 0x41e   : > { %v9231_v17 = vpop.permute.xlu2 %4087  ;;  %v9233_v25 = vpop.permute.xlu1 %3445 }
 0x41f   : > { %11057 = vst [vmem:[#allocation136_spill] sm:$0xff] %v9231_v17  ;;  %v9235_v6 = vpop.permute.xlu0 %3573  ;;  %v3011_v17 = vadd.f32 %v2955_v20, %v2777_v47 }
 0x420   : > { %11058 = vst [vmem:[#allocation137_spill] sm:$0xff] %v9233_v25 }
 0x421   : > { %11059 = vst [vmem:[#allocation138_spill] sm:$0xff] %v9235_v6  ;;  %v3245_v62 = vadd.f32 %v3189_v50, %v3011_v17  ;;  %v2544_v17 = vadd.f32 %v2489_v39, %v8704_v54  ;;  %v3191_v54 = vpop.f32.mrf.mxu1 }
 0x423   : > { %v3281_v47 = vmul.f32 %v8782_v4, %v3245_v62 }
 0x424   : > { %4225 = vrot.lane.b32.xlu2 %v9210_v60, %s10917_s22  ;;  %3969 = vrot.lane.b32.xlu1 %v9210_v60, %s10919_s10 }
 0x425   : > { %4097 = vrot.lane.b32.xlu0 %v9210_v60, %s10925_s11  ;;  %v3317_v50 = vadd.f32 %v8785_v8, %v3281_v47 }
 0x426   : > { %v9245_v25 = vpop.permute.xlu2 %3449  ;;  %v9247_v6 = vpop.permute.xlu1 %3957 }
 0x427   : > { %11060 = vst [vmem:[#allocation139_spill] sm:$0xff] %v9245_v25  ;;  %v9249_v46 = vpop.permute.xlu0 %4085  ;;  %v2957_v25 = vpop.f32.mrf.mxu0  ;;  %v3349_v62 = vmax.f32 %v3317_v50, 0.0 }
 0x428   : > { %11061 = vst [vmem:[#allocation140_spill] sm:$0xff] %v9249_v46  ;;  %v2778_v46 = vadd.f32 %v2723_v34, %v2544_v17  ;;  %v3525_v34 = vmax.f32 %v8792_v21, %v8967_v23  ;;  %v2492_v21 = vpop.f32.mrf.mxu2 }
 0x429   : > { %v9280_v47 = vmin.f32 %v3349_v62, 6.0 }
 0x42c   : > { %3587 = vrot.lane.b32.xlu2 %v9251_v13, %s10927_s28  ;;  %3715 = vrot.lane.b32.xlu1 %v9251_v13, %s10908_s26 }
 0x42d   : > { %3459 = vrot.lane.b32.xlu0 %v9251_v13, %s10915_s7 }
 0x42e   : > { %v9260_v29 = vpop.permute.xlu2 %3961  ;;  %v9262_v20 = vpop.permute.xlu1 %3703 }
 0x42f   : > { %11062 = vst [vmem:[#allocation141_spill] sm:$0xff] %v9260_v29  ;;  %v9264_v60 = vpop.permute.xlu0 %3447  ;;  %v3012_v29 = vadd.f32 %v2957_v25, %v2778_v46 }
 0x430   : > { %11063 = vst [vmem:[#allocation142_spill] sm:$0xff] %v9262_v20 }
 0x431   : > { %11064 = vst [vmem:[#allocation143_spill] sm:$0xff] %v9264_v60  ;;  %v3246_v17 = vadd.f32 %v3191_v54, %v3012_v29  ;;  %v3653_v29 = vmax.f32 %v3525_v34, %v8981_v44 }
 0x433   : > { %v3282_v25 = vmul.f32 %v8782_v4, %v3246_v17 }
 0x434   : > { %4099 = vrot.lane.b32.xlu2 %v9251_v13, %s10925_s11  ;;  %3843 = vrot.lane.b32.xlu1 %v9251_v13, %s10923_s18 }
 0x435   : > { %3971 = vrot.lane.b32.xlu0 %v9251_v13, %s10919_s10  ;;  %v3318_v54 = vadd.f32 %v8785_v8, %v3282_v25 }
 0x436   : > { %v9274_v20 = vpop.permute.xlu2 %3707  ;;  %v9276_v60 = vpop.permute.xlu1 %3831 }
 0x437   : > { %11065 = vst [vmem:[#allocation144_spill] sm:$0xff] %v9274_v20  ;;  %v9278_v39 = vpop.permute.xlu0 %3959  ;;  %v3781_v20 = vmax.f32 %v3653_v29, %v8965_v37  ;;  %v3350_v23 = vmax.f32 %v3318_v54, 0.0  ;;  %v2545_v37 = vadd.f32 %v2492_v21, %v8710_v2  ;;  %v2726_v29 = vpop.f32.mrf.mxu3 }
 0x438   : > { %11066 = vst [vmem:[#allocation145_spill] sm:$0xff] %v9278_v39  ;;  %v3194_v21 = vpop.f32.mrf.mxu1 }
 0x439   : > { %v3909_v34 = vmax.f32 %v3781_v20, %v8979_v43  ;;  %v2779_v39 = vadd.f32 %v2726_v29, %v2545_v37  ;;  %v3526_v43 = vmax.f32 %v8806_v42, %v8940_v16 }
 0x43c   : > { %3461 = vrot.lane.b32.xlu2 %v9280_v47, %s10915_s7  ;;  %4227 = vrot.lane.b32.xlu1 %v9251_v13, %s10917_s22 }
 0x43d   : > { %3717 = vrot.lane.b32.xlu0 %v9280_v47, %s10908_s26 }
 0x43e   : > { %v9291_v46 = vpop.permute.xlu2 %3835  ;;  %v9293_v50 = vpop.permute.xlu1 %4215 }
 0x43f   : > { %11067 = vst [vmem:[#allocation146_spill] sm:$0xff] %v9291_v46  ;;  %v9296_v62 = vpop.permute.xlu0 %3705  ;;  %v9314_v46 = vmin.f32 %v3350_v23, 6.0 }
 0x440   : > { %11068 = vst [vmem:[#allocation147_spill] sm:$0xff] %v9293_v50  ;;  %v4037_v50 = vmax.f32 %v3909_v34, %v8927_v41  ;;  %v3654_v34 = vmax.f32 %v3526_v43, %v9009_v7 }
 0x441   : > { %11069 = vst [vmem:[#allocation148_spill] sm:$0xff] %v9296_v62  ;;  %v2960_v62 = vpop.f32.mrf.mxu0 }
 0x442   : > { %v3013_v2 = vadd.f32 %v2960_v62, %v2779_v39  ;;  %v4165_v41 = vmax.f32 %v4037_v50, %v8994_v58  ;;  %v2494_v50 = vpop.f32.mrf.mxu2 }
 0x444   : > { %3973 = vrot.lane.b32.xlu2 %v9280_v47, %s10919_s10  ;;  %3589 = vrot.lane.b32.xlu1 %v9280_v47, %s10927_s28  ;;  %v3247_v37 = vadd.f32 %v3194_v21, %v3013_v2  ;;  %v9334_v29 = vmax.f32 %v4165_v41, %v8996_v59 }
 0x445   : > { %3845 = vrot.lane.b32.xlu0 %v9280_v47, %s10923_s18 }
 0x446   : > { %v9306_v17 = vpop.permute.xlu2 %4219  ;;  %v9308_v44 = vpop.permute.xlu1 %3577  ;;  %v3283_v42 = vmul.f32 %v8782_v4, %v3247_v37 }
 0x447   : > { %11070 = vst [vmem:[#allocation149_spill] sm:$0xff] %v9306_v17  ;;  %v9311_v25 = vpop.permute.xlu0 %3833  ;;  %v3782_v17 = vmax.f32 %v3654_v34, %v8952_v11 }
 0x448   : > { %v3319_v7 = vadd.f32 %v8785_v8, %v3283_v42 }
 0x449   : > { %v3910_v11 = vmax.f32 %v3782_v17, %v9007_v0  ;;  %v2728_v17 = vpop.f32.mrf.mxu3  ;;  %v2962_v34 = vpop.f32.mrf.mxu0 }
 0x44a   : > { %v3351_v62 = vmax.f32 %v3319_v7, 0.0 }
 0x44b   : > { %v4038_v39 = vmax.f32 %v3910_v11, %v9024_v31  ;;  %v2546_v31 = vadd.f32 %v2494_v50, %v8714_v5  ;;  %v3527_v5 = vmax.f32 %v8837_v3, %v8977_v35  ;;  %v2497_v3 = vpop.f32.mrf.mxu2 }
 0x44c   : > { %3719 = vrot.lane.b32.xlu2 %v9314_v46, %s10908_s26  ;;  %4101 = vrot.lane.b32.xlu1 %v9280_v47, %s10925_s11  ;;  %v9367_v41 = vmin.f32 %v3351_v62, 6.0 }
 0x44d   : > { %4229 = vrot.lane.b32.xlu0 %v9280_v47, %s10917_s22  ;;  %v4166_v43 = vmax.f32 %v4038_v39, %v8963_v1  ;;  %v2780_v37 = vadd.f32 %v2728_v17, %v2546_v31  ;;  %v3655_v39 = vmax.f32 %v3527_v5, %v9035_v27 }
 0x44e   : > { %v9325_v20 = vpop.permute.xlu2 %3581  ;;  %v9327_v54 = vpop.permute.xlu1 %4089 }
 0x44f   : > { %v9330_v23 = vpop.permute.xlu0 %4217  ;;  %v9370_v21 = vmax.f32 %v4166_v43, %v9022_v30  ;;  %v3014_v1 = vadd.f32 %v2962_v34, %v2780_v37  ;;  %v3196_v30 = vpop.f32.mrf.mxu1  ;;  %v3783_v62 = vmax.f32 %v3655_v39, %v9037_v61  ;;  %v2547_v61 = vadd.f32 %v2497_v3, %v8720_v18  ;;  %v9404_v37 = vld [vmem:[%s11023_s16] ss:$0 sm:$0xff] }
 0x451   : > { %v3248_v50 = vadd.f32 %v3196_v30, %v3014_v1  ;;  %v3911_v17 = vmax.f32 %v3783_v62, %v8992_v53  ;;  %v2731_v34 = vpop.f32.mrf.mxu3  ;;  %v2965_v30 = vpop.f32.mrf.mxu0 }
 0x452   : > { %v2781_v39 = vadd.f32 %v2731_v34, %v2547_v61 }
 0x453   : > { %v3284_v35 = vmul.f32 %v8782_v4, %v3248_v50  ;;  %v4039_v1 = vmax.f32 %v3911_v17, %v9049_v49 }
 0x454   : > { %3847 = vrot.lane.b32.xlu2 %v9314_v46, %s10923_s18  ;;  %3463 = vrot.lane.b32.xlu1 %v9314_v46, %s10915_s7  ;;  %v3015_v4 = vadd.f32 %v2965_v30, %v2781_v39 }
 0x455   : > { %4357 = vrot.lane.b32.xlu0 %v9334_v29, %s10921_s23  ;;  %v3320_v5 = vadd.f32 %v9404_v37, %v3284_v35  ;;  %v4167_v53 = vmax.f32 %v4039_v1, %v9051_v36  ;;  %v9433_v36 = vld [vmem:[%s11020_s5] ss:$0 sm:$0xff] }
 0x456   : > { %v9344_v16 = vpop.permute.xlu2 %4093  ;;  %v9346_v58 = vpop.permute.xlu1 %3451 }
 0x457   : > { %11071 = vst [vmem:[#allocation150_spill] sm:$0xff] %v9344_v16  ;;  %v9348_v59 = vpop.permute.xlu0 %3579  ;;  %v3352_v18 = vmax.f32 %v3320_v5, 0.0  ;;  %v3199_v49 = vpop.f32.mrf.mxu1  ;;  %v9424_v17 = vmax.f32 %v4167_v53, %v9005_v63  ;;  %v3528_v63 = vmax.f32 %v8871_v52, %v9066_v45 }
 0x458   : > { %v3249_v61 = vadd.f32 %v3199_v49, %v3015_v4  ;;  %v2499_v4 = vpop.f32.mrf.mxu2 }
 0x459   : > { %v9421_v35 = vmin.f32 %v3352_v18, 6.0  ;;  %v3656_v18 = vmax.f32 %v3528_v63, %v9020_v28  ;;  %v2548_v28 = vadd.f32 %v2499_v4, %v8724_v22 }
 0x45a   : > { %v3285_v34 = vmul.f32 %v9433_v36, %v3249_v61 }
 0x45b   : > { %v3784_v45 = vmax.f32 %v3656_v18, %v9064_v26 }
 0x45c   : > { %4231 = vrot.lane.b32.xlu2 %v9314_v46, %s10917_s22  ;;  %3975 = vrot.lane.b32.xlu1 %v9314_v46, %s10919_s10  ;;  %v3321_v39 = vadd.f32 %v9404_v37, %v3285_v34  ;;  %v2733_v34 = vpop.f32.mrf.mxu3 }
 0x45d   : > { %3591 = vrot.lane.b32.xlu0 %v9314_v46, %s10927_s28  ;;  %v3912_v63 = vmax.f32 %v3784_v45, %v9080_v14  ;;  %v3529_v14 = vmax.f32 %v8894_v15, %v9093_v40 }
 0x45e   : > { %v9360_v2 = vpop.permute.xlu2 %3455  ;;  %v9362_v0 = vpop.permute.xlu1 %3963  ;;  %v3353_v53 = vmax.f32 %v3321_v39, 0.0 }
 0x45f   : > { %v9364_v8 = vpop.permute.xlu0 %4091  ;;  %v4040_v26 = vmax.f32 %v3912_v63, %v9033_v55  ;;  %v3201_v4 = vpop.f32.mrf.mxu1  ;;  %v3657_v45 = vmax.f32 %v3529_v14, %v9108_v56 }
 0x460   : > { %v2502_v63 = vpop.f32.mrf.mxu2 }
 0x464   : > { %3721 = vrot.lane.b32.xlu1 %v9367_v41, %s10908_s26  ;;  %4359 = vrot.lane.b32.xlu2 %v9370_v21, %s10921_s23 }
 0x465   : > { %4103 = vrot.lane.b32.xlu0 %v9314_v46, %s10925_s11 }
 0x466   : > { %v9380_v42 = vpop.permute.xlu2 %3967  ;;  %v9382_v11 = vpop.permute.xlu1 %3709 }
 0x467   : > { %v9384_v7 = vpop.permute.xlu0 %3453 }
 0x46c   : > { %3849 = vrot.lane.b32.xlu1 %v9367_v41, %s10923_s18  ;;  %3593 = vrot.lane.b32.xlu2 %v9367_v41, %s10927_s28 }
 0x46d   : > { %3465 = vrot.lane.b32.xlu0 %v9367_v41, %s10915_s7 }
 0x46e   : > { %v9395_v43 = vpop.permute.xlu2 %3713  ;;  %v9397_v31 = vpop.permute.xlu1 %3837 }
 0x46f   : > { %11072 = vst [vmem:[#allocation151_spill] sm:$0xff] %v9395_v43  ;;  %v9399_v27 = vpop.permute.xlu0 %3965 }
 0x470   : > { %11073 = vst [vmem:[#allocation152_spill] sm:$0xff] %v9399_v27 }
 0x474   : > { %4233 = vrot.lane.b32.xlu1 %v9367_v41, %s10917_s22  ;;  %4105 = vrot.lane.b32.xlu2 %v9367_v41, %s10925_s11 }
 0x475   : > { %3977 = vrot.lane.b32.xlu0 %v9367_v41, %s10919_s10 }
 0x476   : > { %v9415_v50 = vpop.permute.xlu2 %3841  ;;  %v9417_v62 = vpop.permute.xlu1 %4221 }
 0x477   : > { %11074 = vst [vmem:[#allocation153_spill] sm:$0xff] %v9415_v50  ;;  %v9419_v3 = vpop.permute.xlu0 %3711  ;;  %v2967_v50 = vpop.f32.mrf.mxu0 }
 0x478   : > { %11075 = vst [vmem:[#allocation154_spill] sm:$0xff] %v9417_v62  ;;  %v2782_v62 = vadd.f32 %v2733_v34, %v2548_v28  ;;  %v4168_v28 = vmax.f32 %v4040_v26, %v9078_v9  ;;  %v4554_v34 = vld [vmem:[%s11079_s1] sm:$0xff]  ;;  %s11105_s1 = sld [smem:[#allocation46_spill]] }
 0x479   : > { %4965 = vmatpush.msrb.mxu2 %v4554_v34 }
 0x47a   : > { %v3016_v22 = vadd.f32 %v2967_v50, %v2782_v62  ;;  %v9478_v55 = vmax.f32 %v4168_v28, %v9095_v57  ;;  %v3785_v50 = vmax.f32 %v3657_v45, %v9047_v33  ;;  %v2736_v45 = vpop.f32.mrf.mxu3 }
 0x47c   : > { %3467 = vrot.lane.b32.xlu2 %v9421_v35, %s10915_s7  ;;  %4361 = vrot.lane.b32.xlu1 %v9424_v17, %s10921_s23  ;;  %v3250_v43 = vadd.f32 %v3201_v4, %v3016_v22  ;;  %v3913_v57 = vmax.f32 %v3785_v50, %v9106_v48  ;;  %v2549_v4 = vadd.f32 %v2502_v63, %v8730_v32 }
 0x47d   : > { %3723 = vrot.lane.b32.xlu0 %v9421_v35, %s10908_s26 }
 0x47e   : > { %v9436_v5 = vpop.permute.xlu2 %4225  ;;  %v9438_v1 = vpop.permute.xlu1 %3583  ;;  %v3286_v56 = vmul.f32 %v9433_v36, %v3250_v43  ;;  %v4041_v62 = vmax.f32 %v3913_v57, %v9123_v10  ;;  %v2783_v57 = vadd.f32 %v2736_v45, %v2549_v4 }
 0x47f   : > { %11076 = vst [vmem:[#allocation155_spill] sm:$0xff] %v9436_v5  ;;  %v9442_v30 = vpop.permute.xlu0 %3839  ;;  %v9459_v5 = vmin.f32 %v3353_v53, 6.0 }
 0x480   : > { %v3322_v33 = vadd.f32 %v9404_v37, %v3286_v56  ;;  %v4169_v26 = vmax.f32 %v4041_v62, %v9062_v24  ;;  %v2970_v56 = vpop.f32.mrf.mxu0 }
 0x481   : > { %v3017_v24 = vadd.f32 %v2970_v56, %v2783_v57  ;;  %v11087_v56 = vld [vmem:[#allocation117_spill] sm:$0xff] }
 0x482   : > { %v3354_v43 = vmax.f32 %v3322_v33, 0.0  ;;  %v9511_v34 = vmax.f32 %v4169_v26, %v9121_v38  ;;  %v11085_v33 = vld [vmem:[#allocation104_spill] sm:$0xff] }
 0x484   : > { %3979 = vrot.lane.b32.xlu2 %v9421_v35, %s10919_s10  ;;  %3595 = vrot.lane.b32.xlu1 %v9421_v35, %s10927_s28  ;;  %v9508_v28 = vmin.f32 %v3354_v43, 6.0 }
 0x485   : > { %3851 = vrot.lane.b32.xlu0 %v9421_v35, %s10923_s18 }
 0x486   : > { %v3588_v49 = vpop.permute.xlu2 %3587  ;;  %v9452_v61 = vpop.permute.xlu1 %4095 }
 0x487   : > { %11077 = vst [vmem:[#allocation156_spill] sm:$0xff] %v9452_v61  ;;  %v9455_v52 = vpop.permute.xlu0 %4223 }
 0x488   : > { %11078 = vst [vmem:[#allocation157_spill] sm:$0xff] %v9455_v52  ;;  %v11108_v52 = vld [vmem:[#allocation115_spill] sm:$0xff] }
 0x48c   : > { %3725 = vrot.lane.b32.xlu2 %v9459_v5, %s10908_s26  ;;  %4107 = vrot.lane.b32.xlu1 %v9421_v35, %s10925_s11 }
 0x48d   : > { %4235 = vrot.lane.b32.xlu0 %v9421_v35, %s10917_s22 }
 0x48e   : > { %v4100_v39 = vpop.permute.xlu2 %4099  ;;  %v9470_v18 = vpop.permute.xlu1 %3457 }
 0x48f   : > { %11080 = vst [vmem:[#allocation158_spill] sm:$0xff] %v9470_v18  ;;  %v9472_v53 = vpop.permute.xlu0 %3585  ;;  %v9623_v18 = vld [vmem:[%s11105_s1] ss:$0 sm:$0xff] }
 0x490   : > { %11081 = vst [vmem:[#allocation159_spill] sm:$0xff] %v9472_v53 }
 0x494   : > { %3853 = vrot.lane.b32.xlu2 %v9459_v5, %s10923_s18  ;;  %3469 = vrot.lane.b32.xlu1 %v9459_v5, %s10915_s7 }
 0x495   : > { %4363 = vrot.lane.b32.xlu0 %v9478_v55, %s10921_s23 }
 0x496   : > { %v9488_v15 = vpop.permute.xlu2 %3461  ;;  %v9490_v9 = vpop.permute.xlu1 %3969 }
 0x497   : > { %11082 = vst [vmem:[#allocation160_spill] sm:$0xff] %v9490_v9  ;;  %v9492_v40 = vpop.permute.xlu0 %4097 }
 0x498   : > { %11083 = vst [vmem:[#allocation161_spill] sm:$0xff] %v9492_v40  ;;  %v11093_v40 = vld [vmem:[#allocation112_spill] sm:$0xff] }
 0x49c   : > { %4237 = vrot.lane.b32.xlu2 %v9459_v5, %s10917_s22  ;;  %3981 = vrot.lane.b32.xlu1 %v9459_v5, %s10919_s10 }
 0x49d   : > { %3597 = vrot.lane.b32.xlu0 %v9459_v5, %s10927_s28 }
 0x49e   : > { %v9504_v22 = vpop.permute.xlu2 %3973  ;;  %v3716_v48 = vpop.permute.xlu1 %3715 }
 0x49f   : > { %v3460_v14 = vpop.permute.xlu0 %3459 }
 0x4a0   : > { %v3540_v10 = vmax.f32 %v9251_v13, %v3460_v14  ;;  %v11084_v13 = vld [vmem:[#allocation109_spill] sm:$0xff]  ;;  %v11086_v14 = vld [vmem:[#allocation116_spill] sm:$0xff] }
 0x4a1   : > { %v3530_v62 = vmax.f32 %v11085_v33, %v11084_v13 }
 0x4a2   : > { %v3668_v50 = vmax.f32 %v3540_v10, %v3588_v49  ;;  %v3204_v49 = vpop.f32.mrf.mxu1  ;;  %v10904_v10 = vmov 0.0  }
 0x4a3   : > { %v3658_v4 = vmax.f32 %v3530_v62, %v11086_v14  ;;  %1920 = vst.msk [vmem:[#allocation3] sm:$0x1] %vm1918_vm1, %v10904_v10  ;;  %v2738_v14 = vpop.f32.mrf.mxu3 }
 0x4a4   : > { %3727 = vrot.lane.b32.xlu1 %v9508_v28, %s10908_s26  ;;  %4365 = vrot.lane.b32.xlu2 %v9511_v34, %s10921_s23  ;;  %v3796_v32 = vmax.f32 %v3668_v50, %v3716_v48  ;;  %1919 = vst.msk [vmem:[#allocation2] sm:$0x1] %vm1918_vm1, %v10904_v10  ;;  %v3251_v48 = vadd.f32 %v3204_v49, %v3017_v24 }
 0x4a5   : > { %4109 = vrot.lane.b32.xlu0 %v9459_v5, %s10925_s11  ;;  %5167 = vst.msk [vmem:[#allocation2 + $0xfc] sm:$0x1] %vm1918_vm1, %v10904_v10  ;;  %v3786_v57 = vmax.f32 %v3658_v4, %v11087_v56  ;;  %v2972_v56 = vpop.f32.mrf.mxu0 }
 0x4a6   : > { %v9521_v63 = vpop.permute.xlu2 %3719  ;;  %v3844_v38 = vpop.permute.xlu1 %3843  ;;  %v3287_v13 = vmul.f32 %v9433_v36, %v3251_v48  ;;  %v3541_v48 = vmax.f32 %v9280_v47, %v9488_v15 }
 0x4a7   : > { %v3924_v43 = vmax.f32 %v3796_v32, %v3844_v38  ;;  %v3972_v26 = vpop.permute.xlu0 %3971  ;;  %v2504_v32 = vpop.f32.mrf.mxu2  ;;  %v11089_v38 = vld [vmem:[#allocation95_spill] sm:$0xff] }
 0x4a8   : > { %v2550_v49 = vadd.f32 %v2504_v32, %v11089_v38  ;;  %v3323_v4 = vadd.f32 %v9404_v37, %v3287_v13  ;;  %v11091_v32 = vld [vmem:[#allocation119_spill] sm:$0xff] }
 0x4a9   : > { %v4052_v45 = vmax.f32 %v3924_v43, %v3972_v26  ;;  %v11090_v43 = vld [vmem:[#allocation111_spill] sm:$0xff] }
 0x4aa   : > { %v3914_v26 = vmax.f32 %v3786_v57, %v11090_v43  ;;  %v2784_v10 = vadd.f32 %v2738_v14, %v2550_v49  ;;  %v3206_v38 = vpop.f32.mrf.mxu1 }
 0x4ab   : > { %v4180_v50 = vmax.f32 %v4052_v45, %v4100_v39 }
 0x4ac   : > { %3855 = vrot.lane.b32.xlu1 %v9508_v28, %s10923_s18  ;;  %3599 = vrot.lane.b32.xlu2 %v9508_v28, %s10927_s28  ;;  %v4042_v45 = vmax.f32 %v3914_v26, %v9148_v19  ;;  %v3018_v57 = vadd.f32 %v2972_v56, %v2784_v10 }
 0x4ad   : > { %3471 = vrot.lane.b32.xlu0 %v9508_v28, %s10915_s7 }
 0x4ae   : > { %v9538_v33 = vpop.permute.xlu2 %3847  ;;  %v4228_v24 = vpop.permute.xlu1 %4227  ;;  %v4170_v13 = vmax.f32 %v4042_v45, %v11091_v32  ;;  %v11095_v45 = vld [vmem:[#allocation123_spill] sm:$0xff] }
 0x4af   : > { %v9540_v62 = vmax.f32 %v4180_v50, %v4228_v24  ;;  %v3718_v39 = vpop.permute.xlu0 %3717  ;;  %v3355_v50 = vmax.f32 %v3323_v4, 0.0 }
 0x4b0   : > { %v9560_v9 = vmax.f32 %v4170_v13, %v11093_v40  ;;  %v11096_v40 = vld [vmem:[#allocation105_spill] sm:$0xff]  ;;  %v11099_v13 = vld [vmem:[#allocation114_spill] sm:$0xff] }
 0x4b1   : > { %11088 = vst [vmem:[#allocation109_spill] sm:$0xff] %v9540_v62  ;;  %v9557_v14 = vmin.f32 %v3355_v50, 6.0  ;;  %v3252_v62 = vadd.f32 %v3206_v38, %v3018_v57  ;;  %v3531_v56 = vmax.f32 %v11096_v40, %v11095_v45  ;;  %v2507_v38 = vpop.f32.mrf.mxu2 }
 0x4b2   : > { %11094 = vst [vmem:[#allocation116_spill] sm:$0xff] %v9560_v9 }
 0x4b3   : > { %11092 = vst [vmem:[#allocation104_spill] sm:$0xff] %v9557_v14  ;;  %v3288_v10 = vmul.f32 %v9433_v36, %v3252_v62 }
 0x4b4   : > { %4239 = vrot.lane.b32.xlu1 %v9508_v28, %s10917_s22  ;;  %4111 = vrot.lane.b32.xlu2 %v9508_v28, %s10925_s11 }
 0x4b5   : > { %3983 = vrot.lane.b32.xlu0 %v9508_v28, %s10919_s10  ;;  %v3324_v32 = vadd.f32 %v9404_v37, %v3288_v10 }
 0x4b6   : > { %v9555_v24 = vpop.permute.xlu2 %4231  ;;  %v3590_v19 = vpop.permute.xlu1 %3589 }
 0x4b7   : > { %v3669_v49 = vmax.f32 %v3541_v48, %v3590_v19  ;;  %v3846_v43 = vpop.permute.xlu0 %3845  ;;  %v3659_v19 = vmax.f32 %v3531_v56, %v11099_v13  ;;  %v2975_v56 = vpop.f32.mrf.mxu0  ;;  %v11103_v13 = vld [vmem:[#allocation106_spill] sm:$0xff] }
 0x4b9   : > { %v3797_v26 = vmax.f32 %v3669_v49, %v3718_v39 }
 0x4bb   : > { %v3925_v47 = vmax.f32 %v3797_v26, %v3846_v43  ;;  %v11100_v43 = vld [vmem:[#allocation96_spill] sm:$0xff] }
 0x4bc   : > { %3473 = vrot.lane.b32.xlu2 %v9557_v14, %s10915_s7  ;;  %4367 = vrot.lane.b32.xlu1 %v9560_v9, %s10921_s23  ;;  %v2551_v26 = vadd.f32 %v2507_v38, %v11100_v43  ;;  %v3209_v43 = vpop.f32.mrf.mxu1  ;;  %v11109_v9 = vld [vmem:[#allocation129_spill] sm:$0xff] }
 0x4bd   : > { %3729 = vrot.lane.b32.xlu0 %v9557_v14, %s10908_s26  ;;  %v4053_v15 = vmax.f32 %v3925_v47, %v9504_v22  ;;  %v3356_v22 = vmax.f32 %v3324_v32, 0.0  ;;  %v11101_v47 = vld [vmem:[#allocation122_spill] sm:$0xff] }
 0x4be   : > { %v4102_v39 = vpop.permute.xlu1 %4101  ;;  %v4360_v4 = vpop.permute.xlu2 %4359  ;;  %v11102_v32 = vld [vmem:[#allocation118_spill] sm:$0xff] }
 0x4bf   : > { %v4181_v48 = vmax.f32 %v4053_v15, %v4102_v39  ;;  %4455 = vst.msk [vmem:[#allocation3 + $0x9] sm:$0xff] %vm4453_vm2, %v4360_v4  ;;  %v4230_v50 = vpop.permute.xlu0 %4229  ;;  %v3787_v15 = vmax.f32 %v3659_v19, %v11101_v47  ;;  %v2741_v39 = vpop.f32.mrf.mxu3  ;;  %v4551_v4 = vld [vmem:[%s11097_s15] sm:$0x7]  ;;  %v9590_v40 = vmin.f32 %v3356_v22, 6.0  ;;  %s11106_s15 = sld [smem:[#allocation47_spill]] }
 0x4c0   : > { %v9600_v19 = vperm.slane %v4551_v4, 0 }
 0x4c1   : > { %v9573_v57 = vmax.f32 %v4181_v48, %v4230_v50  ;;  %v3915_v45 = vmax.f32 %v3787_v15, %v9177_v51  ;;  %v2785_v48 = vadd.f32 %v2741_v39, %v2551_v26  ;;  %v9592_v50 = vperm.slane %v4551_v4, 1  ;;  %v11104_v51 = vld [vmem:[#allocation125_spill] sm:$0xff] }
 0x4c2   : > { %v9606_v26 = vperm.slane %v4551_v4, 2 }
 0x4c3   : > { %11098 = vst [vmem:[#allocation117_spill] sm:$0xff] %v9573_v57  ;;  %v3532_v57 = vmax.f32 %v11103_v13, %v11102_v32  ;;  %v3019_v38 = vadd.f32 %v2975_v56, %v2785_v48  ;;  %v4043_v22 = vmax.f32 %v3915_v45, %v11104_v51  ;;  %v4591_v13 = vmul.f32 %v9592_v50, %v9334_v29 }
 0x4c4   : > { %3985 = vrot.lane.b32.xlu2 %v9557_v14, %s10919_s10  ;;  %3601 = vrot.lane.b32.xlu1 %v9557_v14, %s10927_s28 }
 0x4c5   : > { %3857 = vrot.lane.b32.xlu0 %v9557_v14, %s10923_s18  ;;  %v3660_v47 = vmax.f32 %v3532_v57, %v9205_v12  ;;  %v4592_v12 = vmul.f32 %v9592_v50, %v9370_v21  ;;  %v4171_v16 = vmax.f32 %v4043_v22, %v11108_v52  ;;  %v11111_v22 = vld [vmem:[#allocation131_spill] sm:$0xff] }
 0x4c6   : > { %v3464_v62 = vpop.permute.xlu1 %3463  ;;  %v9583_v49 = vpop.permute.xlu2 %3593  ;;  %v4520_v32 = vld [vmem:[#allocation3 + $0x9] sm:$0xff] }
 0x4c7   : > { %v4358_v10 = vpop.permute.xlu0 %4357  ;;  %v3542_v15 = vmax.f32 %v9314_v46, %v3464_v62  ;;  %v3253_v62 = vadd.f32 %v3209_v43, %v3019_v38  ;;  %v3788_v53 = vmax.f32 %v3660_v47, %v11109_v9  ;;  %v4657_v29 = vmul.f32 %v9606_v26, %v4520_v32  ;;  %v9634_v38 = vld [vmem:[%s11106_s15] ss:$0 sm:$0xff] }
 0x4c8   : > { %4454 = vst.msk [vmem:[#allocation3 + $0x1] sm:$0xff] %vm4453_vm2, %v4358_v10 }
 0x4c9   : > { %v3289_v43 = vmul.f32 %v9433_v36, %v3253_v62 }
 0x4cc   : > { %3731 = vrot.lane.b32.xlu2 %v9590_v40, %s10908_s26  ;;  %4113 = vrot.lane.b32.xlu1 %v9557_v14, %s10925_s11  ;;  %s11107_s26 = smov %s11106_s15  ;;  %s11118_s15 = smov 104  }
 0x4cd   : > { %4241 = vrot.lane.b32.xlu0 %v9557_v14, %s10917_s22 }
 0x4ce   : > { %v3976_v10 = vpop.permute.xlu1 %3975  ;;  %v9609_v39 = vpop.permute.xlu2 %4105 }
 0x4cf   : > { %v3592_v56 = vpop.permute.xlu0 %3591  ;;  %v4487_v48 = vld [vmem:[#allocation3] sm:$0xff]  ;;  %v4488_v51 = vld [vmem:[#allocation3 + $0x8] sm:$0xff] }
 0x4d0   : > { %v4519_v45 = vld [vmem:[#allocation3 + $0x1] sm:$0xff]  ;;  %v3670_v57 = vmax.f32 %v3542_v15, %v3592_v56  ;;  %v4558_v4 = vmul.f32 %v9600_v19, %v4487_v48  ;;  %v4559_v46 = vmul.f32 %v9600_v19, %v4488_v51  ;;  %v11110_v15 = vld [vmem:[#allocation128_spill] sm:$0xff] }
 0x4d1   : > { %v4656_v27 = vmul.f32 %v9606_v26, %v4519_v45  ;;  %v9626_v56 = vmax.f32 %v4171_v16, %v11110_v15  ;;  %v3916_v16 = vmax.f32 %v3788_v53, %v11111_v22 }
 0x4d2   : > { %v3798_v61 = vmax.f32 %v3670_v57, %v9521_v63  ;;  %v4623_v14 = vadd.f32 %v4591_v13, %v4558_v4  ;;  %v4624_v21 = vadd.f32 %v4592_v12, %v4559_v46  ;;  %v2509_v46 = vpop.f32.mrf.mxu2 }
 0x4d4   : > { %3859 = vrot.lane.b32.xlu2 %v9590_v40, %s10923_s18  ;;  %3475 = vrot.lane.b32.xlu1 %v9590_v40, %s10915_s7  ;;  %v3926_v52 = vmax.f32 %v3798_v61, %v9538_v33  ;;  %v4688_v9 = vadd.f32 %v4656_v27, %v4623_v14  ;;  %v4689_v63 = vadd.f32 %v4657_v29, %v4624_v21  ;;  %v11112_v14 = vld [vmem:[#allocation121_spill] sm:$0xff]  ;;  %v11113_v29 = vld [vmem:[#allocation134_spill] sm:$0xff] }
 0x4d5   : > { %4369 = vrot.lane.b32.xlu0 %v9626_v56, %s10921_s23  ;;  %v3325_v33 = vadd.f32 %v9404_v37, %v3289_v43  ;;  %v4044_v12 = vmax.f32 %v3916_v16, %v11112_v14  ;;  %v2743_v16 = vpop.f32.mrf.mxu3  ;;  %v2977_v14 = vpop.f32.mrf.mxu0 }
 0x4d6   : > { %v3722_v47 = vpop.permute.xlu1 %3721  ;;  %v9640_v32 = vpop.permute.xlu2 %3467  ;;  %v4054_v13 = vmax.f32 %v3926_v52, %v3976_v10  ;;  %v4723_v48 = vmul.f32 %v9623_v18, %v4688_v9  ;;  %v4724_v61 = vmul.f32 %v9623_v18, %v4689_v63  ;;  %v11114_v9 = vld [vmem:[#allocation97_spill] sm:$0xff] }
 0x4d7   : > { %v4104_v45 = vpop.permute.xlu0 %4103  ;;  %v3357_v62 = vmax.f32 %v3325_v33, 0.0  ;;  %v4172_v21 = vmax.f32 %v4044_v12, %v11113_v29  ;;  %v2552_v63 = vadd.f32 %v2509_v46, %v11114_v9 }
 0x4d8   : > { %v4182_v51 = vmax.f32 %v4054_v13, %v4104_v45  ;;  %v4758_v27 = vadd.f32 %v9634_v38, %v4723_v48  ;;  %v4759_v4 = vadd.f32 %v9634_v38, %v4724_v61  ;;  %v11115_v48 = vld [vmem:[#allocation135_spill] sm:$0xff] }
 0x4d9   : > { %v9663_v13 = vmin.f32 %v3357_v62, 6.0  ;;  %v9666_v45 = vmax.f32 %v4172_v21, %v11115_v48  ;;  %v2786_v12 = vadd.f32 %v2743_v16, %v2552_v63  ;;  %v3211_v21 = vpop.f32.mrf.mxu1 }
 0x4da   : > { %v9648_v57 = vmax.f32 %v4182_v51, %v9555_v24  ;;  %v4790_v53 = vmax.f32 %v4758_v27, 0.0  ;;  %v4791_v22 = vmax.f32 %v4759_v4, 0.0  ;;  %v11116_v51 = vld [vmem:[#allocation137_spill] sm:$0xff]  ;;  %v11117_v27 = vld [vmem:[#allocation107_spill] sm:$0xff]  ;;  %v11119_v4 = vld [vmem:[#allocation138_spill] sm:$0xff]  ;;  %v2512_v48 = vpop.f32.mrf.mxu2 }
 0x4db   : > { %v3533_v61 = vmax.f32 %v11117_v27, %v11116_v51  ;;  %v11122_v51 = vld [vmem:[#allocation127_spill] sm:$0xff] }
 0x4dc   : > { %4243 = vrot.lane.b32.xlu2 %v9590_v40, %s10917_s22  ;;  %3987 = vrot.lane.b32.xlu1 %v9590_v40, %s10919_s10  ;;  %v4822_v10 = vmin.f32 %v4790_v53, 6.0 }
 0x4dd   : > { %3603 = vrot.lane.b32.xlu0 %v9590_v40, %s10927_s28  ;;  %v3661_v46 = vmax.f32 %v3533_v61, %v11119_v4  ;;  %v2980_v4 = vpop.f32.mrf.mxu0 }
 0x4de   : > { %6816 = vmatmul.msk.f32.vlgmr.msrb.gmra.mxu2 %vm4453_vm2, %v4822_v10  ;;  %v3850_v24 = vpop.permute.xlu1 %3849  ;;  %v9659_v15 = vpop.permute.xlu2 %3979  ;;  %v3020_v10 = vadd.f32 %v2977_v14, %v2786_v12  ;;  %v11123_v14 = vld [vmem:[#allocation98_spill] sm:$0xff] }
 0x4df   : > { %v3466_v52 = vpop.permute.xlu0 %3465  ;;  %v2553_v12 = vadd.f32 %v2512_v48, %v11123_v14 }
 0x4e0   : > { %v3543_v43 = vmax.f32 %v9367_v41, %v3466_v52  ;;  %v4823_v41 = vmin.f32 %v4791_v22, 6.0  ;;  %v3254_v63 = vadd.f32 %v3211_v21, %v3020_v10 }
 0x4e1   : > { %v3214_v48 = vpop.f32.mrf.mxu1 }
 0x4e2   : > { %v3671_v33 = vmax.f32 %v3543_v43, %v9583_v49  ;;  %v11120_v43 = vld [vmem:[#allocation124_spill] sm:$0xff] }
 0x4e3   : > { %v3789_v16 = vmax.f32 %v3661_v46, %v11120_v43 }
 0x4e4   : > { %3733 = vrot.lane.b32.xlu1 %v9663_v13, %s11118_s15  ;;  %4371 = vrot.lane.b32.xlu2 %v9666_v45, %s10921_s23  ;;  %v3799_v53 = vmax.f32 %v3671_v33, %v3722_v47 }
 0x4e5   : > { %4115 = vrot.lane.b32.xlu0 %v9590_v40, %s10925_s11  ;;  %v3917_v27 = vmax.f32 %v3789_v16, %v11122_v51 }
 0x4e6   : > { %6817 = vmatmul.msk.f32.gmra.mxu2 %vm4453_vm2, %v4823_v41  ;;  %v4234_v62 = vpop.permute.xlu1 %4233  ;;  %v9679_v49 = vpop.permute.xlu2 %3725  ;;  %v3927_v29 = vmax.f32 %v3799_v53, %v3850_v24  ;;  %v3290_v24 = vmul.f32 %v9433_v36, %v3254_v63 }
 0x4e7   : > { %v3978_v52 = vpop.permute.xlu0 %3977  ;;  %v2746_v41 = vpop.f32.mrf.mxu3  ;;  %v4045_v10 = vmax.f32 %v3917_v27, %v9247_v6 }
 0x4e8   : > { %v4055_v9 = vmax.f32 %v3927_v29, %v3978_v52  ;;  %v3326_v53 = vadd.f32 %v9404_v37, %v3290_v24  ;;  %v2787_v46 = vadd.f32 %v2746_v41, %v2553_v12  ;;  %v11124_v52 = vld [vmem:[#allocation140_spill] sm:$0xff]  ;;  %v11126_v41 = vld [vmem:[#allocation130_spill] sm:$0xff] }
 0x4ea   : > { %v4183_v47 = vmax.f32 %v4055_v9, %v9609_v39  ;;  %v3358_v29 = vmax.f32 %v3326_v53, 0.0  ;;  %v3021_v21 = vadd.f32 %v2980_v4, %v2787_v46  ;;  %v4173_v9 = vmax.f32 %v4045_v10, %v11124_v52  ;;  %v11129_v52 = vld [vmem:[#allocation108_spill] sm:$0xff] }
 0x4ec   : > { %v9683_v22 = vmax.f32 %v4183_v47, %v4234_v62  ;;  %3861 = vrot.lane.b32.xlu1 %v9663_v13, %s10923_s18  ;;  %3605 = vrot.lane.b32.xlu2 %v9663_v13, %s10927_s28  ;;  %v3544_v62 = vmax.f32 %v9421_v35, %v9640_v32  ;;  %v4593_v47 = vmul.f32 %v9592_v50, %v9424_v17  ;;  %v9714_v14 = vmin.f32 %v3358_v29, 6.0 }
 0x4ed   : > { %3477 = vrot.lane.b32.xlu0 %v9663_v13, %s10915_s7  ;;  %v3255_v12 = vadd.f32 %v3214_v48, %v3021_v21  ;;  %v9717_v53 = vmax.f32 %v4173_v9, %v11126_v41  ;;  %v11128_v21 = vld [vmem:[#allocation143_spill] sm:$0xff] }
 0x4ee   : > { %11121 = vst [vmem:[#allocation95_spill] sm:$0xff] %v9683_v22  ;;  %v9693_v61 = vpop.permute.xlu2 %3853  ;;  %v4362_v33 = vpop.permute.xlu1 %4361  ;;  %v3534_v9 = vmax.f32 %v11129_v52, %v11128_v21  ;;  %v11131_v41 = vld [vmem:[#allocation99_spill] sm:$0xff] }
 0x4ef   : > { %4456 = vst.msk [vmem:[#allocation3 + $0x11] sm:$0xff] %vm4453_vm2, %v4362_v33  ;;  %v3724_v39 = vpop.permute.xlu0 %3723  ;;  %v3291_v46 = vmul.f32 %v9433_v36, %v3255_v12  ;;  %v2982_v21 = vpop.f32.mrf.mxu0  ;;  %v11138_v22 = vld [vmem:[#allocation147_spill] sm:$0xff] }
 0x4f0   : > { %11125 = vst [vmem:[#allocation111_spill] sm:$0xff] %v9714_v14 }
 0x4f1   : > { %11127 = vst [vmem:[#allocation119_spill] sm:$0xff] %v9717_v53 }
 0x4f4   : > { %4245 = vrot.lane.b32.xlu1 %v9663_v13, %s10917_s22  ;;  %4117 = vrot.lane.b32.xlu2 %v9663_v13, %s10925_s11 }
 0x4f5   : > { %3989 = vrot.lane.b32.xlu0 %v9663_v13, %s10919_s10 }
 0x4f6   : > { %v9708_v63 = vpop.permute.xlu2 %4237  ;;  %v3596_v6 = vpop.permute.xlu1 %3595  ;;  %v4489_v43 = vld [vmem:[#allocation3 + $0x10] sm:$0xff] }
 0x4f7   : > { %v4521_v16 = vld [vmem:[#allocation3 + $0x11] sm:$0xff]  ;;  %v3672_v24 = vmax.f32 %v3544_v62, %v3596_v6  ;;  %v3852_v51 = vpop.permute.xlu0 %3851  ;;  %v4560_v35 = vmul.f32 %v9600_v19, %v4489_v43 }
 0x4f8   : > { %v4658_v33 = vmul.f32 %v9606_v26, %v4521_v16 }
 0x4f9   : > { %v3800_v32 = vmax.f32 %v3672_v24, %v3724_v39  ;;  %v4625_v27 = vadd.f32 %v4593_v47, %v4560_v35  ;;  %v11130_v24 = vld [vmem:[#allocation133_spill] sm:$0xff] }
 0x4fb   : > { %v3928_v10 = vmax.f32 %v3800_v32, %v3852_v51  ;;  %v4690_v4 = vadd.f32 %v4658_v33, %v4625_v27  ;;  %v3662_v51 = vmax.f32 %v3534_v9, %v11130_v24  ;;  %v2514_v32 = vpop.f32.mrf.mxu2  ;;  %v11133_v9 = vld [vmem:[#allocation139_spill] sm:$0xff] }
 0x4fc   : > { %3479 = vrot.lane.b32.xlu2 %v9714_v14, %s10915_s7  ;;  %4373 = vrot.lane.b32.xlu1 %v9717_v53, %s10921_s23 }
 0x4fd   : > { %3735 = vrot.lane.b32.xlu0 %v9714_v14, %s11118_s15  ;;  %v4056_v17 = vmax.f32 %v3928_v10, %v9659_v15  ;;  %v4725_v39 = vmul.f32 %v9623_v18, %v4690_v4  ;;  %v3327_v15 = vadd.f32 %v9404_v37, %v3291_v46  ;;  %v2554_v10 = vadd.f32 %v2514_v32, %v11131_v41  ;;  %v11132_v4 = vld [vmem:[#allocation142_spill] sm:$0xff]  ;;  %v2748_v46 = vpop.f32.mrf.mxu3 }
 0x4fe   : > { %v4108_v62 = vpop.permute.xlu1 %4107  ;;  %v4366_v29 = vpop.permute.xlu2 %4365  ;;  %v4594_v41 = vmul.f32 %v9592_v50, %v9478_v55 }
 0x4ff   : > { %v4184_v6 = vmax.f32 %v4056_v17, %v4108_v62  ;;  %4458 = vst.msk [vmem:[#allocation3 + $0x21] sm:$0xff] %vm4453_vm2, %v4366_v29  ;;  %v4236_v43 = vpop.permute.xlu0 %4235  ;;  %v4760_v16 = vadd.f32 %v9634_v38, %v4725_v39  ;;  %v3359_v27 = vmax.f32 %v3327_v15, 0.0  ;;  %v3790_v17 = vmax.f32 %v3662_v51, %v11132_v4  ;;  %v11135_v15 = vld [vmem:[#allocation145_spill] sm:$0xff] }
 0x500   : > { %v2788_v52 = vadd.f32 %v2748_v46, %v2554_v10  ;;  %v4595_v46 = vmul.f32 %v9592_v50, %v9511_v34 }
 0x501   : > { %v9732_v47 = vmax.f32 %v4184_v6, %v4236_v43  ;;  %v4792_v48 = vmax.f32 %v4760_v16, 0.0  ;;  %v3918_v62 = vmax.f32 %v3790_v17, %v9276_v60  ;;  %v9749_v29 = vmin.f32 %v3359_v27, 6.0  ;;  %v11134_v6 = vld [vmem:[#allocation110_spill] sm:$0xff] }
 0x502   : > { %v3535_v43 = vmax.f32 %v11134_v6, %v11133_v9  ;;  %v3022_v16 = vadd.f32 %v2982_v21, %v2788_v52  ;;  %v11137_v9 = vld [vmem:[#allocation148_spill] sm:$0xff] }
 0x503   : > { %v4824_v35 = vmin.f32 %v4792_v48, 6.0  ;;  %v3216_v48 = vpop.f32.mrf.mxu1  ;;  %v4046_v24 = vmax.f32 %v3918_v62, %v11135_v15 }
 0x504   : > { %3991 = vrot.lane.b32.xlu2 %v9714_v14, %s10919_s10  ;;  %3607 = vrot.lane.b32.xlu1 %v9714_v14, %s10927_s28  ;;  %v3663_v51 = vmax.f32 %v3535_v43, %v9308_v44 }
 0x505   : > { %3863 = vrot.lane.b32.xlu0 %v9714_v14, %s10923_s18  ;;  %6818 = vmatmul.msk.f32.gmra.mxu2 %vm4453_vm2, %v4824_v35 }
 0x506   : > { %v3470_v33 = vpop.permute.xlu1 %3469  ;;  %v9743_v12 = vpop.permute.xlu2 %3599  ;;  %v4523_v27 = vld [vmem:[#allocation3 + $0x21] sm:$0xff]  ;;  %v3791_v6 = vmax.f32 %v3663_v51, %v11137_v9 }
 0x507   : > { %v4364_v39 = vpop.permute.xlu0 %4363  ;;  %v3545_v60 = vmax.f32 %v9459_v5, %v3470_v33  ;;  %v3256_v5 = vadd.f32 %v3216_v48, %v3022_v16  ;;  %v11136_v33 = vld [vmem:[#allocation136_spill] sm:$0xff]  ;;  %v4660_v43 = vmul.f32 %v9606_v26, %v4523_v27  ;;  %v2517_v51 = vpop.f32.mrf.mxu2 }
 0x508   : > { %4457 = vst.msk [vmem:[#allocation3 + $0x19] sm:$0xff] %vm4453_vm2, %v4364_v39  ;;  %v4174_v52 = vmax.f32 %v4046_v24, %v11136_v33 }
 0x50a   : > { %v9776_v34 = vmax.f32 %v4174_v52, %v11138_v22  ;;  %v2985_v52 = vpop.f32.mrf.mxu0 }
 0x50c   : > { %3737 = vrot.lane.b32.xlu2 %v9749_v29, %s11118_s15  ;;  %4119 = vrot.lane.b32.xlu1 %v9714_v14, %s10925_s11 }
 0x50d   : > { %4247 = vrot.lane.b32.xlu0 %v9714_v14, %s10917_s22 }
 0x50e   : > { %v3982_v35 = vpop.permute.xlu1 %3981  ;;  %v9762_v32 = vpop.permute.xlu2 %4111 }
 0x50f   : > { %v3598_v10 = vpop.permute.xlu0 %3597  ;;  %v4490_v4 = vld [vmem:[#allocation3 + $0x18] sm:$0xff]  ;;  %v4491_v39 = vld [vmem:[#allocation3 + $0x20] sm:$0xff] }
 0x510   : > { %v4522_v17 = vld [vmem:[#allocation3 + $0x19] sm:$0xff]  ;;  %v3673_v44 = vmax.f32 %v3545_v60, %v3598_v10  ;;  %v4561_v62 = vmul.f32 %v9600_v19, %v4490_v4  ;;  %v4562_v21 = vmul.f32 %v9600_v19, %v4491_v39  ;;  %v3919_v60 = vmax.f32 %v3791_v6, %v9311_v25 }
 0x511   : > { %v4659_v14 = vmul.f32 %v9606_v26, %v4522_v17  ;;  %v11139_v17 = vld [vmem:[#allocation100_spill] sm:$0xff]  ;;  %v11141_v25 = vld [vmem:[#allocation113_spill] sm:$0xff] }
 0x512   : > { %v3801_v55 = vmax.f32 %v3673_v44, %v9679_v49  ;;  %v4626_v15 = vadd.f32 %v4594_v41, %v4561_v62  ;;  %v4627_v53 = vadd.f32 %v4595_v46, %v4562_v21  ;;  %v3292_v49 = vmul.f32 %v9433_v36, %v3256_v5  ;;  %v2751_v46 = vpop.f32.mrf.mxu3  ;;  %v11140_v62 = vld [vmem:[#allocation141_spill] sm:$0xff] }
 0x513   : > { %v2555_v39 = vadd.f32 %v2517_v51, %v11139_v17  ;;  %v4047_v21 = vmax.f32 %v3919_v60, %v11140_v62  ;;  %v3536_v5 = vmax.f32 %v11141_v25, %v9346_v58  ;;  %v11142_v17 = vld [vmem:[#allocation144_spill] sm:$0xff] }
 0x514   : > { %3865 = vrot.lane.b32.xlu2 %v9749_v29, %s10923_s18  ;;  %3481 = vrot.lane.b32.xlu1 %v9749_v29, %s10915_s7  ;;  %v3929_v16 = vmax.f32 %v3801_v55, %v9693_v61  ;;  %v4691_v48 = vadd.f32 %v4659_v14, %v4626_v15  ;;  %v4692_v24 = vadd.f32 %v4660_v43, %v4627_v53 }
 0x515   : > { %4375 = vrot.lane.b32.xlu0 %v9776_v34, %s10921_s23  ;;  %v3328_v44 = vadd.f32 %v9404_v37, %v3292_v49  ;;  %v2789_v9 = vadd.f32 %v2751_v46, %v2555_v39  ;;  %v3664_v15 = vmax.f32 %v3536_v5, %v9348_v59  ;;  %v11143_v39 = vld [vmem:[#allocation126_spill] sm:$0xff] }
 0x516   : > { %v3728_v22 = vpop.permute.xlu1 %3727  ;;  %v9787_v27 = vpop.permute.xlu2 %3473  ;;  %v4057_v41 = vmax.f32 %v3929_v16, %v3982_v35  ;;  %v4726_v10 = vmul.f32 %v9623_v18, %v4691_v48  ;;  %v4727_v53 = vmul.f32 %v9623_v18, %v4692_v24 }
 0x517   : > { %v4110_v4 = vpop.permute.xlu0 %4109  ;;  %v3360_v55 = vmax.f32 %v3328_v44, 0.0  ;;  %v3023_v58 = vadd.f32 %v2985_v52, %v2789_v9  ;;  %v3219_v24 = vpop.f32.mrf.mxu1 }
 0x518   : > { %v4185_v61 = vmax.f32 %v4057_v41, %v4110_v4  ;;  %v4761_v14 = vadd.f32 %v9634_v38, %v4726_v10  ;;  %v4762_v43 = vadd.f32 %v9634_v38, %v4727_v53  ;;  %v11144_v53 = vld [vmem:[#allocation146_spill] sm:$0xff] }
 0x519   : > { %v9813_v41 = vmin.f32 %v3360_v55, 6.0  ;;  %v3257_v10 = vadd.f32 %v3219_v24, %v3023_v58 }
 0x51a   : > { %v9798_v35 = vmax.f32 %v4185_v61, %v9708_v63  ;;  %v4793_v33 = vmax.f32 %v4761_v14, 0.0  ;;  %v4175_v63 = vmax.f32 %v4047_v21, %v9327_v54  ;;  %v4794_v60 = vmax.f32 %v4762_v43, 0.0  ;;  %v11145_v21 = vld [vmem:[#allocation120_spill] sm:$0xff] }
 0x51b   : > { %v3792_v54 = vmax.f32 %v3664_v15, %v11142_v17  ;;  %v3538_v61 = vmax.f32 %v11143_v39, %v9360_v2  ;;  %v3537_v25 = vmax.f32 %v11145_v21, %v9384_v7  ;;  %v11146_v15 = vld [vmem:[#allocation149_spill] sm:$0xff]  ;;  %v11151_v17 = vld [vmem:[#allocation156_spill] sm:$0xff]  ;;  %v2753_v21 = vpop.f32.mrf.mxu3 }
 0x51c   : > { %4249 = vrot.lane.b32.xlu2 %v9749_v29, %s10917_s22  ;;  %3993 = vrot.lane.b32.xlu1 %v9749_v29, %s10919_s10  ;;  %v4825_v6 = vmin.f32 %v4793_v33, 6.0  ;;  %v9816_v4 = vmax.f32 %v4175_v63, %v9330_v23  ;;  %v3293_v23 = vmul.f32 %v9433_v36, %v3257_v10 }
 0x51d   : > { %3609 = vrot.lane.b32.xlu0 %v9749_v29, %s10927_s28  ;;  %v3920_v46 = vmax.f32 %v3792_v54, %v11144_v53  ;;  %v11152_v54 = vld [vmem:[#allocation159_spill] sm:$0xff] }
 0x51e   : > { %6819 = vmatmul.msk.f32.gmra.mxu2 %vm4453_vm2, %v4825_v6  ;;  %v3856_v16 = vpop.permute.xlu1 %3855  ;;  %v9810_v48 = vpop.permute.xlu2 %3985  ;;  %v3329_v33 = vadd.f32 %v9404_v37, %v3293_v23  ;;  %v11153_v23 = vld [vmem:[#allocation101_spill] sm:$0xff] }
 0x51f   : > { %v3472_v51 = vpop.permute.xlu0 %3471  ;;  %v4048_v52 = vmax.f32 %v3920_v46, %v9362_v0  ;;  %v11154_v46 = vld [vmem:[#allocation116_spill] sm:$0xff] }
 0x520   : > { %v3546_v49 = vmax.f32 %v9508_v28, %v3472_v51  ;;  %v4826_v28 = vmin.f32 %v4794_v60, 6.0  ;;  %v3361_v7 = vmax.f32 %v3329_v33, 0.0  ;;  %v11148_v51 = vld [vmem:[#allocation132_spill] sm:$0xff] }
 0x521   : > { %v4176_v0 = vmax.f32 %v4048_v52, %v9364_v8  ;;  %v11147_v8 = vld [vmem:[#allocation158_spill] sm:$0xff] }
 0x522   : > { %v3674_v59 = vmax.f32 %v3546_v49, %v9743_v12  ;;  %v3666_v12 = vmax.f32 %v3538_v61, %v9438_v1  ;;  %v3665_v1 = vmax.f32 %v3537_v25, %v9325_v20  ;;  %v9856_v63 = vmin.f32 %v3361_v7, 6.0  ;;  %v2519_v49 = vpop.f32.mrf.mxu2  ;;  %v11155_v25 = vld [vmem:[#allocation150_spill] sm:$0xff]  ;;  %v11157_v7 = vld [vmem:[#allocation151_spill] sm:$0xff] }
 0x523   : > { %v2556_v53 = vadd.f32 %v2519_v49, %v11153_v23  ;;  %v11161_v23 = vld [vmem:[#allocation161_spill] sm:$0xff] }
 0x524   : > { %3739 = vrot.lane.b32.xlu1 %v9813_v41, %s11118_s15  ;;  %4377 = vrot.lane.b32.xlu2 %v9816_v4, %s10921_s23  ;;  %v3802_v14 = vmax.f32 %v3674_v59, %v3728_v22  ;;  %v3794_v9 = vmax.f32 %v3666_v12, %v9419_v3  ;;  %v3793_v20 = vmax.f32 %v3665_v1, %v9382_v11  ;;  %v11149_v11 = vld [vmem:[#allocation152_spill] sm:$0xff] }
 0x525   : > { %4121 = vrot.lane.b32.xlu0 %v9749_v29, %s10925_s11  ;;  %v4596_v12 = vmul.f32 %v9592_v50, %v11154_v46 }
 0x526   : > { %6820 = vmatmul.msk.f32.gmra.mxu2 %vm4453_vm2, %v4826_v28  ;;  %v4240_v2 = vpop.permute.xlu1 %4239  ;;  %v9832_v44 = vpop.permute.xlu2 %3731  ;;  %v3930_v62 = vmax.f32 %v3802_v14, %v3856_v16  ;;  %v3922_v37 = vmax.f32 %v3794_v9, %v9442_v30  ;;  %v3921_v58 = vmax.f32 %v3793_v20, %v9397_v31  ;;  %v9859_v16 = vmax.f32 %v4176_v0, %v11146_v15  ;;  %v11150_v31 = vld [vmem:[#allocation104_spill] sm:$0xff] }
 0x527   : > { %v3984_v5 = vpop.permute.xlu0 %3983  ;;  %v3539_v30 = vmax.f32 %v11148_v51, %v11147_v8  ;;  %v3547_v10 = vmax.f32 %v11150_v31, %v9787_v27  ;;  %v2987_v9 = vpop.f32.mrf.mxu0 }
 0x528   : > { %v4058_v22 = vmax.f32 %v3930_v62, %v3984_v5  ;;  %v4050_v24 = vmax.f32 %v3922_v37, %v9380_v42  ;;  %v4049_v60 = vmax.f32 %v3921_v58, %v11149_v11  ;;  %v2790_v37 = vadd.f32 %v2753_v21, %v2556_v53  ;;  %v11162_v21 = vld [vmem:[#allocation155_spill] sm:$0xff] }
 0x529   : > { %v3667_v59 = vmax.f32 %v3539_v30, %v11152_v54  ;;  %v11159_v30 = vld [vmem:[#allocation153_spill] sm:$0xff] }
 0x52a   : > { %v4186_v6 = vmax.f32 %v4058_v22, %v9762_v32  ;;  %v4178_v42 = vmax.f32 %v4050_v24, %v11151_v17  ;;  %v4177_v5 = vmax.f32 %v4049_v60, %v11155_v25  ;;  %v3221_v24 = vpop.f32.mrf.mxu1 }
 0x52b   : > { %v3795_v0 = vmax.f32 %v3667_v59, %v11157_v7 }
 0x52c   : > { %v9841_v43 = vmax.f32 %v4186_v6, %v4240_v2  ;;  %3867 = vrot.lane.b32.xlu1 %v9813_v41, %s10923_s18  ;;  %3611 = vrot.lane.b32.xlu2 %v9813_v41, %s10927_s28  ;;  %v11156_v6 = vld [vmem:[#allocation157_spill] sm:$0xff] }
 0x52d   : > { %3483 = vrot.lane.b32.xlu0 %v9813_v41, %s10915_s7  ;;  %v9884_v1 = vmax.f32 %v4178_v42, %v11156_v6  ;;  %v3923_v49 = vmax.f32 %v3795_v0, %v11159_v30  ;;  %v4597_v6 = vmul.f32 %v9592_v50, %v9626_v56 }
 0x52e   : > { %v9851_v3 = vpop.permute.xlu2 %3859  ;;  %v4368_v32 = vpop.permute.xlu1 %4367 }
 0x52f   : > { %4459 = vst.msk [vmem:[#allocation3 + $0x29] sm:$0xff] %vm4453_vm2, %v4368_v32  ;;  %v3730_v55 = vpop.permute.xlu0 %3729  ;;  %v11158_v32 = vld [vmem:[#allocation154_spill] sm:$0xff] }
 0x530   : > { %v9888_v20 = vmax.f32 %v4177_v5, %v11158_v32 }
 0x534   : > { %3485 = vrot.lane.b32.xlu2 %v9856_v63, %s10915_s7  ;;  %4379 = vrot.lane.b32.xlu1 %v9859_v16, %s10921_s23 }
 0x535   : > { %3995 = vrot.lane.b32.xlu0 %v9813_v41, %s10919_s10 }
 0x536   : > { %v9875_v39 = vpop.permute.xlu2 %4243  ;;  %v3602_v61 = vpop.permute.xlu1 %3601  ;;  %v4492_v28 = vld [vmem:[#allocation3 + $0x28] sm:$0xff] }
 0x537   : > { %v4524_v14 = vld [vmem:[#allocation3 + $0x29] sm:$0xff]  ;;  %v3675_v2 = vmax.f32 %v3547_v10, %v3602_v61  ;;  %v3858_v62 = vpop.permute.xlu0 %3857  ;;  %v4563_v27 = vmul.f32 %v9600_v19, %v4492_v28 }
 0x538   : > { %v4661_v52 = vmul.f32 %v9606_v26, %v4524_v14  ;;  %v11160_v61 = vld [vmem:[#allocation160_spill] sm:$0xff] }
 0x539   : > { %v3803_v22 = vmax.f32 %v3675_v2, %v3730_v55  ;;  %v4628_v33 = vadd.f32 %v4596_v12, %v4563_v27  ;;  %v3024_v55 = vadd.f32 %v2987_v9, %v2790_v37  ;;  %v4051_v28 = vmax.f32 %v3923_v49, %v11160_v61  ;;  %v2522_v9 = vpop.f32.mrf.mxu2 }
 0x53b   : > { %v3931_v58 = vmax.f32 %v3803_v22, %v3858_v62  ;;  %v4693_v15 = vadd.f32 %v4661_v52, %v4628_v33  ;;  %v3258_v42 = vadd.f32 %v3221_v24, %v3024_v55  ;;  %v4179_v53 = vmax.f32 %v4051_v28, %v11161_v23  ;;  %v9917_v62 = vld [vmem:[%s11023_s16] ss:$0 sm:$0xff] }
 0x53c   : > { %3613 = vrot.lane.b32.xlu1 %v9856_v63, %s10927_s28  ;;  %4383 = vrot.lane.b32.xlu2 %v9884_v1, %s10921_s23  ;;  %v11165_v28 = vld [vmem:[#allocation102_spill] sm:$0xff] }
 0x53d   : > { %4381 = vrot.lane.b32.xlu0 %v9888_v20, %s10921_s23  ;;  %v4059_v8 = vmax.f32 %v3931_v58, %v9810_v48  ;;  %v4728_v51 = vmul.f32 %v9623_v18, %v4693_v15  ;;  %v3294_v14 = vmul.f32 %v9433_v36, %v3258_v42  ;;  %v9921_v25 = vmax.f32 %v4179_v53, %v11162_v21  ;;  %v2990_v21 = vpop.f32.mrf.mxu0 }
 0x53e   : > { %v4114_v11 = vpop.permute.xlu1 %4113  ;;  %v4372_v60 = vpop.permute.xlu2 %4371  ;;  %v4598_v58 = vmul.f32 %v9592_v50, %v9666_v45  ;;  %v11163_v45 = vld [vmem:[#allocation117_spill] sm:$0xff] }
 0x53f   : > { %v4187_v31 = vmax.f32 %v4059_v8, %v4114_v11  ;;  %4461 = vst.msk [vmem:[#allocation3 + $0x39] sm:$0xff] %vm4453_vm2, %v4372_v60  ;;  %v4242_v10 = vpop.permute.xlu0 %4241  ;;  %v4763_v17 = vadd.f32 %v9634_v38, %v4728_v51  ;;  %v3330_v27 = vadd.f32 %v9917_v62, %v3294_v14 }
 0x541   : > { %v9901_v54 = vmax.f32 %v4187_v31, %v4242_v10  ;;  %v4795_v59 = vmax.f32 %v4763_v17, 0.0  ;;  %v3362_v36 = vmax.f32 %v3330_v27, 0.0  ;;  %v11164_v10 = vld [vmem:[#allocation109_spill] sm:$0xff] }
 0x543   : > { %v4827_v48 = vmin.f32 %v4795_v59, 6.0  ;;  %v9938_v24 = vmin.f32 %v3362_v36, 6.0 }
 0x544   : > { %4251 = vrot.lane.b32.xlu1 %v9813_v41, %s10917_s22  ;;  %4123 = vrot.lane.b32.xlu2 %v9813_v41, %s10925_s11 }
 0x545   : > { %3741 = vrot.lane.b32.xlu0 %v9856_v63, %s11118_s15  ;;  %6821 = vmatmul.msk.f32.gmra.mxu2 %vm4453_vm2, %v4827_v48  ;;  %v2557_v48 = vadd.f32 %v2522_v9, %v11165_v28 }
 0x546   : > { %v3476_v46 = vpop.permute.xlu1 %3475  ;;  %v9913_v12 = vpop.permute.xlu2 %3605  ;;  %v4526_v52 = vld [vmem:[#allocation3 + $0x39] sm:$0xff] }
 0x547   : > { %v4370_v2 = vpop.permute.xlu0 %4369  ;;  %v3548_v5 = vmax.f32 %v9590_v40, %v3476_v46  ;;  %v4663_v8 = vmul.f32 %v9606_v26, %v4526_v52  ;;  %v2524_v46 = vpop.f32.mrf.mxu2 }
 0x548   : > { %4460 = vst.msk [vmem:[#allocation3 + $0x31] sm:$0xff] %vm4453_vm2, %v4370_v2 }
 0x54c   : > { %3997 = vrot.lane.b32.xlu2 %v9856_v63, %s10919_s10  ;;  %4385 = vrot.lane.b32.xlu1 %v9921_v25, %s10921_s23  ;;  %s11168_s10 = sld [smem:[#allocation50_spill]] }
 0x54d   : > { %3869 = vrot.lane.b32.xlu0 %v9856_v63, %s10923_s18  ;;  %s11170_s18 = sld [smem:[#allocation54_spill]] }
 0x54e   : > { %v3988_v22 = vpop.permute.xlu1 %3987  ;;  %v9930_v33 = vpop.permute.xlu2 %4117 }
 0x54f   : > { %v3604_v7 = vpop.permute.xlu0 %3603  ;;  %v4493_v0 = vld [vmem:[#allocation3 + $0x30] sm:$0xff]  ;;  %v4494_v32 = vld [vmem:[#allocation3 + $0x38] sm:$0xff] }
 0x550   : > { %v4525_v37 = vld [vmem:[#allocation3 + $0x31] sm:$0xff]  ;;  %v3676_v15 = vmax.f32 %v3548_v5, %v3604_v7  ;;  %v4564_v55 = vmul.f32 %v9600_v19, %v4493_v0  ;;  %v4565_v40 = vmul.f32 %v9600_v19, %v4494_v32  ;;  %v3224_v7 = vpop.f32.mrf.mxu1 }
 0x551   : > { %v4662_v56 = vmul.f32 %v9606_v26, %v4525_v37 }
 0x552   : > { %v3804_v51 = vmax.f32 %v3676_v15, %v9832_v44  ;;  %v4629_v30 = vadd.f32 %v4597_v6, %v4564_v55  ;;  %v4630_v49 = vadd.f32 %v4598_v58, %v4565_v40  ;;  %v9974_v32 = vld [vmem:[%s11168_s10] ss:$0 sm:$0xff] }
 0x553   : > { %v5172_v15 = vld [vmem:[%s11170_s18 + $0x8] sm:$0xff] }
 0x554   : > { %3487 = vrot.lane.b32.xlu1 %v9938_v24, %s10915_s7  ;;  %4389 = vrot.lane.b32.xlu2 %v11163_v45, %s10921_s23  ;;  %v3932_v11 = vmax.f32 %v3804_v51, %v9851_v3  ;;  %v4694_v60 = vadd.f32 %v4662_v56, %v4629_v30  ;;  %v4695_v31 = vadd.f32 %v4663_v8, %v4630_v49  ;;  %s11166_s7 = sld [smem:[#allocation49_spill]]  ;;  %v2756_v3 = vpop.f32.mrf.mxu3  ;;  %v5171_v30 = vld [vmem:[%s11170_s18] sm:$0xff] }
 0x555   : > { %4387 = vrot.lane.b32.xlu0 %v11164_v10, %s10921_s23  ;;  %s11169_s23 = smov %s11168_s10  ;;  %v2791_v36 = vadd.f32 %v2756_v3, %v2557_v48  ;;  %5485 = vmatpush.msrb.mxu3 %v5172_v15  ;;  %s11172_s10 = smov 64  }
 0x556   : > { %v3734_v17 = vpop.permute.xlu1 %3733  ;;  %v9950_v42 = vpop.permute.xlu2 %3479  ;;  %v4060_v44 = vmax.f32 %v3932_v11, %v3988_v22  ;;  %v4729_v59 = vmul.f32 %v9623_v18, %v4694_v60  ;;  %v4730_v53 = vmul.f32 %v9623_v18, %v4695_v31  ;;  %v9988_v11 = vld [vmem:[%s11020_s5] ss:$0 sm:$0xff]  ;;  %s11181_s5 = sld [smem:[#allocation53_spill]] }
 0x557   : > { %v4116_v61 = vpop.permute.xlu0 %4115  ;;  %v3025_v52 = vadd.f32 %v2990_v21, %v2791_v36  ;;  %5486 = vmatpush.msrb.mxu3 %v5171_v30 }
 0x558   : > { %v4188_v14 = vmax.f32 %v4060_v44, %v4116_v61  ;;  %v4764_v23 = vadd.f32 %v9634_v38, %v4729_v59  ;;  %v4765_v22 = vadd.f32 %v9634_v38, %v4730_v53  ;;  %v11176_v53 = vld [vmem:[#allocation95_spill] sm:$0xff] }
 0x559   : > { %v3259_v40 = vadd.f32 %v3224_v7, %v3025_v52 }
 0x55a   : > { %s11167_s22 = smov %s11166_s7  ;;  %v9957_v2 = vmax.f32 %v4188_v14, %v9875_v39  ;;  %v4796_v27 = vmax.f32 %v4764_v23, 0.0  ;;  %v9970_v6 = vld [vmem:[%s11166_s7] ss:$0 sm:$0xff]  ;;  %v4797_v58 = vmax.f32 %v4765_v22, 0.0  ;;  %s11171_s7 = smov 96  }
 0x55c   : > { %4125 = vrot.lane.b32.xlu1 %v9856_v63, %s10925_s11  ;;  %3743 = vrot.lane.b32.xlu2 %v9938_v24, %s11118_s15  ;;  %v4828_v5 = vmin.f32 %v4796_v27, 6.0  ;;  %s11173_s11 = smov 72   ;;  %v2758_v52 = vpop.f32.mrf.mxu3 }
 0x55d   : > { %3615 = vrot.lane.b32.xlu0 %v9938_v24, %s10927_s28  ;;  %s11174_s28 = sld [smem:[#allocation51_spill]] }
 0x55e   : > { %6822 = vmatmul.msk.f32.gmra.mxu2 %vm4453_vm2, %v4828_v5  ;;  %v3862_v39 = vpop.permute.xlu1 %3861  ;;  %v9967_v9 = vpop.permute.xlu2 %3991  ;;  %v11177_v5 = vld [vmem:[#allocation103_spill] sm:$0xff] }
 0x55f   : > { %v3478_v0 = vpop.permute.xlu0 %3477  ;;  %v2558_v22 = vadd.f32 %v2524_v46, %v11177_v5 }
 0x560   : > { %v3549_v37 = vmax.f32 %v9663_v13, %v3478_v0  ;;  %v4829_v13 = vmin.f32 %v4797_v58, 6.0 }
 0x561   : > { %v4967_v55 = vpop.f32.mrf.mxu2  ;;  %v2792_v58 = vadd.f32 %v2758_v52, %v2558_v22  ;;  %v10044_v52 = vld [vmem:[%s11181_s5] ss:$0 sm:$0xff] }
 0x562   : > { %v3677_v8 = vmax.f32 %v3549_v37, %v9913_v12  ;;  %v5066_v51 = vmul.f32 %v9970_v6, %v4967_v55  ;;  %v3295_v12 = vmul.f32 %v9988_v11, %v3259_v40  ;;  %v2992_v37 = vpop.f32.mrf.mxu0 }
 0x563   : > { %v5168_v36 = vld [vmem:[%s11174_s28] sm:$0x7]  ;;  %s11179_s28 = smov 120  }
 0x564   : > { %v5101_v56 = vadd.f32 %v9974_v32, %v5066_v51  ;;  %3871 = vrot.lane.b32.xlu2 %v9938_v24, %s11171_s7  ;;  %4391 = vrot.lane.b32.xlu1 %v9648_v57, %s11172_s10  ;;  %v3805_v49 = vmax.f32 %v3677_v8, %v3734_v17  ;;  %v3331_v28 = vadd.f32 %v9917_v62, %v3295_v12  ;;  %v10019_v7 = vperm.slane %v5168_v36, 0 }
 0x565   : > { %4253 = vrot.lane.b32.xlu0 %v9856_v63, %s11173_s11  ;;  %v10021_v0 = vperm.slane %v5168_v36, 1  ;;  %v10027_v15 = vperm.slane %v5168_v36, 2  ;;  %v3026_v8 = vadd.f32 %v2992_v37, %v2792_v58 }
 0x566   : > { %5134 = vst.msk [vmem:[#allocation2 + $0x1] sm:$0xff] %vm5133_vm3, %v5101_v56  ;;  %6823 = vmatmul.msk.f32.gmra.mxu2 %vm4453_vm2, %v4829_v13  ;;  %v9993_v60 = vpop.permute.xlu1 %4245  ;;  %v9995_v31 = vpop.permute.xlu2 %3737  ;;  %v3933_v44 = vmax.f32 %v3805_v49, %v3862_v39  ;;  %v3363_v3 = vmax.f32 %v3331_v28, 0.0 }
 0x567   : > { %v3990_v59 = vpop.permute.xlu0 %3989 }
 0x568   : > { %v4061_v61 = vmax.f32 %v3933_v44, %v3990_v59  ;;  %v10017_v39 = vmin.f32 %v3363_v3, 6.0  ;;  %v3226_v44 = vpop.f32.mrf.mxu1  ;;  %v11182_v59 = vld [vmem:[#allocation119_spill] sm:$0xff]  ;;  %v10040_v3 = vld [vmem:[%s11180_s4] ss:$0 sm:$0xff] }
 0x569   : > { %v4970_v17 = vpop.f32.mrf.mxu2  ;;  %v3260_v5 = vadd.f32 %v3226_v44, %v3026_v8 }
 0x56a   : > { %v9999_v48 = vmax.f32 %v4061_v61, %v9930_v33  ;;  %v5067_v14 = vmul.f32 %v9970_v6, %v4970_v17  ;;  %v4599_v61 = vmul.f32 %v9592_v50, %v11182_v59 }
 0x56c   : > { %v5102_v23 = vadd.f32 %v9974_v32, %v5067_v14  ;;  %3999 = vrot.lane.b32.xlu1 %v9938_v24, %s11175_s2  ;;  %4395 = vrot.lane.b32.xlu2 %v9732_v47, %s11172_s10 }
 0x56d   : > { %4393 = vrot.lane.b32.xlu0 %v11176_v53, %s11172_s10 }
 0x56e   : > { %5135 = vst.msk [vmem:[#allocation2 + $0x9] sm:$0xff] %vm5133_vm3, %v5102_v23  ;;  %v10010_v27 = vpop.permute.xlu2 %3865  ;;  %v4374_v33 = vpop.permute.xlu1 %4373 }
 0x56f   : > { %4462 = vst.msk [vmem:[#allocation3 + $0x41] sm:$0xff] %vm4453_vm2, %v4374_v33  ;;  %v10013_v21 = vpop.permute.xlu0 %3735 }
 0x574   : > { %3745 = vrot.lane.b32.xlu1 %v10017_v39, %s11118_s15  ;;  %3617 = vrot.lane.b32.xlu2 %v10017_v39, %s11178_s3 }
 0x575   : > { %3489 = vrot.lane.b32.xlu0 %v10017_v39, %s11179_s28  ;;  %v5175_v46 = vld [vmem:[#allocation2] ss:$2 sm:$0xff]  ;;  %v5224_v55 = vld [vmem:[#allocation2 + $0x1] ss:$2 sm:$0xff] }
 0x576   : > { %v5289_v40 = vld [vmem:[#allocation2 + $0x2] ss:$2 sm:$0xff]  ;;  %v10031_v51 = vpop.permute.xlu2 %4249  ;;  %v3608_v30 = vpop.permute.xlu1 %3607  ;;  %v5207_v56 = vmul.f32 %v10019_v7, %v5175_v46  ;;  %v5256_v13 = vmul.f32 %v10021_v0, %v5224_v55  ;;  %v3296_v55 = vmul.f32 %v9988_v11, %v3260_v5 }
 0x577   : > { %v4495_v49 = vld [vmem:[#allocation3 + $0x40] sm:$0xff]  ;;  %v3864_v17 = vpop.permute.xlu0 %3863  ;;  %v5321_v23 = vmul.f32 %v10027_v15, %v5289_v40 }
 0x578   : > { %v4527_v12 = vld [vmem:[#allocation3 + $0x41] sm:$0xff]  ;;  %v4566_v28 = vmul.f32 %v9600_v19, %v4495_v49  ;;  %v5272_v14 = vadd.f32 %v5256_v13, %v5207_v56  ;;  %v3332_v59 = vadd.f32 %v9917_v62, %v3296_v55 }
 0x579   : > { %v4664_v36 = vmul.f32 %v9606_v26, %v4527_v12  ;;  %v11184_v11 = vld [vmem:[#allocation111_spill] sm:$0xff] }
 0x57a   : > { %v4631_v33 = vadd.f32 %v4599_v61, %v4566_v28  ;;  %v5337_v22 = vadd.f32 %v5321_v23, %v5272_v14  ;;  %v3550_v14 = vmax.f32 %v11184_v11, %v9950_v42  ;;  %v3364_v23 = vmax.f32 %v3332_v59, 0.0 }
 0x57b   : > { %v4600_v59 = vmul.f32 %v9592_v50, %v9776_v34 }
 0x57c   : > { %v4696_v37 = vadd.f32 %v4664_v36, %v4631_v33  ;;  %4255 = vrot.lane.b32.xlu2 %v9938_v24, %s11173_s11  ;;  %4397 = vrot.lane.b32.xlu1 %v9798_v35, %s11172_s10  ;;  %v5356_v58 = vmul.f32 %v10040_v3, %v5337_v22  ;;  %v3678_v36 = vmax.f32 %v3550_v14, %v3608_v30  ;;  %v10075_v42 = vmin.f32 %v3364_v23, 6.0 }
 0x57d   : > { %4127 = vrot.lane.b32.xlu0 %v9938_v24, %s11183_s6 }
 0x57e   : > { %v4731_v46 = vmul.f32 %v9623_v18, %v4696_v37  ;;  %v4120_v40 = vpop.permute.xlu1 %4119  ;;  %v4378_v8 = vpop.permute.xlu2 %4377  ;;  %v5375_v56 = vadd.f32 %v10044_v52, %v5356_v58  ;;  %v3806_v58 = vmax.f32 %v3678_v36, %v10013_v21 }
 0x57f   : > { %4464 = vst.msk [vmem:[#allocation3 + $0x51] sm:$0xff] %vm4453_vm2, %v4378_v8  ;;  %v10057_v13 = vpop.permute.xlu0 %4247 }
 0x580   : > { %v4766_v49 = vadd.f32 %v9634_v38, %v4731_v46  ;;  %v5391_v12 = vmax.f32 %v5375_v56, 0.0  ;;  %v3934_v56 = vmax.f32 %v3806_v58, %v3864_v17 }
 0x582   : > { %v4798_v44 = vmax.f32 %v4766_v49, 0.0  ;;  %v5407_v61 = vmin.f32 %v5391_v12, 6.0 }
 0x584   : > { %v4830_v28 = vmin.f32 %v4798_v44, 6.0  ;;  %6848 = vmatmul.msk.f32.vlgmr.msrb.gmra.mxu3 %vm5133_vm3, %v5407_v61  ;;  %3873 = vrot.lane.b32.xlu1 %v10017_v39, %s11171_s7  ;;  %v4601_v61 = vmul.f32 %v9592_v50, %v9816_v4 }
 0x585   : > { %4399 = vrot.lane.b32.xlu0 %v9841_v43, %s11172_s10  ;;  %4401 = vrot.lane.b32.xlu2 %v9901_v54, %s11172_s10 }
 0x586   : > { %6824 = vmatmul.msk.f32.gmra.mxu2 %vm4453_vm2, %v4830_v28  ;;  %v3482_v62 = vpop.permute.xlu1 %3481  ;;  %v10071_v33 = vpop.permute.xlu2 %3611  ;;  %v4529_v8 = vld [vmem:[#allocation3 + $0x51] sm:$0xff] }
 0x587   : > { %v4376_v5 = vpop.permute.xlu0 %4375  ;;  %v4666_v17 = vmul.f32 %v9606_v26, %v4529_v8 }
 0x588   : > { %4463 = vst.msk [vmem:[#allocation3 + $0x49] sm:$0xff] %vm4453_vm2, %v4376_v5  ;;  %v4973_v22 = vpop.f32.mrf.mxu2  ;;  %v4062_v5 = vmax.f32 %v3934_v56, %v9967_v9  ;;  %v10108_v56 = vld [vmem:[%s11105_s1] ss:$0 sm:$0xff] }
 0x589   : > { %v5068_v37 = vmul.f32 %v9970_v6, %v4973_v22  ;;  %v3551_v22 = vmax.f32 %v9749_v29, %v3482_v62 }
 0x58a   : > { %v4190_v9 = vmax.f32 %v4062_v5, %v4120_v40  ;;  %v10122_v40 = vld [vmem:[%s11107_s26] ss:$0 sm:$0xff] }
 0x58b   : > { %v5103_v46 = vadd.f32 %v9974_v32, %v5068_v37 }
 0x58c   : > { %3619 = vrot.lane.b32.xlu1 %v10075_v42, %s11178_s3  ;;  %s11186_s3 = sld [smem:[#allocation55_spill]] }
 0x58d   : > { %5136 = vst.msk [vmem:[#allocation2 + $0x11] sm:$0xff] %vm5133_vm3, %v5103_v46  ;;  %4001 = vrot.lane.b32.xlu0 %v10017_v39, %s11175_s2  ;;  %3491 = vrot.lane.b32.xlu2 %v10075_v42, %s11179_s28  ;;  %s11193_s28 = sld [smem:[#allocation66_spill]] }
 0x58e   : > { %v3994_v30 = vpop.permute.xlu1 %3993  ;;  %v10086_v55 = vpop.permute.xlu2 %3485 }
 0x58f   : > { %v3610_v49 = vpop.permute.xlu0 %3609  ;;  %v4496_v21 = vld [vmem:[#allocation3 + $0x48] sm:$0xff]  ;;  %v4497_v44 = vld [vmem:[#allocation3 + $0x50] sm:$0xff] }
 0x590   : > { %v4528_v12 = vld [vmem:[#allocation3 + $0x49] sm:$0xff]  ;;  %v4567_v28 = vmul.f32 %v9600_v19, %v4496_v21  ;;  %v4568_v11 = vmul.f32 %v9600_v19, %v4497_v44  ;;  %v3679_v37 = vmax.f32 %v3551_v22, %v3610_v49  ;;  %v10114_v49 = vmax.f32 %v9999_v48, %v9993_v60 }
 0x591   : > { %v4665_v23 = vmul.f32 %v9606_v26, %v4528_v12 }
 0x592   : > { %v4632_v14 = vadd.f32 %v4600_v59, %v4567_v28  ;;  %v4633_v36 = vadd.f32 %v4601_v61, %v4568_v11  ;;  %v3807_v12 = vmax.f32 %v3679_v37, %v9995_v31  ;;  %v10117_v59 = vmax.f32 %v4190_v9, %v10057_v13 }
 0x594   : > { %4403 = vrot.lane.b32.xlu1 %v9957_v2, %s11172_s10  ;;  %v4697_v34 = vadd.f32 %v4665_v23, %v4632_v14  ;;  %v4698_v4 = vadd.f32 %v4666_v17, %v4633_v36  ;;  %v3935_v60 = vmax.f32 %v3807_v12, %v10010_v27 }
 0x595   : > { %3747 = vrot.lane.b32.xlu0 %v10075_v42, %s11118_s15  ;;  %4129 = vrot.lane.b32.xlu2 %v10017_v39, %s11183_s6  ;;  %s11190_s15 = sld [smem:[#allocation58_spill]] }
 0x596   : > { %v3740_v58 = vpop.permute.xlu1 %3739  ;;  %v4384_v46 = vpop.permute.xlu2 %4383  ;;  %v4732_v8 = vmul.f32 %v9623_v18, %v4697_v34  ;;  %v4733_v21 = vmul.f32 %v10108_v56, %v4698_v4  ;;  %v4063_v14 = vmax.f32 %v3935_v60, %v3994_v30 }
 0x597   : > { %4467 = vst.msk [vmem:[#allocation3 + $0x69] sm:$0xff] %vm4453_vm2, %v4384_v46  ;;  %v4122_v29 = vpop.permute.xlu0 %4121 }
 0x598   : > { %v4767_v62 = vadd.f32 %v9634_v38, %v4732_v8  ;;  %v4768_v38 = vadd.f32 %v10122_v40, %v4733_v21  ;;  %v4191_v5 = vmax.f32 %v4063_v14, %v4122_v29 }
 0x59a   : > { %v4799_v44 = vmax.f32 %v4767_v62, 0.0  ;;  %v4800_v61 = vmax.f32 %v4768_v38, 0.0  ;;  %v4602_v38 = vmul.f32 %v9592_v50, %v9859_v16 }
 0x59c   : > { %4257 = vrot.lane.b32.xlu1 %v10017_v39, %s11173_s11  ;;  %v4831_v18 = vmin.f32 %v4799_v44, 6.0  ;;  %v4832_v17 = vmin.f32 %v4800_v61, 6.0 }
 0x59d   : > { %4405 = vrot.lane.b32.xlu0 %v10114_v49, %s11172_s10  ;;  %4407 = vrot.lane.b32.xlu2 %v10117_v59, %s11172_s10 }
 0x59e   : > { %6825 = vmatmul.msk.f32.gmra.mxu2 %vm4453_vm2, %v4831_v18  ;;  %v3868_v31 = vpop.permute.xlu1 %3867  ;;  %v4124_v48 = vpop.permute.xlu2 %4123 }
 0x59f   : > { %v3484_v13 = vpop.permute.xlu0 %3483 }
 0x5a0   : > { %v3552_v28 = vmax.f32 %v9813_v41, %v3484_v13 }
 0x5a1   : > { %v4976_v11 = vpop.f32.mrf.mxu2 }
 0x5a2   : > { %v5069_v23 = vmul.f32 %v9970_v6, %v4976_v11  ;;  %v3680_v27 = vmax.f32 %v3552_v28, %v10071_v33  ;;  %v10147_v33 = vmax.f32 %v4191_v5, %v10031_v51 }
 0x5a4   : > { %v5104_v36 = vadd.f32 %v9974_v32, %v5069_v23  ;;  %4003 = vrot.lane.b32.xlu1 %v10075_v42, %s11175_s2  ;;  %v3808_v34 = vmax.f32 %v3680_v27, %v3740_v58  ;;  %s11188_s2 = sld [smem:[#allocation60_spill]] }
 0x5a5   : > { %3875 = vrot.lane.b32.xlu0 %v10075_v42, %s11171_s7  ;;  %4131 = vrot.lane.b32.xlu2 %v10075_v42, %s11183_s6  ;;  %s11187_s6 = sld [smem:[#allocation56_spill]] }
 0x5a6   : > { %5137 = vst.msk [vmem:[#allocation2 + $0x19] sm:$0xff] %vm5133_vm3, %v5104_v36  ;;  %6826 = vmatmul.msk.f32.gmra.mxu2 %vm4453_vm2, %v4832_v17  ;;  %v4380_v41 = vpop.permute.xlu1 %4379  ;;  %v10143_v30 = vpop.permute.xlu2 %3997  ;;  %v3936_v8 = vmax.f32 %v3808_v34, %v3868_v31  ;;  %s11191_s7 = sld [smem:[#allocation59_spill]] }
 0x5a7   : > { %4465 = vst.msk [vmem:[#allocation3 + $0x59] sm:$0xff] %vm4453_vm2, %v4380_v41  ;;  %v3996_v22 = vpop.permute.xlu0 %3995 }
 0x5a8   : > { %v4064_v28 = vmax.f32 %v3936_v8, %v3996_v22 }
 0x5a9   : > { %v4979_v4 = vpop.f32.mrf.mxu2 }
 0x5aa   : > { %v5070_v37 = vmul.f32 %v9970_v6, %v4979_v4  ;;  %v4192_v27 = vmax.f32 %v4064_v28, %v4124_v48 }
 0x5ac   : > { %v5105_v46 = vadd.f32 %v9974_v32, %v5070_v37  ;;  %4409 = vrot.lane.b32.xlu1 %v10147_v33, %s11172_s10 }
 0x5ad   : > { %4259 = vrot.lane.b32.xlu0 %v10075_v42, %s11173_s11  ;;  %v5177_v9 = vld [vmem:[#allocation2 + $0x10] ss:$2 sm:$0xff]  ;;  %v5226_v29 = vld [vmem:[#allocation2 + $0x11] ss:$2 sm:$0xff]  ;;  %s11189_s11 = sld [smem:[#allocation57_spill]] }
 0x5ae   : > { %v5291_v62 = vld [vmem:[#allocation2 + $0x12] ss:$2 sm:$0xff]  ;;  %5138 = vst.msk [vmem:[#allocation2 + $0x21] sm:$0xff] %vm5133_vm3, %v5105_v46  ;;  %v10156_v58 = vpop.permute.xlu1 %3613  ;;  %v4390_v51 = vpop.permute.xlu2 %4389  ;;  %v5208_v21 = vmul.f32 %v10019_v7, %v5177_v9  ;;  %v5257_v12 = vmul.f32 %v10021_v0, %v5226_v29  ;;  %v4603_v29 = vmul.f32 %v9592_v50, %v9888_v20 }
 0x5af   : > { %v4498_v44 = vld [vmem:[#allocation3 + $0x58] sm:$0xff]  ;;  %4470 = vst.msk [vmem:[#allocation3 + $0x81] sm:$0xff] %vm4453_vm2, %v4390_v51  ;;  %v4382_v60 = vpop.permute.xlu0 %4381  ;;  %v5322_v61 = vmul.f32 %v10027_v15, %v5291_v62  ;;  %v4532_v51 = vld [vmem:[#allocation3 + $0x69] sm:$0xff] }
 0x5b0   : > { %v4530_v18 = vld [vmem:[#allocation3 + $0x59] sm:$0xff]  ;;  %v4569_v31 = vmul.f32 %v9600_v19, %v4498_v44  ;;  %4466 = vst.msk [vmem:[#allocation3 + $0x61] sm:$0xff] %vm4453_vm2, %v4382_v60  ;;  %v5273_v13 = vadd.f32 %v5257_v12, %v5208_v21  ;;  %v4604_v21 = vmul.f32 %v9592_v50, %v9884_v1  ;;  %v4669_v20 = vmul.f32 %v9606_v26, %v4532_v51 }
 0x5b1   : > { %v4667_v14 = vmul.f32 %v9606_v26, %v4530_v18 }
 0x5b2   : > { %v4634_v11 = vadd.f32 %v4602_v38, %v4569_v31  ;;  %v5338_v23 = vadd.f32 %v5322_v61, %v5273_v13 }
 0x5b4   : > { %v4699_v36 = vadd.f32 %v4667_v14, %v4634_v11  ;;  %v5357_v17 = vmul.f32 %v10040_v3, %v5338_v23 }
 0x5b6   : > { %v4734_v16 = vmul.f32 %v10108_v56, %v4699_v36  ;;  %v4252_v5 = vpop.permute.xlu1 %4251  ;;  %v10169_v41 = vpop.permute.xlu2 %3743  ;;  %v5376_v34 = vadd.f32 %v10044_v52, %v5357_v17 }
 0x5b7   : > { %v10172_v4 = vmax.f32 %v4192_v27, %v4252_v5  ;;  %v10174_v37 = vpop.permute.xlu0 %3741  ;;  %v4499_v46 = vld [vmem:[#allocation3 + $0x60] sm:$0xff]  ;;  %v4500_v9 = vld [vmem:[#allocation3 + $0x68] sm:$0xff] }
 0x5b8   : > { %v4769_v22 = vadd.f32 %v10122_v40, %v4734_v16  ;;  %v4531_v8 = vld [vmem:[#allocation3 + $0x61] sm:$0xff]  ;;  %v5392_v48 = vmax.f32 %v5376_v34, 0.0  ;;  %v4570_v62 = vmul.f32 %v9600_v19, %v4499_v46  ;;  %v4571_v44 = vmul.f32 %v9600_v19, %v4500_v9 }
 0x5b9   : > { %4411 = vrot.lane.b32.xlu2 %v10172_v4, %s11172_s10  ;;  %v4668_v60 = vmul.f32 %v9606_v26, %v4531_v8  ;;  %v4605_v9 = vmul.f32 %v9592_v50, %v9921_v25 }
 0x5ba   : > { %v4801_v12 = vmax.f32 %v4769_v22, 0.0  ;;  %v5408_v18 = vmin.f32 %v5392_v48, 6.0  ;;  %v4635_v38 = vadd.f32 %v4603_v29, %v4570_v62  ;;  %v4636_v13 = vadd.f32 %v4604_v21, %v4571_v44 }
 0x5bc   : > { %v4833_v31 = vmin.f32 %v4801_v12, 6.0  ;;  %6849 = vmatmul.msk.f32.gmra.mxu3 %vm5133_vm3, %v5408_v18  ;;  %v4700_v61 = vadd.f32 %v4668_v60, %v4635_v38  ;;  %v4701_v1 = vadd.f32 %v4669_v20, %v4636_v13  ;;  %v3553_v18 = vmax.f32 %v9856_v63, %v10086_v55 }
 0x5bd   : > { %v4606_v63 = vmul.f32 %v9592_v50, %v11164_v10 }
 0x5be   : > { %6827 = vmatmul.msk.f32.gmra.mxu2 %vm4453_vm2, %v4833_v31  ;;  %v4386_v28 = vpop.permute.xlu1 %4385  ;;  %v10189_v11 = vpop.permute.xlu2 %3871  ;;  %v4735_v14 = vmul.f32 %v10108_v56, %v4700_v61  ;;  %v4736_v17 = vmul.f32 %v10108_v56, %v4701_v1  ;;  %v3681_v60 = vmax.f32 %v3553_v18, %v10156_v58 }
 0x5bf   : > { %4468 = vst.msk [vmem:[#allocation3 + $0x71] sm:$0xff] %vm4453_vm2, %v4386_v28  ;;  %v3870_v23 = vpop.permute.xlu0 %3869  ;;  %v4535_v28 = vld [vmem:[#allocation3 + $0x81] sm:$0xff] }
 0x5c0   : > { %v4770_v36 = vadd.f32 %v10122_v40, %v4735_v14  ;;  %v4771_v5 = vadd.f32 %v10122_v40, %v4736_v17  ;;  %v3809_v20 = vmax.f32 %v3681_v60, %v10174_v37  ;;  %v11185_v37 = vmov 0.0  }
 0x5c2   : > { %v4802_v27 = vmax.f32 %v4770_v36, 0.0  ;;  %v4803_v51 = vmax.f32 %v4771_v5, 0.0 }
 0x5c4   : > { %v4834_v16 = vmin.f32 %v4802_v27, 6.0  ;;  %v4835_v31 = vmin.f32 %v4803_v51, 6.0  ;;  %v4607_v27 = vmul.f32 %v9592_v50, %v11163_v45 }
 0x5c6   : > { %6828 = vmatmul.msk.f32.gmra.mxu2 %vm4453_vm2, %v4834_v16  ;;  %v10197_v34 = vpop.permute.xlu1 %3487  ;;  %v4396_v22 = vpop.permute.xlu2 %4395  ;;  %v4501_v46 = vld [vmem:[#allocation3 + $0x70] sm:$0xff]  ;;  %v3937_v16 = vmax.f32 %v3809_v20, %v3870_v23 }
 0x5c7   : > { %v4533_v8 = vld [vmem:[#allocation3 + $0x71] sm:$0xff]  ;;  %4473 = vst.msk [vmem:[#allocation3 + $0x99] sm:$0xff] %vm4453_vm2, %v4396_v22  ;;  %v4388_v29 = vpop.permute.xlu0 %4387  ;;  %v4572_v48 = vmul.f32 %v9600_v19, %v4501_v46 }
 0x5c8   : > { %4469 = vst.msk [vmem:[#allocation3 + $0x79] sm:$0xff] %vm4453_vm2, %v4388_v29  ;;  %v4982_v62 = vpop.f32.mrf.mxu2  ;;  %v4670_v44 = vmul.f32 %v9606_v26, %v4533_v8  ;;  %v4672_v29 = vmul.f32 %v9606_v26, %v4535_v28 }
 0x5c9   : > { %v5071_v21 = vmul.f32 %v9970_v6, %v4982_v62  ;;  %v4637_v12 = vadd.f32 %v4605_v9, %v4572_v48  ;;  %v4065_v62 = vmax.f32 %v3937_v16, %v10143_v30 }
 0x5cb   : > { %v5106_v38 = vadd.f32 %v9974_v32, %v5071_v21  ;;  %v4702_v25 = vadd.f32 %v4670_v44, %v4637_v12 }
 0x5cd   : > { %5139 = vst.msk [vmem:[#allocation2 + $0x29] sm:$0xff] %vm5133_vm3, %v5106_v38  ;;  %v4737_v13 = vmul.f32 %v10108_v56, %v4702_v25 }
 0x5ce   : > { %6829 = vmatmul.msk.f32.gmra.mxu2 %vm4453_vm2, %v4835_v31  ;;  %v4126_v61 = vpop.permute.xlu1 %4125  ;;  %v10214_v1 = vpop.permute.xlu2 %3617 }
 0x5cf   : > { %v4502_v55 = vld [vmem:[#allocation3 + $0x78] sm:$0xff]  ;;  %v3616_v36 = vpop.permute.xlu0 %3615  ;;  %v4772_v58 = vadd.f32 %v10122_v40, %v4737_v13  ;;  %v4503_v17 = vld [vmem:[#allocation3 + $0x80] sm:$0xff]  ;;  %v4193_v38 = vmax.f32 %v4065_v62, %v4126_v61 }
 0x5d0   : > { %v4534_v14 = vld [vmem:[#allocation3 + $0x79] sm:$0xff]  ;;  %v4573_v5 = vmul.f32 %v9600_v19, %v4502_v55  ;;  %v4574_v22 = vmul.f32 %v9600_v19, %v4503_v17 }
 0x5d1   : > { %5592 = vst.msk [vmem:[#allocation3 + $0x7f] sm:$0x1] %vm1918_vm1, %v11185_v37  ;;  %v4804_v46 = vmax.f32 %v4772_v58, 0.0  ;;  %v4671_v10 = vmul.f32 %v9606_v26, %v4534_v14 }
 0x5d2   : > { %v4638_v8 = vadd.f32 %v4606_v63, %v4573_v5  ;;  %v4639_v9 = vadd.f32 %v4607_v27, %v4574_v22 }
 0x5d3   : > { %v4836_v48 = vmin.f32 %v4804_v46, 6.0 }
 0x5d4   : > { %v4703_v51 = vadd.f32 %v4671_v10, %v4638_v8  ;;  %v5179_v45 = vld [vmem:[#allocation2 + $0x20] ss:$2 sm:$0xff]  ;;  %v5228_v23 = vld [vmem:[#allocation2 + $0x21] ss:$2 sm:$0xff]  ;;  %v4704_v12 = vadd.f32 %v4672_v29, %v4639_v9  ;;  %v4608_v8 = vmul.f32 %v9592_v50, %v9648_v57 }
 0x5d5   : > { %v5293_v21 = vld [vmem:[#allocation2 + $0x22] ss:$2 sm:$0xff]  ;;  %v5209_v44 = vmul.f32 %v10019_v7, %v5179_v45  ;;  %v5258_v18 = vmul.f32 %v10021_v0, %v5228_v23 }
 0x5d6   : > { %6830 = vmatmul.msk.f32.gmra.mxu2 %vm4453_vm2, %v4836_v48  ;;  %v4392_v25 = vpop.permute.xlu1 %4391  ;;  %v10231_v60 = vpop.permute.xlu2 %4255  ;;  %v4738_v31 = vmul.f32 %v10108_v56, %v4703_v51  ;;  %v5323_v20 = vmul.f32 %v10027_v15, %v5293_v21  ;;  %v4739_v55 = vmul.f32 %v10108_v56, %v4704_v12  ;;  %v3554_v12 = vmax.f32 %v9938_v24, %v10197_v34 }
 0x5d7   : > { %4471 = vst.msk [vmem:[#allocation3 + $0x89] sm:$0xff] %vm4453_vm2, %v4392_v25  ;;  %v4254_v30 = vpop.permute.xlu0 %4253  ;;  %v5274_v13 = vadd.f32 %v5258_v18, %v5209_v44 }
 0x5d8   : > { %v10236_v28 = vmax.f32 %v4193_v38, %v4254_v30  ;;  %v4773_v63 = vadd.f32 %v10122_v40, %v4738_v31  ;;  %v4774_v27 = vadd.f32 %v10122_v40, %v4739_v55  ;;  %v3682_v18 = vmax.f32 %v3554_v12, %v3616_v36 }
 0x5d9   : > { %v5339_v61 = vadd.f32 %v5323_v20, %v5274_v13  ;;  %v4538_v20 = vld [vmem:[#allocation3 + $0x99] sm:$0xff]  ;;  %v4609_v36 = vmul.f32 %v9592_v50, %v11176_v53 }
 0x5da   : > { %4413 = vrot.lane.b32.xlu0 %v10236_v28, %s11172_s10  ;;  %v4805_v14 = vmax.f32 %v4773_v63, 0.0  ;;  %v4806_v62 = vmax.f32 %v4774_v27, 0.0  ;;  %v3810_v63 = vmax.f32 %v3682_v18, %v10169_v41 }
 0x5db   : > { %v5358_v58 = vmul.f32 %v10040_v3, %v5339_v61 }
 0x5dc   : > { %v4837_v17 = vmin.f32 %v4805_v14, 6.0  ;;  %v4838_v25 = vmin.f32 %v4806_v62, 6.0 }
 0x5dd   : > { %v5377_v16 = vadd.f32 %v10044_v52, %v5358_v58  ;;  %v4610_v58 = vmul.f32 %v9592_v50, %v9732_v47 }
 0x5de   : > { %6831 = vmatmul.msk.f32.gmra.mxu2 %vm4453_vm2, %v4837_v17  ;;  %v4000_v5 = vpop.permute.xlu1 %3999  ;;  %v4504_v22 = vld [vmem:[#allocation3 + $0x88] sm:$0xff] }
 0x5df   : > { %v4536_v46 = vld [vmem:[#allocation3 + $0x89] sm:$0xff]  ;;  %v4402_v10 = vpop.permute.xlu2 %4401  ;;  %v4394_v9 = vpop.permute.xlu0 %4393  ;;  %v5393_v29 = vmax.f32 %v5377_v16, 0.0  ;;  %v4575_v48 = vmul.f32 %v9600_v19, %v4504_v22 }
 0x5e0   : > { %4476 = vst.msk [vmem:[#allocation3 + $0xb1] sm:$0xff] %vm4453_vm2, %v4402_v10  ;;  %v4673_v21 = vmul.f32 %v9606_v26, %v4536_v46 }
 0x5e1   : > { %4472 = vst.msk [vmem:[#allocation3 + $0x91] sm:$0xff] %vm4453_vm2, %v4394_v9  ;;  %v4985_v51 = vpop.f32.mrf.mxu2  ;;  %v5409_v45 = vmin.f32 %v5393_v29, 6.0  ;;  %v4640_v23 = vadd.f32 %v4608_v8, %v4575_v48  ;;  %v4675_v8 = vmul.f32 %v9606_v26, %v4538_v20  ;;  %v3938_v29 = vmax.f32 %v3810_v63, %v10189_v11 }
 0x5e2   : > { %v5072_v57 = vmul.f32 %v9970_v6, %v4985_v51 }
 0x5e3   : > { %6850 = vmatmul.msk.f32.gmra.mxu3 %vm5133_vm3, %v5409_v45  ;;  %v4705_v44 = vadd.f32 %v4673_v21, %v4640_v23  ;;  %v4066_v51 = vmax.f32 %v3938_v29, %v4000_v5 }
 0x5e4   : > { %v5107_v38 = vadd.f32 %v9974_v32, %v5072_v57 }
 0x5e5   : > { %v4740_v31 = vmul.f32 %v10108_v56, %v4705_v44 }
 0x5e6   : > { %5140 = vst.msk [vmem:[#allocation2 + $0x31] sm:$0xff] %vm5133_vm3, %v5107_v38  ;;  %6832 = vmatmul.msk.f32.gmra.mxu2 %vm4453_vm2, %v4838_v25  ;;  %v10260_v30 = vpop.permute.xlu1 %3745 }
 0x5e7   : > { %v10262_v13 = vpop.permute.xlu2 %3491  ;;  %v10264_v24 = vpop.permute.xlu0 %3489  ;;  %v4775_v34 = vadd.f32 %v10122_v40, %v4740_v31 }
 0x5e8   : > { %v4505_v55 = vld [vmem:[#allocation3 + $0x90] sm:$0xff]  ;;  %v4506_v14 = vld [vmem:[#allocation3 + $0x98] sm:$0xff] }
 0x5e9   : > { %v4537_v61 = vld [vmem:[#allocation3 + $0x91] sm:$0xff]  ;;  %v4988_v17 = vpop.f32.mrf.mxu2  ;;  %v4807_v27 = vmax.f32 %v4775_v34, 0.0  ;;  %v4576_v16 = vmul.f32 %v9600_v19, %v4505_v55  ;;  %v4577_v22 = vmul.f32 %v9600_v19, %v4506_v14 }
 0x5ea   : > { %v5073_v46 = vmul.f32 %v9970_v6, %v4988_v17  ;;  %v4674_v41 = vmul.f32 %v9606_v26, %v4537_v61 }
 0x5eb   : > { %v4839_v10 = vmin.f32 %v4807_v27, 6.0  ;;  %v4641_v53 = vadd.f32 %v4609_v36, %v4576_v16  ;;  %v4642_v9 = vadd.f32 %v4610_v58, %v4577_v22 }
 0x5ec   : > { %v5108_v48 = vadd.f32 %v9974_v32, %v5073_v46 }
 0x5ed   : > { %v4706_v47 = vadd.f32 %v4674_v41, %v4641_v53  ;;  %v4707_v62 = vadd.f32 %v4675_v8, %v4642_v9  ;;  %v3555_v9 = vmax.f32 %v10017_v39, %v10264_v24 }
 0x5ee   : > { %5141 = vst.msk [vmem:[#allocation2 + $0x39] sm:$0xff] %vm5133_vm3, %v5108_v48  ;;  %6833 = vmatmul.msk.f32.gmra.mxu2 %vm4453_vm2, %v4839_v10  ;;  %v4398_v45 = vpop.permute.xlu1 %4397 }
 0x5ef   : > { %4474 = vst.msk [vmem:[#allocation3 + $0xa1] sm:$0xff] %vm4453_vm2, %v4398_v45  ;;  %v10282_v23 = vpop.permute.xlu2 %4129  ;;  %v4128_v21 = vpop.permute.xlu0 %4127  ;;  %v4741_v12 = vmul.f32 %v10108_v56, %v4706_v47  ;;  %v4742_v44 = vmul.f32 %v10108_v56, %v4707_v62 }
 0x5f0   : > { %v4194_v57 = vmax.f32 %v4066_v51, %v4128_v21  ;;  %v4541_v21 = vld [vmem:[#allocation3 + $0xb1] sm:$0xff] }
 0x5f1   : > { %v4776_v11 = vadd.f32 %v10122_v40, %v4741_v12  ;;  %v4777_v25 = vadd.f32 %v10122_v40, %v4742_v44  ;;  %v4612_v12 = vmul.f32 %v9592_v50, %v9841_v43 }
 0x5f2   : > { %v10288_v18 = vmax.f32 %v4194_v57, %v10231_v60  ;;  %v4611_v60 = vmul.f32 %v9592_v50, %v9798_v35  ;;  %v4613_v57 = vmul.f32 %v9592_v50, %v9901_v54 }
 0x5f3   : > { %v4808_v5 = vmax.f32 %v4776_v11, 0.0  ;;  %v4809_v46 = vmax.f32 %v4777_v25, 0.0 }
 0x5f4   : > { %4415 = vrot.lane.b32.xlu1 %v10288_v18, %s11172_s10 }
 0x5f5   : > { %v4840_v38 = vmin.f32 %v4808_v5, 6.0  ;;  %v5181_v31 = vld [vmem:[#allocation2 + $0x30] ss:$2 sm:$0xff]  ;;  %v5230_v34 = vld [vmem:[#allocation2 + $0x31] ss:$2 sm:$0xff]  ;;  %v4841_v29 = vmin.f32 %v4809_v46, 6.0  ;;  %v3683_v5 = vmax.f32 %v3555_v9, %v10214_v1 }
 0x5f6   : > { %v3874_v20 = vpop.permute.xlu1 %3873  ;;  %v5210_v36 = vmul.f32 %v10019_v7, %v5181_v31  ;;  %v5259_v63 = vmul.f32 %v10021_v0, %v5230_v34  ;;  %v5295_v55 = vld [vmem:[#allocation2 + $0x32] ss:$2 sm:$0xff]  ;;  %v4539_v14 = vld [vmem:[#allocation3 + $0xa1] sm:$0xff] }
 0x5f7   : > { %v4507_v61 = vld [vmem:[#allocation3 + $0xa0] sm:$0xff]  ;;  %6834 = vmatmul.msk.f32.gmra.mxu2 %vm4453_vm2, %v4840_v38  ;;  %v4408_v58 = vpop.permute.xlu2 %4407  ;;  %v4400_v17 = vpop.permute.xlu0 %4399  ;;  %v5324_v22 = vmul.f32 %v10027_v15, %v5295_v55  ;;  %v4676_v10 = vmul.f32 %v9606_v26, %v4539_v14  ;;  %v3811_v1 = vmax.f32 %v3683_v5, %v10260_v30  ;;  %v3556_v5 = vmax.f32 %v10075_v42, %v10262_v13 }
 0x5f8   : > { %v4578_v27 = vmul.f32 %v9600_v19, %v4507_v61  ;;  %4479 = vst.msk [vmem:[#allocation3 + $0xc9] sm:$0xff] %vm4453_vm2, %v4408_v58  ;;  %v5275_v16 = vadd.f32 %v5259_v63, %v5210_v36  ;;  %v4678_v36 = vmul.f32 %v9606_v26, %v4541_v21  ;;  %v10323_v61 = vld [vmem:[%s11186_s3] ss:$0 sm:$0xff] }
 0x5f9   : > { %4475 = vst.msk [vmem:[#allocation3 + $0xa9] sm:$0xff] %vm4453_vm2, %v4400_v17  ;;  %v10327_v17 = vld [vmem:[%s11187_s6] ss:$0 sm:$0xff] }
 0x5fa   : > { %v4643_v8 = vadd.f32 %v4611_v60, %v4578_v27  ;;  %v5340_v53 = vadd.f32 %v5324_v22, %v5275_v16  ;;  %v3939_v27 = vmax.f32 %v3811_v1, %v3874_v20 }
 0x5fc   : > { %v4708_v41 = vadd.f32 %v4676_v10, %v4643_v8  ;;  %v5359_v35 = vmul.f32 %v10040_v3, %v5340_v53 }
 0x5fe   : > { %v4743_v48 = vmul.f32 %v10108_v56, %v4708_v41  ;;  %v10307_v47 = vpop.permute.xlu1 %3619  ;;  %v5378_v62 = vadd.f32 %v10044_v52, %v5359_v35 }
 0x5ff   : > { %6835 = vmatmul.msk.f32.gmra.mxu2 %vm4453_vm2, %v4841_v29  ;;  %v4002_v51 = vpop.permute.xlu0 %4001  ;;  %v4132_v9 = vpop.permute.xlu2 %4131 }
 0x600   : > { %v4778_v45 = vadd.f32 %v10122_v40, %v4743_v48  ;;  %v5394_v39 = vmax.f32 %v5378_v62, 0.0  ;;  %v4508_v24 = vld [vmem:[#allocation3 + $0xa8] sm:$0xff]  ;;  %v4509_v44 = vld [vmem:[#allocation3 + $0xb0] sm:$0xff]  ;;  %v4067_v10 = vmax.f32 %v3939_v27, %v4002_v51 }
 0x601   : > { %v4540_v11 = vld [vmem:[#allocation3 + $0xa9] sm:$0xff]  ;;  %v4579_v25 = vmul.f32 %v9600_v19, %v4508_v24  ;;  %v4580_v31 = vmul.f32 %v9600_v19, %v4509_v44 }
 0x602   : > { %v4810_v38 = vmax.f32 %v4778_v45, 0.0  ;;  %v5410_v34 = vmin.f32 %v5394_v39, 6.0  ;;  %v4677_v54 = vmul.f32 %v9606_v26, %v4540_v11  ;;  %v4195_v45 = vmax.f32 %v4067_v10, %v10282_v23 }
 0x603   : > { %v4644_v63 = vadd.f32 %v4612_v12, %v4579_v25  ;;  %v4645_v55 = vadd.f32 %v4613_v57, %v4580_v31  ;;  %v4614_v39 = vmul.f32 %v9592_v50, %v9957_v2  ;;  %v3684_v25 = vmax.f32 %v3556_v5, %v10307_v47 }
 0x604   : > { %v4842_v43 = vmin.f32 %v4810_v38, 6.0  ;;  %6851 = vmatmul.msk.f32.gmra.mxu3 %vm5133_vm3, %v5410_v34  ;;  %v4616_v47 = vmul.f32 %v9592_v50, %v10117_v59  ;;  %v4617_v5 = vmul.f32 %v9592_v50, %v10147_v33 }
 0x605   : > { %v4709_v14 = vadd.f32 %v4677_v54, %v4644_v63  ;;  %v4710_v60 = vadd.f32 %v4678_v36, %v4645_v55  ;;  %v4544_v63 = vld [vmem:[#allocation3 + $0xc9] sm:$0xff]  ;;  %v4615_v54 = vmul.f32 %v9592_v50, %v10114_v49 }
 0x606   : > { %v4404_v58 = vpop.permute.xlu1 %4403 }
 0x607   : > { %6836 = vmatmul.msk.f32.gmra.mxu2 %vm4453_vm2, %v4842_v43  ;;  %4477 = vst.msk [vmem:[#allocation3 + $0xb9] sm:$0xff] %vm4453_vm2, %v4404_v58  ;;  %v3748_v16 = vpop.permute.xlu0 %3747  ;;  %v5488_v22 = vpop.f32.mrf.mxu3  ;;  %v4744_v46 = vmul.f32 %v10108_v56, %v4709_v14  ;;  %v4745_v41 = vmul.f32 %v10108_v56, %v4710_v60 }
 0x608   : > { %v5539_v8 = vmul.f32 %v10323_v61, %v5488_v22  ;;  %v3812_v36 = vmax.f32 %v3684_v25, %v3748_v16  ;;  %v4681_v22 = vmul.f32 %v9606_v26, %v4544_v63 }
 0x609   : > { %v4991_v53 = vpop.f32.mrf.mxu2  ;;  %v4779_v30 = vadd.f32 %v10122_v40, %v4744_v46  ;;  %v4780_v51 = vadd.f32 %v10122_v40, %v4745_v41 }
 0x60a   : > { %v5558_v35 = vadd.f32 %v10327_v17, %v5539_v8  ;;  %v5074_v20 = vmul.f32 %v9970_v6, %v4991_v53 }
 0x60b   : > { %v4811_v29 = vmax.f32 %v4779_v30, 0.0  ;;  %v4812_v23 = vmax.f32 %v4780_v51, 0.0 }
 0x60c   : > { %5575 = vst.msk [vmem:[#allocation3 + $0x1] sm:$0xff] %vm5574_vm4, %v5558_v35  ;;  %v5109_v48 = vadd.f32 %v9974_v32, %v5074_v20 }
 0x60d   : > { %v4843_v62 = vmin.f32 %v4811_v29, 6.0  ;;  %v4844_v31 = vmin.f32 %v4812_v23, 6.0 }
 0x60e   : > { %5142 = vst.msk [vmem:[#allocation2 + $0x41] sm:$0xff] %vm5133_vm3, %v5109_v48  ;;  %v4258_v21 = vpop.permute.xlu1 %4257  ;;  %v4510_v12 = vld [vmem:[#allocation3 + $0xb8] sm:$0xff] }
 0x60f   : > { %v4542_v57 = vld [vmem:[#allocation3 + $0xb9] sm:$0xff]  ;;  %6837 = vmatmul.msk.f32.gmra.mxu2 %vm4453_vm2, %v4843_v62  ;;  %v10345_v6 = vmax.f32 %v4195_v45, %v4258_v21  ;;  %v4406_v24 = vpop.permute.xlu0 %4405  ;;  %v4581_v32 = vmul.f32 %v9600_v19, %v4510_v12 }
 0x610   : > { %4478 = vst.msk [vmem:[#allocation3 + $0xc1] sm:$0xff] %vm4453_vm2, %v4406_v24  ;;  %v4679_v44 = vmul.f32 %v9606_v26, %v4542_v57  ;;  %v10375_v21 = vld [vmem:[%s11167_s22] ss:$0 sm:$0xff] }
 0x611   : > { %4417 = vrot.lane.b32.xlu2 %v10345_v6, %s11172_s10  ;;  %v4646_v11 = vadd.f32 %v4614_v39, %v4581_v32  ;;  %v10381_v57 = vld [vmem:[%s11169_s23] ss:$0 sm:$0xff] }
 0x613   : > { %v4412_v2 = vpop.permute.xlu2 %4411  ;;  %v4711_v38 = vadd.f32 %v4679_v44, %v4646_v11 }
 0x614   : > { %4481 = vst.msk [vmem:[#allocation3 + $0xd9] sm:$0xff] %vm4453_vm2, %v4412_v2  ;;  %v4618_v2 = vmul.f32 %v9592_v50, %v10172_v4 }
 0x615   : > { %v4746_v34 = vmul.f32 %v10108_v56, %v4711_v38 }
 0x616   : > { %v4004_v43 = vpop.permute.xlu1 %4003 }
 0x617   : > { %6838 = vmatmul.msk.f32.gmra.mxu2 %vm4453_vm2, %v4844_v31  ;;  %v3876_v55 = vpop.permute.xlu0 %3875  ;;  %v4781_v42 = vadd.f32 %v10122_v40, %v4746_v34  ;;  %v4511_v13 = vld [vmem:[#allocation3 + $0xc0] sm:$0xff]  ;;  %v4512_v14 = vld [vmem:[#allocation3 + $0xc8] sm:$0xff] }
 0x618   : > { %v4543_v1 = vld [vmem:[#allocation3 + $0xc1] sm:$0xff]  ;;  %v3940_v60 = vmax.f32 %v3812_v36, %v3876_v55  ;;  %v4582_v58 = vmul.f32 %v9600_v19, %v4511_v13  ;;  %v4583_v27 = vmul.f32 %v9600_v19, %v4512_v14 }
 0x619   : > { %v4813_v16 = vmax.f32 %v4781_v42, 0.0  ;;  %v4680_v8 = vmul.f32 %v9606_v26, %v4543_v1 }
 0x61a   : > { %v4068_v49 = vmax.f32 %v3940_v60, %v4004_v43  ;;  %v4647_v46 = vadd.f32 %v4615_v54, %v4582_v58  ;;  %v4648_v10 = vadd.f32 %v4616_v47, %v4583_v27 }
 0x61b   : > { %v4845_v53 = vmin.f32 %v4813_v16, 6.0  ;;  %v4546_v34 = vld [vmem:[#allocation3 + $0xd9] sm:$0xff] }
 0x61c   : > { %v4712_v30 = vadd.f32 %v4680_v8, %v4647_v46  ;;  %v4713_v41 = vadd.f32 %v4681_v22, %v4648_v10  ;;  %v4196_v59 = vmax.f32 %v4068_v49, %v4132_v9  ;;  %v4683_v33 = vmul.f32 %v9606_v26, %v4546_v34 }
 0x61e   : > { %v4410_v35 = vpop.permute.xlu1 %4409  ;;  %v4747_v20 = vmul.f32 %v10108_v56, %v4712_v30  ;;  %v4748_v45 = vmul.f32 %v10108_v56, %v4713_v41 }
 0x61f   : > { %6839 = vmatmul.msk.f32.gmra.mxu2 %vm4453_vm2, %v4845_v53  ;;  %4480 = vst.msk [vmem:[#allocation3 + $0xd1] sm:$0xff] %vm4453_vm2, %v4410_v35  ;;  %v4260_v29 = vpop.permute.xlu0 %4259 }
 0x620   : > { %v10370_v48 = vmax.f32 %v4196_v59, %v4260_v29  ;;  %v4782_v62 = vadd.f32 %v10122_v40, %v4747_v20  ;;  %v4783_v32 = vadd.f32 %v10122_v40, %v4748_v45 }
 0x621   : > { %v4994_v51 = vpop.f32.mrf.mxu2 }
 0x622   : > { %v5075_v12 = vmul.f32 %v10375_v21, %v4994_v51  ;;  %4419 = vrot.lane.b32.xlu0 %v10370_v48, %s11172_s10  ;;  %v4814_v9 = vmax.f32 %v4782_v62, 0.0  ;;  %v4815_v31 = vmax.f32 %v4783_v32, 0.0  ;;  %s11192_s10 = sld [smem:[#allocation61_spill]] }
 0x624   : > { %v5110_v39 = vadd.f32 %v10381_v57, %v5075_v12  ;;  %v4846_v24 = vmin.f32 %v4814_v9, 6.0  ;;  %v4847_v13 = vmin.f32 %v4815_v31, 6.0 }
 0x626   : > { %5143 = vst.msk [vmem:[#allocation2 + $0x49] sm:$0xff] %vm5133_vm3, %v5110_v39  ;;  %v4513_v23 = vld [vmem:[#allocation3 + $0xd0] sm:$0xff]  ;;  %v4514_v44 = vld [vmem:[#allocation3 + $0xd8] sm:$0xff] }
 0x627   : > { %v4545_v11 = vld [vmem:[#allocation3 + $0xd1] sm:$0xff]  ;;  %6840 = vmatmul.msk.f32.gmra.mxu2 %vm4453_vm2, %v4846_v24  ;;  %v4584_v38 = vmul.f32 %v9600_v19, %v4513_v23  ;;  %v4585_v25 = vmul.f32 %v9600_v19, %v4514_v44 }
 0x628   : > { %v4682_v63 = vmul.f32 %v9606_v26, %v4545_v11 }
 0x629   : > { %v4997_v36 = vpop.f32.mrf.mxu2  ;;  %v4649_v43 = vadd.f32 %v4617_v5, %v4584_v38  ;;  %v4650_v54 = vadd.f32 %v4618_v2, %v4585_v25 }
 0x62a   : > { %v5076_v55 = vmul.f32 %v10375_v21, %v4997_v36 }
 0x62b   : > { %v4714_v42 = vadd.f32 %v4682_v63, %v4649_v43  ;;  %v4715_v58 = vadd.f32 %v4683_v33, %v4650_v54  ;;  %v10428_v54 = vld [vmem:[%s11180_s4] ss:$0 sm:$0xff] }
 0x62c   : > { %v5111_v4 = vadd.f32 %v10381_v57, %v5076_v55 }
 0x62d   : > { %v4749_v1 = vmul.f32 %v10108_v56, %v4714_v42  ;;  %v5183_v14 = vld [vmem:[#allocation2 + $0x40] ss:$2 sm:$0xff]  ;;  %v5232_v47 = vld [vmem:[#allocation2 + $0x41] ss:$2 sm:$0xff]  ;;  %v4750_v10 = vmul.f32 %v10108_v56, %v4715_v58 }
 0x62e   : > { %v5297_v60 = vld [vmem:[#allocation2 + $0x42] ss:$2 sm:$0xff]  ;;  %5144 = vst.msk [vmem:[#allocation2 + $0x51] sm:$0xff] %vm5133_vm3, %v5111_v4  ;;  %v5211_v27 = vmul.f32 %v10019_v7, %v5183_v14  ;;  %v5260_v16 = vmul.f32 %v10021_v0, %v5232_v47 }
 0x62f   : > { %6841 = vmatmul.msk.f32.gmra.mxu2 %vm4453_vm2, %v4847_v13  ;;  %v4784_v22 = vadd.f32 %v10122_v40, %v4749_v1  ;;  %5825 = vst.msk [vmem:[#allocation2 + $0x40] sm:$0x1] %vm1918_vm1, %v11185_v37  ;;  %v5325_v46 = vmul.f32 %v10027_v15, %v5297_v60  ;;  %v4785_v35 = vadd.f32 %v10122_v40, %v4750_v10  ;;  %v10435_v1 = vld [vmem:[%s11181_s5] ss:$0 sm:$0xff] }
 0x630   : > { %v5276_v49 = vadd.f32 %v5260_v16, %v5211_v27  ;;  %v4619_v13 = vmul.f32 %v9592_v50, %v10236_v28 }
 0x631   : > { %v4816_v8 = vmax.f32 %v4784_v22, 0.0  ;;  %v4817_v29 = vmax.f32 %v4785_v35, 0.0 }
 0x632   : > { %v5341_v53 = vadd.f32 %v5325_v46, %v5276_v49 }
 0x633   : > { %v4848_v30 = vmin.f32 %v4816_v8, 6.0  ;;  %v4849_v45 = vmin.f32 %v4817_v29, 6.0 }
 0x634   : > { %v5360_v41 = vmul.f32 %v10040_v3, %v5341_v53 }
 0x636   : > { %v5379_v59 = vadd.f32 %v10044_v52, %v5360_v41 }
 0x637   : > { %6842 = vmatmul.msk.f32.gmra.mxu2 %vm4453_vm2, %v4848_v30 }
 0x638   : > { %v5395_v20 = vmax.f32 %v5379_v59, 0.0 }
 0x63a   : > { %v5411_v62 = vmin.f32 %v5395_v20, 6.0 }
 0x63c   : > { %6852 = vmatmul.msk.f32.gmra.mxu3 %vm5133_vm3, %v5411_v62 }
 0x63f   : > { %6843 = vmatmul.msk.f32.gmra.mxu2 %vm4453_vm2, %v4849_v45  ;;  %v5491_v51 = vpop.f32.mrf.mxu3 }
 0x640   : > { %v5540_v12 = vmul.f32 %v10323_v61, %v5491_v51 }
 0x641   : > { %v5000_v9 = vpop.f32.mrf.mxu2 }
 0x642   : > { %v5077_v3 = vmul.f32 %v10375_v21, %v5000_v9  ;;  %v5559_v39 = vadd.f32 %v10327_v17, %v5540_v12 }
 0x644   : > { %v5112_v52 = vadd.f32 %v10381_v57, %v5077_v3  ;;  %5576 = vst.msk [vmem:[#allocation3 + $0x9] sm:$0xff] %vm5574_vm4, %v5559_v39 }
 0x646   : > { %5145 = vst.msk [vmem:[#allocation2 + $0x59] sm:$0xff] %vm5133_vm3, %v5112_v52 }
 0x649   : > { %v5003_v24 = vpop.f32.mrf.mxu2 }
 0x64a   : > { %v5078_v32 = vmul.f32 %v10375_v21, %v5003_v24 }
 0x64c   : > { %v5113_v23 = vadd.f32 %v10381_v57, %v5078_v32  ;;  %v4414_v11 = vpop.permute.xlu0 %4413 }
 0x64d   : > { %v5185_v44 = vld [vmem:[#allocation2 + $0x50] ss:$2 sm:$0xff]  ;;  %v5234_v5 = vld [vmem:[#allocation2 + $0x51] ss:$2 sm:$0xff]  ;;  %4482 = vst.msk [vmem:[#allocation3 + $0xe1] sm:$0xff] %vm4453_vm2, %v4414_v11 }
 0x64e   : > { %v5299_v2 = vld [vmem:[#allocation2 + $0x52] ss:$2 sm:$0xff]  ;;  %v5212_v38 = vmul.f32 %v10019_v7, %v5185_v44  ;;  %v5261_v25 = vmul.f32 %v10021_v0, %v5234_v5  ;;  %5146 = vst.msk [vmem:[#allocation2 + $0x61] sm:$0xff] %vm5133_vm3, %v5113_v23 }
 0x64f   : > { %v5326_v34 = vmul.f32 %v10027_v15, %v5299_v2 }
 0x650   : > { %v5277_v31 = vadd.f32 %v5261_v25, %v5212_v38 }
 0x651   : > { %v5006_v36 = vpop.f32.mrf.mxu2 }
 0x652   : > { %v5342_v43 = vadd.f32 %v5326_v34, %v5277_v31  ;;  %v5079_v63 = vmul.f32 %v10375_v21, %v5006_v36 }
 0x654   : > { %v5361_v55 = vmul.f32 %v10428_v54, %v5342_v43  ;;  %v5114_v42 = vadd.f32 %v10381_v57, %v5079_v63  ;;  %v4515_v33 = vld [vmem:[#allocation3 + $0xe0] sm:$0xff] }
 0x655   : > { %v4547_v4 = vld [vmem:[#allocation3 + $0xe1] sm:$0xff]  ;;  %v4586_v47 = vmul.f32 %v9600_v19, %v4515_v33 }
 0x656   : > { %v5380_v14 = vadd.f32 %v10435_v1, %v5361_v55  ;;  %5147 = vst.msk [vmem:[#allocation2 + $0x69] sm:$0xff] %vm5133_vm3, %v5114_v42  ;;  %v4684_v27 = vmul.f32 %v9606_v26, %v4547_v4  ;;  %v4620_v42 = vmul.f32 %v9592_v50, %v10288_v18  ;;  %v4621_v18 = vmul.f32 %v9592_v50, %v10345_v6 }
 0x657   : > { %v4651_v58 = vadd.f32 %v4619_v13, %v4586_v47 }
 0x658   : > { %v5396_v60 = vmax.f32 %v5380_v14, 0.0 }
 0x659   : > { %v5009_v16 = vpop.f32.mrf.mxu2  ;;  %v4716_v49 = vadd.f32 %v4684_v27, %v4651_v58 }
 0x65a   : > { %v5412_v22 = vmin.f32 %v5396_v60, 6.0  ;;  %v5080_v46 = vmul.f32 %v10375_v21, %v5009_v16 }
 0x65b   : > { %v4751_v28 = vmul.f32 %v10108_v56, %v4716_v49 }
 0x65c   : > { %6853 = vmatmul.msk.f32.gmra.mxu3 %vm5133_vm3, %v5412_v22  ;;  %v5115_v8 = vadd.f32 %v10381_v57, %v5080_v46 }
 0x65d   : > { %v4786_v10 = vadd.f32 %v10122_v40, %v4751_v28  ;;  %v5187_v53 = vld [vmem:[#allocation2 + $0x60] ss:$2 sm:$0xff]  ;;  %v5236_v30 = vld [vmem:[#allocation2 + $0x61] ss:$2 sm:$0xff] }
 0x65e   : > { %v5301_v41 = vld [vmem:[#allocation2 + $0x62] ss:$2 sm:$0xff]  ;;  %5148 = vst.msk [vmem:[#allocation2 + $0x71] sm:$0xff] %vm5133_vm3, %v5115_v8  ;;  %v5213_v35 = vmul.f32 %v10019_v7, %v5187_v53  ;;  %v5262_v59 = vmul.f32 %v10021_v0, %v5236_v30 }
 0x65f   : > { %v4818_v20 = vmax.f32 %v4786_v10, 0.0  ;;  %v5327_v62 = vmul.f32 %v10027_v15, %v5301_v41  ;;  %v10479_v10 = vld [vmem:[%s11105_s1] ss:$0 sm:$0xff] }
 0x660   : > { %v5278_v29 = vadd.f32 %v5262_v59, %v5213_v35  ;;  %v10486_v59 = vld [vmem:[%s11107_s26] ss:$0 sm:$0xff] }
 0x661   : > { %v5012_v45 = vpop.f32.mrf.mxu2  ;;  %v4850_v51 = vmin.f32 %v4818_v20, 6.0 }
 0x662   : > { %v5081_v56 = vmul.f32 %v10375_v21, %v5012_v45  ;;  %v5343_v12 = vadd.f32 %v5327_v62, %v5278_v29 }
 0x663   : > { %6844 = vmatmul.msk.f32.gmra.mxu2 %vm4453_vm2, %v4850_v51 }
 0x664   : > { %v5116_v40 = vadd.f32 %v10381_v57, %v5081_v56  ;;  %v5362_v9 = vmul.f32 %v10428_v54, %v5343_v12 }
 0x666   : > { %5149 = vst.msk [vmem:[#allocation2 + $0x79] sm:$0xff] %vm5133_vm3, %v5116_v40  ;;  %v4416_v3 = vpop.permute.xlu1 %4415  ;;  %v5494_v39 = vpop.f32.mrf.mxu3  ;;  %v5381_v52 = vadd.f32 %v10435_v1, %v5362_v9 }
 0x667   : > { %4483 = vst.msk [vmem:[#allocation3 + $0xe9] sm:$0xff] %vm4453_vm2, %v4416_v3  ;;  %v5541_v24 = vmul.f32 %v10323_v61, %v5494_v39 }
 0x668   : > { %v5397_v32 = vmax.f32 %v5381_v52, 0.0 }
 0x669   : > { %v5560_v23 = vadd.f32 %v10327_v17, %v5541_v24  ;;  %v5015_v11 = vpop.f32.mrf.mxu2 }
 0x66a   : > { %v5082_v44 = vmul.f32 %v10375_v21, %v5015_v11  ;;  %v5413_v5 = vmin.f32 %v5397_v32, 6.0 }
 0x66b   : > { %5577 = vst.msk [vmem:[#allocation3 + $0x11] sm:$0xff] %vm5574_vm4, %v5560_v23  ;;  %v4418_v2 = vpop.permute.xlu2 %4417 }
 0x66c   : > { %v5117_v38 = vadd.f32 %v10381_v57, %v5082_v44  ;;  %4484 = vst.msk [vmem:[#allocation3 + $0xf1] sm:$0xff] %vm4453_vm2, %v4418_v2  ;;  %6854 = vmatmul.msk.f32.gmra.mxu3 %vm5133_vm3, %v5413_v5 }
 0x66d   : > { %v5189_v25 = vld [vmem:[#allocation2 + $0x70] ss:$2 sm:$0xff]  ;;  %v5238_v31 = vld [vmem:[#allocation2 + $0x71] ss:$2 sm:$0xff] }
 0x66e   : > { %v5303_v34 = vld [vmem:[#allocation2 + $0x72] ss:$2 sm:$0xff]  ;;  %5150 = vst.msk [vmem:[#allocation2 + $0x81] sm:$0xff] %vm5133_vm3, %v5117_v38  ;;  %v5214_v36 = vmul.f32 %v10019_v7, %v5189_v25  ;;  %v5263_v43 = vmul.f32 %v10021_v0, %v5238_v31  ;;  %v4516_v63 = vld [vmem:[#allocation3 + $0xe8] sm:$0xff] }
 0x66f   : > { %v4548_v55 = vld [vmem:[#allocation3 + $0xe9] sm:$0xff]  ;;  %v4587_v33 = vmul.f32 %v9600_v19, %v4516_v63  ;;  %v5328_v13 = vmul.f32 %v10027_v15, %v5303_v34 }
 0x670   : > { %v5279_v4 = vadd.f32 %v5263_v43, %v5214_v36  ;;  %v4685_v60 = vmul.f32 %v9606_v26, %v4548_v55 }
 0x671   : > { %v5018_v14 = vpop.f32.mrf.mxu2  ;;  %v4652_v47 = vadd.f32 %v4620_v42, %v4587_v33 }
 0x672   : > { %v5083_v58 = vmul.f32 %v10375_v21, %v5018_v14  ;;  %v5344_v27 = vadd.f32 %v5328_v13, %v5279_v4 }
 0x673   : > { %v4717_v16 = vadd.f32 %v4685_v60, %v4652_v47  ;;  %v4517_v22 = vld [vmem:[#allocation3 + $0xf0] sm:$0xff] }
 0x674   : > { %v4549_v49 = vld [vmem:[#allocation3 + $0xf1] sm:$0xff]  ;;  %v5118_v46 = vadd.f32 %v10381_v57, %v5083_v58  ;;  %v5363_v28 = vmul.f32 %v10428_v54, %v5344_v27  ;;  %v4588_v8 = vmul.f32 %v9600_v19, %v4517_v22 }
 0x675   : > { %v4752_v53 = vmul.f32 %v10479_v10, %v4717_v16  ;;  %v4686_v35 = vmul.f32 %v9606_v26, %v4549_v49 }
 0x676   : > { %5151 = vst.msk [vmem:[#allocation2 + $0x89] sm:$0xff] %vm5133_vm3, %v5118_v46  ;;  %v5382_v30 = vadd.f32 %v10435_v1, %v5363_v28  ;;  %v4653_v41 = vadd.f32 %v4621_v18, %v4588_v8 }
 0x677   : > { %v4787_v6 = vadd.f32 %v10486_v59, %v4752_v53 }
 0x678   : > { %v5398_v20 = vmax.f32 %v5382_v30, 0.0  ;;  %v4718_v29 = vadd.f32 %v4686_v35, %v4653_v41 }
 0x679   : > { %v4819_v62 = vmax.f32 %v4787_v6, 0.0 }
 0x67a   : > { %v5021_v45 = vpop.f32.mrf.mxu2  ;;  %v5414_v51 = vmin.f32 %v5398_v20, 6.0  ;;  %v4753_v56 = vmul.f32 %v10479_v10, %v4718_v29 }
 0x67b   : > { %v5084_v12 = vmul.f32 %v10375_v21, %v5021_v45  ;;  %v4851_v40 = vmin.f32 %v4819_v62, 6.0 }
 0x67c   : > { %6855 = vmatmul.msk.f32.gmra.mxu3 %vm5133_vm3, %v5414_v51  ;;  %v4788_v9 = vadd.f32 %v10486_v59, %v4753_v56  ;;  %v4622_v56 = vmul.f32 %v9592_v50, %v10370_v48 }
 0x67d   : > { %v5119_v3 = vadd.f32 %v10381_v57, %v5084_v12  ;;  %6845 = vmatmul.msk.f32.gmra.mxu2 %vm4453_vm2, %v4851_v40  ;;  %v5191_v39 = vld [vmem:[#allocation2 + $0x80] ss:$2 sm:$0xff]  ;;  %v5240_v52 = vld [vmem:[#allocation2 + $0x81] ss:$2 sm:$0xff] }
 0x67e   : > { %v5305_v24 = vld [vmem:[#allocation2 + $0x82] ss:$2 sm:$0xff]  ;;  %v5215_v32 = vmul.f32 %v10019_v7, %v5191_v39  ;;  %v5264_v23 = vmul.f32 %v10021_v0, %v5240_v52  ;;  %v4820_v11 = vmax.f32 %v4788_v9, 0.0 }
 0x67f   : > { %5152 = vst.msk [vmem:[#allocation2 + $0x91] sm:$0xff] %vm5133_vm3, %v5119_v3  ;;  %v5329_v5 = vmul.f32 %v10027_v15, %v5305_v24 }
 0x680   : > { %v5280_v44 = vadd.f32 %v5264_v23, %v5215_v32  ;;  %v4852_v31 = vmin.f32 %v4820_v11, 6.0 }
 0x682   : > { %v5024_v2 = vpop.f32.mrf.mxu2  ;;  %v5345_v38 = vadd.f32 %v5329_v5, %v5280_v44 }
 0x683   : > { %v5085_v25 = vmul.f32 %v10375_v21, %v5024_v2 }
 0x684   : > { %v5364_v34 = vmul.f32 %v10428_v54, %v5345_v38 }
 0x685   : > { %v5120_v36 = vadd.f32 %v10381_v57, %v5085_v25  ;;  %6846 = vmatmul.msk.f32.gmra.mxu2 %vm4453_vm2, %v4852_v31 }
 0x686   : > { %v5383_v43 = vadd.f32 %v10435_v1, %v5364_v34 }
 0x687   : > { %5153 = vst.msk [vmem:[#allocation2 + $0x99] sm:$0xff] %vm5133_vm3, %v5120_v36  ;;  %v5497_v63 = vpop.f32.mrf.mxu3 }
 0x688   : > { %v5542_v55 = vmul.f32 %v10323_v61, %v5497_v63  ;;  %v5399_v42 = vmax.f32 %v5383_v43, 0.0 }
 0x68a   : > { %v5561_v33 = vadd.f32 %v10327_v17, %v5542_v55  ;;  %v5027_v4 = vpop.f32.mrf.mxu2  ;;  %v5415_v13 = vmin.f32 %v5399_v42, 6.0 }
 0x68b   : > { %v5086_v14 = vmul.f32 %v10375_v21, %v5027_v4 }
 0x68c   : > { %5578 = vst.msk [vmem:[#allocation3 + $0x19] sm:$0xff] %vm5574_vm4, %v5561_v33  ;;  %6856 = vmatmul.msk.f32.gmra.mxu3 %vm5133_vm3, %v5415_v13 }
 0x68d   : > { %v5121_v47 = vadd.f32 %v10381_v57, %v5086_v14 }
 0x68e   : > { %v5193_v60 = vld [vmem:[#allocation2 + $0x90] ss:$2 sm:$0xff]  ;;  %v5242_v58 = vld [vmem:[#allocation2 + $0x91] ss:$2 sm:$0xff] }
 0x68f   : > { %v5307_v27 = vld [vmem:[#allocation2 + $0x92] ss:$2 sm:$0xff]  ;;  %5154 = vst.msk [vmem:[#allocation2 + $0xa1] sm:$0xff] %vm5133_vm3, %v5121_v47  ;;  %v5216_v16 = vmul.f32 %v10019_v7, %v5193_v60  ;;  %v5265_v22 = vmul.f32 %v10021_v0, %v5242_v58 }
 0x690   : > { %v5330_v18 = vmul.f32 %v10027_v15, %v5307_v27 }
 0x691   : > { %v5281_v49 = vadd.f32 %v5265_v22, %v5216_v16 }
 0x692   : > { %v5030_v46 = vpop.f32.mrf.mxu2 }
 0x693   : > { %v5087_v28 = vmul.f32 %v10375_v21, %v5030_v46  ;;  %v5346_v8 = vadd.f32 %v5330_v18, %v5281_v49 }
 0x694   : > { %v4420_v53 = vpop.permute.xlu0 %4419 }
 0x695   : > { %v5122_v30 = vadd.f32 %v10381_v57, %v5087_v28  ;;  %4486 = vst.msk [vmem:[#allocation3 + $0xf9] sm:$0x7] %vm4485_vm5, %v4420_v53  ;;  %v5365_v41 = vmul.f32 %v10428_v54, %v5346_v8 }
 0x697   : > { %5155 = vst.msk [vmem:[#allocation2 + $0xa9] sm:$0xff] %vm5133_vm3, %v5122_v30  ;;  %v5384_v35 = vadd.f32 %v10435_v1, %v5365_v41 }
 0x699   : > { %v5400_v6 = vmax.f32 %v5384_v35, 0.0 }
 0x69a   : > { %v5033_v20 = vpop.f32.mrf.mxu2 }
 0x69b   : > { %v5088_v29 = vmul.f32 %v10375_v21, %v5033_v20  ;;  %v5416_v62 = vmin.f32 %v5400_v6, 6.0 }
 0x69c   : > { %v4518_v45 = vld [vmem:[#allocation3 + $0xf8] sm:$0x7] }
 0x69d   : > { %v4550_v51 = vld [vmem:[#allocation3 + $0xf9] sm:$0x7]  ;;  %v5123_v12 = vadd.f32 %v10381_v57, %v5088_v29  ;;  %6857 = vmatmul.msk.f32.gmra.mxu3 %vm5133_vm3, %v5416_v62  ;;  %v4589_v40 = vmul.f32 %v9600_v19, %v4518_v45 }
 0x69e   : > { %v5195_v9 = vld [vmem:[#allocation2 + $0xa0] ss:$2 sm:$0xff]  ;;  %v5244_v3 = vld [vmem:[#allocation2 + $0xa1] ss:$2 sm:$0xff]  ;;  %v4687_v24 = vmul.f32 %v9606_v26, %v4550_v51 }
 0x69f   : > { %v5309_v39 = vld [vmem:[#allocation2 + $0xa2] ss:$2 sm:$0xff]  ;;  %5156 = vst.msk [vmem:[#allocation2 + $0xb1] sm:$0xff] %vm5133_vm3, %v5123_v12  ;;  %v4654_v52 = vadd.f32 %v4622_v56, %v4589_v40  ;;  %v5217_v32 = vmul.f32 %v10019_v7, %v5195_v9  ;;  %v5266_v23 = vmul.f32 %v10021_v0, %v5244_v3 }
 0x6a0   : > { %v5331_v48 = vmul.f32 %v10027_v15, %v5309_v39 }
 0x6a1   : > { %v4719_v11 = vadd.f32 %v4687_v24, %v4654_v52  ;;  %v5282_v50 = vadd.f32 %v5266_v23, %v5217_v32 }
 0x6a2   : > { %v5036_v44 = vpop.f32.mrf.mxu2 }
 0x6a3   : > { %v5089_v5 = vmul.f32 %v10375_v21, %v5036_v44  ;;  %v4754_v19 = vmul.f32 %v10479_v10, %v4719_v11  ;;  %v5347_v2 = vadd.f32 %v5331_v48, %v5282_v50 }
 0x6a5   : > { %v5124_v38 = vadd.f32 %v10381_v57, %v5089_v5  ;;  %v4789_v25 = vadd.f32 %v10486_v59, %v4754_v19  ;;  %v5366_v26 = vmul.f32 %v10428_v54, %v5347_v2 }
 0x6a7   : > { %5157 = vst.msk [vmem:[#allocation2 + $0xb9] sm:$0xff] %vm5133_vm3, %v5124_v38  ;;  %v4821_v31 = vmax.f32 %v4789_v25, 0.0  ;;  %v5385_v34 = vadd.f32 %v10435_v1, %v5366_v26 }
 0x6a9   : > { %v4853_v36 = vmin.f32 %v4821_v31, 6.0  ;;  %v5401_v43 = vmax.f32 %v5385_v34, 0.0 }
 0x6aa   : > { %v5039_v63 = vpop.f32.mrf.mxu2 }
 0x6ab   : > { %v5090_v55 = vmul.f32 %v10375_v21, %v5039_v63  ;;  %6847 = vmatmul.msk.f32.gmra.mxu2 %vm4453_vm2, %v4853_v36  ;;  %v5417_v10 = vmin.f32 %v5401_v43, 6.0 }
 0x6ad   : > { %v5125_v42 = vadd.f32 %v10381_v57, %v5090_v55  ;;  %6858 = vmatmul.msk.f32.gmra.mxu3 %vm5133_vm3, %v5417_v10 }
 0x6ae   : > { %v5197_v59 = vld [vmem:[#allocation2 + $0xb0] ss:$2 sm:$0xff]  ;;  %v5246_v33 = vld [vmem:[#allocation2 + $0xb1] ss:$2 sm:$0xff] }
 0x6af   : > { %v5311_v4 = vld [vmem:[#allocation2 + $0xb2] ss:$2 sm:$0xff]  ;;  %5158 = vst.msk [vmem:[#allocation2 + $0xc1] sm:$0xff] %vm5133_vm3, %v5125_v42  ;;  %v5218_v13 = vmul.f32 %v10019_v7, %v5197_v59  ;;  %v5267_v14 = vmul.f32 %v10021_v0, %v5246_v33 }
 0x6b0   : > { %v5332_v60 = vmul.f32 %v10027_v15, %v5311_v4 }
 0x6b1   : > { %v5283_v47 = vadd.f32 %v5267_v14, %v5218_v13 }
 0x6b2   : > { %v5042_v58 = vpop.f32.mrf.mxu2 }
 0x6b3   : > { %v5091_v27 = vmul.f32 %v10375_v21, %v5042_v58  ;;  %v5348_v16 = vadd.f32 %v5332_v60, %v5283_v47 }
 0x6b5   : > { %v5126_v22 = vadd.f32 %v10381_v57, %v5091_v27  ;;  %v5367_v49 = vmul.f32 %v10428_v54, %v5348_v16 }
 0x6b7   : > { %5159 = vst.msk [vmem:[#allocation2 + $0xc9] sm:$0xff] %vm5133_vm3, %v5126_v22  ;;  %v5386_v18 = vadd.f32 %v10435_v1, %v5367_v49 }
 0x6b9   : > { %v5402_v46 = vmax.f32 %v5386_v18, 0.0 }
 0x6ba   : > { %v5045_v28 = vpop.f32.mrf.mxu2 }
 0x6bb   : > { %v5092_v8 = vmul.f32 %v10375_v21, %v5045_v28  ;;  %v5418_v53 = vmin.f32 %v5402_v46, 6.0 }
 0x6bd   : > { %v5127_v30 = vadd.f32 %v10381_v57, %v5092_v8  ;;  %6859 = vmatmul.msk.f32.gmra.mxu3 %vm5133_vm3, %v5418_v53 }
 0x6be   : > { %v5199_v41 = vld [vmem:[#allocation2 + $0xc0] ss:$2 sm:$0xff]  ;;  %v5248_v35 = vld [vmem:[#allocation2 + $0xc1] ss:$2 sm:$0xff] }
 0x6bf   : > { %v5313_v6 = vld [vmem:[#allocation2 + $0xc2] ss:$2 sm:$0xff]  ;;  %5160 = vst.msk [vmem:[#allocation2 + $0xd1] sm:$0xff] %vm5133_vm3, %v5127_v30  ;;  %v5500_v20 = vpop.f32.mrf.mxu3  ;;  %v5219_v29 = vmul.f32 %v10019_v7, %v5199_v41  ;;  %v5268_v62 = vmul.f32 %v10021_v0, %v5248_v35 }
 0x6c0   : > { %v5543_v45 = vmul.f32 %v10323_v61, %v5500_v20  ;;  %v5333_v56 = vmul.f32 %v10027_v15, %v5313_v6 }
 0x6c1   : > { %v5284_v51 = vadd.f32 %v5268_v62, %v5219_v29 }
 0x6c2   : > { %v5562_v12 = vadd.f32 %v10327_v17, %v5543_v45  ;;  %v5048_v40 = vpop.f32.mrf.mxu2 }
 0x6c3   : > { %v5093_v9 = vmul.f32 %v10375_v21, %v5048_v40  ;;  %v5349_v3 = vadd.f32 %v5333_v56, %v5284_v51  ;;  %v5598_v56 = vld [vmem:[%s11188_s2 + $0x10] sm:$0xff] }
 0x6c4   : > { %5579 = vst.msk [vmem:[#allocation3 + $0x21] sm:$0xff] %vm5574_vm4, %v5562_v12  ;;  %5766 = vmatpush.msra.mxu3 %v5598_v56 }
 0x6c5   : > { %v5128_v39 = vadd.f32 %v10381_v57, %v5093_v9  ;;  %v5368_v52 = vmul.f32 %v10428_v54, %v5349_v3 }
 0x6c7   : > { %5161 = vst.msk [vmem:[#allocation2 + $0xd9] sm:$0xff] %vm5133_vm3, %v5128_v39  ;;  %v5387_v24 = vadd.f32 %v10435_v1, %v5368_v52  ;;  %v5597_v52 = vld [vmem:[%s11188_s2 + $0x8] sm:$0xff] }
 0x6c8   : > { %5767 = vmatpush.msra.mxu3 %v5597_v52 }
 0x6c9   : > { %v5403_v32 = vmax.f32 %v5387_v24, 0.0 }
 0x6cb   : > { %v5419_v23 = vmin.f32 %v5403_v32, 6.0 }
 0x6cd   : > { %6860 = vmatmul.msk.f32.gmra.mxu3 %vm5133_vm3, %v5419_v23 }
 0x6ce   : > { %v5201_v11 = vld [vmem:[#allocation2 + $0xd0] ss:$2 sm:$0xff]  ;;  %v5250_v50 = vld [vmem:[#allocation2 + $0xd1] ss:$2 sm:$0xff] }
 0x6cf   : > { %v5315_v48 = vld [vmem:[#allocation2 + $0xd2] ss:$2 sm:$0xff]  ;;  %v5220_v44 = vmul.f32 %v10019_v7, %v5201_v11  ;;  %v5269_v5 = vmul.f32 %v10021_v0, %v5250_v50 }
 0x6d0   : > { %v5334_v2 = vmul.f32 %v10027_v15, %v5315_v48  ;;  %v5596_v11 = vld [vmem:[%s11188_s2] sm:$0xff] }
 0x6d1   : > { %v5285_v19 = vadd.f32 %v5269_v5, %v5220_v44  ;;  %v5593_v50 = vld [vmem:[%s11189_s11] sm:$0x7]  ;;  %5768 = vmatpush.msra.mxu3 %v5596_v11  ;;  %s11194_s11 = sld [smem:[#allocation62_spill]] }
 0x6d3   : > { %v5350_v38 = vadd.f32 %v5334_v2, %v5285_v19  ;;  %v10615_v19 = vperm.slane %v5593_v50, 0  ;;  %v10617_v2 = vperm.slane %v5593_v50, 1 }
 0x6d5   : > { %v5369_v25 = vmul.f32 %v10428_v54, %v5350_v38  ;;  %v5601_v38 = vld [vmem:[#allocation3] ss:$2 sm:$0xff] }
 0x6d7   : > { %v5388_v26 = vadd.f32 %v10435_v1, %v5369_v25  ;;  %v5626_v25 = vld [vmem:[#allocation3 + $0x1] ss:$2 sm:$0xff] }
 0x6d9   : > { %v5404_v31 = vmax.f32 %v5388_v26, 0.0  ;;  %v5642_v26 = vmul.f32 %v10617_v2, %v5626_v25 }
 0x6db   : > { %v5420_v34 = vmin.f32 %v5404_v31, 6.0  ;;  %v10622_v31 = vperm.slane %v5593_v50, 2 }
 0x6dd   : > { %6861 = vmatmul.msk.f32.gmra.mxu3 %vm5133_vm3, %v5420_v34 }
 0x6df   : > { %v5503_v36 = vpop.f32.mrf.mxu3 }
 0x6e0   : > { %v5544_v43 = vmul.f32 %v10323_v61, %v5503_v36 }
 0x6e2   : > { %v5563_v63 = vadd.f32 %v10327_v17, %v5544_v43 }
 0x6e4   : > { %5580 = vst.msk [vmem:[#allocation3 + $0x29] sm:$0xff] %vm5574_vm4, %v5563_v63 }
 0x6e6   : > { %v5051_v55 = vpop.f32.mrf.mxu2 }
 0x6e7   : > { %v5094_v10 = vmul.f32 %v10375_v21, %v5051_v55 }
 0x6e9   : > { %v5129_v42 = vadd.f32 %v10381_v57, %v5094_v10 }
 0x6eb   : > { %5162 = vst.msk [vmem:[#allocation2 + $0xe1] sm:$0xff] %vm5133_vm3, %v5129_v42  ;;  %v10579_v59 = vld [vmem:[#allocation3 + $0x21] ss:$2 sm:$0xff]  ;;  %v5603_v42 = vld [vmem:[#allocation3 + $0x10] ss:$2 sm:$0xff] }
 0x6ec   : > { %5952 = vst.msk [vmem:[#allocation3 + $0x21] sm:$0x1] %vm1918_vm1, %v11185_v37 }
 0x6ef   : > { %v5506_v33 = vpop.f32.mrf.mxu3 }
 0x6f0   : > { %v5545_v4 = vmul.f32 %v10323_v61, %v5506_v33  ;;  %v5628_v33 = vld [vmem:[#allocation3 + $0x11] ss:$2 sm:$0xff] }
 0x6f2   : > { %v5564_v13 = vadd.f32 %v10327_v17, %v5545_v4 }
 0x6f4   : > { %5581 = vst.msk [vmem:[#allocation3 + $0x31] sm:$0xff] %vm5574_vm4, %v5564_v13 }
 0x6ff   : > { %v5509_v14 = vpop.f32.mrf.mxu3 }
 0x700   : > { %v5546_v47 = vmul.f32 %v10323_v61, %v5509_v14  ;;  %v5054_v60 = vpop.f32.mrf.mxu2 }
 0x701   : > { %v5095_v58 = vmul.f32 %v10375_v21, %v5054_v60 }
 0x702   : > { %v5565_v27 = vadd.f32 %v10327_v17, %v5546_v47 }
 0x703   : > { %v5130_v16 = vadd.f32 %v10381_v57, %v5095_v58  ;;  %v10629_v58 = vld [vmem:[%s11190_s15] ss:$0 sm:$0xff]  ;;  %s11195_s15 = sld [smem:[#allocation63_spill]] }
 0x704   : > { %5582 = vst.msk [vmem:[#allocation3 + $0x39] sm:$0xff] %vm5574_vm4, %v5565_v27  ;;  %v5618_v27 = vmul.f32 %v10615_v19, %v5603_v42 }
 0x705   : > { %5163 = vst.msk [vmem:[#allocation2 + $0xe9] sm:$0xff] %vm5133_vm3, %v5130_v16 }
 0x708   : > { %v5057_v22 = vpop.f32.mrf.mxu2 }
 0x709   : > { %v5096_v49 = vmul.f32 %v10375_v21, %v5057_v22 }
 0x70b   : > { %v5131_v18 = vadd.f32 %v10381_v57, %v5096_v49  ;;  %v5661_v49 = vld [vmem:[#allocation3 + $0x12] ss:$2 sm:$0xff] }
 0x70c   : > { %v5203_v46 = vld [vmem:[#allocation2 + $0xe0] ss:$2 sm:$0xff]  ;;  %v5252_v28 = vld [vmem:[#allocation2 + $0xe1] ss:$2 sm:$0xff] }
 0x70d   : > { %v5317_v8 = vld [vmem:[#allocation2 + $0xe2] ss:$2 sm:$0xff]  ;;  %5164 = vst.msk [vmem:[#allocation2 + $0xf1] sm:$0xff] %vm5133_vm3, %v5131_v18  ;;  %v5221_v53 = vmul.f32 %v10019_v7, %v5203_v46  ;;  %v5270_v30 = vmul.f32 %v10021_v0, %v5252_v28  ;;  %v10639_v28 = vld [vmem:[%s11191_s7] ss:$0 sm:$0xff]  ;;  %s11196_s7 = sld [smem:[#allocation64_spill]] }
 0x70e   : > { %v5335_v6 = vmul.f32 %v10027_v15, %v5317_v8  ;;  %v5665_v11 = vld [vmem:[#allocation3 + $0x32] ss:$2 sm:$0xff] }
 0x70f   : > { %v5512_v41 = vpop.f32.mrf.mxu3  ;;  %v5286_v35 = vadd.f32 %v5270_v30, %v5221_v53  ;;  %v5605_v53 = vld [vmem:[#allocation3 + $0x20] ss:$2 sm:$0xff]  ;;  %v5678_v25 = vmul.f32 %v10622_v31, %v5665_v11 }
 0x710   : > { %v5547_v20 = vmul.f32 %v10323_v61, %v5512_v41  ;;  %v5676_v41 = vmul.f32 %v10622_v31, %v5661_v49 }
 0x711   : > { %v5351_v29 = vadd.f32 %v5335_v6, %v5286_v35  ;;  %v5619_v35 = vmul.f32 %v10615_v19, %v5605_v53 }
 0x712   : > { %v5566_v62 = vadd.f32 %v10327_v17, %v5547_v20 }
 0x713   : > { %v5370_v45 = vmul.f32 %v10428_v54, %v5351_v29  ;;  %v5663_v29 = vld [vmem:[#allocation3 + $0x22] ss:$2 sm:$0xff] }
 0x714   : > { %5583 = vst.msk [vmem:[#allocation3 + $0x41] sm:$0xff] %vm5574_vm4, %v5566_v62  ;;  %v5677_v56 = vmul.f32 %v10622_v31, %v5663_v29 }
 0x715   : > { %v5389_v51 = vadd.f32 %v10435_v1, %v5370_v45 }
 0x717   : > { %v5405_v12 = vmax.f32 %v5389_v51, 0.0 }
 0x719   : > { %v5421_v40 = vmin.f32 %v5405_v12, 6.0  ;;  %v5607_v12 = vld [vmem:[#allocation3 + $0x30] ss:$2 sm:$0xff] }
 0x71b   : > { %6862 = vmatmul.msk.f32.gmra.mxu3 %vm5133_vm3, %v5421_v40  ;;  %v5632_v40 = vld [vmem:[#allocation3 + $0x31] ss:$2 sm:$0xff] }
 0x71c   : > { %v5645_v52 = vmul.f32 %v10617_v2, %v5632_v40 }
 0x720   : > { %v5515_v9 = vpop.f32.mrf.mxu3 }
 0x721   : > { %v5548_v3 = vmul.f32 %v10323_v61, %v5515_v9 }
 0x723   : > { %v5567_v39 = vadd.f32 %v10327_v17, %v5548_v3 }
 0x725   : > { %5584 = vst.msk [vmem:[#allocation3 + $0x49] sm:$0xff] %vm5574_vm4, %v5567_v39 }
 0x72e   : > { %v5060_v24 = vpop.f32.mrf.mxu2 }
 0x72f   : > { %v5097_v32 = vmul.f32 %v10375_v21, %v5060_v24  ;;  %v5617_v21 = vmul.f32 %v10615_v19, %v5601_v38  ;;  %v5634_v38 = vld [vmem:[#allocation3 + $0x41] ss:$2 sm:$0xff] }
 0x730   : > { %v5518_v23 = vpop.f32.mrf.mxu3 }
 0x731   : > { %v5132_v48 = vadd.f32 %v10381_v57, %v5097_v32  ;;  %v5549_v44 = vmul.f32 %v10323_v61, %v5518_v23  ;;  %v5659_v57 = vld [vmem:[#allocation3 + $0x2] ss:$2 sm:$0xff]  ;;  %v5650_v10 = vadd.f32 %v5642_v26, %v5617_v21 }
 0x732   : > { %v5675_v14 = vmul.f32 %v10622_v31, %v5659_v57 }
 0x733   : > { %5166 = vst.msk [vmem:[#allocation2 + $0xf9] sm:$0x7] %vm5165_vm6, %v5132_v48  ;;  %v5568_v5 = vadd.f32 %v10327_v17, %v5549_v44 }
 0x734   : > { %v5683_v60 = vadd.f32 %v5675_v14, %v5650_v10 }
 0x735   : > { %5585 = vst.msk [vmem:[#allocation3 + $0x51] sm:$0xff] %vm5574_vm4, %v5568_v5  ;;  %v5609_v5 = vld [vmem:[#allocation3 + $0x40] ss:$2 sm:$0xff] }
 0x736   : > { %v5694_v46 = vmul.f32 %v10629_v58, %v5683_v60 }
 0x738   : > { %v5705_v20 = vadd.f32 %v10639_v28, %v5694_v46 }
 0x73a   : > { %v5205_v34 = vld [vmem:[#allocation2 + $0xf0] ss:$2 sm:$0x3f]  ;;  %v5254_v36 = vld [vmem:[#allocation2 + $0xf1] ss:$2 sm:$0x3f] }
 0x73b   : > { %v5222_v43 = vmul.f32 %v10019_v7, %v5205_v34  ;;  %v5271_v63 = vmul.f32 %v10021_v0, %v5254_v36  ;;  %v5319_v55 = vld [vmem:[#allocation2 + $0xf2] ss:$2 sm:$0x3f]  ;;  %v5643_v7 = vmul.f32 %v10617_v2, %v5628_v33  ;;  %v5713_v45 = vmax.f32 %v5705_v20, 0.0  ;;  %v5667_v36 = vld [vmem:[#allocation3 + $0x42] ss:$2 sm:$0xff] }
 0x73c   : > { %v5336_v13 = vmul.f32 %v10027_v15, %v5319_v55  ;;  %v5646_v34 = vmul.f32 %v10617_v2, %v5634_v38  ;;  %v5679_v42 = vmul.f32 %v10622_v31, %v5667_v36  ;;  %v5831_v38 = vld [vmem:[%s11193_s28 + $0x10] sm:$0xff] }
 0x73d   : > { %v5287_v4 = vadd.f32 %v5271_v63, %v5222_v43  ;;  %v5651_v8 = vadd.f32 %v5643_v7, %v5618_v27  ;;  %v5721_v3 = vmin.f32 %v5713_v45, 6.0  ;;  %v7215_v27 = vld [vmem:[%s11186_s3] ss:$0 sm:$0xff] }
 0x73f   : > { %v5352_v47 = vadd.f32 %v5336_v13, %v5287_v4 }
 0x740   : > { %v5521_v16 = vpop.f32.mrf.mxu3 }
 0x741   : > { %v5550_v0 = vmul.f32 %v10323_v61, %v5521_v16  ;;  %v5371_v22 = vmul.f32 %v10428_v54, %v5352_v47  ;;  %v5644_v54 = vmul.f32 %v10617_v2, %v10579_v59  ;;  %v5620_v59 = vmul.f32 %v10615_v19, %v5607_v12 }
 0x743   : > { %v5569_v18 = vadd.f32 %v10327_v17, %v5550_v0  ;;  %v5390_v15 = vadd.f32 %v10435_v1, %v5371_v22  ;;  %v5684_v1 = vadd.f32 %v5676_v41, %v5651_v8  ;;  %v5652_v62 = vadd.f32 %v5644_v54, %v5619_v35  ;;  %v7216_v0 = vld [vmem:[%s11187_s6] ss:$0 sm:$0xff] }
 0x744   : > { %v5653_v44 = vadd.f32 %v5645_v52, %v5620_v59 }
 0x745   : > { %5586 = vst.msk [vmem:[#allocation3 + $0x59] sm:$0xff] %vm5574_vm4, %v5569_v18  ;;  %v5406_v30 = vmax.f32 %v5390_v15, 0.0  ;;  %v5695_v51 = vmul.f32 %v10629_v58, %v5684_v1  ;;  %v5685_v9 = vadd.f32 %v5677_v56, %v5652_v62 }
 0x746   : > { %v5686_v57 = vadd.f32 %v5678_v25, %v5653_v44  ;;  %v10688_v44 = vld [vmem:[%s11192_s10] ss:$0 sm:$0xff]  ;;  %s11197_s10 = sld [smem:[#allocation65_spill]] }
 0x747   : > { %v5422_v6 = vmin.f32 %v5406_v30, 6.0  ;;  %v5706_v39 = vadd.f32 %v10639_v28, %v5695_v51  ;;  %v5696_v23 = vmul.f32 %v10629_v58, %v5685_v9  ;;  %v10693_v25 = vld [vmem:[%s11194_s11] ss:$0 sm:$0xff]  ;;  %s11198_s11 = sld [smem:[#allocation72_spill]] }
 0x748   : > { %v5697_v43 = vmul.f32 %v10629_v58, %v5686_v57  ;;  %v5830_v57 = vld [vmem:[%s11193_s28 + $0x8] sm:$0xff] }
 0x749   : > { %6863 = vmatmul.msk.f32.gmra.mxu3 %vm5133_vm3, %v5422_v6  ;;  %v5714_v48 = vmax.f32 %v5706_v39, 0.0  ;;  %v5707_v21 = vadd.f32 %v10639_v28, %v5696_v23 }
 0x74a   : > { %v5708_v4 = vadd.f32 %v10639_v28, %v5697_v43 }
 0x74b   : > { %v5722_v26 = vmin.f32 %v5714_v48, 6.0 }
 0x74c   : > { %v5611_v55 = vld [vmem:[#allocation3 + $0x50] ss:$2 sm:$0xff]  ;;  %v5636_v10 = vld [vmem:[#allocation3 + $0x51] ss:$2 sm:$0xff]  ;;  %v5716_v49 = vmax.f32 %v5708_v4, 0.0 }
 0x74d   : > { %v5622_v14 = vmul.f32 %v10615_v19, %v5611_v55  ;;  %v5647_v47 = vmul.f32 %v10617_v2, %v5636_v10  ;;  %v5669_v16 = vld [vmem:[#allocation3 + $0x52] ss:$2 sm:$0xff]  ;;  %s11199_s1 = smov %s11198_s11 }
 0x74e   : > { %v5680_v46 = vmul.f32 %v10622_v31, %v5669_v16  ;;  %v5724_v8 = vmin.f32 %v5716_v49, 6.0 }
 0x74f   : > { %v5655_v15 = vadd.f32 %v5647_v47, %v5622_v14 }
 0x750   : > { %v5524_v24 = vpop.f32.mrf.mxu3 }
 0x751   : > { %v5551_v32 = vmul.f32 %v10323_v61, %v5524_v24  ;;  %6864 = vmatmul.msk.f32.vlgmr.msra.gmra.mxu3 %vm5574_vm4, %v5721_v3  ;;  %v5621_v61 = vmul.f32 %v10615_v19, %v5609_v5  ;;  %v5688_v30 = vadd.f32 %v5680_v46, %v5655_v15  ;;  %v5832_v5 = vld [vmem:[%s11193_s28 + $0x18] sm:$0xff] }
 0x752   : > { %5916 = vmatpush.msrb.mxu3 %v5832_v5 }
 0x753   : > { %v5570_v50 = vadd.f32 %v10327_v17, %v5551_v32  ;;  %v5715_v17 = vmax.f32 %v5707_v21, 0.0  ;;  %v5654_v63 = vadd.f32 %v5646_v34, %v5621_v61  ;;  %v5699_v35 = vmul.f32 %v10629_v58, %v5688_v30  ;;  %v5829_v34 = vld [vmem:[%s11193_s28] sm:$0xff] }
 0x754   : > { %5917 = vmatpush.msrb.mxu3 %v5831_v38  ;;  %v10723_v30 = vld [vmem:[%s11196_s7] ss:$0 sm:$0xff]  ;;  %s11201_s7 = sld [smem:[#allocation68_spill]] }
 0x755   : > { %5587 = vst.msk [vmem:[#allocation3 + $0x61] sm:$0xff] %vm5574_vm4, %v5570_v50  ;;  %v5723_v33 = vmin.f32 %v5715_v17, 6.0  ;;  %v5687_v13 = vadd.f32 %v5679_v42, %v5654_v63  ;;  %v5710_v45 = vadd.f32 %v10639_v28, %v5699_v35 }
 0x756   : > { %5918 = vmatpush.msrb.mxu3 %v5830_v57 }
 0x757   : > { %v5698_v18 = vmul.f32 %v10629_v58, %v5687_v13  ;;  %v5718_v40 = vmax.f32 %v5710_v45, 0.0 }
 0x758   : > { %5919 = vmatpush.msrb.mxu3 %v5829_v34 }
 0x759   : > { %6865 = vmatmul.msk.f32.gmra.mxu3 %vm5574_vm4, %v5722_v26  ;;  %v5709_v53 = vadd.f32 %v10639_v28, %v5698_v18  ;;  %v5726_v3 = vmin.f32 %v5718_v40, 6.0 }
 0x75b   : > { %v5717_v41 = vmax.f32 %v5709_v53, 0.0 }
 0x75d   : > { %v5725_v62 = vmin.f32 %v5717_v41, 6.0 }
 0x760   : > { %v5527_v60 = vpop.f32.mrf.mxu3 }
 0x761   : > { %v5552_v7 = vmul.f32 %v7215_v27, %v5527_v60  ;;  %6866 = vmatmul.msk.f32.gmra.mxu3 %vm5574_vm4, %v5723_v33 }
 0x763   : > { %v5571_v22 = vadd.f32 %v7216_v0, %v5552_v7 }
 0x765   : > { %5588 = vst.msk [vmem:[#allocation3 + $0x69] sm:$0xff] %vm5574_vm4, %v5571_v22 }
 0x769   : > { %6867 = vmatmul.msk.f32.gmra.mxu3 %vm5574_vm4, %v5724_v8 }
 0x76c   : > { %v5613_v54 = vld [vmem:[#allocation3 + $0x60] ss:$2 sm:$0xff]  ;;  %v5638_v6 = vld [vmem:[#allocation3 + $0x61] ss:$2 sm:$0xff] }
 0x76d   : > { %v5671_v20 = vld [vmem:[#allocation3 + $0x62] ss:$2 sm:$0xff]  ;;  %v5623_v1 = vmul.f32 %v10615_v19, %v5613_v54  ;;  %v5648_v29 = vmul.f32 %v10617_v2, %v5638_v6  ;;  %v10727_v6 = vld [vmem:[%s11197_s10] ss:$0 sm:$0xff]  ;;  %s11202_s10 = sld [smem:[#allocation69_spill]] }
 0x76e   : > { %v5681_v56 = vmul.f32 %v10622_v31, %v5671_v20 }
 0x76f   : > { %v5656_v51 = vadd.f32 %v5648_v29, %v5623_v1 }
 0x771   : > { %6868 = vmatmul.msk.f32.gmra.mxu3 %vm5574_vm4, %v5725_v62  ;;  %v5689_v12 = vadd.f32 %v5681_v56, %v5656_v51 }
 0x773   : > { %v5700_v9 = vmul.f32 %v10629_v58, %v5689_v12 }
 0x775   : > { %v5711_v39 = vadd.f32 %v10639_v28, %v5700_v9 }
 0x777   : > { %v5719_v59 = vmax.f32 %v5711_v39, 0.0 }
 0x779   : > { %6869 = vmatmul.msk.f32.gmra.mxu3 %vm5574_vm4, %v5726_v3  ;;  %v5727_v52 = vmin.f32 %v5719_v59, 6.0 }
 0x781   : > { %6870 = vmatmul.msk.f32.gmra.mxu3 %vm5574_vm4, %v5727_v52 }
 0x79e   : > { %v5530_v24 = vpop.f32.mrf.mxu3 }
 0x79f   : > { %v5553_v32 = vmul.f32 %v7215_v27, %v5530_v24 }
 0x7a1   : > { %v5572_v23 = vadd.f32 %v7216_v0, %v5553_v32 }
 0x7a3   : > { %5589 = vst.msk [vmem:[#allocation3 + $0x71] sm:$0xff] %vm5574_vm4, %v5572_v23 }
 0x7cc   : > { %v5533_v11 = vpop.f32.mrf.mxu3 }
 0x7cd   : > { %v5554_v50 = vmul.f32 %v7215_v27, %v5533_v11  ;;  %v5826_v27 = vld [vmem:[%s11195_s15] sm:$0x7]  ;;  %s11200_s15 = sld [smem:[#allocation67_spill]] }
 0x7cf   : > { %v5573_v48 = vadd.f32 %v7216_v0, %v5554_v50  ;;  %v10712_v0 = vperm.slane %v5826_v27, 1 }
 0x7d1   : > { %5591 = vst.msk [vmem:[#allocation3 + $0x79] sm:$0x3f] %vm5590_vm7, %v5573_v48 }
 0x7d4   : > { %v5770_v21 = vpop.f32.mrf.mxu3 }
 0x7d5   : > { %v5797_v26 = vmul.f32 %v10688_v44, %v5770_v21 }
 0x7d7   : > { %v5808_v61 = vadd.f32 %v10693_v25, %v5797_v26 }
 0x7d8   : > { %v5615_v17 = vld [vmem:[#allocation3 + $0x70] ss:$2 sm:$0x7f]  ;;  %v5640_v36 = vld [vmem:[#allocation3 + $0x71] ss:$2 sm:$0x7f] }
 0x7d9   : > { %5816 = vst.msk [vmem:[#allocation2 + $0x1] sm:$0xff] %vm2038_vm0, %v5808_v61  ;;  %v5624_v43 = vmul.f32 %v10615_v19, %v5615_v17  ;;  %v5649_v63 = vmul.f32 %v10617_v2, %v5640_v36  ;;  %v5673_v55 = vld [vmem:[#allocation3 + $0x72] ss:$2 sm:$0x7f] }
 0x7da   : > { %v5682_v42 = vmul.f32 %v10622_v31, %v5673_v55  ;;  %v10710_v31 = vperm.slane %v5826_v27, 0 }
 0x7db   : > { %v5657_v10 = vadd.f32 %v5649_v63, %v5624_v43 }
 0x7dc   : > { %v5773_v33 = vpop.f32.mrf.mxu3 }
 0x7dd   : > { %v5798_v4 = vmul.f32 %v10688_v44, %v5773_v33  ;;  %v5690_v13 = vadd.f32 %v5682_v42, %v5657_v10 }
 0x7df   : > { %v5809_v14 = vadd.f32 %v10693_v25, %v5798_v4  ;;  %v5701_v47 = vmul.f32 %v10629_v58, %v5690_v13  ;;  %v10716_v58 = vperm.slane %v5826_v27, 2 }
 0x7e1   : > { %5817 = vst.msk [vmem:[#allocation2 + $0x9] sm:$0xff] %vm2038_vm0, %v5809_v14  ;;  %v5712_v60 = vadd.f32 %v10639_v28, %v5701_v47 }
 0x7e3   : > { %v5720_v19 = vmax.f32 %v5712_v60, 0.0 }
 0x7e4   : > { %v5776_v7 = vpop.f32.mrf.mxu3 }
 0x7e5   : > { %v5799_v2 = vmul.f32 %v10688_v44, %v5776_v7  ;;  %v5728_v16 = vmin.f32 %v5720_v19, 6.0  ;;  %v5963_v19 = vld [vmem:[%s11198_s11 + $0x38] sm:$0xff]  ;;  %v5962_v7 = vld [vmem:[%s11199_s1 + $0x30] sm:$0xff]  ;;  %s11203_s11 = sld [smem:[#allocation70_spill]] }
 0x7e6   : > { %6013 = vmatpush.msra.mxu3 %v5963_v19 }
 0x7e7   : > { %v5810_v22 = vadd.f32 %v10693_v25, %v5799_v2  ;;  %6871 = vmatmul.msk.f32.gmra.mxu3 %vm5574_vm4, %v5728_v16 }
 0x7e8   : > { %v5835_v49 = vld [vmem:[#allocation2] ss:$2 sm:$0xff]  ;;  %v5844_v28 = vld [vmem:[#allocation2 + $0x1] ss:$2 sm:$0xff]  ;;  %6014 = vmatpush.msra.mxu3 %v5962_v7 }
 0x7e9   : > { %v5857_v18 = vld [vmem:[#allocation2 + $0x2] ss:$2 sm:$0xff]  ;;  %5818 = vst.msk [vmem:[#allocation2 + $0x11] sm:$0xff] %vm2038_vm0, %v5810_v22  ;;  %v5840_v15 = vmul.f32 %v10710_v31, %v5835_v49  ;;  %v5849_v46 = vmul.f32 %v10712_v0, %v5844_v28  ;;  %v7181_v49 = vld [vmem:[%s11200_s15] ss:$0 sm:$0xff]  ;;  %s11204_s15 = sld [smem:[#allocation71_spill]] }
 0x7ea   : > { %v5862_v53 = vmul.f32 %v10716_v58, %v5857_v18 }
 0x7eb   : > { %v5853_v8 = vadd.f32 %v5849_v46, %v5840_v15 }
 0x7ec   : > { %v5779_v41 = vpop.f32.mrf.mxu3 }
 0x7ed   : > { %v5800_v35 = vmul.f32 %v10688_v44, %v5779_v41  ;;  %v5866_v54 = vadd.f32 %v5862_v53, %v5853_v8  ;;  %v5961_v41 = vld [vmem:[%s11199_s1 + $0x28] sm:$0xff] }
 0x7ee   : > { %6015 = vmatpush.msra.mxu3 %v5961_v41 }
 0x7ef   : > { %v5811_v20 = vadd.f32 %v10693_v25, %v5800_v35  ;;  %v5873_v1 = vmul.f32 %v10723_v30, %v5866_v54 }
 0x7f1   : > { %5819 = vst.msk [vmem:[#allocation2 + $0x19] sm:$0xff] %vm2038_vm0, %v5811_v20  ;;  %v5880_v29 = vadd.f32 %v10727_v6, %v5873_v1  ;;  %v5960_v20 = vld [vmem:[%s11199_s1 + $0x20] sm:$0xff]  ;;  %v5958_v1 = vld [vmem:[%s11199_s1 + $0x10] sm:$0xff] }
 0x7f2   : > { %6016 = vmatpush.msra.mxu3 %v5960_v20 }
 0x7f3   : > { %v5884_v62 = vmax.f32 %v5880_v29, 0.0  ;;  %v5957_v29 = vld [vmem:[%s11199_s1 + $0x8] sm:$0xff] }
 0x7f4   : > { %v5782_v45 = vpop.f32.mrf.mxu3 }
 0x7f5   : > { %v5801_v51 = vmul.f32 %v10688_v44, %v5782_v45  ;;  %v5888_v56 = vmin.f32 %v5884_v62, 6.0  ;;  %v5956_v45 = vld [vmem:[%s11199_s1] sm:$0xff] }
 0x7f7   : > { %v5812_v12 = vadd.f32 %v10693_v25, %v5801_v51  ;;  %6872 = vmatmul.msk.f32.vlgmr.msrb.gmra.mxu3 %vm2038_vm0, %v5888_v56 }
 0x7f8   : > { %v5836_v40 = vld [vmem:[#allocation2 + $0x10] ss:$2 sm:$0xff]  ;;  %v5845_v9 = vld [vmem:[#allocation2 + $0x11] ss:$2 sm:$0xff] }
 0x7f9   : > { %v5858_v3 = vld [vmem:[#allocation2 + $0x12] ss:$2 sm:$0xff]  ;;  %5820 = vst.msk [vmem:[#allocation2 + $0x21] sm:$0xff] %vm2038_vm0, %v5812_v12  ;;  %v5841_v39 = vmul.f32 %v10710_v31, %v5836_v40  ;;  %v5850_v59 = vmul.f32 %v10712_v0, %v5845_v9 }
 0x7fa   : > { %6040 = vst.msk [vmem:[#allocation2 + $0x11] sm:$0x1] %vm1918_vm1, %v11185_v37  ;;  %v5863_v24 = vmul.f32 %v10716_v58, %v5858_v3 }
 0x7fb   : > { %v5854_v52 = vadd.f32 %v5850_v59, %v5841_v39 }
 0x7fc   : > { %v5785_v32 = vpop.f32.mrf.mxu3 }
 0x7fd   : > { %v5802_v23 = vmul.f32 %v10688_v44, %v5785_v32  ;;  %v5867_v11 = vadd.f32 %v5863_v24, %v5854_v52 }
 0x7ff   : > { %v5813_v50 = vadd.f32 %v10693_v25, %v5802_v23  ;;  %v5874_v48 = vmul.f32 %v10723_v30, %v5867_v11  ;;  %v7183_v11 = vld [vmem:[%s11203_s11] ss:$0 sm:$0xff]  ;;  %s11208_s11 = sld [smem:[#allocation76_spill]] }
 0x801   : > { %5821 = vst.msk [vmem:[#allocation2 + $0x29] sm:$0xff] %vm2038_vm0, %v5813_v50  ;;  %v5881_v5 = vadd.f32 %v10727_v6, %v5874_v48 }
 0x803   : > { %v5885_v38 = vmax.f32 %v5881_v5, 0.0 }
 0x804   : > { %v5788_v21 = vpop.f32.mrf.mxu3 }
 0x805   : > { %v5803_v26 = vmul.f32 %v10688_v44, %v5788_v21  ;;  %v5889_v57 = vmin.f32 %v5885_v38, 6.0  ;;  %v7184_v38 = vld [vmem:[%s11204_s15] ss:$0 sm:$0xff]  ;;  %s11209_s2 = smov %s11208_s11  ;;  %s11210_s15 = sld [smem:[#allocation82_spill]] }
 0x806   : > { %v6047_v41 = vld [vmem:[%s11209_s2 + $0x18] sm:$0xff]  ;;  %v6044_v20 = vld [vmem:[%s11209_s2] sm:$0xff] }
 0x807   : > { %v5814_v61 = vadd.f32 %v10693_v25, %v5803_v26  ;;  %6873 = vmatmul.msk.f32.gmra.mxu3 %vm2038_vm0, %v5889_v57 }
 0x808   : > { %v5837_v34 = vld [vmem:[#allocation2 + $0x20] ss:$2 sm:$0xff]  ;;  %v5846_v17 = vld [vmem:[#allocation2 + $0x21] ss:$2 sm:$0xff] }
 0x809   : > { %v5859_v36 = vld [vmem:[#allocation2 + $0x22] ss:$2 sm:$0xff]  ;;  %5822 = vst.msk [vmem:[#allocation2 + $0x31] sm:$0xff] %vm2038_vm0, %v5814_v61  ;;  %v5842_v43 = vmul.f32 %v10710_v31, %v5837_v34  ;;  %v5851_v63 = vmul.f32 %v10712_v0, %v5846_v17 }
 0x80a   : > { %v5864_v10 = vmul.f32 %v10716_v58, %v5859_v36 }
 0x80b   : > { %v5855_v55 = vadd.f32 %v5851_v63, %v5842_v43  ;;  %s11211_s3 = smov %s11210_s15 }
 0x80d   : > { %v5868_v42 = vadd.f32 %v5864_v10, %v5855_v55 }
 0x80f   : > { %v5875_v33 = vmul.f32 %v10723_v30, %v5868_v42 }
 0x811   : > { %v5882_v4 = vadd.f32 %v10727_v6, %v5875_v33 }
 0x813   : > { %v5886_v13 = vmax.f32 %v5882_v4, 0.0 }
 0x815   : > { %v5890_v14 = vmin.f32 %v5886_v13, 6.0 }
 0x817   : > { %6874 = vmatmul.msk.f32.gmra.mxu3 %vm2038_vm0, %v5890_v14 }
 0x86a   : > { %v5791_v47 = vpop.f32.mrf.mxu3 }
 0x86b   : > { %v5804_v60 = vmul.f32 %v10688_v44, %v5791_v47  ;;  %v7182_v44 = vld [vmem:[%s11201_s7] ss:$0 sm:$0xff]  ;;  %s11205_s7 = sld [smem:[#allocation79_spill]] }
 0x86d   : > { %v5815_v27 = vadd.f32 %v10693_v25, %v5804_v60 }
 0x86f   : > { %5824 = vst.msk [vmem:[#allocation2 + $0x39] sm:$0x7f] %vm5823_vm8, %v5815_v27 }
 0x871   : > { %v6118_v63 = vld [vmem:[%s11205_s7 + $0x38] sm:$0xff] }
 0x872   : > { %6153 = vmatpush.msra.mxu0 %v6118_v63  ;;  %v6180_v63 = vld [vmem:[%s11211_s3 + $0x8] sm:$0xff] }
 0x876   : > { %v5838_v2 = vld [vmem:[#allocation2 + $0x30] ss:$2 sm:$0xff]  ;;  %v5847_v16 = vld [vmem:[#allocation2 + $0x31] ss:$2 sm:$0xff] }
 0x877   : > { %v5860_v22 = vld [vmem:[#allocation2 + $0x32] ss:$2 sm:$0xff]  ;;  %v5843_v28 = vmul.f32 %v10710_v31, %v5838_v2  ;;  %v5852_v18 = vmul.f32 %v10712_v0, %v5847_v16 }
 0x878   : > { %v5865_v25 = vmul.f32 %v10716_v58, %v5860_v22  ;;  %v5959_v31 = vld [vmem:[%s11199_s1 + $0x18] sm:$0xff]  ;;  %s11206_s1 = smov %s11205_s7  ;;  %s11212_s7 = sld [smem:[#allocation75_spill]] }
 0x879   : > { %v5856_v15 = vadd.f32 %v5852_v18, %v5843_v28  ;;  %6017 = vmatpush.msra.mxu3 %v5959_v31  ;;  %v6117_v55 = vld [vmem:[%s11206_s1 + $0x30] sm:$0xff]  ;;  %v6116_v10 = vld [vmem:[%s11206_s1 + $0x28] sm:$0xff]  ;;  %v6114_v31 = vld [vmem:[%s11206_s1 + $0x18] sm:$0xff] }
 0x87a   : > { %v5921_v46 = vpop.f32.mrf.mxu3  ;;  %6154 = vmatpush.msra.mxu0 %v6117_v55 }
 0x87b   : > { %v5936_v8 = vmul.f32 %v7181_v49, %v5921_v46  ;;  %v5869_v53 = vadd.f32 %v5865_v25, %v5856_v15  ;;  %6018 = vmatpush.msra.mxu3 %v5958_v1  ;;  %v6051_v15 = vld [vmem:[%s11208_s11 + $0x38] sm:$0xff]  ;;  %v6050_v25 = vld [vmem:[%s11209_s2 + $0x30] sm:$0xff]  ;;  %v6049_v46 = vld [vmem:[%s11209_s2 + $0x28] sm:$0xff]  ;;  %s11215_s11 = sld [smem:[#allocation77_spill]] }
 0x87c   : > { %6155 = vmatpush.msra.mxu0 %v6116_v10  ;;  %v6113_v1 = vld [vmem:[%s11206_s1 + $0x10] sm:$0xff]  ;;  %v7190_v10 = vld [vmem:[#allocation12] ss:$0 sm:$0xff] }
 0x87d   : > { %v5943_v35 = vadd.f32 %v7182_v44, %v5936_v8  ;;  %v5876_v54 = vmul.f32 %v10723_v30, %v5869_v53  ;;  %6019 = vmatpush.msra.mxu3 %v5957_v29  ;;  %v6115_v8 = vld [vmem:[%s11206_s1 + $0x20] sm:$0xff]  ;;  %v6112_v29 = vld [vmem:[%s11206_s1 + $0x8] sm:$0xff] }
 0x87e   : > { %6156 = vmatpush.msra.mxu0 %v6115_v8  ;;  %v6048_v53 = vld [vmem:[%s11209_s2 + $0x20] sm:$0xff] }
 0x87f   : > { %v5883_v0 = vadd.f32 %v10727_v6, %v5876_v54  ;;  %5948 = vst.msk [vmem:[#allocation3 + $0x1] sm:$0xff] %vm5947_vm9, %v5943_v35  ;;  %6020 = vmatpush.msra.mxu3 %v5956_v45  ;;  %v5953_v6 = vld [vmem:[%s11202_s10] sm:$0x7]  ;;  %s11207_s10 = sld [smem:[#allocation73_spill]]  ;;  %v6046_v35 = vld [vmem:[%s11209_s2 + $0x10] sm:$0xff]  ;;  %v6045_v54 = vld [vmem:[%s11209_s2 + $0x8] sm:$0xff] }
 0x880   : > { %v5968_v12 = vperm.slane %v5953_v6, 0  ;;  %v5973_v40 = vperm.slane %v5953_v6, 1  ;;  %v5980_v9 = vperm.slane %v5953_v6, 2  ;;  %6157 = vmatpush.msra.mxu0 %v6114_v31  ;;  %v6111_v45 = vld [vmem:[%s11206_s1] sm:$0xff]  ;;  %v7194_v31 = vld [vmem:[#allocation18] ss:$0 sm:$0xff] }
 0x881   : > { %v5887_v58 = vmax.f32 %v5883_v0, 0.0  ;;  %6086 = vmatpush.msrb.mxu3 %v6051_v15  ;;  %v6186_v0 = vld [vmem:[%s11210_s15 + $0x38] sm:$0xff]  ;;  %v6041_v6 = vld [vmem:[%s11212_s7] sm:$0x7]  ;;  %v7192_v15 = vld [vmem:[#allocation15] ss:$0 sm:$0xff] }
 0x882   : > { %6221 = vmatpush.msra.mxu1 %v6186_v0  ;;  %6158 = vmatpush.msra.mxu0 %v6113_v1  ;;  %s11216_s15 = sld [smem:[#allocation81_spill]] }
 0x883   : > { %v5891_v62 = vmin.f32 %v5887_v58, 6.0  ;;  %6087 = vmatpush.msrb.mxu3 %v6050_v25  ;;  %v6185_v58 = vld [vmem:[%s11211_s3 + $0x30] sm:$0xff]  ;;  %s11217_s7 = sld [smem:[#allocation88_spill]] }
 0x884   : > { %6222 = vmatpush.msra.mxu1 %v6185_v58  ;;  %6159 = vmatpush.msra.mxu0 %v6112_v29 }
 0x885   : > { %6875 = vmatmul.msk.f32.gmra.mxu3 %vm2038_vm0, %v5891_v62  ;;  %v7185_v22 = vld [vmem:[%s11207_s10] ss:$0 sm:$0xff]  ;;  %v6184_v62 = vld [vmem:[%s11211_s3 + $0x28] sm:$0xff]  ;;  %s11213_s10 = sld [smem:[#allocation84_spill]] }
 0x886   : > { %6088 = vmatpush.msrb.mxu3 %v6049_v46  ;;  %6223 = vmatpush.msra.mxu1 %v6184_v62 }
 0x887   : > { %6160 = vmatpush.msra.mxu0 %v6111_v45 }
 0x888   : > { %6089 = vmatpush.msrb.mxu3 %v6048_v53  ;;  %v6176_v62 = vld [vmem:[%s11216_s15] sm:$0x7] }
 0x889   : > { %v6190_v45 = vperm.slane %v6176_v62, 0 }
 0x88a   : > { %v5924_v30 = vpop.f32.mrf.mxu3  ;;  %6090 = vmatpush.msrb.mxu3 %v6047_v41 }
 0x88b   : > { %v5937_v51 = vmul.f32 %v7181_v49, %v5924_v30  ;;  %s11214_s2 = smov %s11213_s10 }
 0x88c   : > { %6091 = vmatpush.msrb.mxu3 %v6046_v35  ;;  %v6250_v55 = vld [vmem:[%s11214_s2 + $0x28] sm:$0xff]  ;;  %v6249_v41 = vld [vmem:[%s11214_s2 + $0x20] sm:$0xff]  ;;  %v6248_v35 = vld [vmem:[%s11214_s2 + $0x18] sm:$0xff] }
 0x88d   : > { %v5944_v56 = vadd.f32 %v7182_v44, %v5937_v51  ;;  %v6245_v0 = vld [vmem:[%s11214_s2] sm:$0xff] }
 0x88e   : > { %6092 = vmatpush.msrb.mxu3 %v6045_v54  ;;  %v6247_v54 = vld [vmem:[%s11214_s2 + $0x10] sm:$0xff] }
 0x88f   : > { %5949 = vst.msk [vmem:[#allocation3 + $0x9] sm:$0xff] %vm5947_vm9, %v5944_v56 }
 0x890   : > { %6093 = vmatpush.msrb.mxu3 %v6044_v20  ;;  %v6246_v20 = vld [vmem:[%s11214_s2 + $0x8] sm:$0xff] }
 0x896   : > { %v5966_v3 = vld [vmem:[#allocation3] ss:$2 sm:$0xff]  ;;  %v5971_v39 = vld [vmem:[#allocation3 + $0x1] ss:$2 sm:$0xff] }
 0x897   : > { %v5978_v59 = vld [vmem:[#allocation3 + $0x2] ss:$2 sm:$0xff]  ;;  %v5969_v52 = vmul.f32 %v5968_v12, %v5966_v3  ;;  %v5974_v24 = vmul.f32 %v5973_v40, %v5971_v39  ;;  %6107 = vst.msk [vmem:[#allocation3 + $0x9] sm:$0x1] %vm1918_vm1, %v11185_v37 }
 0x898   : > { %v5981_v23 = vmul.f32 %v5980_v9, %v5978_v59 }
 0x899   : > { %v5976_v32 = vadd.f32 %v5974_v24, %v5969_v52 }
 0x89a   : > { %v5927_v50 = vpop.f32.mrf.mxu3 }
 0x89b   : > { %v5938_v48 = vmul.f32 %v7181_v49, %v5927_v50  ;;  %v5983_v5 = vadd.f32 %v5981_v23, %v5976_v32 }
 0x89d   : > { %v5945_v21 = vadd.f32 %v7182_v44, %v5938_v48  ;;  %v5988_v26 = vmul.f32 %v7183_v11, %v5983_v5  ;;  %v7188_v48 = vld [vmem:[#allocation9] ss:$0 sm:$0xff] }
 0x89f   : > { %v5993_v57 = vadd.f32 %v7184_v38, %v5988_v26  ;;  %5950 = vst.msk [vmem:[#allocation3 + $0x11] sm:$0xff] %vm5947_vm9, %v5945_v21 }
 0x8a1   : > { %v5995_v61 = vmax.f32 %v5993_v57, 0.0  ;;  %v6183_v57 = vld [vmem:[%s11211_s3 + $0x20] sm:$0xff] }
 0x8a2   : > { %6224 = vmatpush.msra.mxu1 %v6183_v57 }
 0x8a3   : > { %v5997_v34 = vmin.f32 %v5995_v61, 6.0  ;;  %v6182_v61 = vld [vmem:[%s11211_s3 + $0x18] sm:$0xff] }
 0x8a4   : > { %6225 = vmatpush.msra.mxu1 %v6182_v61  ;;  %v6307_v61 = vld [vmem:[%s10993_s9 + $0x18] sm:$0xff] }
 0x8a5   : > { %6876 = vmatmul.msk.f32.vlgmr.msra.gmra.mxu3 %vm5947_vm9, %v5997_v34  ;;  %v6252_v34 = vld [vmem:[%s11213_s10 + $0x38] sm:$0xff]  ;;  %s11218_s10 = sld [smem:[#allocation86_spill]] }
 0x8a6   : > { %6264 = vmatpush.msra.mxu2 %v6252_v34  ;;  %6324 = vmatpush.msra.mxu3 %v6307_v61  ;;  %v6306_v34 = vld [vmem:[%s10993_s9 + $0x10] sm:$0xff] }
 0x8a8   : > { %6325 = vmatpush.msra.mxu3 %v6306_v34 }
 0x8ab   : > { %s11219_s1 = smov %s11218_s10  ;;  %s6343_s15 = scalar_lea.hbm %s11218_s10, %s8196_s0 }
 0x8ac   : > { %s6347_s5 = sshll.u32 %s6343_s15, 4  ;;  %s7717_s0 = scalar_lea.hbm %s11219_s1, 2  ;;  %s6348_s5 = int_to_ptr.hbm [resolvable:$true] %s6347_s5 }
 0x8ad   : > { %s7711_s8 = sshra.s32 %s6348_s5, 4  ;;  %s7712_s8 = int_to_ptr.hbm [resolvable:$true] %s7711_s8 }
 0x8ae   : > { %p7718_p13 = scmp.lt.s32.totalorder %s7712_s8, %s11219_s1 }
 0x908   : > { %v5930_v17 = vpop.f32.mrf.mxu3 }
 0x909   : > { %v5939_v36 = vmul.f32 %v7181_v49, %v5930_v17  ;;  %v7186_v49 = vld [vmem:[#allocation4] ss:$0 sm:$0xff]  ;;  %v6181_v17 = vld [vmem:[%s11211_s3 + $0x10] sm:$0xff] }
 0x90a   : > { %6226 = vmatpush.msra.mxu1 %v6181_v17  ;;  %v6305_v17 = vld [vmem:[%s10993_s9 + $0x8] sm:$0xff] }
 0x90b   : > { %v5946_v43 = vadd.f32 %v7182_v44, %v5939_v36  ;;  %v6251_v36 = vld [vmem:[%s11214_s2 + $0x30] sm:$0xff]  ;;  %6326 = vmatpush.msra.mxu3 %v6305_v17 }
 0x90c   : > { %6265 = vmatpush.msra.mxu2 %v6251_v36  ;;  %6227 = vmatpush.msra.mxu1 %v6180_v63  ;;  %v6304_v36 = vld [vmem:[%s10993_s9] sm:$0xff]  ;;  %v7199_v63 = vld [vmem:[#allocation25] ss:$0 sm:$0xff]  ;;  %s7713_s9 = scalar_lea.hbm %s7712_s8, 1 }
 0x90d   : > { %5951 = vst.msk [vmem:[#allocation3 + $0x19] sm:$0xff] %vm5947_vm9, %v5946_v43  ;;  %v7189_v43 = vld [vmem:[#allocation10] ss:$0 sm:$0xff]  ;;  %6327 = vmatpush.msra.mxu3 %v6304_v36  ;;  %p7714_p9 = scmp.ne.s32.totalorder %s7712_s8, %s7713_s9  ;;  %p7719_p1 = scmp.lt.s32.totalorder %s7717_s0, %s7713_s9 }
 0x90e   : > { %6266 = vmatpush.msra.mxu2 %v6250_v55  ;;  %v7200_v55 = vld [vmem:[#allocation27] ss:$0 sm:$0xff] }
 0x90f   : > { %p7715_p12 = pnand %p7714_p9, %p8213_p5  ;;  %p7720_p2 = por %p7719_p1, %p7718_p13 }
 0x910   : > { %6267 = vmatpush.msra.mxu2 %v6249_v41 }
 0x911   : > { %p7716_p0 = pneg %p7715_p12 }
 0x912   : > { %6268 = vmatpush.msra.mxu2 %v6248_v35 }
 0x913   : > { %p7721_p3 = pnand %p7720_p2, %p7716_p0 }
 0x914   : > { %v5967_v42 = vld [vmem:[#allocation3 + $0x10] ss:$2 sm:$0xff]  ;;  %v5972_v33 = vld [vmem:[#allocation3 + $0x11] ss:$2 sm:$0xff]  ;;  %6269 = vmatpush.msra.mxu2 %v6247_v54 }
 0x915   : > { %v5979_v4 = vld [vmem:[#allocation3 + $0x12] ss:$2 sm:$0xff]  ;;  %v5970_v13 = vmul.f32 %v5968_v12, %v5967_v42  ;;  %v5975_v14 = vmul.f32 %v5973_v40, %v5972_v33  ;;  %v6055_v12 = vperm.slane %v6041_v6, 0  ;;  %v6058_v40 = vperm.slane %v6041_v6, 1 }
 0x916   : > { %v5982_v60 = vmul.f32 %v5980_v9, %v5979_v4  ;;  %v6062_v9 = vperm.slane %v6041_v6, 2  ;;  %v6179_v42 = vld [vmem:[%s11211_s3] sm:$0xff]  ;;  %6270 = vmatpush.msra.mxu2 %v6246_v20 }
 0x917   : > { %v5977_v47 = vadd.f32 %v5975_v14, %v5970_v13  ;;  %6228 = vmatpush.msra.mxu1 %v6179_v42  ;;  %v6108_v14 = vld [vmem:[%s11215_s11] sm:$0x7]  ;;  %s1910_s11 = sand.u32 1, %s11217_s7  }
 0x918   : > { %6271 = vmatpush.msra.mxu2 %v6245_v0  ;;  %s1911_s3 = scalar_lea.vmem [#allocation30], %s1910_s11  ;;  %s6335_s6 = scalar_lea.sflag [#allocation6], %s1910_s11 }
 0x919   : > { %v5984_v27 = vadd.f32 %v5982_v60, %v5977_v47  ;;  %v6122_v47 = vperm.slane %v6108_v14, 0  ;;  %v6125_v60 = vperm.slane %v6108_v14, 1  ;;  %s6345_s4 = sshll.u32 %s1911_s3, 4  ;;  %s6346_s4 = int_to_ptr.vmem [resolvable:$true] %s6345_s4 }
 0x91b   : > { %v5989_v19 = vmul.f32 %v7183_v11, %v5984_v27  ;;  %v7187_v11 = vld [vmem:[#allocation7] ss:$0 sm:$0xff]  ;;  %v6129_v27 = vperm.slane %v6108_v14, 2 }
 0x91d   : > { %v5994_v7 = vadd.f32 %v7184_v38, %v5989_v19 }
 0x91f   : > { %v5996_v2 = vmax.f32 %v5994_v7, 0.0 }
 0x921   : > { %v5998_v16 = vmin.f32 %v5996_v2, 6.0 }
 0x923   : > { %6877 = vmatmul.msk.f32.gmra.mxu3 %vm5947_vm9, %v5998_v16 }
 0x928   : > { %v6022_v28 = vpop.f32.mrf.mxu3 }
 0x929   : > { %v6031_v18 = vmul.f32 %v7185_v22, %v6022_v28 }
 0x92b   : > { %v6036_v44 = vadd.f32 %v7186_v49, %v6031_v18  ;;  %v7191_v18 = vld [vmem:[#allocation13] ss:$0 sm:$0xff] }
 0x92d   : > { %6038 = vst.msk [vmem:[#allocation2 + $0x1] sm:$0xff] %vm5947_vm9, %v6036_v44 }
 0x9a6   : > { %v6025_v30 = vpop.f32.mrf.mxu3 }
 0x9a7   : > { %v6032_v51 = vmul.f32 %v7185_v22, %v6025_v30  ;;  %v6193_v30 = vperm.slane %v6176_v62, 1 }
 0x9a9   : > { %v6037_v56 = vadd.f32 %v7186_v49, %v6032_v51  ;;  %v6197_v51 = vperm.slane %v6176_v62, 2 }
 0x9ab   : > { %6039 = vst.msk [vmem:[#allocation2 + $0x9] sm:$0xff] %vm5947_vm9, %v6037_v56 }
 0x9b2   : > { %v6054_v3 = vld [vmem:[#allocation2] ss:$2 sm:$0xff]  ;;  %v6057_v39 = vld [vmem:[#allocation2 + $0x1] ss:$2 sm:$0xff] }
 0x9b3   : > { %v6061_v59 = vld [vmem:[#allocation2 + $0x2] ss:$2 sm:$0xff]  ;;  %v6056_v52 = vmul.f32 %v6055_v12, %v6054_v3  ;;  %v6059_v24 = vmul.f32 %v6058_v40, %v6057_v39  ;;  %6175 = vst.msk [vmem:[#allocation2 + $0x5] sm:$0x1] %vm1918_vm1, %v11185_v37 }
 0x9b4   : > { %v6063_v23 = vmul.f32 %v6062_v9, %v6061_v59  ;;  %v7195_v59 = vld [vmem:[#allocation19] ss:$0 sm:$0xff] }
 0x9b5   : > { %v6060_v32 = vadd.f32 %v6059_v24, %v6056_v52  ;;  %v7196_v24 = vld [vmem:[#allocation21] ss:$0 sm:$0xff] }
 0x9b7   : > { %v6064_v50 = vadd.f32 %v6063_v23, %v6060_v32 }
 0x9b9   : > { %v6068_v5 = vmul.f32 %v7187_v11, %v6064_v50 }
 0x9bb   : > { %v6072_v38 = vadd.f32 %v7188_v48, %v6068_v5  ;;  %v7197_v48 = vld [vmem:[#allocation22] ss:$0 sm:$0xff]  ;;  %v7198_v5 = vld [vmem:[#allocation24] ss:$0 sm:$0xff] }
 0x9bd   : > { %v6073_v21 = vmax.f32 %v6072_v38, 0.0 }
 0x9bf   : > { %v6074_v26 = vmin.f32 %v6073_v21, 6.0 }
 0x9c1   : > { %6878 = vmatmul.msk.f32.vlgmr.msrb.gmra.mxu3 %vm5947_vm9, %v6074_v26 }
 0xa44   : > { %v6095_v33 = vpop.f32.mrf.mxu3 }
 0xa45   : > { %v6101_v4 = vmul.f32 %v7189_v43, %v6095_v33  ;;  %v7879_v43 = vmov 2.0  }
 0xa46   : > { %7201 = vrcp.f32 %v7879_v43 }
 0xa47   : > { %v6105_v13 = vadd.f32 %v7190_v10, %v6101_v4 }
 0xa49   : > { %6106 = vst.msk [vmem:[#allocation3 + $0x1] sm:$0xff] %vm5947_vm9, %v6105_v13 }
 0xa4c   : > { %v7202_v10 = vpop.eup %7201 }
 0xa4d   : > { %v6297_v13 = vmul.f32 2.0, %v7202_v10  ;;  %vm6301_vm13 = vweird.f32 %v7202_v10 }
 0xa50   : > { %v6121_v19 = vld [vmem:[#allocation3] ss:$2 sm:$0xf]  ;;  %v6124_v7 = vld [vmem:[#allocation3 + $0x1] ss:$2 sm:$0xf] }
 0xa51   : > { %v6123_v2 = vmul.f32 %v6122_v47, %v6121_v19  ;;  %v6126_v16 = vmul.f32 %v6125_v60, %v6124_v7  ;;  %v6128_v22 = vld [vmem:[#allocation3 + $0x2] ss:$2 sm:$0xf]  ;;  %6243 = vst.msk [vmem:[#allocation3 + $0x3] sm:$0x1] %vm1918_vm1, %v11185_v37  ;;  %v6298_v60 = vsub.f32 1.0, %v6297_v13 }
 0xa52   : > { %v6130_v28 = vmul.f32 %v6129_v27, %v6128_v22  ;;  %v7193_v37 = vld [vmem:[#allocation16] ss:$0 sm:$0xff] }
 0xa53   : > { %v6127_v49 = vadd.f32 %v6126_v16, %v6123_v2  ;;  %v6299_v7 = vmul.f32 %v7202_v10, %v6298_v60 }
 0xa55   : > { %v6131_v44 = vadd.f32 %v6130_v28, %v6127_v49  ;;  %v6300_v22 = vadd.f32 %v7202_v10, %v6299_v7 }
 0xa57   : > { %v6135_v25 = vmul.f32 %v7191_v18, %v6131_v44  ;;  %v6302_v18 = vsel %vm6301_vm13, %v7202_v10, %v6300_v22 }
 0xa59   : > { %v6139_v46 = vadd.f32 %v7192_v15, %v6135_v25  ;;  %v6308_v25 = vld [vmem:[#allocation28] sm:$0x1] }
 0xa5b   : > { %v6140_v8 = vmax.f32 %v6139_v46, 0.0 }
 0xa5d   : > { %v6141_v53 = vmin.f32 %v6140_v8, 6.0 }
 0xa5f   : > { %6879 = vmatmul.msk.f32.vlgmr.msra.gmra.mxu0 %vm5947_vm9, %v6141_v53 }
 0xadc   : > { %v6162_v1 = vpop.f32.mrf.mxu0 }
 0xadd   : > { %v6168_v58 = vmul.f32 %v7193_v37, %v6162_v1 }
 0xadf   : > { %v6172_v29 = vadd.f32 %v7194_v31, %v6168_v58 }
 0xae1   : > { %6174 = vst.msk [vmem:[#allocation2 + $0x1] sm:$0xf] %vm6173_vm10, %v6172_v29 }
 0xae8   : > { %v6189_v56 = vld [vmem:[#allocation2] ss:$2 sm:$0x3]  ;;  %v6192_v6 = vld [vmem:[#allocation2 + $0x1] ss:$2 sm:$0x3] }
 0xae9   : > { %v6191_v12 = vmul.f32 %v6190_v45, %v6189_v56  ;;  %v6194_v40 = vmul.f32 %v6193_v30, %v6192_v6  ;;  %v6196_v9 = vld [vmem:[#allocation2 + $0x2] ss:$2 sm:$0x3] }
 0xaea   : > { %v6198_v39 = vmul.f32 %v6197_v51, %v6196_v9 }
 0xaeb   : > { %v6195_v3 = vadd.f32 %v6194_v40, %v6191_v12 }
 0xaed   : > { %v6199_v52 = vadd.f32 %v6198_v39, %v6195_v3 }
 0xaef   : > { %v6203_v32 = vmul.f32 %v7195_v59, %v6199_v52 }
 0xaf1   : > { %v6207_v23 = vadd.f32 %v7196_v24, %v6203_v32 }
 0xaf3   : > { %v6208_v11 = vmax.f32 %v6207_v23, 0.0 }
 0xaf5   : > { %v6209_v50 = vmin.f32 %v6208_v11, 6.0 }
 0xaf7   : > { %6880 = vmatmul.msk.f32.vlgmr.msra.gmra.mxu1 %vm5947_vm9, %v6209_v50 }
 0xb74   : > { %v6230_v38 = vpop.f32.mrf.mxu1 }
 0xb75   : > { %v6236_v21 = vmul.f32 %v7197_v48, %v6230_v38 }
 0xb77   : > { %v6240_v26 = vadd.f32 %v7198_v5, %v6236_v21 }
 0xb79   : > { %6242 = vst.msk [vmem:[#allocation3 + $0x1] sm:$0x3] %vm6241_vm11, %v6240_v26 }
 0xb80   : > { %v6244_v57 = vld [vmem:[#allocation3 + $0x1] sm:$0x3] }
 0xb81   : > { %6881 = vmatmul.msk.f32.vlgmr.msra.gmra.mxu2 %vm5947_vm9, %v6244_v57 }
 0xc04   : > { %v6273_v42 = vpop.f32.mrf.mxu2 }
 0xc05   : > { %v6280_v33 = vmul.f32 %v7199_v63, %v6273_v42 }
 0xc07   : > { %v6285_v4 = vadd.f32 %v7200_v55, %v6280_v33 }
 0xc09   : > { %v6286_v14 = vmax.f32 %v6285_v4, 0.0 }
 0xc0b   : > { %v6287_v47 = vmin.f32 %v6286_v14, 6.0 }
 0xc0d   : > { %v6289_v27 = vsel %vm6288_vm12, %v6287_v47, 0.0 }
 0xc0e   : > { %v6290_v19 = vrot.slane %v6289_v27, 4 }
 0xc10   : > { %v6291_v2 = vadd.f32 %v6290_v19, %v6289_v27 }
 0xc12   : > { %v6292_v16 = vrot.slane %v6291_v2, 2 }
 0xc14   : > { %v6293_v49 = vadd.f32 %v6292_v16, %v6291_v2 }
 0xc16   : > { %v6294_v28 = vrot.slane %v6293_v49, 1 }
 0xc18   : > { %v6295_v44 = vadd.f32 %v6294_v28, %v6293_v49 }
 0xc1a   : > { %v6303_v15 = vmul.f32 %v6302_v18, %v6295_v44 }
 0xc1c   : > { %6882 = vmatmul.msk.f32.vlgmr.msra.gmra.mxu3 %vm2038_vm0, %v6303_v15 }
 0xc9f   : > { %v6329_v46 = vpop.f32.mrf.mxu3 }
 0xca0   : > { %v6330_v8 = vadd.f32 %v6329_v46, %v6308_v25 }
 0xca2   : > { %6333 = vst.msk [vmem:[%s1911_s3] sm:$0x1] %vm6332_vm14, %v6330_v8 }
 0xca3   : > { %7724 = shalt.err (!%p7721_p3)
}
 0xca4   : > { %6962 = dma.vmem_to_hbm [thread:$0]  (%p8213_p5), %s6346_s4, 16, %s6348_s5, %s6335_s6  }
 0xca5 PF: > { %s11221_s7 = sld [smem:[#allocation90_spill]] }
 0xca6   : > { %s11222_s3 = sld [smem:[#allocation87_spill]] }
 0xcab   : > { %p7049_p4 = scmp.ge.s32.totalorder %s11221_s7, 2 }
 0xcac   : > { %s6359_s11 = sand.u32 1, %s11222_s3  }
 0xcad   : > { %p7014_p7 = pnand %p7049_p4, %p8217_p6  ;;  %s6360_s15 = scalar_lea.sflag [#allocation6], %s6359_s11 }
 0xcaf   : > { %p7015_p8 = pneg %p7014_p7 }
 0xcb1   : > { %7778 = dma.done.wait (%p7015_p8), %s6360_s15, 16  }
 0xcb2   : > { %7780 = vsyncadd (%p7015_p8), %s6360_s15, 4294967280  ;;  %s11224_s15 = sld [smem:[#allocation91_spill]] }
 0xcb3   : > { %s11225_s7 = sld [smem:[#allocation88_spill]] }
 0xcb4   : > { %s11226_s10 = sld [smem:[#allocation89_spill]] }
 0xcb5   : > { %s11227_s11 = sld [smem:[#allocation92_spill]] }
 0xcb8   : > { %p134_p11 = scmp.ge.s32.totalorder %s11224_s15, 4  }
 0xcba   :  { %136 = sbr.rel (!%p134_p11) target bundleno = 129 (0x81), region = 480 }
 0xcbf   :  { %6365 = vsyncpa [#allocation5], 1 }
 0xcc0   :  { %6367 = vsyncpa [#allocation5 + $0x1], 1 }
 0xcc1   :  { %6368 = vsyncpa [#allocation8], 1 }
 0xcc2   :  { %6369 = vsyncpa [#allocation11], 1 }
 0xcc3   :  { %6370 = vsyncpa [#allocation14], 1 }
 0xcc4   :  { %6371 = vsyncpa [#allocation17], 1 }
 0xcc5   :  { %6372 = vsyncpa [#allocation20], 1 }
 0xcc6   :  { %6373 = vsyncpa [#allocation23], 1 }
 0xcc7   :  { %6374 = vsyncpa [#allocation26], 1 }
 0xcc8   :  { %6375 = vsyncpa [#allocation29], 1 }
 0xcc9   :  { %6376 = vsyncpa [#allocation6], 1 }
 0xcca   :  { %6378 = vsyncpa [#allocation6 + $0x1], 1 }

</bundles_post_ra>
